<compile_context>
chip_gen: v7x
topology: tpu7x:2x2x1
jax: 0.10.0
libtpu: 0.0.40
codegen_flags: <defaults>
</compile_context>

<pallas_src>
import jax
import jax.numpy as jnp
from jax import lax
from jax.experimental import pallas as pl
from jax.experimental.pallas import tpu as pltpu


def _round_up(x, m):
    return ((x + m - 1) // m) * m


def _conv1x1_kernel(x_ref, w_ref, b_ref, o_ref):
    # x_ref: (Cin, TP)   w_ref: (Cout, Cin)   b_ref: (Cout, 1)   o_ref: (Cout, TP)
    #
    # NOTE: in the ragged last pixel tile, lanes beyond p hold undefined data;
    # they are multiplied and then masked on store (correct for this pure
    # per-pixel GEMM).  Do NOT add any reduction across the pixel axis here
    # without masking those lanes first.
    acc = jnp.dot(w_ref[...], x_ref[...],
                  preferred_element_type=jnp.float32,
                  precision=lax.Precision.HIGHEST)
    o_ref[...] = (acc + b_ref[...]).astype(o_ref.dtype)


def conv2d_1x1(x_nchw, weight, bias, *, tile_p=2048, min_pixels=128,
               min_grid_steps=4):
    """1x1 stride-1 Conv2d.

    x_nchw : (N, Cin, H, W)  float32
    weight : (Cout, Cin, 1, 1)
    bias   : (Cout,)
    returns: (N, Cout, H, W)
    """
    n, cin, h, w = x_nchw.shape
    cout = weight.shape[0]
    p = h * w
    w_mat = weight.reshape(cout, cin)

    if p < min_pixels or n == 0:
        # Tiny spatial extent (including the module's literal [1,34,1,1]
        # input): a custom call is pure launch overhead, and large-N/tiny-HW
        # shapes would produce almost-fully-masked stores.  Plain XLA wins.
        out = jnp.einsum("oi,nihw->nohw", w_mat, x_nchw,
                         precision=lax.Precision.HIGHEST)
        return (out + bias.reshape(1, cout, 1, 1)).astype(x_nchw.dtype)

    # NCHW -> (N, Cin, P) is a pure reshape (no data movement).
    x3 = x_nchw.reshape(n, cin, p)
    b_col = bias.reshape(cout, 1)

    # Balanced, lane-dense pixel tiles; ensure enough grid steps for v7x's two
    # TensorCores and for DMA/compute/writeback overlap on small shapes.
    num_tiles = max(pl.cdiv(p, tile_p), pl.cdiv(min_grid_steps, n))
    num_tiles = min(num_tiles, pl.cdiv(p, 128))      # keep every tile >= 128 lanes
    tp = _round_up(pl.cdiv(p, num_tiles), 128)
    grid = (n, pl.cdiv(p, tp))

    flops = 2 * n * p * cin * cout
    bytes_accessed = 4 * n * p * (cin + cout) + 4 * cout * (cin + 1)

    out3 = pl.pallas_call(
        _conv1x1_kernel,
        out_shape=jax.ShapeDtypeStruct((n, cout, p), x_nchw.dtype),
        grid_spec=pltpu.PrefetchScalarGridSpec(
            num_scalar_prefetch=0,
            grid=grid,
            in_specs=[
                pl.BlockSpec((None, cin, tp), lambda i, j: (i, 0, j)),
                pl.BlockSpec((cout, cin), lambda i, j: (0, 0)),   # VMEM-resident
                pl.BlockSpec((cout, 1), lambda i, j: (0, 0)),     # VMEM-resident
            ],
            out_specs=pl.BlockSpec((None, cout, tp), lambda i, j: (i, 0, j)),
        ),
        compiler_params=pltpu.CompilerParams(
            dimension_semantics=("parallel", "parallel"),
            vmem_limit_bytes=40 << 20),
        cost_estimate=pl.CostEstimate(flops=flops, transcendentals=0,
                                      bytes_accessed=bytes_accessed),
    )(x3, w_mat, b_col)

    return out3.reshape(n, cout, h, w)


if __name__ == "__main__":
    key = jax.random.PRNGKey(0)
    k_x1, k_x2, k_w, k_b = jax.random.split(key, 4)

    CIN, COUT = 34, 816
    bound = 1.0 / float(jnp.sqrt(jnp.float32(CIN)))
    weight = jax.random.uniform(k_w, (COUT, CIN, 1, 1), jnp.float32,
                                minval=-bound, maxval=bound)
    bias = jax.random.uniform(k_b, (COUT,), jnp.float32,
                              minval=-bound, maxval=bound)

    def ref_conv(x):
        out = jnp.einsum("oi,nihw->nohw", weight.reshape(COUT, CIN), x,
                         precision=lax.Precision.HIGHEST)
        return out + bias.reshape(1, COUT, 1, 1)

    # 1) Literal module shape [1, 34, 1, 1]: tiny-spatial -> plain-XLA path.
    x_small = jax.random.normal(k_x1, (1, CIN, 1, 1), dtype=jnp.float32)
    out_small = conv2d_1x1(x_small, weight, bias)
    jax.block_until_ready(out_small)
    assert out_small.shape == (1, COUT, 1, 1)
    assert jnp.allclose(out_small, ref_conv(x_small), atol=1e-5, rtol=1e-5)

    # 2) Small spatial shape exercising the tiled Pallas kernel
    #    (N>1, balanced tiles, ragged last pixel tile, 4 grid steps).
    N, H, W = 2, 24, 24                      # P = 576, TP = 384, grid = (2, 2)
    x_big = jax.random.normal(k_x2, (N, CIN, H, W), dtype=jnp.float32)
    out_big = conv2d_1x1(x_big, weight, bias)
    jax.block_until_ready(out_big)
    assert out_big.shape == (N, COUT, H, W)
    assert jnp.allclose(out_big, ref_conv(x_big), atol=1e-5, rtol=1e-5)

    print("KERNEL_OK")
</pallas_src>

<mosaic_0001>
module attributes {stable_mosaic.version = 11 : i64} {
  func.func @_conv1x1_kernel(%arg0: i32, %arg1: i32, %arg2: memref<1x34x384xf32, #tpu.memory_space<vmem>>, %arg3: memref<816x34xf32, #tpu.memory_space<vmem>>, %arg4: memref<816x1xf32, #tpu.memory_space<vmem>>, %arg5: memref<1x816x384xf32, #tpu.memory_space<vmem>>) attributes {dimension_semantics = [#tpu.dimension_semantics<parallel>, #tpu.dimension_semantics<parallel>], iteration_bounds = array<i64: 2, 2>, scalar_prefetch = 0 : i64, scratch_operands = 0 : i64, tpu.core_type = #tpu.core_type<tc>, window_params = [{transform_indices = @transform_0, window_bounds = array<i64: 1, 34, 384>}, {pipeline_mode = #tpu.pipeline_mode<synchronous>, transform_indices = @transform_1, window_bounds = array<i64: 816, 34>}, {pipeline_mode = #tpu.pipeline_mode<synchronous>, transform_indices = @transform_2, window_bounds = array<i64: 816, 1>}, {transform_indices = @transform_3, window_bounds = array<i64: 1, 816, 384>}]} {
    %c0 = arith.constant 0 : index
    %c0_0 = arith.constant 0 : index
    %0 = vector.load %arg3[%c0, %c0_0] : memref<816x34xf32, #tpu.memory_space<vmem>>, vector<816x34xf32>
    %c0_1 = arith.constant 0 : index
    %c0_2 = arith.constant 0 : index
    %c0_3 = arith.constant 0 : index
    %1 = vector.load %arg2[%c0_1, %c0_2, %c0_3] : memref<1x34x384xf32, #tpu.memory_space<vmem>>, vector<1x34x384xf32>
    %2 = vector.shape_cast %1 : vector<1x34x384xf32> to vector<34x384xf32>
    %cst = arith.constant dense<0.000000e+00> : vector<816x384xf32>
    %3 = tpu.matmul %0, %2, %cst {dimension_numbers = #tpu.dot_dimension_numbers<[1], [0], [0], [1], [0, 0, 1, 1], [], []>, precision = #tpu.contract_precision<fp32>} : vector<816x34xf32>, vector<34x384xf32>, vector<816x384xf32> -> vector<816x384xf32>
    %c0_4 = arith.constant 0 : index
    %c0_5 = arith.constant 0 : index
    %4 = vector.load %arg4[%c0_4, %c0_5] : memref<816x1xf32, #tpu.memory_space<vmem>>, vector<816x1xf32>
    %5 = vector.broadcast %4 : vector<816x1xf32> to vector<816x384xf32>
    %6 = arith.addf %3, %5 : vector<816x384xf32>
    %c0_6 = arith.constant 0 : index
    %c0_7 = arith.constant 0 : index
    %c0_8 = arith.constant 0 : index
    %7 = vector.load %arg5[%c0_6, %c0_7, %c0_8] : memref<1x816x384xf32, #tpu.memory_space<vmem>>, vector<1x816x384xf32>
    %8 = vector.shape_cast %7 : vector<1x816x384xf32> to vector<816x384xf32>
    %9 = vector.shape_cast %6 : vector<816x384xf32> to vector<1x816x384xf32>
    tpu.vector_store %arg5[%c0_6, %c0_7, %c0_8], %9 {strides = array<i32>} : memref<1x816x384xf32, #tpu.memory_space<vmem>>, vector<1x816x384xf32>,
    return
  }
  func.func @transform_0(%arg0: i32, %arg1: i32) -> (i32, i32, i32) {
    %c0_i32 = arith.constant 0 : i32
    %c0_i32_0 = arith.constant 0 : i32
    return %arg0, %c0_i32, %arg1 : i32, i32, i32
  }
  func.func @transform_1(%arg0: i32, %arg1: i32) -> (i32, i32) {
    %c0_i32 = arith.constant 0 : i32
    %c0_i32_0 = arith.constant 0 : i32
    %c0_i32_1 = arith.constant 0 : i32
    return %c0_i32, %c0_i32_0 : i32, i32
  }
  func.func @transform_2(%arg0: i32, %arg1: i32) -> (i32, i32) {
    %c0_i32 = arith.constant 0 : i32
    %c0_i32_0 = arith.constant 0 : i32
    %c0_i32_1 = arith.constant 0 : i32
    return %c0_i32, %c0_i32_0 : i32, i32
  }
  func.func @transform_3(%arg0: i32, %arg1: i32) -> (i32, i32, i32) {
    %c0_i32 = arith.constant 0 : i32
    %c0_i32_0 = arith.constant 0 : i32
    return %arg0, %c0_i32, %arg1 : i32, i32, i32
  }
}

</mosaic_0001>

<bundles_post_ra>
// kernel: tpu_custom_call.1
= control target key start
LH: loop header
LB: loop body
LE: loop exit
PB: predicated region body
PF: predicated region fallthrough
CT: control target
= control target key end

     0   :  { %s24621_s0 = inlined_call_operand.vmem [shape: f32[2,34,576], index: 0, kind: input, shape index: {}]   ;;  %s24622_s1 = inlined_call_operand.vmem [shape: f32[816,34], index: 1, kind: input, shape index: {}]   ;;  %s24623_s2 = inlined_call_operand.vmem [shape: f32[816,1], index: 2, kind: input, shape index: {}]   ;;  %s24624_s3 = inlined_call_operand.vmem [shape: f32[2,816,576], index: 3, kind: output, shape index: {}]  }
   0x1   :  { %25345 = sst [smem:[#allocation520_spill]] %s24621_s0 }
   0x2   :  { %s17631_s12 = smov 0   ;;  %s17633_s13 = smov 0  }
   0x3   :  { %s17635_s14 = smov 0   ;;  %s17637_s15 = smov 0  }
   0x4   :  { %s17639_s16 = smov 0   ;;  %s17641_s17 = smov 0  }
   0x5   :  { %s17643_s18 = smov 0  }
   0x6 LB: > { %s22_s19 = sadd.s32 1, %s17531_s16  ;;  %s25_s20 = sadd.s32 1, %s17535_s17  ;;  %s17539_s18 = sphi %s17643_s18, %s13_s18   ;;  %s17535_s17 = sphi %s17641_s17, %s26942_s17   ;;  %s17531_s16 = sphi %s17639_s16, %s26941_s16   ;;  %s17527_s15 = sphi %s17637_s15, %s26940_s15   ;;  %s17523_s14 = sphi %s17635_s14, %s26939_s14   ;;  %s17519_s13 = sphi %s17633_s13, %s26938_s13   ;;  %s17515_s12 = sphi %s17631_s12, %s26937_s12  }
   0x7   : > { %p23_p0 = scmp.ge.s32.totalorder %s22_s19, 2  ;;  %s13521_s21 = sadd.s32 4294967295, %s17539_s18  }
   0x8   : > { %p41_p1 = scmp.ne.s32.totalorder %s17519_s13, %s17515_s12  ;;  %p42_p2 = scmp.eq.s32.totalorder %s17539_s18, 0 }
   0x9   : > { %s26944_s19 = smov (%p23_p0, %s22_s19), 0  ;;  %s26946_s20 = smov (!%p23_p0, %s25_s20), %s17535_s17 }
   0xa   : > { %p27_p3 = scmp.ge.s32.totalorder %s26946_s20, 2  ;;  %p115_p4 = scmp.eq.s32.totalorder %s13521_s21, 3 }
   0xb   : > { %s30_s22 = ssub.s32 %s17531_s16, %s26944_s19  ;;  %p43_p5 = por %p42_p2, %p41_p1 }
   0xc   : > { %s26948_s20 = smov (%p27_p3, %s26946_s20), 0  ;;  %p17679_p6 = por %p115_p4, %p41_p1 }
   0xd   : > { %s29_s24 = ssub.s32 %s17535_s17, %s26948_s20  ;;  %s34_s26 = sadd.s32 1, %s17519_s13 }
   0xe   : > { %s31_s25 = sor.u32 %s30_s22, %s29_s24  ;;  %p13524_p8 = scmp.ge.s32.totalorder %s17539_s18, 4 }
   0xf   : > { %p32_p7 = scmp.eq.s32.totalorder %s31_s25, 0 }
  0x10   : > { %143 = sbr.rel (%p13524_p8) target bundleno = 114 (0x72), region = 24 }
  0x11   : > { %s17687_s27 = scalar_select %p32_p7, %s17519_s13, %s34_s26  }
  0x17   : > { %146 = sbr.rel (!%p43_p5) target bundleno = 114 (0x72), region = 28  ;;  %s148_s28 = sand.u32 (%p43_p5), 1, %s17519_s13  }
  0x18   : > { %s151_s29 = smul.u32 (%p43_p5), 3, %s17531_s16  ;;  %s25347_s0 = sld [smem:[#allocation520_spill]] (%p43_p5) }
  0x19   : > { %s17126_s30 = smul.u32 (%p43_p5), 120, %s148_s28 }
  0x1a   : > { %s152_s4 = ssub.s32 (%p43_p5), 5, %s151_s29  ;;  %s17127_s5 = smul.u32 (%p43_p5), 25, %s17535_s17 }
  0x1b   : > { %p153_p9 = scmp.lt.s32.totalorder (%p43_p5), %s152_s4, 3  ;;  %s17700_s22 = scalar_lea.vmem (%p43_p5), [#allocation2], %s17126_s30  }
  0x1c   : > { %s158_s6 = sadd.s32 (%p43_p5), %s17127_s5, %s151_s29 }
  0x1d   : > { %s13526_s7 = sshll.u32 (%p43_p5), %s158_s6, 3 }
  0x1e   : > { %s26950_s4 = smov (!%p153_p9, %s152_s4), 3  ;;  %s17696_s11 = scalar_lea.vmem %s25347_s0, %s13526_s7  }
  0x1f   : > { %s155_s8 = smul.u32 640, %s26950_s4  ;;  %s17698_s21 = sshll.u32 %s26950_s4, 3 }
  0x21   : > { %p13528_p10 = scmp.eq.s32.totalorder %s155_s8, 0 }
  0x22   : > { %p165_p11 = scmp.lt.u32.totalorder (!%p13528_p10), %s17698_s21, 8 }
  0x23   : > { %164 = sbr.rel (%p13528_p10) target bundleno = 114 (0x72), region = 32 }
  0x2a   : > { %168 = sbr.rel (%p165_p11) target bundleno = 105 (0x69), region = 36  ;;  %s17704_s24 = sand.u32 (!%p165_p11), 7, %s17698_s21  }
  0x2b   : > { %p192_p12 = scmp.eq.s32.totalorder (!%p165_p11), %s17704_s24, 0  ;;  %p13529_p13 = scmp.ne.s32.totalorder (!%p165_p11), %s17704_s24, 0 }
  0x31   : > { %195 = sbr.rel (%p13529_p13) target bundleno = 73 (0x49), region = 51  ;;  %s196_s25 = sshrl.u32 (!%p13529_p13), %s17698_s21, 3 }
  0x32   : > { %s197_s26 = sshrl.u32 (!%p13529_p13), %s196_s25, 4  ;;  %s17709_s28 = sand.u32 (!%p13529_p13), 15, %s196_s25  }
  0x33   : > { %s13564_s29 = sshll.u32 (!%p13529_p13), %s197_s26, 11  ;;  %p13536_p0 = scmp.le.s32.totalorder (!%p13529_p13), %s17709_s28, 0 }
  0x34   : > { %s380_s30 = sshra.s32 (!%p13529_p13), %s13564_s29, 4 }
  0x35   : > { %s17712_s4 = scalar_lea.vmem (!%p13529_p13), %s17696_s11, %s380_s30   ;;  %s17715_s5 = scalar_lea.vmem (!%p13529_p13), %s17700_s22, %s380_s30 [#allocation2]  }
  0x38   : > { %13424 = sbr.rel (%p13536_p0) target bundleno = 73 (0x49), region = 218  ;;  %s25348_s6 = smov (!%p13536_p0), %s17715_s5 }
  0x39   : > { %s25349_s7 = smov (!%p13536_p0), %s17712_s4  ;;  %s17724_s8 = smov (!%p13536_p0), 0  }
  0x3a   : > { %s17726_s9 = smov (!%p13536_p0), 0  }
  0x3f LB: >> { %v396_v0 = vld [vmem:[%s17547_s7] sm:$0xff]  ;;  %v398_v1 = vld [vmem:[%s17547_s7 + $0x28] sm:$0xff]  ;;  %v400_v2 = vld [vmem:[%s17547_s7 + $0x50] sm:$0xff]  ;;  %s406_s10 = sadd.s32 1, %s17551_s8  ;;  %s390_s9 = sadd.s32 1, %s17555_s9   ;;  %s17555_s9 = sphi %s17726_s9, %s390_s9   ;;  %s17551_s8 = sphi %s17724_s8, %s25350_s8   ;;  %s17547_s7 = sphi %s25349_s7, %s411_s7   ;;  %s17543_s6 = sphi %s25348_s6, %s412_s6  }
  0x40   : >> { %397 = vst [vmem:[%s17543_s6] sm:$0xff] %v396_v0  ;;  %399 = vst [vmem:[%s17543_s6 + $0x18] sm:$0xff] %v398_v1  ;;  %v402_v3 = vld [vmem:[%s17547_s7 + $0x78] sm:$0xff]  ;;  %v404_v4 = vld [vmem:[%s17547_s7 + $0xa0] sm:$0xff]  ;;  %p407_p1 = scmp.ge.s32.totalorder %s406_s10, %s17709_s28  ;;  %p389_p2 = scmp.ge.s32.totalorder %s390_s9, %s17709_s28 }
  0x41   : >> { %401 = vst [vmem:[%s17543_s6 + $0x30] sm:$0xff] %v400_v2  ;;  %403 = vst [vmem:[%s17543_s6 + $0x48] sm:$0xff] %v402_v3 }
  0x42   : >> { %405 = vst [vmem:[%s17543_s6 + $0x60] sm:$0xff] %v404_v4  ;;  %s26952_s10 = smov (%p407_p1, %s406_s10), 0  ;;  %392 = sbr.rel (!%p389_p2) target bundleno = 63 (0x3f), region = 224 }
  0x43   : >> { %s13537_s25 = sshll.u32 %s26952_s10, 3  ;;  %s25350_s8 = smov %s26952_s10 }
  0x44   : >> { %s411_s7 = scalar_lea.vmem %s17712_s4, %s13537_s25   ;;  %s412_s6 = scalar_lea.vmem %s17715_s5, %s13537_s25 [#allocation2]  }
  0x49 PF: > { %415 = sbr.rel (%p192_p12) target bundleno = 105 (0x69), region = 69  ;;  %s417_s26 = ssub.s32 (!%p192_p12), %s17698_s21, %s17704_s24 }
  0x4a   : > { %s421_s29 = sshrl.u32 (!%p192_p12), %s17698_s21, 3  ;;  %s17750_s30 = scalar_lea.vmem (!%p192_p12), %s17696_s11, %s417_s26 }
  0x4b   : > { %s17753_s10 = scalar_lea.vmem (!%p192_p12), %s17700_s22, %s417_s26 [#allocation2]  ;;  %s422_s9 = sshrl.u32 (!%p192_p12), %s421_s29, 4 }
  0x4c   : > { %s17755_s25 = sand.u32 (!%p192_p12), 15, %s421_s29   ;;  %s13566_s28 = sshll.u32 (!%p192_p12), %s422_s9, 11 }
  0x4d   : > { %s605_s4 = sshra.s32 (!%p192_p12), %s13566_s28, 4  ;;  %p13545_p3 = scmp.le.s32.totalorder (!%p192_p12), %s17755_s25, 0 }
  0x4e   : > { %s17758_s5 = scalar_lea.vmem (!%p192_p12), %s17696_s11, %s605_s4   ;;  %s17761_s6 = scalar_lea.vmem (!%p192_p12), %s17700_s22, %s605_s4 [#allocation2]  }
  0x50   : > { %13452 = sbr.rel (%p13545_p3) target bundleno = 97 (0x61), region = 240  ;;  %s25351_s7 = smov (!%p13545_p3), %s17761_s6 }
  0x51   : > { %s25352_s8 = smov (!%p13545_p3), %s17758_s5  ;;  %s17770_s26 = smov (!%p13545_p3), 0  }
  0x52   : > { %s17772_s0 = smov (!%p13545_p3), 0  }
  0x57 LB: >> { %v621_v5 = vld [vmem:[%s17563_s8] sm:$0xff]  ;;  %v623_v6 = vld [vmem:[%s17563_s8 + $0x28] sm:$0xff]  ;;  %v625_v7 = vld [vmem:[%s17563_s8 + $0x50] sm:$0xff]  ;;  %s631_s29 = sadd.s32 1, %s17567_s26  ;;  %s615_s0 = sadd.s32 1, %s17571_s0   ;;  %s17571_s0 = sphi %s17772_s0, %s615_s0   ;;  %s17567_s26 = sphi %s17770_s26, %s25353_s26   ;;  %s17563_s8 = sphi %s25352_s8, %s636_s8   ;;  %s17559_s7 = sphi %s25351_s7, %s637_s7  }
  0x58   : >> { %622 = vst [vmem:[%s17559_s7] sm:$0xff] %v621_v5  ;;  %624 = vst [vmem:[%s17559_s7 + $0x18] sm:$0xff] %v623_v6  ;;  %v627_v8 = vld [vmem:[%s17563_s8 + $0x78] sm:$0xff]  ;;  %v629_v9 = vld [vmem:[%s17563_s8 + $0xa0] sm:$0xff]  ;;  %p632_p4 = scmp.ge.s32.totalorder %s631_s29, %s17755_s25  ;;  %p614_p5 = scmp.ge.s32.totalorder %s615_s0, %s17755_s25 }
  0x59   : >> { %626 = vst [vmem:[%s17559_s7 + $0x30] sm:$0xff] %v625_v7  ;;  %628 = vst [vmem:[%s17559_s7 + $0x48] sm:$0xff] %v627_v8 }
  0x5a   : >> { %630 = vst [vmem:[%s17559_s7 + $0x60] sm:$0xff] %v629_v9  ;;  %s26954_s29 = smov (%p632_p4, %s631_s29), 0  ;;  %617 = sbr.rel (!%p614_p5) target bundleno = 87 (0x57), region = 246 }
  0x5b   : >> { %s13546_s9 = sshll.u32 %s26954_s29, 3  ;;  %s25353_s26 = smov %s26954_s29 }
  0x5c   : >> { %s636_s8 = scalar_lea.vmem %s17758_s5, %s13546_s9   ;;  %s637_s7 = scalar_lea.vmem %s17761_s6, %s13546_s9 [#allocation2]  }
  0x61 PF: > { %s17605_s28 = smov 0  }
  0x62   : > { %s638_s4 = sshllo.u32 %s17605_s28, %s17704_s24 }
  0x63   : > { %v647_v10 = vld [vmem:[%s17750_s30] sm:%s638_s4]  ;;  %v649_v11 = vld [vmem:[%s17750_s30 + $0x28] sm:%s638_s4] }
  0x64   : > { %648 = vst [vmem:[%s17753_s10] sm:%s638_s4] %v647_v10  ;;  %650 = vst [vmem:[%s17753_s10 + $0x18] sm:%s638_s4] %v649_v11 }
  0x65   : > { %v651_v12 = vld [vmem:[%s17750_s30 + $0x50] sm:%s638_s4]  ;;  %v653_v13 = vld [vmem:[%s17750_s30 + $0x78] sm:%s638_s4] }
  0x66   : > { %652 = vst [vmem:[%s17753_s10 + $0x30] sm:%s638_s4] %v651_v12  ;;  %654 = vst [vmem:[%s17753_s10 + $0x48] sm:%s638_s4] %v653_v13 }
  0x67   : > { %v655_v14 = vld [vmem:[%s17750_s30 + $0xa0] sm:%s638_s4] }
  0x68   : > { %656 = vst [vmem:[%s17753_s10 + $0x60] sm:%s638_s4] %v655_v14 }
  0x69 PF: > { %p13548_p7 = scmp.ge.u32.totalorder %s17698_s21, 8 }
  0x6a   : > { %s17606_s0 = smov (!%p13548_p7), 0  }
  0x6b   : > { %171 = sbr.rel (%p13548_p7) target bundleno = 114 (0x72), region = 40  ;;  %s172_s24 = sshllo.u32 (!%p13548_p7), %s17606_s0, %s17698_s21 }
  0x6c   : > { %v181_v15 = vld [vmem:[%s17696_s11] sm:%s172_s24] (!%p13548_p7)  ;;  %v183_v16 = vld [vmem:[%s17696_s11 + $0x28] sm:%s172_s24] (!%p13548_p7) }
  0x6d   : > { %182 = vst [vmem:[%s17700_s22] sm:%s172_s24] (!%p13548_p7), %v181_v15  ;;  %184 = vst [vmem:[%s17700_s22 + $0x18] sm:%s172_s24] (!%p13548_p7), %v183_v16 }
  0x6e   : > { %v185_v17 = vld [vmem:[%s17696_s11 + $0x50] sm:%s172_s24] (!%p13548_p7)  ;;  %v187_v18 = vld [vmem:[%s17696_s11 + $0x78] sm:%s172_s24] (!%p13548_p7) }
  0x6f   : > { %186 = vst [vmem:[%s17700_s22 + $0x30] sm:%s172_s24] (!%p13548_p7), %v185_v17  ;;  %188 = vst [vmem:[%s17700_s22 + $0x48] sm:%s172_s24] (!%p13548_p7), %v187_v18 }
  0x70   : > { %v189_v19 = vld [vmem:[%s17696_s11 + $0xa0] sm:%s172_s24] (!%p13548_p7) }
  0x71   : > { %190 = vst [vmem:[%s17700_s22 + $0x60] sm:%s172_s24] (!%p13548_p7), %v189_v19 }
  0x72 PF: > { %p13549_p8 = scmp.ge.s32.totalorder %s17539_s18, 1  ;;  %p659_p9 = scmp.lt.s32.totalorder %s17539_s18, 5 }
  0x74   : > { %p660_p10 = pnand %p13549_p8, %p659_p9 }
  0x76   : > { %663 = sbr.rel (%p660_p10) target bundleno = 2563 (0xa03), region = 94 }
  0x7d   : > { %s666_s21 = sand.u32 1, %s17515_s12   ;;  %v698_v20 = vld [vmem:[%s24622_s1] sm:$0xff]  ;;  %vm1427_vm0 = vcmask 277504   ;;  %v699_v21 = vld [vmem:[%s24622_s1 + $0x8] sm:$0xff]  ;;  %v24645_v22 = vmov 0.0   ;;  %v700_v25 = vld [vmem:[%s24622_s1 + $0x10] sm:$0xff] }
  0x7e   : > { %s17128_s25 = smul.u32 120, %s666_s21  ;;  %1818 = vmatprep.mubr.f32.mxu1 %v24645_v22  ;;  %v1429_v23 = vsel %vm1427_vm0, %v698_v20, 0  ;;  %v1432_v24 = vsel %vm1427_vm0, %v699_v21, 0  ;;  %3055 = vmatprep.mubr.f32.mxu0 %v24645_v22  ;;  %v701_v26 = vld [vmem:[%s24622_s1 + $0x18] sm:$0xff]  ;;  %v702_v27 = vld [vmem:[%s24622_s1 + $0x20] sm:$0xff]  ;;  %v1435_v30 = vsel %vm1427_vm0, %v700_v25, 0 }
  0x7f   : > { %v17837_v28 = vand.u32 4294901760, %v1429_v23  ;;  %v17839_v29 = vand.u32 4294901760, %v1432_v24  ;;  %v17843_v31 = vsel %vm1427_vm0, %v701_v26, 0  ;;  %v703_v32 = vld [vmem:[%s24622_s1 + $0x28] sm:$0xff]  ;;  %vm1734_vm1 = vcmask 1041408   ;;  %s17129_s10 = smul.u32 2448, %s666_s21 }
  0x80   : > { %v17849_v33 = vsel %vm1427_vm0, %v702_v27, 0  ;;  %v17852_v34 = vsel %vm1427_vm0, %v703_v32, 0  ;;  %s17854_s4 = scalar_lea.vmem [#allocation2], %s17128_s25  ;;  %v17862_v39 = vand.u32 4294901760, %v1435_v30  ;;  %v17865_v40 = vand.u32 4294901760, %v17843_v31  ;;  %s12416_s21 = smul.u32 (%p17679_p6), 3, %s17523_s14 }
  0x81   : > { %25354 = vst [vmem:[#allocation4_spill] sm:$0xff] %v17837_v28  ;;  %25355 = vst [vmem:[#allocation5_spill] sm:$0xff] %v17839_v29  ;;  %v801_v35 = vld [vmem:[%s17854_s4 + $0x8] sm:$0xff]  ;;  %v804_v36 = vld [vmem:[%s17854_s4 + $0x20] sm:$0xff]  ;;  %v17860_v38 = vsub.f32 %v1429_v23, %v17837_v28  ;;  %v17868_v41 = vand.u32 4294901760, %v17849_v33  ;;  %v17874_v48 = vsub.f32 %v1432_v24, %v17839_v29  ;;  %v17879_v54 = vand.u32 4294901760, %v17852_v34 }
  0x82   : > { %v800_v37 = vld [vmem:[%s17854_s4] sm:$0xff]  ;;  %25357 = vst [vmem:[#allocation7_spill] sm:$0xff] %v17862_v39  ;;  %25358 = vst [vmem:[#allocation8_spill] sm:$0xff] %v17865_v40  ;;  %v1744_v42 = vand.u32 4294901760, %v801_v35  ;;  %v1748_v43 = vand.u32 4294901760, %v804_v36  ;;  %v803_v44 = vld [vmem:[%s17854_s4 + $0x18] sm:$0xff]  ;;  %v17910_v8 = vsub.f32 %v1435_v30, %v17862_v39 }
  0x83   : > { %25356 = vst [vmem:[#allocation6_spill] sm:$0xff] %v17860_v38  ;;  %25359 = vst [vmem:[#allocation9_spill] sm:$0xff] %v17868_v41  ;;  %v1746_v45 = vand.u32 4294901760, %v800_v37  ;;  %v807_v46 = vld [vmem:[%s17854_s4 + $0x38] sm:$0xff]  ;;  %v810_v47 = vld [vmem:[%s17854_s4 + $0x50] sm:$0xff]  ;;  %v1750_v49 = vand.u32 4294901760, %v803_v44 }
  0x84   : > { %25360 = vst [vmem:[#allocation10_spill] sm:$0xff] %v17874_v48  ;;  %v1752_v50 = vand.u32 4294901760, %v807_v46  ;;  %v1756_v51 = vand.u32 4294901760, %v810_v47  ;;  %v806_v52 = vld [vmem:[%s17854_s4 + $0x30] sm:$0xff]  ;;  %v809_v53 = vld [vmem:[%s17854_s4 + $0x48] sm:$0xff]  ;;  %25361 = vst [vmem:[#allocation11_spill] sm:$0xff] %v17879_v54  ;;  %v17881_v55 = vpack.c.bf16 %v1748_v43, %v1744_v42  ;;  %v17883_v56 = vsub.f32 %v801_v35, %v1744_v42 }
  0x85   : > { %v17885_v57 = vsub.f32 %v804_v36, %v1748_v43  ;;  %v813_v58 = vld [vmem:[%s17854_s4 + $0x68] sm:$0x3]  ;;  %v17889_v59 = vand.u32 4294901760, %v17860_v38  ;;  %v17891_v60 = vpack.c.bf16 %v1750_v49, %v1746_v45  ;;  %v17893_v61 = vsub.f32 %v800_v37, %v1746_v45  ;;  %v812_v4 = vld [vmem:[%s17854_s4 + $0x60] sm:$0x3]  ;;  %25372 = vst [vmem:[#allocation22_spill] sm:$0xff] %v17910_v8 }
  0x86   : > { %25362 = vst [vmem:[#allocation12_spill] sm:$0xff] %v17881_v55  ;;  %25363 = vst [vmem:[#allocation13_spill] sm:$0xff] %v17883_v56  ;;  %v17895_v62 = vsub.f32 %v803_v44, %v1750_v49  ;;  %v17897_v63 = vpack.c.bf16 %v1756_v51, %v1752_v50  ;;  %15189 = vmatprep.subr.bf16.mxu1 %v17881_v55  ;;  %v17900_v0 = vsub.f32 %v807_v46, %v1752_v50  ;;  %s22102_s12 = scalar_lea.vmem [#allocation3], %s17129_s10   ;;  %s17130_s11 = smul.u32 (%p17679_p6), 510, %s17527_s15 }
  0x87   : > { %25364 = vst [vmem:[#allocation14_spill] sm:$0xff] %v17885_v57  ;;  %25365 = vst [vmem:[#allocation15_spill] sm:$0xff] %v17889_v59  ;;  %v1754_v1 = vand.u32 4294901760, %v806_v52  ;;  %v1758_v2 = vand.u32 4294901760, %v809_v53  ;;  %v1739_v3 = vsel %vm1734_vm1, %v813_v58, 0  ;;  %15191 = vmatpush1.bf16.msra.mxu1 %v17891_v60  ;;  %v17905_v5 = vsub.f32 %v810_v47, %v1756_v51  ;;  %s12417_s22 = ssub.s32 (%p17679_p6), 5, %s12416_s21 }
  0x88   : > { %25366 = vst [vmem:[#allocation16_spill] sm:$0xff] %v17891_v60  ;;  %25367 = vst [vmem:[#allocation17_spill] sm:$0xff] %v17893_v61  ;;  %v24634_v6 = vand.u32 4294901760, %v17883_v56  ;;  %v24633_v7 = vand.u32 4294901760, %v17885_v57  ;;  %15193 = vmatprep.subr.bf16.mxu1 %v17897_v63  ;;  %v17919_v12 = vand.u32 4294901760, %v1739_v3  ;;  %v1736_v15 = vsel %vm1734_vm1, %v812_v4, 0  ;;  %s12423_s25 = sadd.s32 (%p17679_p6), %s17130_s11, %s12416_s21 }
  0x89   : > { %25368 = vst [vmem:[#allocation18_spill] sm:$0xff] %v17895_v62  ;;  %25369 = vst [vmem:[#allocation19_spill] sm:$0xff] %v17897_v63  ;;  %v17913_v9 = vpack.c.bf16 %v1758_v2, %v1754_v1  ;;  %v17915_v10 = vsub.f32 %v806_v52, %v1754_v1  ;;  %v17917_v11 = vsub.f32 %v809_v53, %v1758_v2  ;;  %v24632_v16 = vand.u32 4294901760, %v17893_v61  ;;  %p12418_p11 = scmp.lt.s32.totalorder (%p17679_p6), %s12417_s22, 3  ;;  %s13551_s5 = sshll.u32 (%p17679_p6), %s12423_s25, 3 }
  0x8a   : > { %25370 = vst [vmem:[#allocation20_spill] sm:$0xff] %v17900_v0  ;;  %25371 = vst [vmem:[#allocation21_spill] sm:$0xff] %v17905_v5  ;;  %v2944_v13 = vsub.f32 %v17883_v56, %v24634_v6  ;;  %v2956_v14 = vsub.f32 %v17885_v57, %v24633_v7  ;;  %v17929_v17 = vand.u32 4294901760, %v1736_v15  ;;  %v24631_v18 = vand.u32 4294901760, %v17895_v62  ;;  %s23255_s8 = scalar_lea.vmem (%p17679_p6), %s24624_s3, %s13551_s5  }
  0x8b   : > { %25373 = vst [vmem:[#allocation23_spill] sm:$0xff] %v17913_v9  ;;  %25374 = vst [vmem:[#allocation24_spill] sm:$0xff] %v17915_v10  ;;  %v1822_v19 = vsub.f32 %v17860_v38, %v17889_v59  ;;  %v24630_v20 = vand.u32 4294901760, %v17900_v0  ;;  %15195 = vmatpush1.bf16.msra.mxu1 %v17913_v9  ;;  %v2950_v24 = vsub.f32 %v17893_v61, %v24632_v16  ;;  %v24629_v25 = vand.u32 4294901760, %v17905_v5  ;;  %v845_v59 = vld [vmem:[%s24623_s2 + $0xf0] sm:$0xff] }
  0x8c   : > { %25375 = vst [vmem:[#allocation25_spill] sm:$0xff] %v17917_v11  ;;  %25376 = vst [vmem:[#allocation26_spill] sm:$0xff] %v17919_v12  ;;  %v2945_v21 = vand.u32 4294901760, %v2944_v13  ;;  %v2957_v23 = vand.u32 4294901760, %v2956_v14  ;;  %1761 = vmatprep.subr.mxu1 %v17919_v12  ;;  %v2962_v26 = vsub.f32 %v17895_v62, %v24631_v18  ;;  %v24628_v32 = vand.u32 4294901760, %v17915_v10  ;;  %v704_v14 = vld [vmem:[%s24622_s1 + $0x30] sm:$0xff] }
  0x8d   : > { %25377 = vst [vmem:[#allocation27_spill] sm:$0xff] %v17929_v17  ;;  %v17944_v27 = vand.u32 4294901760, %v1822_v19  ;;  %v2968_v30 = vsub.f32 %v17900_v0, %v24630_v20  ;;  %v2951_v36 = vand.u32 4294901760, %v2950_v24  ;;  %v2980_v37 = vsub.f32 %v17905_v5, %v24629_v25  ;;  %v710_v18 = vld [vmem:[%s24622_s1 + $0x60] sm:$0xff] }
  0x8e   : > { %v15196_v35 = vpack.c.bf16 %v2957_v23, %v2945_v21  ;;  %v24627_v42 = vand.u32 4294901760, %v17917_v11  ;;  %v2963_v43 = vand.u32 4294901760, %v2962_v26  ;;  %v2974_v45 = vsub.f32 %v17915_v10, %v24628_v32 }
  0x8f   : > { %25378 = vst [vmem:[#allocation28_spill] sm:$0xff] %v17944_v27  ;;  %v2969_v44 = vand.u32 4294901760, %v2968_v30  ;;  %v17958_v46 = vand.u32 4294901760, %v17874_v48  ;;  %1763 = vmatpush1.msra.mxu1 %v17929_v17  ;;  %v2981_v47 = vand.u32 4294901760, %v2980_v37  ;;  %v17965_v50 = vsub.f32 %v1739_v3, %v17919_v12  ;;  %v705_v30 = vld [vmem:[%s24622_s1 + $0x38] sm:$0xff] }
  0x90   : > { %15197 = vmatprep.subr.bf16.mxu0 %v15196_v35  ;;  %v2986_v49 = vsub.f32 %v17917_v11, %v24627_v42  ;;  %v17968_v51 = vsub.f32 %v1736_v15, %v17929_v17  ;;  %v15198_v52 = vpack.c.bf16 %v2963_v43, %v2951_v36  ;;  %1824 = vmatmul.mubr.f32.vlgmr.msra.gmra.mrb[0].mxu1 %v17944_v27  ;;  %v2975_v53 = vand.u32 4294901760, %v2974_v45 }
  0x91   : > { %25379 = vst [vmem:[#allocation29_spill] sm:$0xff] %v17958_v46  ;;  %25380 = vst [vmem:[#allocation30_spill] sm:$0xff] %v17965_v50  ;;  %v1833_v58 = vsub.f32 %v17874_v48, %v17958_v46  ;;  %v17974_v1 = vand.u32 4294901760, %v17910_v8  ;;  %15284 = vmatprep.subr.bf16.mxu1 %v15196_v35  ;;  %v15200_v2 = vpack.c.bf16 %v2981_v47, %v2969_v44  ;;  %1829 = vmatprep.mubr.f32.mxu1 %v24645_v22 }
  0x92   : > { %25381 = vst [vmem:[#allocation31_spill] sm:$0xff] %v17968_v51  ;;  %v2987_v4 = vand.u32 4294901760, %v2986_v49  ;;  %v24626_v3 = vand.u32 4294901760, %v17965_v50  ;;  %v24625_v13 = vand.u32 4294901760, %v17968_v51  ;;  %15199 = vmatpush1.bf16.msra.mxu0 %v15198_v52  ;;  %15287 = vmatpush1.bf16.msra.mxu1 %v15198_v52  ;;  %v17994_v26 = vsub.f32 %v17843_v31, %v17865_v40 }
  0x93   : > { %25382 = vst [vmem:[#allocation32_spill] sm:$0xff] %v17974_v1  ;;  %v17982_v15 = vand.u32 4294901760, %v1833_v58  ;;  %v1844_v19 = vsub.f32 %v17910_v8, %v17974_v1  ;;  %15201 = vmatprep.subr.bf16.mxu0 %v15200_v2  ;;  %v18004_v36 = vsub.f32 %v17849_v33, %v17868_v41  ;;  %v18008_v37 = vsub.f32 %v17852_v34, %v17879_v54  ;;  %v706_v33 = vld [vmem:[%s24622_s1 + $0x40] sm:$0xff] }
  0x94   : > { %v15202_v21 = vpack.c.bf16 %v2987_v4, %v2975_v53  ;;  %v2992_v23 = vsub.f32 %v17965_v50, %v24626_v3  ;;  %v2998_v24 = vsub.f32 %v17968_v51, %v24625_v13  ;;  %25384 = vst [vmem:[#allocation34_spill] sm:$0xff] %v17994_v26  ;;  %v1447_v43 = vsel %vm1427_vm0, %v704_v14, 0  ;;  %15285 = vmatprep.subr.bf16.mxu1 %v15200_v2  ;;  %v831_v1 = vld [vmem:[%s24623_s2 + $0x80] sm:$0xff] }
  0x95   : > { %25383 = vst [vmem:[#allocation33_spill] sm:$0xff] %v17982_v15  ;;  %1835 = vmatmul.mubr.f32.gmra.mrb[2].mxu1 %v17982_v15  ;;  %v18000_v35 = vand.u32 4294901760, %v1844_v19  ;;  %25386 = vst [vmem:[#allocation36_spill] sm:$0xff] %v18004_v36  ;;  %v18013_v44 = vand.u32 4294901760, %v17994_v26  ;;  %v18015_v45 = vand.u32 4294901760, %v1447_v43  ;;  %v18021_v34 = vand.u32 4294901760, %v18004_v36 }
  0x96   : > { %25387 = vst [vmem:[#allocation37_spill] sm:$0xff] %v18008_v37  ;;  %v2993_v31 = vand.u32 4294901760, %v2992_v23  ;;  %1840 = vmatprep.mubr.f32.mxu1 %v24645_v22  ;;  %15203 = vmatpush1.bf16.msra.mxu0 %v15202_v21  ;;  %v2999_v47 = vand.u32 4294901760, %v2998_v24  ;;  %v1450_v49 = vsel %vm1427_vm0, %v705_v30, 0  ;;  %v15204_v52 = vpack.c.bf16 %v17885_v57, %v17883_v56  ;;  %v707_v24 = vld [vmem:[%s24622_s1 + $0x48] sm:$0xff] }
  0x97   : > { %25385 = vst [vmem:[#allocation35_spill] sm:$0xff] %v18000_v35  ;;  %25388 = vst [vmem:[#allocation38_spill] sm:$0xff] %v18013_v44  ;;  %15288 = vmatpush1.bf16.msra.mxu1 %v15202_v21  ;;  %v1855_v53 = vsub.f32 %v17994_v26, %v18013_v44  ;;  %v15206_v58 = vpack.c.bf16 %v17895_v62, %v17893_v61  ;;  %v18032_v2 = vand.u32 4294901760, %v18008_v37  ;;  %v1453_v4 = vsel %vm1427_vm0, %v706_v33, 0 }
  0x98   : > { %25389 = vst [vmem:[#allocation39_spill] sm:$0xff] %v18015_v45  ;;  %25390 = vst [vmem:[#allocation40_spill] sm:$0xff] %v18021_v34  ;;  %2994 = vmatprep.subr.mxu0 %v2993_v31  ;;  %15286 = vmatprep.subr.mxu1 %v2993_v31  ;;  %v1866_v19 = vsub.f32 %v18004_v36, %v18021_v34  ;;  %v18041_v21 = vsub.f32 %v1447_v43, %v18015_v45  ;;  %v18043_v23 = vand.u32 4294901760, %v1450_v49 }
  0x99   : > { %1846 = vmatmul.mubr.f32.gmra.mrb[4].mxu1 %v18000_v35  ;;  %25391 = vst [vmem:[#allocation41_spill] sm:$0xff] %v18032_v2  ;;  %v18036_v14 = vand.u32 4294901760, %v1855_v53  ;;  %v18050_v30 = vand.u32 4294901760, %v1453_v4  ;;  %v1877_v31 = vsub.f32 %v18008_v37, %v18032_v2  ;;  %v1456_v53 = vsel %vm1427_vm0, %v707_v24, 0  ;;  %v816_v2 = vld [vmem:[%s24623_s2 + $0x8] sm:$0xff] }
  0x9a   : > { %1851 = vmatprep.mubr.f32.mxu1 %v24645_v22  ;;  %25393 = vst [vmem:[#allocation43_spill] sm:$0xff] %v18041_v21  ;;  %25394 = vst [vmem:[#allocation44_spill] sm:$0xff] %v18043_v23  ;;  %3000 = vmatpush1.msra.mxu0 %v2999_v47  ;;  %v18053_v43 = vand.u32 4294901760, %v1866_v19  ;;  %v18058_v33 = vand.u32 4294901760, %v18041_v21  ;;  %v18082_v24 = vand.u32 4294901760, %v1456_v53 }
  0x9b   : > { %25392 = vst [vmem:[#allocation42_spill] sm:$0xff] %v18036_v14  ;;  %15289 = vmatpush1.msra.mxu1 %v2999_v47  ;;  %3057 = vmatmul.mubr.f32.vlgmr.msra.gmra.mrb[0].mxu0 %v17837_v28  ;;  %25395 = vst [vmem:[#allocation45_spill] sm:$0xff] %v18050_v30  ;;  %v18061_v47 = vsub.f32 %v1450_v49, %v18043_v23  ;;  %v18075_v49 = vand.u32 4294901760, %v1877_v31 }
  0x9c   : > { %15205 = vmatprep.subr.bf16.mxu0 %v15204_v52  ;;  %3062 = vmatprep.mubr.f32.mxu0 %v24645_v22  ;;  %25396 = vst [vmem:[#allocation46_spill] sm:$0xff] %v18053_v43  ;;  %25397 = vst [vmem:[#allocation47_spill] sm:$0xff] %v18058_v33  ;;  %v708_v52 = vld [vmem:[%s24622_s1 + $0x50] sm:$0xff]  ;;  %v1888_v13 = vsub.f32 %v18041_v21, %v18058_v33  ;;  %v18101_v25 = vsub.f32 %v1456_v53, %v18082_v24  ;;  %v1465_v53 = vsel %vm1427_vm0, %v710_v18, 0  ;;  %v711_v18 = vld [vmem:[%s24622_s1 + $0x68] sm:$0xff] }
  0x9d   : > { %15207 = vmatpush1.bf16.msra.mxu0 %v15206_v58  ;;  %1857 = vmatmul.mubr.f32.gmra.mrb[6].mxu1 %v18036_v14  ;;  %25398 = vst [vmem:[#allocation48_spill] sm:$0xff] %v18061_v47  ;;  %v18071_v58 = vsub.f32 %v1453_v4, %v18050_v30  ;;  %v1459_v19 = vsel %vm1427_vm0, %v708_v52, 0  ;;  %25400 = vst [vmem:[#allocation50_spill] sm:$0xff] %v18075_v49  ;;  %v18080_v3 = vand.u32 4294901760, %v18061_v47  ;;  %v709_v4 = vld [vmem:[%s24622_s1 + $0x58] sm:$0xff] }
  0x9e   : > { %1862 = vmatprep.mubr.f32.mxu1 %v24645_v22  ;;  %25402 = vst [vmem:[#allocation52_spill] sm:$0xff] %v18082_v24  ;;  %v18093_v52 = vand.u32 4294901760, %v1459_v19  ;;  %v18096_v42 = vand.u32 4294901760, %v1888_v13  ;;  %25406 = vst [vmem:[#allocation56_spill] sm:$0xff] %v18101_v25  ;;  %v1462_v20 = vsel %vm1427_vm0, %v709_v4, 0  ;;  %v15208_v4 = vpack.c.bf16 %v17905_v5, %v17900_v0  ;;  %v829_v5 = vld [vmem:[%s24623_s2 + $0x70] sm:$0xff] }
  0x9f   : > { %3064 = vmatmul.mubr.f32.gmra.mrb[2].mxu0 %v17839_v29  ;;  %25399 = vst [vmem:[#allocation49_spill] sm:$0xff] %v18071_v58  ;;  %25401 = vst [vmem:[#allocation51_spill] sm:$0xff] %v18080_v3  ;;  %v18091_v31 = vand.u32 4294901760, %v18071_v58  ;;  %v1899_v32 = vsub.f32 %v18061_v47, %v18080_v3  ;;  %v18113_v16 = vand.u32 4294901760, %v1462_v20 }
  0xa0   : > { %3069 = vmatprep.mubr.f32.mxu0 %v24645_v22  ;;  %25404 = vst [vmem:[#allocation54_spill] sm:$0xff] %v18093_v52  ;;  %25405 = vst [vmem:[#allocation55_spill] sm:$0xff] %v18096_v42  ;;  %v18111_v13 = vsub.f32 %v1459_v19, %v18093_v52  ;;  %v15210_v19 = vpack.c.bf16 %v17917_v11, %v17915_v10  ;;  %15209 = vmatprep.subr.bf16.mxu0 %v15208_v4  ;;  %v1468_v4 = vsel %vm1427_vm0, %v711_v18, 0  ;;  %v717_v11 = vld [vmem:[%s24622_s1 + $0x98] sm:$0xff] }
  0xa1   : > { %1868 = vmatmul.mubr.f32.gmra.mrb[8].mxu1 %v18053_v43  ;;  %25403 = vst [vmem:[#allocation53_spill] sm:$0xff] %v18091_v31  ;;  %25408 = vst [vmem:[#allocation58_spill] sm:$0xff] %v18113_v16  ;;  %v18119_v7 = vand.u32 4294901760, %v1899_v32  ;;  %v1910_v6 = vsub.f32 %v18071_v58, %v18091_v31  ;;  %v18145_v31 = vsub.f32 %v1462_v20, %v18113_v16  ;;  %v817_v20 = vld [vmem:[%s24623_s2 + $0x10] sm:$0xff] }
  0xa2   : > { %1873 = vmatprep.mubr.f32.mxu1 %v24645_v22  ;;  %25407 = vst [vmem:[#allocation57_spill] sm:$0xff] %v18111_v13  ;;  %v18135_v32 = vand.u32 4294901760, %v18111_v13  ;;  %15211 = vmatpush1.bf16.msra.mxu0 %v15210_v19  ;;  %v17608_v19 = vmov 0  }
  0xa3   : > { %3071 = vmatmul.mubr.f32.gmra.mrb[4].mxu0 %v17862_v39  ;;  %25409 = vst [vmem:[#allocation59_spill] sm:$0xff] %v18119_v7  ;;  %v18137_v39 = vand.u32 4294901760, %v1465_v53  ;;  %v18140_v29 = vand.u32 4294901760, %v1910_v6  ;;  %25414 = vst [vmem:[#allocation64_spill] sm:$0xff] %v18145_v31  ;;  %3796 = vmatprep.subr.mxu0 %v17965_v50  ;;  %v712_v6 = vld [vmem:[%s24622_s1 + $0x70] sm:$0xff]  ;;  %v18172_v33 = vand.u32 4294901760, %v18145_v31 }
  0xa4   : > { %3076 = vmatprep.mubr.f32.mxu0 %v24645_v22  ;;  %25411 = vst [vmem:[#allocation61_spill] sm:$0xff] %v18135_v32  ;;  %17385 = vset.pattern.permute.xlu0 %v17608_v19  ;;  %v1932_v3 = vsub.f32 %v18111_v13, %v18135_v32  ;;  %v819_v50 = vld [vmem:[%s24623_s2 + $0x20] sm:$0xff] }
  0xa5   : > { %1879 = vmatmul.mubr.f32.gmra.mrb[10].mxu1 %v18075_v49  ;;  %25412 = vst [vmem:[#allocation62_spill] sm:$0xff] %v18137_v39  ;;  %25413 = vst [vmem:[#allocation63_spill] sm:$0xff] %v18140_v29  ;;  %v18162_v18 = vsub.f32 %v1465_v53, %v18137_v39  ;;  %17386 = vset.pattern.permute.xlu1 %v17608_v19  ;;  %v1471_v53 = vsel %vm1427_vm0, %v712_v6, 0 }
  0xa6   : > { %1884 = vmatprep.mubr.f32.mxu1 %v24645_v22  ;;  %25419 = vst [vmem:[#allocation68_spill] sm:$0xff] %v18172_v33  ;;  %929 = vperm.xlu1 %17386, %v817_v20   ;;  %v18194_v6 = vand.u32 4294901760, %v1932_v3  ;;  %v1943_v20 = vsub.f32 %v18145_v31, %v18172_v33  ;;  %v714_v3 = vld [vmem:[%s24622_s1 + $0x80] sm:$0xff] }
  0xa7   : > { %3078 = vmatmul.mubr.f32.gmra.mrb[6].mxu0 %v17865_v40  ;;  %v18124_v40 = vand.u32 4294901760, %v18101_v25  ;;  %25416 = vst [vmem:[#allocation65_spill] sm:$0xff] %v18162_v18  ;;  %v18188_v32 = vand.u32 4294901760, %v18162_v18 }
  0xa8   : > { %3083 = vmatprep.mubr.f32.mxu0 %v24645_v22  ;;  %25422 = vst [vmem:[#allocation71_spill] sm:$0xff] %v18194_v6  ;;  %3799 = vmatpush1.msra.mxu0 %v17968_v51  ;;  %v18220_v33 = vand.u32 4294901760, %v1943_v20  ;;  %v821_v51 = vld [vmem:[%s24623_s2 + $0x30] sm:$0xff] }
  0xa9   : > { %1890 = vmatmul.mubr.f32.gmra.mrb[12].mxu1 %v18096_v42  ;;  %25410 = vst [vmem:[#allocation60_spill] sm:$0xff] %v18124_v40  ;;  %v1921_v28 = vsub.f32 %v18101_v25, %v18124_v40  ;;  %v18164_v40 = vand.u32 4294901760, %v1468_v4  ;;  %25420 = vst [vmem:[#allocation69_spill] sm:$0xff] %v18188_v32  ;;  %15213 = vmatprep.subr.bf16.mxu0 %v17881_v55  ;;  %v1477_v55 = vsel %vm1427_vm0, %v714_v3, 0  ;;  %v728_v42 = vld [vmem:[%s24622_s1 + $0xf0] sm:$0xff] }
  0xaa   : > { %1895 = vmatprep.mubr.f32.mxu1 %v24645_v22  ;;  %25425 = vst [vmem:[#allocation74_spill] sm:$0xff] %v18220_v33  ;;  %v18244_v3 = vand.u32 4294901760, %v1477_v55 }
  0xab   : > { %3085 = vmatmul.mubr.f32.gmra.mrb[8].mxu0 %v17868_v41  ;;  %v25415_v41 = vmov 0.0   ;;  %25417 = vst [vmem:[#allocation66_spill] sm:$0xff] %v18164_v40  ;;  %v18191_v19 = vsub.f32 %v1468_v4, %v18164_v40  ;;  %v1954_v4 = vsub.f32 %v18162_v18, %v18188_v32 }
  0xac   : > { %3090 = vmatprep.mubr.f32.mxu0 %v24645_v22  ;;  %v815_v22 = vld [vmem:[%s24623_s2] sm:$0xff]  ;;  %25429 = vst [vmem:[#allocation78_spill] sm:$0xff] %v18244_v3 }
  0xad   : > { %1901 = vmatmul.mubr.f32.gmra.mrb[14].mxu1 %v18119_v7  ;;  %919 = vperm.xlu0 %17385, %v815_v22   ;;  %v713_v22 = vld [vmem:[%s24622_s1 + $0x78] sm:$0xff]  ;;  %25421 = vst [vmem:[#allocation70_spill] sm:$0xff] %v18191_v19  ;;  %v18247_v32 = vand.u32 4294901760, %v1954_v4  ;;  %v824_v4 = vld [vmem:[%s24623_s2 + $0x48] sm:$0xff] }
  0xae   : > { %1906 = vmatprep.mubr.f32.mxu1 %v25415_v41  ;;  %v1474_v34 = vsel %vm1427_vm0, %v713_v22, 0 }
  0xaf   : > { %3092 = vmatmul.mubr.f32.gmra.mrb[10].mxu0 %v17879_v54  ;;  %v18167_v54 = vand.u32 4294901760, %v1921_v28  ;;  %v818_v28 = vld [vmem:[%s24623_s2 + $0x18] sm:$0xff]  ;;  %v18217_v22 = vand.u32 4294901760, %v1474_v34  ;;  %25430 = vst [vmem:[#allocation79_spill] sm:$0xff] %v18247_v32 }
  0xb0   : > { %3097 = vmatprep.mubr.f32.mxu0 %v25415_v41  ;;  %934 = vperm.xlu1 %17386, %v818_v28   ;;  %v18223_v28 = vand.u32 4294901760, %v18191_v19 }
  0xb1   : > { %1912 = vmatmul.mubr.f32.gmra.mrb[16].mxu1 %v18140_v29  ;;  %25418 = vst [vmem:[#allocation67_spill] sm:$0xff] %v18167_v54  ;;  %924 = vperm.xlu0 %17385, %v816_v2   ;;  %v820_v2 = vld [vmem:[%s24623_s2 + $0x28] sm:$0xff]  ;;  %25424 = vst [vmem:[#allocation73_spill] sm:$0xff] %v18217_v22  ;;  %v18242_v20 = vsub.f32 %v1474_v34, %v18217_v22  ;;  %v823_v34 = vld [vmem:[%s24623_s2 + $0x40] sm:$0xff] }
  0xb2   : > { %1917 = vmatprep.mubr.f32.mxu1 %v25415_v41  ;;  %25426 = vst [vmem:[#allocation75_spill] sm:$0xff] %v18223_v28  ;;  %v839_v29 = vld [vmem:[%s24623_s2 + $0xc0] sm:$0xff] }
  0xb3   : > { %3099 = vmatmul.mubr.f32.gmra.mrb[12].mxu0 %v18015_v45  ;;  %v18198_v45 = vand.u32 4294901760, %v1471_v53  ;;  %25428 = vst [vmem:[#allocation77_spill] sm:$0xff] %v18242_v20 }
  0xb4   : > { %3104 = vmatprep.mubr.f32.mxu0 %v25415_v41  ;;  %944 = vperm.xlu1 %17386, %v820_v2   ;;  %v1965_v2 = vsub.f32 %v18191_v19, %v18223_v28 }
  0xb5   : > { %1923 = vmatmul.mubr.f32.gmra.mrb[18].mxu1 %v18167_v54  ;;  %25423 = vst [vmem:[#allocation72_spill] sm:$0xff] %v18198_v45  ;;  %939 = vperm.xlu0 %17385, %v819_v50   ;;  %v715_v50 = vld [vmem:[%s24622_s1 + $0x88] sm:$0xff] }
  0xb6   : > { %1928 = vmatprep.mubr.f32.mxu1 %v25415_v41  ;;  %v1480_v44 = vsel %vm1427_vm0, %v715_v50, 0  ;;  %v18270_v28 = vand.u32 4294901760, %v1965_v2  ;;  %v723_v54 = vld [vmem:[%s24622_s1 + $0xc8] sm:$0xff] }
  0xb7   : > { %3106 = vmatmul.mubr.f32.gmra.mrb[14].mxu0 %v18043_v23  ;;  %v18226_v23 = vsub.f32 %v1471_v53, %v18198_v45  ;;  %v822_v53 = vld [vmem:[%s24623_s2 + $0x38] sm:$0xff]  ;;  %v18267_v50 = vand.u32 4294901760, %v1480_v44 }
  0xb8   : > { %3111 = vmatprep.mubr.f32.mxu0 %v25415_v41  ;;  %954 = vperm.xlu1 %17386, %v822_v53   ;;  %25433 = vst [vmem:[#allocation82_spill] sm:$0xff] %v18270_v28 }
  0xb9   : > { %1934 = vmatmul.mubr.f32.gmra.mrb[20].mxu1 %v18194_v6  ;;  %25427 = vst [vmem:[#allocation76_spill] sm:$0xff] %v18226_v23  ;;  %949 = vperm.xlu0 %17385, %v821_v51   ;;  %v716_v51 = vld [vmem:[%s24622_s1 + $0x90] sm:$0xff]  ;;  %25432 = vst [vmem:[#allocation81_spill] sm:$0xff] %v18267_v50 }
  0xba   : > { %1939 = vmatprep.mubr.f32.mxu1 %v25415_v41  ;;  %v1483_v2 = vsel %vm1427_vm0, %v716_v51, 0  ;;  %v833_v6 = vld [vmem:[%s24623_s2 + $0x90] sm:$0xff] }
  0xbb   : > { %3113 = vmatmul.mubr.f32.gmra.mrb[16].mxu0 %v18050_v30  ;;  %v18252_v30 = vand.u32 4294901760, %v18226_v23 }
  0xbc   : > { %3118 = vmatprep.mubr.f32.mxu0 %v25415_v41  ;;  %964 = vperm.xlu1 %17386, %v824_v4  }
  0xbd   : > { %1945 = vmatmul.mubr.f32.gmra.mrb[22].mxu1 %v18220_v33  ;;  %25431 = vst [vmem:[#allocation80_spill] sm:$0xff] %v18252_v30  ;;  %959 = vperm.xlu0 %17385, %v823_v34   ;;  %v1976_v53 = vsub.f32 %v18226_v23, %v18252_v30  ;;  %v18278_v33 = vsub.f32 %v1477_v55, %v18244_v3  ;;  %v825_v34 = vld [vmem:[%s24623_s2 + $0x50] sm:$0xff]  ;;  %v826_v55 = vld [vmem:[%s24623_s2 + $0x58] sm:$0xff] }
  0xbe   : > { %1950 = vmatprep.mubr.f32.mxu1 %v25415_v41  ;;  %v18294_v30 = vsub.f32 %v1480_v44, %v18267_v50  ;;  %v827_v44 = vld [vmem:[%s24623_s2 + $0x60] sm:$0xff] }
  0xbf   : > { %3120 = vmatmul.mubr.f32.gmra.mrb[18].mxu0 %v18082_v24  ;;  %v18275_v24 = vand.u32 4294901760, %v18242_v20  ;;  %25435 = vst [vmem:[#allocation84_spill] sm:$0xff] %v18278_v33  ;;  %v18298_v10 = vand.u32 4294901760, %v1976_v53  ;;  %v18303_v4 = vand.u32 4294901760, %v18278_v33  ;;  %v828_v53 = vld [vmem:[%s24623_s2 + $0x68] sm:$0xff] }
  0xc0   : > { %3125 = vmatprep.mubr.f32.mxu0 %v25415_v41  ;;  %25436 = vst [vmem:[#allocation85_spill] sm:$0xff] %v18294_v30  ;;  %974 = vperm.xlu1 %17386, %v826_v55  }
  0xc1   : > { %1956 = vmatmul.mubr.f32.gmra.mrb[24].mxu1 %v18247_v32  ;;  %25434 = vst [vmem:[#allocation83_spill] sm:$0xff] %v18275_v24  ;;  %v1486_v32 = vsel %vm1427_vm0, %v717_v11, 0  ;;  %969 = vperm.xlu0 %17385, %v825_v34   ;;  %25437 = vst [vmem:[#allocation86_spill] sm:$0xff] %v18298_v10  ;;  %v1987_v51 = vsub.f32 %v18242_v20, %v18275_v24  ;;  %v718_v11 = vld [vmem:[%s24622_s1 + $0xa0] sm:$0xff]  ;;  %v18320_v34 = vand.u32 4294901760, %v18294_v30 }
  0xc2   : > { %1961 = vmatprep.mubr.f32.mxu1 %v25415_v41  ;;  %25438 = vst [vmem:[#allocation87_spill] sm:$0xff] %v18303_v4  ;;  %v18322_v24 = vand.u32 4294901760, %v1486_v32  ;;  %v1489_v0 = vsel %vm1427_vm0, %v718_v11, 0 }
  0xc3   : > { %3127 = vmatmul.mubr.f32.gmra.mrb[20].mxu0 %v18093_v52  ;;  %v18305_v52 = vand.u32 4294901760, %v1483_v2  ;;  %25440 = vst [vmem:[#allocation89_spill] sm:$0xff] %v18320_v34  ;;  %v18325_v55 = vand.u32 4294901760, %v1987_v51  ;;  %v2009_v51 = vsub.f32 %v18294_v30, %v18320_v34 }
  0xc4   : > { %3132 = vmatprep.mubr.f32.mxu0 %v25415_v41  ;;  %25441 = vst [vmem:[#allocation90_spill] sm:$0xff] %v18322_v24  ;;  %984 = vperm.xlu1 %17386, %v828_v53  }
  0xc5   : > { %1967 = vmatmul.mubr.f32.gmra.mrb[26].mxu1 %v18270_v28  ;;  %25439 = vst [vmem:[#allocation88_spill] sm:$0xff] %v18305_v52  ;;  %979 = vperm.xlu0 %17385, %v827_v44   ;;  %25442 = vst [vmem:[#allocation91_spill] sm:$0xff] %v18325_v55  ;;  %v18330_v28 = vsub.f32 %v1483_v2, %v18305_v52  ;;  %v719_v44 = vld [vmem:[%s24622_s1 + $0xa8] sm:$0xff]  ;;  %v830_v2 = vld [vmem:[%s24623_s2 + $0x78] sm:$0xff]  ;;  %v18377_v34 = vand.u32 4294901760, %v2009_v51 }
  0xc6   : > { %1972 = vmatprep.mubr.f32.mxu1 %v25415_v41 }
  0xc7   : > { %3134 = vmatmul.mubr.f32.gmra.mrb[22].mxu0 %v18113_v16  ;;  %v1998_v16 = vsub.f32 %v18278_v33, %v18303_v4  ;;  %25443 = vst [vmem:[#allocation92_spill] sm:$0xff] %v18330_v28  ;;  %v18348_v4 = vsub.f32 %v1486_v32, %v18322_v24  ;;  %v18354_v53 = vand.u32 4294901760, %v18330_v28  ;;  %25450 = vst [vmem:[#allocation99_spill] sm:$0xff] %v18377_v34 }
  0xc8   : > { %3139 = vmatprep.mubr.f32.mxu0 %v25415_v41  ;;  %994 = vperm.xlu1 %17386, %v830_v2  }
  0xc9   : > { %1978 = vmatmul.mubr.f32.gmra.mrb[28].mxu1 %v18298_v10  ;;  %25444 = vst [vmem:[#allocation93_spill] sm:$0xff] %v18348_v4  ;;  %989 = vperm.xlu0 %17385, %v829_v5   ;;  %v18351_v11 = vand.u32 4294901760, %v1998_v16  ;;  %25446 = vst [vmem:[#allocation95_spill] sm:$0xff] %v18354_v53  ;;  %v1492_v10 = vsel %vm1427_vm0, %v719_v44, 0  ;;  %v720_v5 = vld [vmem:[%s24622_s1 + $0xb0] sm:$0xff]  ;;  %v832_v16 = vld [vmem:[%s24623_s2 + $0x88] sm:$0xff]  ;;  %v2020_v2 = vsub.f32 %v18330_v28, %v18354_v53 }
  0xca   : > { %1983 = vmatprep.mubr.f32.mxu1 %v25415_v41  ;;  %v18372_v32 = vand.u32 4294901760, %v18348_v4  ;;  %v18374_v44 = vand.u32 4294901760, %v1492_v10 }
  0xcb   : > { %3141 = vmatmul.mubr.f32.gmra.mrb[24].mxu0 %v18137_v39  ;;  %25445 = vst [vmem:[#allocation94_spill] sm:$0xff] %v18351_v11  ;;  %v18356_v39 = vand.u32 4294901760, %v1489_v0 }
  0xcc   : > { %3146 = vmatprep.mubr.f32.mxu0 %v25415_v41  ;;  %25448 = vst [vmem:[#allocation97_spill] sm:$0xff] %v18372_v32  ;;  %25449 = vst [vmem:[#allocation98_spill] sm:$0xff] %v18374_v44  ;;  %1004 = vperm.xlu1 %17386, %v832_v16   ;;  %v2031_v16 = vsub.f32 %v18348_v4, %v18372_v32  ;;  %v18408_v53 = vsub.f32 %v1492_v10, %v18374_v44  ;;  %v836_v10 = vld [vmem:[%s24623_s2 + $0xa8] sm:$0xff] }
  0xcd   : > { %1989 = vmatmul.mubr.f32.gmra.mrb[30].mxu1 %v18325_v55  ;;  %25447 = vst [vmem:[#allocation96_spill] sm:$0xff] %v18356_v39  ;;  %999 = vperm.xlu0 %17385, %v831_v1   ;;  %v1495_v55 = vsel %vm1427_vm0, %v720_v5, 0  ;;  %v721_v1 = vld [vmem:[%s24622_s1 + $0xb8] sm:$0xff]  ;;  %v18400_v5 = vand.u32 4294901760, %v2020_v2  ;;  %v722_v2 = vld [vmem:[%s24622_s1 + $0xc0] sm:$0xff] }
  0xce   : > { %1994 = vmatprep.mubr.f32.mxu1 %v25415_v41  ;;  %v18397_v51 = vand.u32 4294901760, %v1495_v55  ;;  %25455 = vst [vmem:[#allocation104_spill] sm:$0xff] %v18408_v53 }
  0xcf   : > { %3148 = vmatmul.mubr.f32.gmra.mrb[26].mxu0 %v18164_v40  ;;  %v18382_v40 = vsub.f32 %v1489_v0, %v18356_v39  ;;  %v834_v0 = vld [vmem:[%s24623_s2 + $0x98] sm:$0xff]  ;;  %25453 = vst [vmem:[#allocation102_spill] sm:$0xff] %v18400_v5 }
  0xd0   : > { %3153 = vmatprep.mubr.f32.mxu0 %v25415_v41  ;;  %25452 = vst [vmem:[#allocation101_spill] sm:$0xff] %v18397_v51  ;;  %1014 = vperm.xlu1 %17386, %v834_v0   ;;  %v18424_v32 = vsub.f32 %v1495_v55, %v18397_v51  ;;  %v837_v55 = vld [vmem:[%s24623_s2 + $0xb0] sm:$0xff] }
  0xd1   : > { %2000 = vmatmul.mubr.f32.gmra.mrb[32].mxu1 %v18351_v11  ;;  %25451 = vst [vmem:[#allocation100_spill] sm:$0xff] %v18382_v40  ;;  %1009 = vperm.xlu0 %17385, %v833_v6   ;;  %v835_v11 = vld [vmem:[%s24623_s2 + $0xa0] sm:$0xff]  ;;  %v1498_v6 = vsel %vm1427_vm0, %v721_v1, 0  ;;  %v18427_v1 = vand.u32 4294901760, %v2031_v16  ;;  %v838_v16 = vld [vmem:[%s24623_s2 + $0xb8] sm:$0xff] }
  0xd2   : > { %2005 = vmatprep.mubr.f32.mxu1 %v25415_v41  ;;  %25456 = vst [vmem:[#allocation105_spill] sm:$0xff] %v18424_v32 }
  0xd3   : > { %3155 = vmatmul.mubr.f32.gmra.mrb[28].mxu0 %v18198_v45  ;;  %v18405_v45 = vand.u32 4294901760, %v18382_v40  ;;  %25457 = vst [vmem:[#allocation106_spill] sm:$0xff] %v18427_v1 }
  0xd4   : > { %3160 = vmatprep.mubr.f32.mxu0 %v25415_v41  ;;  %1024 = vperm.xlu1 %17386, %v836_v10  }
  0xd5   : > { %2011 = vmatmul.mubr.f32.gmra.mrb[34].mxu1 %v18377_v34  ;;  %25454 = vst [vmem:[#allocation103_spill] sm:$0xff] %v18405_v45  ;;  %1019 = vperm.xlu0 %17385, %v835_v11   ;;  %v2042_v0 = vsub.f32 %v18382_v40, %v18405_v45  ;;  %v18434_v34 = vand.u32 4294901760, %v1498_v6  ;;  %v1501_v11 = vsel %vm1427_vm0, %v722_v2, 0  ;;  %v18450_v45 = vand.u32 4294901760, %v18424_v32 }
  0xd6   : > { %2016 = vmatprep.mubr.f32.mxu1 %v25415_v41 }
  0xd7   : > { %3162 = vmatmul.mubr.f32.gmra.mrb[30].mxu0 %v18217_v22  ;;  %v18432_v22 = vand.u32 4294901760, %v18408_v53  ;;  %25459 = vst [vmem:[#allocation108_spill] sm:$0xff] %v18434_v34  ;;  %25460 = vst [vmem:[#allocation109_spill] sm:$0xff] %v18450_v45  ;;  %v18454_v46 = vand.u32 4294901760, %v2042_v0  ;;  %v18459_v10 = vsub.f32 %v1498_v6, %v18434_v34  ;;  %v840_v6 = vld [vmem:[%s24623_s2 + $0xc8] sm:$0xff] }
  0xd8   : > { %3167 = vmatprep.mubr.f32.mxu0 %v25415_v41  ;;  %1034 = vperm.xlu1 %17386, %v838_v16   ;;  %v2064_v16 = vsub.f32 %v18424_v32, %v18450_v45 }
  0xd9   : > { %2022 = vmatmul.mubr.f32.gmra.mrb[36].mxu1 %v18400_v5  ;;  %25458 = vst [vmem:[#allocation107_spill] sm:$0xff] %v18432_v22  ;;  %v1504_v5 = vsel %vm1427_vm0, %v723_v54, 0  ;;  %1029 = vperm.xlu0 %17385, %v837_v55   ;;  %25461 = vst [vmem:[#allocation110_spill] sm:$0xff] %v18454_v46  ;;  %v2053_v2 = vsub.f32 %v18408_v53, %v18432_v22  ;;  %v724_v54 = vld [vmem:[%s24622_s1 + $0xd0] sm:$0xff] }
  0xda   : > { %2027 = vmatprep.mubr.f32.mxu1 %v25415_v41  ;;  %25462 = vst [vmem:[#allocation111_spill] sm:$0xff] %v18459_v10  ;;  %v18475_v0 = vand.u32 4294901760, %v1504_v5  ;;  %v18506_v7 = vand.u32 4294901760, %v2064_v16  ;;  %v844_v16 = vld [vmem:[%s24623_s2 + $0xe8] sm:$0xff] }
  0xdb   : > { %3169 = vmatmul.mubr.f32.gmra.mrb[32].mxu0 %v18244_v3  ;;  %v18461_v3 = vand.u32 4294901760, %v1501_v11  ;;  %v18478_v55 = vand.u32 4294901760, %v2053_v2  ;;  %v1507_v2 = vsel %vm1427_vm0, %v724_v54, 0 }
  0xdc   : > { %3174 = vmatprep.mubr.f32.mxu0 %v25415_v41  ;;  %25464 = vst [vmem:[#allocation113_spill] sm:$0xff] %v18475_v0  ;;  %1044 = vperm.xlu1 %17386, %v840_v6   ;;  %v18502_v45 = vsub.f32 %v1504_v5, %v18475_v0  ;;  %25469 = vst [vmem:[#allocation118_spill] sm:$0xff] %v18506_v7  ;;  %v843_v5 = vld [vmem:[%s24623_s2 + $0xe0] sm:$0xff] }
  0xdd   : > { %2033 = vmatmul.mubr.f32.gmra.mrb[38].mxu1 %v18427_v1  ;;  %25463 = vst [vmem:[#allocation112_spill] sm:$0xff] %v18461_v3  ;;  %1039 = vperm.xlu0 %17385, %v839_v29   ;;  %25465 = vst [vmem:[#allocation114_spill] sm:$0xff] %v18478_v55  ;;  %v18486_v22 = vsub.f32 %v1501_v11, %v18461_v3  ;;  %v725_v1 = vld [vmem:[%s24622_s1 + $0xd8] sm:$0xff]  ;;  %v841_v29 = vld [vmem:[%s24623_s2 + $0xd0] sm:$0xff] }
  0xde   : > { %2038 = vmatprep.mubr.f32.mxu1 %v25415_v41  ;;  %v842_v11 = vld [vmem:[%s24623_s2 + $0xd8] sm:$0xff]  ;;  %25468 = vst [vmem:[#allocation117_spill] sm:$0xff] %v18502_v45 }
  0xdf   : > { %3176 = vmatmul.mubr.f32.gmra.mrb[34].mxu0 %v18267_v50  ;;  %v18483_v50 = vand.u32 4294901760, %v18459_v10  ;;  %25467 = vst [vmem:[#allocation116_spill] sm:$0xff] %v18486_v22  ;;  %v18511_v6 = vand.u32 4294901760, %v18486_v22 }
  0xe0   : > { %3181 = vmatprep.mubr.f32.mxu0 %v25415_v41  ;;  %1054 = vperm.xlu1 %17386, %v842_v11  }
  0xe1   : > { %2044 = vmatmul.mubr.f32.gmra.mrb[40].mxu1 %v18454_v46  ;;  %25466 = vst [vmem:[#allocation115_spill] sm:$0xff] %v18483_v50  ;;  %v1510_v46 = vsel %vm1427_vm0, %v725_v1, 0  ;;  %1049 = vperm.xlu0 %17385, %v841_v29   ;;  %v2075_v54 = vsub.f32 %v18459_v10, %v18483_v50  ;;  %25470 = vst [vmem:[#allocation119_spill] sm:$0xff] %v18511_v6  ;;  %v726_v1 = vld [vmem:[%s24622_s1 + $0xe0] sm:$0xff]  ;;  %v2086_v11 = vsub.f32 %v18486_v22, %v18511_v6 }
  0xe2   : > { %2049 = vmatprep.mubr.f32.mxu1 %v25415_v41  ;;  %v18527_v29 = vand.u32 4294901760, %v1510_v46 }
  0xe3   : > { %3183 = vmatmul.mubr.f32.gmra.mrb[36].mxu0 %v18305_v52  ;;  %v18513_v52 = vand.u32 4294901760, %v1507_v2  ;;  %v18530_v50 = vand.u32 4294901760, %v2075_v54  ;;  %v727_v54 = vld [vmem:[%s24622_s1 + $0xe8] sm:$0xff] }
  0xe4   : > { %3188 = vmatprep.mubr.f32.mxu0 %v25415_v41  ;;  %25472 = vst [vmem:[#allocation121_spill] sm:$0xff] %v18527_v29  ;;  %1064 = vperm.xlu1 %17386, %v844_v16   ;;  %v18554_v6 = vsub.f32 %v1510_v46, %v18527_v29  ;;  %v847_v46 = vld [vmem:[%s24623_s2 + $0x100] sm:$0xff] }
  0xe5   : > { %2055 = vmatmul.mubr.f32.gmra.mrb[42].mxu1 %v18478_v55  ;;  %25471 = vst [vmem:[#allocation120_spill] sm:$0xff] %v18513_v52  ;;  %1059 = vperm.xlu0 %17385, %v843_v5   ;;  %25473 = vst [vmem:[#allocation122_spill] sm:$0xff] %v18530_v50  ;;  %v18538_v55 = vsub.f32 %v1507_v2, %v18513_v52  ;;  %v1513_v5 = vsel %vm1427_vm0, %v726_v1, 0  ;;  %v846_v2 = vld [vmem:[%s24623_s2 + $0xf8] sm:$0xff]  ;;  %v18557_v1 = vand.u32 4294901760, %v2086_v11 }
  0xe6   : > { %2060 = vmatprep.mubr.f32.mxu1 %v25415_v41  ;;  %25476 = vst [vmem:[#allocation125_spill] sm:$0xff] %v18554_v6  ;;  %v18577_v11 = vand.u32 4294901760, %v18554_v6 }
  0xe7   : > { %3190 = vmatmul.mubr.f32.gmra.mrb[38].mxu0 %v18322_v24  ;;  %v18535_v24 = vand.u32 4294901760, %v18502_v45  ;;  %25475 = vst [vmem:[#allocation124_spill] sm:$0xff] %v18538_v55  ;;  %25477 = vst [vmem:[#allocation126_spill] sm:$0xff] %v18557_v1 }
  0xe8   : > { %3195 = vmatprep.mubr.f32.mxu0 %v25415_v41  ;;  %1074 = vperm.xlu1 %17386, %v846_v2   ;;  %25480 = vst [vmem:[#allocation129_spill] sm:$0xff] %v18577_v11 }
  0xe9   : > { %2066 = vmatmul.mubr.f32.gmra.mrb[44].mxu1 %v18506_v7  ;;  %25474 = vst [vmem:[#allocation123_spill] sm:$0xff] %v18535_v24  ;;  %1069 = vperm.xlu0 %17385, %v845_v59   ;;  %v2097_v16 = vsub.f32 %v18502_v45, %v18535_v24  ;;  %v18564_v7 = vand.u32 4294901760, %v1513_v5  ;;  %v1516_v59 = vsel %vm1427_vm0, %v727_v54, 0  ;;  %v1519_v24 = vsel %vm1427_vm0, %v728_v42, 0  ;;  %v848_v42 = vld [vmem:[%s24623_s2 + $0x108] sm:$0xff] }
  0xea   : > { %2071 = vmatprep.mubr.f32.mxu1 %v25415_v41  ;;  %v18588_v49 = vand.u32 4294901760, %v1516_v59 }
  0xeb   : > { %3197 = vmatmul.mubr.f32.gmra.mrb[40].mxu0 %v18356_v39  ;;  %v18562_v39 = vand.u32 4294901760, %v18538_v55  ;;  %25479 = vst [vmem:[#allocation128_spill] sm:$0xff] %v18564_v7  ;;  %v18586_v2 = vsub.f32 %v1513_v5, %v18564_v7 }
  0xec   : > { %3202 = vmatprep.mubr.f32.mxu0 %v25415_v41  ;;  %25483 = vst [vmem:[#allocation132_spill] sm:$0xff] %v18588_v49  ;;  %1084 = vperm.xlu1 %17386, %v848_v42   ;;  %v18611_v62 = vsub.f32 %v1516_v59, %v18588_v49  ;;  %v730_v42 = vld [vmem:[%s24622_s1 + $0x100] sm:$0xff] }
  0xed   : > { %2077 = vmatmul.mubr.f32.gmra.mrb[46].mxu1 %v18530_v50  ;;  %25478 = vst [vmem:[#allocation127_spill] sm:$0xff] %v18562_v39  ;;  %1079 = vperm.xlu0 %17385, %v847_v46   ;;  %v18581_v50 = vand.u32 4294901760, %v2097_v16  ;;  %v2108_v54 = vsub.f32 %v18538_v55, %v18562_v39  ;;  %25482 = vst [vmem:[#allocation131_spill] sm:$0xff] %v18586_v2  ;;  %v18599_v16 = vand.u32 4294901760, %v1519_v24 }
  0xee   : > { %2082 = vmatprep.mubr.f32.mxu1 %v25415_v41  ;;  %v2119_v39 = vsub.f32 %v18554_v6, %v18577_v11  ;;  %25487 = vst [vmem:[#allocation136_spill] sm:$0xff] %v18611_v62 }
  0xef   : > { %3204 = vmatmul.mubr.f32.gmra.mrb[42].mxu0 %v18374_v44  ;;  %25481 = vst [vmem:[#allocation130_spill] sm:$0xff] %v18581_v50  ;;  %v729_v44 = vld [vmem:[%s24622_s1 + $0xf8] sm:$0xff]  ;;  %25484 = vst [vmem:[#allocation133_spill] sm:$0xff] %v18599_v16  ;;  %v18603_v46 = vand.u32 4294901760, %v2108_v54  ;;  %v18623_v54 = vsub.f32 %v1519_v24, %v18599_v16  ;;  %v731_v24 = vld [vmem:[%s24622_s1 + $0x108] sm:$0xff] }
  0xf0   : > { %3209 = vmatprep.mubr.f32.mxu0 %v25415_v41  ;;  %v1522_v5 = vsel %vm1427_vm0, %v729_v44, 0  ;;  %v849_v44 = vld [vmem:[%s24623_s2 + $0x110] sm:$0xff] }
  0xf1   : > { %2088 = vmatmul.mubr.f32.gmra.mrb[48].mxu1 %v18557_v1  ;;  %25485 = vst [vmem:[#allocation134_spill] sm:$0xff] %v18603_v46  ;;  %v18608_v1 = vand.u32 4294901760, %v18586_v2  ;;  %1089 = vperm.xlu0 %17385, %v849_v44   ;;  %25488 = vst [vmem:[#allocation137_spill] sm:$0xff] %v18623_v54  ;;  %v18625_v59 = vand.u32 4294901760, %v1522_v5  ;;  %v850_v44 = vld [vmem:[%s24623_s2 + $0x118] sm:$0xff] }
  0xf2   : > { %2093 = vmatprep.mubr.f32.mxu1 %v25415_v41  ;;  %1094 = vperm.xlu1 %17386, %v850_v44   ;;  %v732_v44 = vld [vmem:[%s24622_s1 + $0x110] sm:$0xff] }
  0xf3   : > { %3211 = vmatmul.mubr.f32.gmra.mrb[44].mxu0 %v18397_v51  ;;  %25486 = vst [vmem:[#allocation135_spill] sm:$0xff] %v18608_v1  ;;  %25489 = vst [vmem:[#allocation138_spill] sm:$0xff] %v18625_v59  ;;  %v18628_v51 = vand.u32 4294901760, %v2119_v39  ;;  %v2130_v11 = vsub.f32 %v18586_v2, %v18608_v1  ;;  %v18646_v39 = vand.u32 4294901760, %v18623_v54  ;;  %v18656_v61 = vsub.f32 %v1522_v5, %v18625_v59 }
  0xf4   : > { %3216 = vmatprep.mubr.f32.mxu0 %v25415_v41 }
  0xf5   : > { %2099 = vmatmul.mubr.f32.gmra.mrb[50].mxu1 %v18581_v50  ;;  %25490 = vst [vmem:[#allocation139_spill] sm:$0xff] %v18628_v51  ;;  %v18633_v50 = vand.u32 4294901760, %v18611_v62  ;;  %25492 = vst [vmem:[#allocation141_spill] sm:$0xff] %v18646_v39  ;;  %v18679_v43 = vand.u32 4294901760, %v18656_v61 }
  0xf6   : > { %2104 = vmatprep.mubr.f32.mxu1 %v25415_v41  ;;  %25495 = vst [vmem:[#allocation144_spill] sm:$0xff] %v18656_v61 }
  0xf7   : > { %3218 = vmatmul.mubr.f32.gmra.mrb[46].mxu0 %v18434_v34  ;;  %25491 = vst [vmem:[#allocation140_spill] sm:$0xff] %v18633_v50  ;;  %v1525_v34 = vsel %vm1427_vm0, %v730_v42, 0  ;;  %v18651_v42 = vand.u32 4294901760, %v2130_v11  ;;  %25499 = vst [vmem:[#allocation148_spill] sm:$0xff] %v18679_v43 }
  0xf8   : > { %3223 = vmatprep.mubr.f32.mxu0 %v25415_v41  ;;  %v18648_v1 = vand.u32 4294901760, %v1525_v34 }
  0xf9   : > { %2110 = vmatmul.mubr.f32.gmra.mrb[52].mxu1 %v18603_v46  ;;  %25494 = vst [vmem:[#allocation143_spill] sm:$0xff] %v18651_v42  ;;  %v2141_v46 = vsub.f32 %v18611_v62, %v18633_v50  ;;  %v2152_v50 = vsub.f32 %v18623_v54, %v18646_v39  ;;  %v2163_v39 = vsub.f32 %v18656_v61, %v18679_v43 }
  0xfa   : > { %2115 = vmatprep.mubr.f32.mxu1 %v25415_v41  ;;  %25493 = vst [vmem:[#allocation142_spill] sm:$0xff] %v18648_v1  ;;  %v18669_v11 = vsub.f32 %v1525_v34, %v18648_v1  ;;  %v852_v34 = vld [vmem:[%s24623_s2 + $0x128] sm:$0xff] }
  0xfb   : > { %3225 = vmatmul.mubr.f32.gmra.mrb[48].mxu0 %v18461_v3  ;;  %v1528_v3 = vsel %vm1427_vm0, %v731_v24, 0  ;;  %v18674_v24 = vand.u32 4294901760, %v2141_v46  ;;  %1104 = vperm.xlu1 %17386, %v852_v34   ;;  %v734_v34 = vld [vmem:[%s24622_s1 + $0x120] sm:$0xff] }
  0xfc   : > { %3230 = vmatprep.mubr.f32.mxu0 %v25415_v41  ;;  %25496 = vst [vmem:[#allocation145_spill] sm:$0xff] %v18669_v11  ;;  %v18671_v5 = vand.u32 4294901760, %v1528_v3  ;;  %v1537_v43 = vsel %vm1427_vm0, %v734_v34, 0 }
  0xfd   : > { %2121 = vmatmul.mubr.f32.gmra.mrb[54].mxu1 %v18628_v51  ;;  %v851_v51 = vld [vmem:[%s24623_s2 + $0x120] sm:$0xff]  ;;  %25498 = vst [vmem:[#allocation147_spill] sm:$0xff] %v18674_v24  ;;  %v18737_v34 = vand.u32 4294901760, %v1537_v43 }
  0xfe   : > { %2126 = vmatprep.mubr.f32.mxu1 %v25415_v41  ;;  %1099 = vperm.xlu0 %17385, %v851_v51   ;;  %25497 = vst [vmem:[#allocation146_spill] sm:$0xff] %v18671_v5  ;;  %v733_v51 = vld [vmem:[%s24622_s1 + $0x118] sm:$0xff] }
  0xff   : > { %3232 = vmatmul.mubr.f32.gmra.mrb[50].mxu0 %v18475_v0  ;;  %v1531_v0 = vsel %vm1427_vm0, %v732_v44, 0  ;;  %v18694_v44 = vand.u32 4294901760, %v2152_v50  ;;  %v1534_v14 = vsel %vm1427_vm0, %v733_v51, 0  ;;  %v853_v50 = vld [vmem:[%s24623_s2 + $0x130] sm:$0xff]  ;;  %25508 = vst [vmem:[#allocation157_spill] sm:$0xff] %v18737_v34 }
 0x100   : > { %3237 = vmatprep.mubr.f32.mxu0 %v25415_v41  ;;  %v18691_v46 = vand.u32 4294901760, %v1531_v0  ;;  %v18726_v15 = vand.u32 4294901760, %v1534_v14 }
 0x101   : > { %2132 = vmatmul.mubr.f32.gmra.mrb[56].mxu1 %v18651_v42  ;;  %25501 = vst [vmem:[#allocation150_spill] sm:$0xff] %v18694_v44  ;;  %v18699_v42 = vand.u32 4294901760, %v18669_v11 }
 0x102   : > { %2137 = vmatprep.mubr.f32.mxu1 %v25415_v41  ;;  %25500 = vst [vmem:[#allocation149_spill] sm:$0xff] %v18691_v46  ;;  %1109 = vperm.xlu0 %17385, %v853_v50   ;;  %25507 = vst [vmem:[#allocation156_spill] sm:$0xff] %v18726_v15 }
 0x103   : > { %3239 = vmatmul.mubr.f32.gmra.mrb[52].mxu0 %v18513_v52  ;;  %25502 = vst [vmem:[#allocation151_spill] sm:$0xff] %v18699_v42  ;;  %v18702_v52 = vsub.f32 %v1528_v3, %v18671_v5  ;;  %v18715_v3 = vsub.f32 %v1531_v0, %v18691_v46  ;;  %v2174_v51 = vsub.f32 %v18669_v11, %v18699_v42  ;;  %v854_v0 = vld [vmem:[%s24623_s2 + $0x138] sm:$0xff] }
 0x104   : > { %3244 = vmatprep.mubr.f32.mxu0 %v25415_v41  ;;  %1114 = vperm.xlu1 %17386, %v854_v0   ;;  %v736_v0 = vld [vmem:[%s24622_s1 + $0x130] sm:$0xff] }
 0x105   : > { %2143 = vmatmul.mubr.f32.gmra.mrb[58].mxu1 %v18674_v24  ;;  %25503 = vst [vmem:[#allocation152_spill] sm:$0xff] %v18702_v52  ;;  %25504 = vst [vmem:[#allocation153_spill] sm:$0xff] %v18715_v3  ;;  %v18719_v24 = vand.u32 4294901760, %v2163_v39  ;;  %v18724_v35 = vand.u32 4294901760, %v18702_v52  ;;  %v735_v39 = vld [vmem:[%s24622_s1 + $0x128] sm:$0xff]  ;;  %v18740_v50 = vand.u32 4294901760, %v2174_v51 }
 0x106   : > { %2148 = vmatprep.mubr.f32.mxu1 %v25415_v41  ;;  %v18745_v42 = vand.u32 4294901760, %v18715_v3  ;;  %v855_v51 = vld [vmem:[%s24623_s2 + $0x140] sm:$0xff] }
 0x107   : > { %3246 = vmatmul.mubr.f32.gmra.mrb[54].mxu0 %v18527_v29  ;;  %25505 = vst [vmem:[#allocation154_spill] sm:$0xff] %v18719_v24  ;;  %25506 = vst [vmem:[#allocation155_spill] sm:$0xff] %v18724_v35  ;;  %v2185_v29 = vsub.f32 %v18702_v52, %v18724_v35  ;;  %1119 = vperm.xlu0 %17385, %v855_v51   ;;  %v1543_v35 = vsel %vm1427_vm0, %v736_v0, 0  ;;  %v737_v51 = vld [vmem:[%s24622_s1 + $0x138] sm:$0xff] }
 0x108   : > { %3251 = vmatprep.mubr.f32.mxu0 %v25415_v41  ;;  %25509 = vst [vmem:[#allocation158_spill] sm:$0xff] %v18740_v50  ;;  %25510 = vst [vmem:[#allocation159_spill] sm:$0xff] %v18745_v42  ;;  %v1546_v0 = vsel %vm1427_vm0, %v737_v51, 0 }
 0x109   : > { %2154 = vmatmul.mubr.f32.gmra.mrb[60].mxu1 %v18694_v44  ;;  %v1540_v44 = vsel %vm1427_vm0, %v735_v39, 0  ;;  %v2196_v39 = vsub.f32 %v18715_v3, %v18745_v42  ;;  %v18806_v51 = vand.u32 4294901760, %v1546_v0 }
 0x10a   : > { %2159 = vmatprep.mubr.f32.mxu1 %v25415_v41  ;;  %v18772_v57 = vand.u32 4294901760, %v1540_v44 }
 0x10b   : > { %3253 = vmatmul.mubr.f32.gmra.mrb[56].mxu0 %v18564_v7  ;;  %v18748_v7 = vsub.f32 %v1534_v14, %v18726_v15  ;;  %v18761_v14 = vsub.f32 %v1537_v43, %v18737_v34  ;;  %v856_v43 = vld [vmem:[%s24623_s2 + $0x148] sm:$0xff]  ;;  %25520 = vst [vmem:[#allocation169_spill] sm:$0xff] %v18806_v51 }
 0x10c   : > { %3258 = vmatprep.mubr.f32.mxu0 %v25415_v41  ;;  %25515 = vst [vmem:[#allocation164_spill] sm:$0xff] %v18772_v57  ;;  %1124 = vperm.xlu1 %17386, %v856_v43   ;;  %v18795_v56 = vsub.f32 %v1540_v44, %v18772_v57  ;;  %v857_v43 = vld [vmem:[%s24623_s2 + $0x150] sm:$0xff] }
 0x10d   : > { %2165 = vmatmul.mubr.f32.gmra.mrb[62].mxu1 %v18719_v24  ;;  %25511 = vst [vmem:[#allocation160_spill] sm:$0xff] %v18748_v7  ;;  %25512 = vst [vmem:[#allocation161_spill] sm:$0xff] %v18761_v14  ;;  %v18765_v24 = vand.u32 4294901760, %v2185_v29  ;;  %v18770_v27 = vand.u32 4294901760, %v18748_v7  ;;  %v18783_v29 = vand.u32 4294901760, %v1543_v35  ;;  %1129 = vperm.xlu0 %17385, %v857_v43  }
 0x10e   : > { %2170 = vmatprep.mubr.f32.mxu1 %v25415_v41  ;;  %25519 = vst [vmem:[#allocation168_spill] sm:$0xff] %v18795_v56 }
 0x10f   : > { %3260 = vmatmul.mubr.f32.gmra.mrb[58].mxu0 %v18588_v49  ;;  %25513 = vst [vmem:[#allocation162_spill] sm:$0xff] %v18765_v24  ;;  %25514 = vst [vmem:[#allocation163_spill] sm:$0xff] %v18770_v27  ;;  %v18787_v49 = vand.u32 4294901760, %v2196_v39  ;;  %v2207_v42 = vsub.f32 %v18748_v7, %v18770_v27  ;;  %v738_v39 = vld [vmem:[%s24622_s1 + $0x140] sm:$0xff]  ;;  %v18814_v27 = vand.u32 4294901760, %v18795_v56 }
 0x110   : > { %3265 = vmatprep.mubr.f32.mxu0 %v25415_v41  ;;  %25516 = vst [vmem:[#allocation165_spill] sm:$0xff] %v18783_v29  ;;  %v1549_v43 = vsel %vm1427_vm0, %v738_v39, 0 }
 0x111   : > { %2176 = vmatmul.mubr.f32.gmra.mrb[64].mxu1 %v18740_v50  ;;  %25517 = vst [vmem:[#allocation166_spill] sm:$0xff] %v18787_v49  ;;  %v18792_v50 = vand.u32 4294901760, %v18761_v14  ;;  %v18809_v44 = vand.u32 4294901760, %v2207_v42  ;;  %25522 = vst [vmem:[#allocation171_spill] sm:$0xff] %v18814_v27  ;;  %v739_v42 = vld [vmem:[%s24622_s1 + $0x148] sm:$0xff]  ;;  %v2229_v39 = vsub.f32 %v18795_v56, %v18814_v27 }
 0x112   : > { %2181 = vmatprep.mubr.f32.mxu1 %v25415_v41 }
 0x113   : > { %3267 = vmatmul.mubr.f32.gmra.mrb[60].mxu0 %v18599_v16  ;;  %25518 = vst [vmem:[#allocation167_spill] sm:$0xff] %v18792_v50  ;;  %25521 = vst [vmem:[#allocation170_spill] sm:$0xff] %v18809_v44  ;;  %v2218_v16 = vsub.f32 %v18761_v14, %v18792_v50  ;;  %v18857_v56 = vand.u32 4294901760, %v2229_v39  ;;  %v741_v39 = vld [vmem:[%s24622_s1 + $0x158] sm:$0xff] }
 0x114   : > { %3272 = vmatprep.mubr.f32.mxu0 %v25415_v41 }
 0x115   : > { %2187 = vmatmul.mubr.f32.gmra.mrb[66].mxu1 %v18765_v24  ;;  %v858_v24 = vld [vmem:[%s24623_s2 + $0x158] sm:$0xff]  ;;  %v18833_v50 = vand.u32 4294901760, %v2218_v16  ;;  %v859_v16 = vld [vmem:[%s24623_s2 + $0x160] sm:$0xff]  ;;  %25529 = vst [vmem:[#allocation178_spill] sm:$0xff] %v18857_v56 }
 0x116   : > { %2192 = vmatprep.mubr.f32.mxu1 %v25415_v41  ;;  %1134 = vperm.xlu1 %17386, %v858_v24   ;;  %v740_v24 = vld [vmem:[%s24622_s1 + $0x150] sm:$0xff] }
 0x117   : > { %3274 = vmatmul.mubr.f32.gmra.mrb[62].mxu0 %v18625_v59  ;;  %v18817_v59 = vsub.f32 %v1543_v35, %v18783_v29  ;;  %v18830_v35 = vsub.f32 %v1546_v0, %v18806_v51  ;;  %25525 = vst [vmem:[#allocation174_spill] sm:$0xff] %v18833_v50  ;;  %v1552_v0 = vsel %vm1427_vm0, %v739_v42, 0  ;;  %1139 = vperm.xlu0 %17385, %v859_v16   ;;  %v860_v16 = vld [vmem:[%s24623_s2 + $0x168] sm:$0xff] }
 0x118   : > { %3279 = vmatprep.mubr.f32.mxu0 %v25415_v41  ;;  %v18864_v7 = vand.u32 4294901760, %v1552_v0 }
 0x119   : > { %2198 = vmatmul.mubr.f32.gmra.mrb[68].mxu1 %v18787_v49  ;;  %25523 = vst [vmem:[#allocation172_spill] sm:$0xff] %v18817_v59  ;;  %25524 = vst [vmem:[#allocation173_spill] sm:$0xff] %v18830_v35  ;;  %v18838_v49 = vand.u32 4294901760, %v18817_v59  ;;  %v18853_v27 = vand.u32 4294901760, %v18830_v35 }
 0x11a   : > { %2203 = vmatprep.mubr.f32.mxu1 %v25415_v41  ;;  %25531 = vst [vmem:[#allocation180_spill] sm:$0xff] %v18864_v7  ;;  %1144 = vperm.xlu1 %17386, %v860_v16   ;;  %v742_v16 = vld [vmem:[%s24622_s1 + $0x160] sm:$0xff] }
 0x11b   : > { %3281 = vmatmul.mubr.f32.gmra.mrb[64].mxu0 %v18648_v1  ;;  %25526 = vst [vmem:[#allocation175_spill] sm:$0xff] %v18838_v49  ;;  %v18840_v1 = vand.u32 4294901760, %v1549_v43  ;;  %25528 = vst [vmem:[#allocation177_spill] sm:$0xff] %v18853_v27  ;;  %v2240_v42 = vsub.f32 %v18817_v59, %v18838_v49 }
 0x11c   : > { %3286 = vmatprep.mubr.f32.mxu0 %v25415_v41 }
 0x11d   : > { %2209 = vmatmul.mubr.f32.gmra.mrb[70].mxu1 %v18809_v44  ;;  %25527 = vst [vmem:[#allocation176_spill] sm:$0xff] %v18840_v1  ;;  %v1555_v44 = vsel %vm1427_vm0, %v740_v24, 0  ;;  %v18862_v14 = vsub.f32 %v1549_v43, %v18840_v1  ;;  %v18878_v43 = vand.u32 4294901760, %v2240_v42  ;;  %v861_v42 = vld [vmem:[%s24623_s2 + $0x170] sm:$0xff] }
 0x11e   : > { %2214 = vmatprep.mubr.f32.mxu1 %v25415_v41  ;;  %v18875_v24 = vand.u32 4294901760, %v1555_v44  ;;  %1149 = vperm.xlu0 %17385, %v861_v42  }
 0x11f   : > { %3288 = vmatmul.mubr.f32.gmra.mrb[66].mxu0 %v18671_v5  ;;  %25530 = vst [vmem:[#allocation179_spill] sm:$0xff] %v18862_v14  ;;  %25533 = vst [vmem:[#allocation182_spill] sm:$0xff] %v18878_v43  ;;  %v2251_v5 = vsub.f32 %v18830_v35, %v18853_v27  ;;  %v18883_v49 = vand.u32 4294901760, %v18862_v14  ;;  %v1561_v27 = vsel %vm1427_vm0, %v742_v16, 0 }
 0x120   : > { %3293 = vmatprep.mubr.f32.mxu0 %v25415_v41  ;;  %25532 = vst [vmem:[#allocation181_spill] sm:$0xff] %v18875_v24  ;;  %v18921_v16 = vand.u32 4294901760, %v1561_v27 }
 0x121   : > { %2220 = vmatmul.mubr.f32.gmra.mrb[72].mxu1 %v18833_v50  ;;  %25534 = vst [vmem:[#allocation183_spill] sm:$0xff] %v18883_v49  ;;  %v1558_v50 = vsel %vm1427_vm0, %v741_v39, 0  ;;  %v2262_v39 = vsub.f32 %v18862_v14, %v18883_v49 }
 0x122   : > { %2225 = vmatprep.mubr.f32.mxu1 %v25415_v41  ;;  %v18910_v59 = vand.u32 4294901760, %v1558_v50  ;;  %25540 = vst [vmem:[#allocation189_spill] sm:$0xff] %v18921_v16 }
 0x123   : > { %3295 = vmatmul.mubr.f32.gmra.mrb[68].mxu0 %v18691_v46  ;;  %v18886_v46 = vsub.f32 %v1552_v0, %v18864_v7  ;;  %v18899_v0 = vsub.f32 %v1555_v44, %v18875_v24  ;;  %v862_v44 = vld [vmem:[%s24623_s2 + $0x178] sm:$0xff]  ;;  %v18924_v42 = vand.u32 4294901760, %v2262_v39  ;;  %v863_v39 = vld [vmem:[%s24623_s2 + $0x180] sm:$0xff] }
 0x124   : > { %3300 = vmatprep.mubr.f32.mxu0 %v25415_v41  ;;  %25539 = vst [vmem:[#allocation188_spill] sm:$0xff] %v18910_v59  ;;  %1154 = vperm.xlu1 %17386, %v862_v44   ;;  %v744_v44 = vld [vmem:[%s24622_s1 + $0x170] sm:$0xff] }
 0x125   : > { %2231 = vmatmul.mubr.f32.gmra.mrb[74].mxu1 %v18857_v56  ;;  %25535 = vst [vmem:[#allocation184_spill] sm:$0xff] %v18886_v46  ;;  %25536 = vst [vmem:[#allocation185_spill] sm:$0xff] %v18899_v0  ;;  %v18903_v56 = vand.u32 4294901760, %v2251_v5  ;;  %v18908_v35 = vand.u32 4294901760, %v18886_v46  ;;  %v743_v5 = vld [vmem:[%s24622_s1 + $0x168] sm:$0xff]  ;;  %v18929_v49 = vand.u32 4294901760, %v18899_v0  ;;  %1159 = vperm.xlu0 %17385, %v863_v39  }
 0x126   : > { %2236 = vmatprep.mubr.f32.mxu1 %v25415_v41  ;;  %25541 = vst [vmem:[#allocation190_spill] sm:$0xff] %v18924_v42  ;;  %v745_v39 = vld [vmem:[%s24622_s1 + $0x178] sm:$0xff] }
 0x127   : > { %3302 = vmatmul.mubr.f32.gmra.mrb[70].mxu0 %v18726_v15  ;;  %25537 = vst [vmem:[#allocation186_spill] sm:$0xff] %v18903_v56  ;;  %25538 = vst [vmem:[#allocation187_spill] sm:$0xff] %v18908_v35  ;;  %v2273_v15 = vsub.f32 %v18886_v46, %v18908_v35  ;;  %v1567_v35 = vsel %vm1427_vm0, %v744_v44, 0  ;;  %v1570_v44 = vsel %vm1427_vm0, %v745_v39, 0 }
 0x128   : > { %3307 = vmatprep.mubr.f32.mxu0 %v25415_v41  ;;  %25542 = vst [vmem:[#allocation191_spill] sm:$0xff] %v18929_v49  ;;  %v18990_v39 = vand.u32 4294901760, %v1570_v44 }
 0x129   : > { %2242 = vmatmul.mubr.f32.gmra.mrb[76].mxu1 %v18878_v43  ;;  %v1564_v43 = vsel %vm1427_vm0, %v743_v5, 0  ;;  %v2284_v5 = vsub.f32 %v18899_v0, %v18929_v49 }
 0x12a   : > { %2247 = vmatprep.mubr.f32.mxu1 %v25415_v41  ;;  %v18956_v14 = vand.u32 4294901760, %v1564_v43  ;;  %25552 = vst [vmem:[#allocation201_spill] sm:$0xff] %v18990_v39 }
 0x12b   : > { %3309 = vmatmul.mubr.f32.gmra.mrb[72].mxu0 %v18737_v34  ;;  %v18932_v34 = vsub.f32 %v1558_v50, %v18910_v59  ;;  %v18945_v50 = vsub.f32 %v1561_v27, %v18921_v16  ;;  %v864_v27 = vld [vmem:[%s24623_s2 + $0x188] sm:$0xff] }
 0x12c   : > { %3314 = vmatprep.mubr.f32.mxu0 %v25415_v41  ;;  %25547 = vst [vmem:[#allocation196_spill] sm:$0xff] %v18956_v14  ;;  %1164 = vperm.xlu1 %17386, %v864_v27   ;;  %v18979_v0 = vsub.f32 %v1564_v43, %v18956_v14  ;;  %v865_v27 = vld [vmem:[%s24623_s2 + $0x190] sm:$0xff] }
 0x12d   : > { %2253 = vmatmul.mubr.f32.gmra.mrb[78].mxu1 %v18903_v56  ;;  %25543 = vst [vmem:[#allocation192_spill] sm:$0xff] %v18932_v34  ;;  %25544 = vst [vmem:[#allocation193_spill] sm:$0xff] %v18945_v50  ;;  %v18949_v56 = vand.u32 4294901760, %v2273_v15  ;;  %v18954_v46 = vand.u32 4294901760, %v18932_v34  ;;  %v18967_v15 = vand.u32 4294901760, %v1567_v35  ;;  %1169 = vperm.xlu0 %17385, %v865_v27  }
 0x12e   : > { %2258 = vmatprep.mubr.f32.mxu1 %v25415_v41  ;;  %25551 = vst [vmem:[#allocation200_spill] sm:$0xff] %v18979_v0 }
 0x12f   : > { %3316 = vmatmul.mubr.f32.gmra.mrb[74].mxu0 %v18772_v57  ;;  %25545 = vst [vmem:[#allocation194_spill] sm:$0xff] %v18949_v56  ;;  %25546 = vst [vmem:[#allocation195_spill] sm:$0xff] %v18954_v46  ;;  %v18971_v57 = vand.u32 4294901760, %v2284_v5  ;;  %v2295_v49 = vsub.f32 %v18932_v34, %v18954_v46  ;;  %v746_v5 = vld [vmem:[%s24622_s1 + $0x180] sm:$0xff]  ;;  %v18998_v46 = vand.u32 4294901760, %v18979_v0 }
 0x130   : > { %3321 = vmatprep.mubr.f32.mxu0 %v25415_v41  ;;  %25548 = vst [vmem:[#allocation197_spill] sm:$0xff] %v18967_v15  ;;  %v1573_v27 = vsel %vm1427_vm0, %v746_v5, 0 }
 0x131   : > { %2264 = vmatmul.mubr.f32.gmra.mrb[80].mxu1 %v18924_v42  ;;  %25549 = vst [vmem:[#allocation198_spill] sm:$0xff] %v18971_v57  ;;  %v18976_v42 = vand.u32 4294901760, %v18945_v50  ;;  %v18993_v43 = vand.u32 4294901760, %v2295_v49  ;;  %25554 = vst [vmem:[#allocation203_spill] sm:$0xff] %v18998_v46  ;;  %v747_v49 = vld [vmem:[%s24622_s1 + $0x188] sm:$0xff] }
 0x132   : > { %2269 = vmatprep.mubr.f32.mxu1 %v25415_v41 }
 0x133   : > { %3323 = vmatmul.mubr.f32.gmra.mrb[76].mxu0 %v18783_v29  ;;  %25550 = vst [vmem:[#allocation199_spill] sm:$0xff] %v18976_v42  ;;  %25553 = vst [vmem:[#allocation202_spill] sm:$0xff] %v18993_v43  ;;  %v2306_v29 = vsub.f32 %v18945_v50, %v18976_v42  ;;  %v19011_v42 = vsub.f32 %v1570_v44, %v18990_v39  ;;  %v1576_v44 = vsel %vm1427_vm0, %v747_v49, 0 }
 0x134   : > { %3328 = vmatprep.mubr.f32.mxu0 %v25415_v41  ;;  %v19042_v49 = vand.u32 4294901760, %v1576_v44 }
 0x135   : > { %2275 = vmatmul.mubr.f32.gmra.mrb[82].mxu1 %v18949_v56  ;;  %25556 = vst [vmem:[#allocation205_spill] sm:$0xff] %v19011_v42  ;;  %v748_v56 = vld [vmem:[%s24622_s1 + $0x190] sm:$0xff] }
 0x136   : > { %2280 = vmatprep.mubr.f32.mxu1 %v25415_v41  ;;  %25563 = vst [vmem:[#allocation212_spill] sm:$0xff] %v19042_v49 }
 0x137   : > { %3330 = vmatmul.mubr.f32.gmra.mrb[78].mxu0 %v18806_v51  ;;  %v19001_v51 = vsub.f32 %v1567_v35, %v18967_v15  ;;  %v2317_v35 = vsub.f32 %v18979_v0, %v18998_v46  ;;  %v1579_v46 = vsel %vm1427_vm0, %v748_v56, 0  ;;  %v749_v56 = vld [vmem:[%s24622_s1 + $0x198] sm:$0xff] }
 0x138   : > { %3335 = vmatprep.mubr.f32.mxu0 %v25415_v41 }
 0x139   : > { %2286 = vmatmul.mubr.f32.gmra.mrb[84].mxu1 %v18971_v57  ;;  %25555 = vst [vmem:[#allocation204_spill] sm:$0xff] %v19001_v51  ;;  %v19014_v57 = vand.u32 4294901760, %v2306_v29  ;;  %v19019_v5 = vand.u32 4294901760, %v19001_v51  ;;  %v19031_v29 = vand.u32 4294901760, %v19011_v42 }
 0x13a   : > { %2291 = vmatprep.mubr.f32.mxu1 %v25415_v41 }
 0x13b   : > { %3337 = vmatmul.mubr.f32.gmra.mrb[80].mxu0 %v18840_v1  ;;  %25557 = vst [vmem:[#allocation206_spill] sm:$0xff] %v19014_v57  ;;  %25558 = vst [vmem:[#allocation207_spill] sm:$0xff] %v19019_v5  ;;  %v19021_v1 = vand.u32 4294901760, %v1573_v27  ;;  %v2328_v0 = vsub.f32 %v19001_v51, %v19019_v5  ;;  %v1582_v51 = vsel %vm1427_vm0, %v749_v56, 0 }
 0x13c   : > { %3342 = vmatprep.mubr.f32.mxu0 %v25415_v41  ;;  %25560 = vst [vmem:[#allocation209_spill] sm:$0xff] %v19031_v29  ;;  %v19082_v56 = vand.u32 4294901760, %v1582_v51 }
 0x13d   : > { %2297 = vmatmul.mubr.f32.gmra.mrb[86].mxu1 %v18993_v43  ;;  %25559 = vst [vmem:[#allocation208_spill] sm:$0xff] %v19021_v1  ;;  %v19035_v43 = vand.u32 4294901760, %v2317_v35  ;;  %v19040_v50 = vsub.f32 %v1573_v27, %v19021_v1  ;;  %v19050_v35 = vand.u32 4294901760, %v1579_v46  ;;  %v2339_v27 = vsub.f32 %v19011_v42, %v19031_v29 }
 0x13e   : > { %2302 = vmatprep.mubr.f32.mxu1 %v25415_v41  ;;  %25571 = vst [vmem:[#allocation220_spill] sm:$0xff] %v19082_v56 }
 0x13f   : > { %3344 = vmatmul.mubr.f32.gmra.mrb[82].mxu0 %v18864_v7  ;;  %25561 = vst [vmem:[#allocation210_spill] sm:$0xff] %v19035_v43  ;;  %25562 = vst [vmem:[#allocation211_spill] sm:$0xff] %v19040_v50  ;;  %v19053_v7 = vand.u32 4294901760, %v2328_v0  ;;  %v19058_v5 = vand.u32 4294901760, %v19040_v50  ;;  %v19071_v0 = vsub.f32 %v1579_v46, %v19050_v35  ;;  %v751_v46 = vld [vmem:[%s24622_s1 + $0x1a8] sm:$0xff] }
 0x140   : > { %3349 = vmatprep.mubr.f32.mxu0 %v25415_v41  ;;  %25564 = vst [vmem:[#allocation213_spill] sm:$0xff] %v19050_v35 }
 0x141   : > { %2308 = vmatmul.mubr.f32.gmra.mrb[88].mxu1 %v19014_v57  ;;  %25565 = vst [vmem:[#allocation214_spill] sm:$0xff] %v19053_v7  ;;  %25566 = vst [vmem:[#allocation215_spill] sm:$0xff] %v19058_v5  ;;  %v750_v57 = vld [vmem:[%s24622_s1 + $0x1a0] sm:$0xff] }
 0x142   : > { %2313 = vmatprep.mubr.f32.mxu1 %v25415_v41  ;;  %25568 = vst [vmem:[#allocation217_spill] sm:$0xff] %v19071_v0  ;;  %v1585_v29 = vsel %vm1427_vm0, %v750_v57, 0  ;;  %v19091_v57 = vand.u32 4294901760, %v19071_v0 }
 0x143   : > { %3351 = vmatmul.mubr.f32.gmra.mrb[84].mxu0 %v18875_v24  ;;  %v19061_v24 = vsub.f32 %v1576_v44, %v19042_v49  ;;  %v19075_v44 = vand.u32 4294901760, %v2339_v27  ;;  %v19093_v27 = vand.u32 4294901760, %v1585_v29 }
 0x144   : > { %3356 = vmatprep.mubr.f32.mxu0 %v25415_v41  ;;  %25572 = vst [vmem:[#allocation221_spill] sm:$0xff] %v19091_v57 }
 0x145   : > { %2319 = vmatmul.mubr.f32.gmra.mrb[90].mxu1 %v19035_v43  ;;  %25567 = vst [vmem:[#allocation216_spill] sm:$0xff] %v19061_v24  ;;  %25569 = vst [vmem:[#allocation218_spill] sm:$0xff] %v19075_v44  ;;  %v2350_v43 = vsub.f32 %v19040_v50, %v19058_v5  ;;  %v19080_v42 = vand.u32 4294901760, %v19061_v24  ;;  %v1588_v50 = vsel %vm1427_vm0, %v751_v46, 0  ;;  %v2372_v46 = vsub.f32 %v19071_v0, %v19091_v57 }
 0x146   : > { %2324 = vmatprep.mubr.f32.mxu1 %v25415_v41  ;;  %25573 = vst [vmem:[#allocation222_spill] sm:$0xff] %v19093_v27 }
 0x147   : > { %3358 = vmatmul.mubr.f32.gmra.mrb[86].mxu0 %v18910_v59  ;;  %25570 = vst [vmem:[#allocation219_spill] sm:$0xff] %v19080_v42  ;;  %v19096_v59 = vand.u32 4294901760, %v2350_v43  ;;  %v2361_v5 = vsub.f32 %v19061_v24, %v19080_v42  ;;  %v19111_v43 = vsub.f32 %v1585_v29, %v19093_v27  ;;  %v753_v29 = vld [vmem:[%s24622_s1 + $0x1b8] sm:$0xff] }
 0x148   : > { %3363 = vmatprep.mubr.f32.mxu0 %v25415_v41  ;;  %v1594_v0 = vsel %vm1427_vm0, %v753_v29, 0 }
 0x149   : > { %2330 = vmatmul.mubr.f32.gmra.mrb[92].mxu1 %v19053_v7  ;;  %25574 = vst [vmem:[#allocation223_spill] sm:$0xff] %v19096_v59  ;;  %v19101_v7 = vsub.f32 %v1582_v51, %v19082_v56  ;;  %25576 = vst [vmem:[#allocation225_spill] sm:$0xff] %v19111_v43  ;;  %v19116_v51 = vand.u32 4294901760, %v2361_v5  ;;  %v19131_v5 = vand.u32 4294901760, %v19111_v43 }
 0x14a   : > { %2335 = vmatprep.mubr.f32.mxu1 %v25415_v41 }
 0x14b   : > { %3365 = vmatmul.mubr.f32.gmra.mrb[88].mxu0 %v18921_v16  ;;  %25575 = vst [vmem:[#allocation224_spill] sm:$0xff] %v19101_v7  ;;  %v752_v16 = vld [vmem:[%s24622_s1 + $0x1b0] sm:$0xff]  ;;  %25578 = vst [vmem:[#allocation227_spill] sm:$0xff] %v19116_v51 }
 0x14c   : > { %3370 = vmatprep.mubr.f32.mxu0 %v25415_v41  ;;  %v1591_v42 = vsel %vm1427_vm0, %v752_v16, 0  ;;  %25580 = vst [vmem:[#allocation229_spill] sm:$0xff] %v19131_v5 }
 0x14d   : > { %2341 = vmatmul.mubr.f32.gmra.mrb[94].mxu1 %v19075_v44  ;;  %v19113_v44 = vand.u32 4294901760, %v1588_v50 }
 0x14e   : > { %2346 = vmatprep.mubr.f32.mxu1 %v25415_v41 }
 0x14f   : > { %3372 = vmatmul.mubr.f32.gmra.mrb[90].mxu0 %v18956_v14  ;;  %25577 = vst [vmem:[#allocation226_spill] sm:$0xff] %v19113_v44  ;;  %v19121_v14 = vand.u32 4294901760, %v19101_v7  ;;  %v19134_v57 = vsub.f32 %v1588_v50, %v19113_v44  ;;  %v754_v50 = vld [vmem:[%s24622_s1 + $0x1c0] sm:$0xff] }
 0x150   : > { %3377 = vmatprep.mubr.f32.mxu0 %v25415_v41 }
 0x151   : > { %2352 = vmatmul.mubr.f32.gmra.mrb[96].mxu1 %v19096_v59  ;;  %25579 = vst [vmem:[#allocation228_spill] sm:$0xff] %v19121_v14  ;;  %25581 = vst [vmem:[#allocation230_spill] sm:$0xff] %v19134_v57  ;;  %v19137_v59 = vand.u32 4294901760, %v2372_v46  ;;  %v2383_v16 = vsub.f32 %v19101_v7, %v19121_v14  ;;  %v2394_v46 = vsub.f32 %v19111_v43, %v19131_v5  ;;  %v1597_v7 = vsel %vm1427_vm0, %v754_v50, 0  ;;  %v755_v5 = vld [vmem:[%s24622_s1 + $0x1c8] sm:$0xff] }
 0x152   : > { %2357 = vmatprep.mubr.f32.mxu1 %v25415_v41  ;;  %v19181_v43 = vand.u32 4294901760, %v1597_v7 }
 0x153   : > { %3379 = vmatmul.mubr.f32.gmra.mrb[92].mxu0 %v18967_v15  ;;  %25582 = vst [vmem:[#allocation231_spill] sm:$0xff] %v19137_v59  ;;  %v19141_v15 = vand.u32 4294901760, %v1591_v42  ;;  %v19156_v14 = vand.u32 4294901760, %v2383_v16 }
 0x154   : > { %3384 = vmatprep.mubr.f32.mxu0 %v25415_v41 }
 0x155   : > { %2363 = vmatmul.mubr.f32.gmra.mrb[98].mxu1 %v19116_v51  ;;  %25583 = vst [vmem:[#allocation232_spill] sm:$0xff] %v19141_v15  ;;  %v19153_v51 = vand.u32 4294901760, %v19134_v57  ;;  %25585 = vst [vmem:[#allocation234_spill] sm:$0xff] %v19156_v14  ;;  %v19159_v29 = vsub.f32 %v1591_v42, %v19141_v15  ;;  %v1600_v15 = vsel %vm1427_vm0, %v755_v5, 0 }
 0x156   : > { %2368 = vmatprep.mubr.f32.mxu1 %v25415_v41 }
 0x157   : > { %3386 = vmatmul.mubr.f32.gmra.mrb[94].mxu0 %v18990_v39  ;;  %25584 = vst [vmem:[#allocation233_spill] sm:$0xff] %v19153_v51  ;;  %25586 = vst [vmem:[#allocation235_spill] sm:$0xff] %v19159_v29  ;;  %v19161_v39 = vand.u32 4294901760, %v1594_v0  ;;  %v2405_v42 = vsub.f32 %v19134_v57, %v19153_v51  ;;  %v19176_v16 = vand.u32 4294901760, %v19159_v29  ;;  %v19192_v51 = vand.u32 4294901760, %v1600_v15 }
 0x158   : > { %3391 = vmatprep.mubr.f32.mxu0 %v25415_v41 }
 0x159   : > { %2374 = vmatmul.mubr.f32.gmra.mrb[100].mxu1 %v19137_v59  ;;  %v19170_v59 = vand.u32 4294901760, %v2394_v46  ;;  %25588 = vst [vmem:[#allocation237_spill] sm:$0xff] %v19176_v16  ;;  %v19179_v50 = vsub.f32 %v1594_v0, %v19161_v39  ;;  %v756_v46 = vld [vmem:[%s24622_s1 + $0x1d0] sm:$0xff]  ;;  %v2416_v0 = vsub.f32 %v19159_v29, %v19176_v16 }
 0x15a   : > { %2379 = vmatprep.mubr.f32.mxu1 %v25415_v41  ;;  %v1603_v57 = vsel %vm1427_vm0, %v756_v46, 0 }
 0x15b   : > { %3393 = vmatmul.mubr.f32.gmra.mrb[96].mxu0 %v19021_v1  ;;  %25587 = vst [vmem:[#allocation236_spill] sm:$0xff] %v19170_v59  ;;  %25589 = vst [vmem:[#allocation238_spill] sm:$0xff] %v19179_v50  ;;  %v19190_v1 = vand.u32 4294901760, %v2405_v42  ;;  %v19198_v5 = vand.u32 4294901760, %v19179_v50  ;;  %v19220_v46 = vand.u32 4294901760, %v2416_v0 }
 0x15c   : > { %3398 = vmatprep.mubr.f32.mxu0 %v25415_v41 }
 0x15d   : > { %2385 = vmatmul.mubr.f32.gmra.mrb[102].mxu1 %v19156_v14  ;;  %25590 = vst [vmem:[#allocation239_spill] sm:$0xff] %v19190_v1  ;;  %25591 = vst [vmem:[#allocation240_spill] sm:$0xff] %v19198_v5  ;;  %v19201_v14 = vsub.f32 %v1597_v7, %v19181_v43  ;;  %v19217_v7 = vand.u32 4294901760, %v1603_v57 }
 0x15e   : > { %2390 = vmatprep.mubr.f32.mxu1 %v25415_v41  ;;  %25596 = vst [vmem:[#allocation245_spill] sm:$0xff] %v19220_v46 }
 0x15f   : > { %3400 = vmatmul.mubr.f32.gmra.mrb[98].mxu0 %v19042_v49  ;;  %25592 = vst [vmem:[#allocation241_spill] sm:$0xff] %v19201_v14  ;;  %v757_v49 = vld [vmem:[%s24622_s1 + $0x1d8] sm:$0xff] }
 0x160   : > { %3405 = vmatprep.mubr.f32.mxu0 %v25415_v41  ;;  %v1606_v29 = vsel %vm1427_vm0, %v757_v49, 0 }
 0x161   : > { %2396 = vmatmul.mubr.f32.gmra.mrb[104].mxu1 %v19170_v59  ;;  %v19215_v59 = vsub.f32 %v1600_v15, %v19192_v51 }
 0x162   : > { %2401 = vmatprep.mubr.f32.mxu1 %v25415_v41 }
 0x163   : > { %3407 = vmatmul.mubr.f32.gmra.mrb[100].mxu0 %v19050_v35  ;;  %v19206_v42 = vpop.f32.mrb[0].mxu1  ;;  %25595 = vst [vmem:[#allocation244_spill] sm:$0xff] %v19215_v59  ;;  %v19225_v35 = vand.u32 4294901760, %v19201_v14 }
 0x164   : > { %25593 = vst [vmem:[#allocation242_spill] sm:$0xff] %v19206_v42  ;;  %3854 = vmatprep.mubr.f32.mxu0 %v25415_v41  ;;  %v19212_v16 = vpop.f32.mrb[1].mxu1  ;;  %v2427_v42 = vsub.f32 %v19179_v50, %v19198_v5  ;;  %v19240_v5 = vand.u32 4294901760, %v19215_v59 }
 0x165   : > { %25594 = vst [vmem:[#allocation243_spill] sm:$0xff] %v19212_v16  ;;  %2407 = vmatmul.mubr.f32.gmra.mrb[106].mxu1 %v19190_v1  ;;  %25597 = vst [vmem:[#allocation246_spill] sm:$0xff] %v19225_v35  ;;  %v758_v16 = vld [vmem:[%s24622_s1 + $0x1e0] sm:$0xff]  ;;  %v19243_v1 = vsub.f32 %v1603_v57, %v19217_v7  ;;  %v759_v57 = vld [vmem:[%s24622_s1 + $0x1e8] sm:$0xff] }
 0x166   : > { %2412 = vmatprep.mubr.f32.mxu1 %v25415_v41  ;;  %25600 = vst [vmem:[#allocation249_spill] sm:$0xff] %v19240_v5  ;;  %v19246_v49 = vand.u32 4294901760, %v2427_v42 }
 0x167   : > { %3857 = vmatmul.mubr.f32.vlgmr.msra.gmra.mrb[0].mxu0 %v17860_v38  ;;  %25601 = vst [vmem:[#allocation250_spill] sm:$0xff] %v19243_v1  ;;  %v19250_v38 = vand.u32 4294901760, %v1606_v29 }
 0x168   : > { %v19230_v15 = vpop.f32.mrb[2].mxu1  ;;  %15215 = vmatpush1.bf16.msra.mxu0 %v17891_v60  ;;  %3862 = vmatprep.mubr.f32.mxu0 %v25415_v41  ;;  %25602 = vst [vmem:[#allocation251_spill] sm:$0xff] %v19246_v49 }
 0x169   : > { %25598 = vst [vmem:[#allocation247_spill] sm:$0xff] %v19230_v15  ;;  %v19237_v0 = vpop.f32.mrb[3].mxu1  ;;  %2418 = vmatmul.mubr.f32.gmra.mrb[108].mxu1 %v19220_v46  ;;  %v2438_v15 = vsub.f32 %v19201_v14, %v19225_v35  ;;  %15217 = vmatprep.subr.bf16.mxu0 %v17897_v63  ;;  %v2449_v35 = vsub.f32 %v19215_v59, %v19240_v5  ;;  %v19267_v63 = vand.u32 4294901760, %v19243_v1  ;;  %v760_v5 = vld [vmem:[%s24622_s1 + $0x1f0] sm:$0xff] }
 0x16a   : > { %25599 = vst [vmem:[#allocation248_spill] sm:$0xff] %v19237_v0  ;;  %2423 = vmatprep.mubr.f32.mxu1 %v25415_v41  ;;  %v1609_v0 = vsel %vm1427_vm0, %v758_v16, 0 }
 0x16b   : > { %3865 = vmatmul.mubr.f32.gmra.mrb[2].mxu0 %v17874_v48  ;;  %25605 = vst [vmem:[#allocation254_spill] sm:$0xff] %v19267_v63  ;;  %v19271_v16 = vand.u32 4294901760, %v2438_v15  ;;  %v19276_v48 = vand.u32 4294901760, %v1609_v0  ;;  %v19286_v15 = vand.u32 4294901760, %v2449_v35  ;;  %v1615_v35 = vsel %vm1427_vm0, %v760_v5, 0 }
 0x16c   : > { %v19256_v60 = vpop.f32.mrb[4].mxu1  ;;  %3870 = vmatprep.mubr.f32.mxu0 %v25415_v41  ;;  %15219 = vmatpush1.bf16.msra.mxu0 %v17913_v9  ;;  %v2460_v9 = vsub.f32 %v19243_v1, %v19267_v63 }
 0x16d   : > { %25603 = vst [vmem:[#allocation252_spill] sm:$0xff] %v19256_v60  ;;  %v19262_v42 = vpop.f32.mrb[5].mxu1  ;;  %2429 = vmatmul.mubr.f32.gmra.mrb[110].mxu1 %v19246_v49  ;;  %25606 = vst [vmem:[#allocation255_spill] sm:$0xff] %v19271_v16  ;;  %v19274_v60 = vsub.f32 %v1606_v29, %v19250_v38  ;;  %4688 = vmatprep.subr.mxu0 %v17919_v12 }
 0x16e   : > { %25604 = vst [vmem:[#allocation253_spill] sm:$0xff] %v19262_v42  ;;  %2434 = vmatprep.mubr.f32.mxu1 %v25415_v41  ;;  %v1612_v42 = vsel %vm1427_vm0, %v759_v57, 0  ;;  %25608 = vst [vmem:[#allocation257_spill] sm:$0xff] %v19286_v15 }
 0x16f   : > { %25607 = vst [vmem:[#allocation256_spill] sm:$0xff] %v19274_v60  ;;  %3873 = vmatmul.mubr.f32.gmra.mrb[4].mxu0 %v17910_v8  ;;  %v19297_v12 = vand.u32 4294901760, %v19274_v60  ;;  %v19300_v8 = vsub.f32 %v1609_v0, %v19276_v48  ;;  %v19302_v49 = vand.u32 4294901760, %v1612_v42  ;;  %v19315_v0 = vand.u32 4294901760, %v1615_v35 }
 0x170   : > { %3878 = vmatprep.mubr.f32.mxu0 %v25415_v41  ;;  %v19288_v29 = vpop.f32.mrb[6].mxu1  ;;  %4690 = vmatpush1.msra.mxu0 %v17929_v17 }
 0x171   : > { %25609 = vst [vmem:[#allocation258_spill] sm:$0xff] %v19288_v29  ;;  %2440 = vmatmul.mubr.f32.gmra.mrb[112].mxu1 %v19271_v16  ;;  %v19294_v57 = vpop.f32.mrb[7].mxu1  ;;  %25611 = vst [vmem:[#allocation260_spill] sm:$0xff] %v19297_v12  ;;  %v761_v29 = vld [vmem:[%s24622_s1 + $0x1f8] sm:$0xff]  ;;  %v2471_v5 = vsub.f32 %v19274_v60, %v19297_v12  ;;  %v19323_v16 = vand.u32 4294901760, %v19300_v8  ;;  %v19338_v12 = vsub.f32 %v1615_v35, %v19315_v0  ;;  %v763_v35 = vld [vmem:[%s24622_s1 + $0x208] sm:$0xff] }
 0x172   : > { %25610 = vst [vmem:[#allocation259_spill] sm:$0xff] %v19294_v57  ;;  %25612 = vst [vmem:[#allocation261_spill] sm:$0xff] %v19300_v8  ;;  %2445 = vmatprep.mubr.f32.mxu1 %v25415_v41  ;;  %v19311_v57 = vand.u32 4294901760, %v2460_v9  ;;  %v1618_v9 = vsel %vm1427_vm0, %v761_v29, 0 }
 0x173   : > { %3881 = vmatmul.mubr.f32.gmra.mrb[6].mxu0 %v17994_v26  ;;  %25616 = vst [vmem:[#allocation265_spill] sm:$0xff] %v19323_v16  ;;  %v19326_v26 = vsub.f32 %v1612_v42, %v19302_v49  ;;  %25619 = vst [vmem:[#allocation268_spill] sm:$0xff] %v19338_v12  ;;  %v19343_v42 = vand.u32 4294901760, %v2471_v5 }
 0x174   : > { %3886 = vmatprep.mubr.f32.mxu0 %v25415_v41  ;;  %25613 = vst [vmem:[#allocation262_spill] sm:$0xff] %v19311_v57  ;;  %v19313_v17 = vpop.f32.mrb[8].mxu1 }
 0x175   : > { %25614 = vst [vmem:[#allocation263_spill] sm:$0xff] %v19313_v17  ;;  %2451 = vmatmul.mubr.f32.gmra.mrb[114].mxu1 %v19286_v15  ;;  %v19318_v63 = vpop.f32.mrb[9].mxu1  ;;  %25617 = vst [vmem:[#allocation266_spill] sm:$0xff] %v19326_v26  ;;  %v762_v17 = vld [vmem:[%s24622_s1 + $0x200] sm:$0xff]  ;;  %v19340_v15 = vand.u32 4294901760, %v1618_v9  ;;  %v19350_v46 = vand.u32 4294901760, %v19326_v26 }
 0x176   : > { %25615 = vst [vmem:[#allocation264_spill] sm:$0xff] %v19318_v63  ;;  %2456 = vmatprep.mubr.f32.mxu1 %v25415_v41  ;;  %25620 = vst [vmem:[#allocation269_spill] sm:$0xff] %v19343_v42 }
 0x177   : > { %3889 = vmatmul.mubr.f32.gmra.mrb[8].mxu0 %v18004_v36  ;;  %v2482_v36 = vsub.f32 %v19300_v8, %v19323_v16  ;;  %25622 = vst [vmem:[#allocation271_spill] sm:$0xff] %v19350_v46  ;;  %v19365_v16 = vsub.f32 %v1618_v9, %v19340_v15  ;;  %v764_v9 = vld [vmem:[%s24622_s1 + $0x210] sm:$0xff] }
 0x178   : > { %3894 = vmatprep.mubr.f32.mxu0 %v25415_v41  ;;  %v19335_v63 = vpop.f32.mrb[10].mxu1 }
 0x179   : > { %25618 = vst [vmem:[#allocation267_spill] sm:$0xff] %v19335_v63  ;;  %2462 = vmatmul.mubr.f32.gmra.mrb[116].mxu1 %v19311_v57  ;;  %v19345_v29 = vpop.f32.mrb[11].mxu1  ;;  %v1621_v63 = vsel %vm1427_vm0, %v762_v17, 0  ;;  %25625 = vst [vmem:[#allocation274_spill] sm:$0xff] %v19365_v16  ;;  %v19368_v57 = vand.u32 4294901760, %v2482_v36 }
 0x17a   : > { %25621 = vst [vmem:[#allocation270_spill] sm:$0xff] %v19345_v29  ;;  %2467 = vmatprep.mubr.f32.mxu1 %v25415_v41  ;;  %v19362_v29 = vand.u32 4294901760, %v19338_v12  ;;  %v19374_v8 = vand.u32 4294901760, %v1621_v63 }
 0x17b   : > { %3897 = vmatmul.mubr.f32.gmra.mrb[10].mxu0 %v18008_v37  ;;  %25626 = vst [vmem:[#allocation275_spill] sm:$0xff] %v19368_v57  ;;  %v2493_v37 = vsub.f32 %v19326_v26, %v19350_v46  ;;  %v19388_v46 = vand.u32 4294901760, %v19365_v16 }
 0x17c   : > { %3902 = vmatprep.mubr.f32.mxu0 %v25415_v41  ;;  %v19359_v5 = vpop.f32.mrb[12].mxu1  ;;  %25624 = vst [vmem:[#allocation273_spill] sm:$0xff] %v19362_v29 }
 0x17d   : > { %25623 = vst [vmem:[#allocation272_spill] sm:$0xff] %v19359_v5  ;;  %2473 = vmatmul.mubr.f32.gmra.mrb[118].mxu1 %v19343_v42  ;;  %v19370_v17 = vpop.f32.mrb[13].mxu1  ;;  %v1624_v5 = vsel %vm1427_vm0, %v763_v35, 0  ;;  %25629 = vst [vmem:[#allocation278_spill] sm:$0xff] %v19388_v46  ;;  %v19391_v42 = vand.u32 4294901760, %v2493_v37 }
 0x17e   : > { %25627 = vst [vmem:[#allocation276_spill] sm:$0xff] %v19370_v17  ;;  %2478 = vmatprep.mubr.f32.mxu1 %v25415_v41  ;;  %v2504_v17 = vsub.f32 %v19338_v12, %v19362_v29  ;;  %v19398_v26 = vand.u32 4294901760, %v1624_v5  ;;  %v765_v29 = vld [vmem:[%s24622_s1 + $0x218] sm:$0xff] }
 0x17f   : > { %3905 = vmatmul.mubr.f32.gmra.mrb[12].mxu0 %v18041_v21  ;;  %25630 = vst [vmem:[#allocation279_spill] sm:$0xff] %v19391_v42  ;;  %v19396_v21 = vsub.f32 %v1621_v63, %v19374_v8  ;;  %v2515_v63 = vsub.f32 %v19365_v16, %v19388_v46 }
 0x180   : > { %3910 = vmatprep.mubr.f32.mxu0 %v25415_v41  ;;  %v19383_v36 = vpop.f32.mrb[14].mxu1  ;;  %v19407_v37 = vand.u32 4294901760, %v2504_v17  ;;  %v19420_v12 = vsub.f32 %v1624_v5, %v19398_v26  ;;  %v1630_v17 = vsel %vm1427_vm0, %v765_v29, 0 }
 0x181   : > { %25628 = vst [vmem:[#allocation277_spill] sm:$0xff] %v19383_v36  ;;  %2484 = vmatmul.mubr.f32.gmra.mrb[120].mxu1 %v19368_v57  ;;  %v19393_v35 = vpop.f32.mrb[15].mxu1  ;;  %25632 = vst [vmem:[#allocation281_spill] sm:$0xff] %v19396_v21  ;;  %v1627_v36 = vsel %vm1427_vm0, %v764_v9, 0  ;;  %v19417_v9 = vand.u32 4294901760, %v19396_v21  ;;  %v19435_v5 = vand.u32 4294901760, %v1630_v17 }
 0x182   : > { %25631 = vst [vmem:[#allocation280_spill] sm:$0xff] %v19393_v35  ;;  %2489 = vmatprep.mubr.f32.mxu1 %v25415_v41  ;;  %25633 = vst [vmem:[#allocation282_spill] sm:$0xff] %v19407_v37  ;;  %v19443_v16 = vand.u32 4294901760, %v19420_v12 }
 0x183   : > { %3913 = vmatmul.mubr.f32.gmra.mrb[14].mxu0 %v18061_v47  ;;  %25636 = vst [vmem:[#allocation285_spill] sm:$0xff] %v19417_v9  ;;  %25637 = vst [vmem:[#allocation286_spill] sm:$0xff] %v19420_v12  ;;  %v19422_v47 = vand.u32 4294901760, %v1627_v36  ;;  %v2526_v29 = vsub.f32 %v19396_v21, %v19417_v9  ;;  %v19458_v9 = vsub.f32 %v1630_v17, %v19435_v5  ;;  %v768_v17 = vld [vmem:[%s24622_s1 + $0x230] sm:$0xff] }
 0x184   : > { %3918 = vmatprep.mubr.f32.mxu0 %v25415_v41  ;;  %v19409_v35 = vpop.f32.mrb[16].mxu1  ;;  %25642 = vst [vmem:[#allocation291_spill] sm:$0xff] %v19443_v16 }
 0x185   : > { %25634 = vst [vmem:[#allocation283_spill] sm:$0xff] %v19409_v35  ;;  %2495 = vmatmul.mubr.f32.gmra.mrb[122].mxu1 %v19391_v42  ;;  %v19414_v57 = vpop.f32.mrb[17].mxu1  ;;  %25638 = vst [vmem:[#allocation287_spill] sm:$0xff] %v19422_v47  ;;  %v766_v35 = vld [vmem:[%s24622_s1 + $0x220] sm:$0xff] }
 0x186   : > { %25635 = vst [vmem:[#allocation284_spill] sm:$0xff] %v19414_v57  ;;  %2500 = vmatprep.mubr.f32.mxu1 %v25415_v41  ;;  %v19431_v57 = vand.u32 4294901760, %v2515_v63  ;;  %v1633_v63 = vsel %vm1427_vm0, %v766_v35, 0  ;;  %25645 = vst [vmem:[#allocation294_spill] sm:$0xff] %v19458_v9 }
 0x187   : > { %3921 = vmatmul.mubr.f32.gmra.mrb[16].mxu0 %v18071_v58  ;;  %v19446_v58 = vsub.f32 %v1627_v36, %v19422_v47  ;;  %v19463_v36 = vand.u32 4294901760, %v2526_v29 }
 0x188   : > { %3926 = vmatprep.mubr.f32.mxu0 %v25415_v41  ;;  %25639 = vst [vmem:[#allocation288_spill] sm:$0xff] %v19431_v57  ;;  %v19433_v46 = vpop.f32.mrb[18].mxu1 }
 0x189   : > { %25640 = vst [vmem:[#allocation289_spill] sm:$0xff] %v19433_v46  ;;  %2506 = vmatmul.mubr.f32.gmra.mrb[124].mxu1 %v19407_v37  ;;  %v19438_v42 = vpop.f32.mrb[19].mxu1  ;;  %25643 = vst [vmem:[#allocation292_spill] sm:$0xff] %v19446_v58  ;;  %v767_v46 = vld [vmem:[%s24622_s1 + $0x228] sm:$0xff]  ;;  %v19460_v37 = vand.u32 4294901760, %v1633_v63  ;;  %v19470_v21 = vand.u32 4294901760, %v19446_v58 }
 0x18a   : > { %25641 = vst [vmem:[#allocation290_spill] sm:$0xff] %v19438_v42  ;;  %2511 = vmatprep.mubr.f32.mxu1 %v25415_v41  ;;  %25646 = vst [vmem:[#allocation295_spill] sm:$0xff] %v19463_v36 }
 0x18b   : > { %3929 = vmatmul.mubr.f32.gmra.mrb[18].mxu0 %v18101_v25  ;;  %v2537_v25 = vsub.f32 %v19420_v12, %v19443_v16  ;;  %25648 = vst [vmem:[#allocation297_spill] sm:$0xff] %v19470_v21  ;;  %v19485_v16 = vsub.f32 %v1633_v63, %v19460_v37  ;;  %v769_v63 = vld [vmem:[%s24622_s1 + $0x238] sm:$0xff] }
 0x18c   : > { %3934 = vmatprep.mubr.f32.mxu0 %v25415_v41  ;;  %v19455_v42 = vpop.f32.mrb[20].mxu1 }
 0x18d   : > { %25644 = vst [vmem:[#allocation293_spill] sm:$0xff] %v19455_v42  ;;  %2517 = vmatmul.mubr.f32.gmra.mrb[126].mxu1 %v19431_v57  ;;  %v19465_v35 = vpop.f32.mrb[21].mxu1  ;;  %v1636_v42 = vsel %vm1427_vm0, %v767_v46, 0  ;;  %25651 = vst [vmem:[#allocation300_spill] sm:$0xff] %v19485_v16  ;;  %v19488_v57 = vand.u32 4294901760, %v2537_v25 }
 0x18e   : > { %25647 = vst [vmem:[#allocation296_spill] sm:$0xff] %v19465_v35  ;;  %2522 = vmatprep.mubr.f32.mxu1 %v25415_v41  ;;  %v19482_v35 = vand.u32 4294901760, %v19458_v9  ;;  %v19494_v12 = vand.u32 4294901760, %v1636_v42 }
 0x18f   : > { %3937 = vmatmul.mubr.f32.gmra.mrb[20].mxu0 %v18111_v13  ;;  %25652 = vst [vmem:[#allocation301_spill] sm:$0xff] %v19488_v57  ;;  %v2548_v13 = vsub.f32 %v19446_v58, %v19470_v21  ;;  %v19508_v21 = vand.u32 4294901760, %v19485_v16 }
 0x190   : > { %3942 = vmatprep.mubr.f32.mxu0 %v25415_v41  ;;  %v19479_v29 = vpop.f32.mrb[22].mxu1  ;;  %25650 = vst [vmem:[#allocation299_spill] sm:$0xff] %v19482_v35 }
 0x191   : > { %25649 = vst [vmem:[#allocation298_spill] sm:$0xff] %v19479_v29  ;;  %2528 = vmatmul.mubr.f32.gmra.mrb[128].mxu1 %v19463_v36  ;;  %v19490_v46 = vpop.f32.mrb[23].mxu1  ;;  %v1639_v29 = vsel %vm1427_vm0, %v768_v17, 0  ;;  %25655 = vst [vmem:[#allocation304_spill] sm:$0xff] %v19508_v21  ;;  %v19511_v36 = vand.u32 4294901760, %v2548_v13 }
 0x192   : > { %25653 = vst [vmem:[#allocation302_spill] sm:$0xff] %v19490_v46  ;;  %2533 = vmatprep.mubr.f32.mxu1 %v25415_v41  ;;  %v2559_v46 = vsub.f32 %v19458_v9, %v19482_v35  ;;  %v19518_v58 = vand.u32 4294901760, %v1639_v29  ;;  %v770_v35 = vld [vmem:[%s24622_s1 + $0x240] sm:$0xff] }
 0x193   : > { %3945 = vmatmul.mubr.f32.gmra.mrb[22].mxu0 %v18145_v31  ;;  %25656 = vst [vmem:[#allocation305_spill] sm:$0xff] %v19511_v36  ;;  %v19516_v31 = vsub.f32 %v1636_v42, %v19494_v12  ;;  %v2570_v42 = vsub.f32 %v19485_v16, %v19508_v21 }
 0x194   : > { %3950 = vmatprep.mubr.f32.mxu0 %v25415_v41  ;;  %v19503_v25 = vpop.f32.mrb[24].mxu1  ;;  %v19527_v13 = vand.u32 4294901760, %v2559_v46  ;;  %v19540_v9 = vsub.f32 %v1639_v29, %v19518_v58  ;;  %v1645_v46 = vsel %vm1427_vm0, %v770_v35, 0 }
 0x195   : > { %25654 = vst [vmem:[#allocation303_spill] sm:$0xff] %v19503_v25  ;;  %2539 = vmatmul.mubr.f32.gmra.mrb[130].mxu1 %v19488_v57  ;;  %v19513_v17 = vpop.f32.mrb[25].mxu1  ;;  %25658 = vst [vmem:[#allocation307_spill] sm:$0xff] %v19516_v31  ;;  %v1642_v25 = vsel %vm1427_vm0, %v769_v63, 0  ;;  %v19537_v63 = vand.u32 4294901760, %v19516_v31  ;;  %v19555_v29 = vand.u32 4294901760, %v1645_v46 }
 0x196   : > { %25657 = vst [vmem:[#allocation306_spill] sm:$0xff] %v19513_v17  ;;  %2544 = vmatprep.mubr.f32.mxu1 %v25415_v41  ;;  %25659 = vst [vmem:[#allocation308_spill] sm:$0xff] %v19527_v13  ;;  %v19563_v16 = vand.u32 4294901760, %v19540_v9 }
 0x197   : > { %3953 = vmatmul.mubr.f32.gmra.mrb[24].mxu0 %v18162_v18  ;;  %25662 = vst [vmem:[#allocation311_spill] sm:$0xff] %v19537_v63  ;;  %25663 = vst [vmem:[#allocation312_spill] sm:$0xff] %v19540_v9  ;;  %v19542_v18 = vand.u32 4294901760, %v1642_v25  ;;  %v2581_v35 = vsub.f32 %v19516_v31, %v19537_v63  ;;  %v19578_v63 = vsub.f32 %v1645_v46, %v19555_v29  ;;  %v773_v46 = vld [vmem:[%s24622_s1 + $0x258] sm:$0xff] }
 0x198   : > { %3958 = vmatprep.mubr.f32.mxu0 %v25415_v41  ;;  %v19529_v17 = vpop.f32.mrb[26].mxu1  ;;  %25666 = vst [vmem:[#allocation315_spill] sm:$0xff] %v19555_v29  ;;  %25668 = vst [vmem:[#allocation317_spill] sm:$0xff] %v19563_v16 }
 0x199   : > { %25660 = vst [vmem:[#allocation309_spill] sm:$0xff] %v19529_v17  ;;  %2550 = vmatmul.mubr.f32.gmra.mrb[132].mxu1 %v19511_v36  ;;  %v19534_v57 = vpop.f32.mrb[27].mxu1  ;;  %v771_v17 = vld [vmem:[%s24622_s1 + $0x248] sm:$0xff]  ;;  %25671 = vst [vmem:[#allocation320_spill] sm:$0xff] %v19578_v63 }
 0x19a   : > { %25661 = vst [vmem:[#allocation310_spill] sm:$0xff] %v19534_v57  ;;  %2555 = vmatprep.mubr.f32.mxu1 %v25415_v41  ;;  %v19551_v57 = vand.u32 4294901760, %v2570_v42  ;;  %v1648_v42 = vsel %vm1427_vm0, %v771_v17, 0 }
 0x19b   : > { %3961 = vmatmul.mubr.f32.gmra.mrb[26].mxu0 %v18191_v19  ;;  %v19566_v19 = vsub.f32 %v1642_v25, %v19542_v18  ;;  %v19583_v25 = vand.u32 4294901760, %v2581_v35 }
 0x19c   : > { %3966 = vmatprep.mubr.f32.mxu0 %v25415_v41  ;;  %25664 = vst [vmem:[#allocation313_spill] sm:$0xff] %v19551_v57  ;;  %v19553_v21 = vpop.f32.mrb[28].mxu1 }
 0x19d   : > { %25665 = vst [vmem:[#allocation314_spill] sm:$0xff] %v19553_v21  ;;  %2561 = vmatmul.mubr.f32.gmra.mrb[134].mxu1 %v19527_v13  ;;  %v19558_v36 = vpop.f32.mrb[29].mxu1  ;;  %25669 = vst [vmem:[#allocation318_spill] sm:$0xff] %v19566_v19  ;;  %v772_v21 = vld [vmem:[%s24622_s1 + $0x250] sm:$0xff]  ;;  %v19580_v13 = vand.u32 4294901760, %v1648_v42  ;;  %v19590_v31 = vand.u32 4294901760, %v19566_v19 }
 0x19e   : > { %25667 = vst [vmem:[#allocation316_spill] sm:$0xff] %v19558_v36  ;;  %2566 = vmatprep.mubr.f32.mxu1 %v25415_v41  ;;  %25673 = vst [vmem:[#allocation322_spill] sm:$0xff] %v19583_v25 }
 0x19f   : > { %3969 = vmatmul.mubr.f32.gmra.mrb[28].mxu0 %v18226_v23  ;;  %25672 = vst [vmem:[#allocation321_spill] sm:$0xff] %v19580_v13  ;;  %v2592_v23 = vsub.f32 %v19540_v9, %v19563_v16  ;;  %25675 = vst [vmem:[#allocation324_spill] sm:$0xff] %v19590_v31  ;;  %v19605_v16 = vsub.f32 %v1648_v42, %v19580_v13  ;;  %v774_v42 = vld [vmem:[%s24622_s1 + $0x260] sm:$0xff] }
 0x1a0   : > { %3974 = vmatprep.mubr.f32.mxu0 %v25415_v41  ;;  %v19575_v36 = vpop.f32.mrb[30].mxu1 }
 0x1a1   : > { %25670 = vst [vmem:[#allocation319_spill] sm:$0xff] %v19575_v36  ;;  %2572 = vmatmul.mubr.f32.gmra.mrb[136].mxu1 %v19551_v57  ;;  %v19585_v17 = vpop.f32.mrb[31].mxu1  ;;  %v1651_v36 = vsel %vm1427_vm0, %v772_v21, 0  ;;  %25678 = vst [vmem:[#allocation327_spill] sm:$0xff] %v19605_v16  ;;  %v19608_v57 = vand.u32 4294901760, %v2592_v23 }
 0x1a2   : > { %25674 = vst [vmem:[#allocation323_spill] sm:$0xff] %v19585_v17  ;;  %2577 = vmatprep.mubr.f32.mxu1 %v25415_v41  ;;  %v19602_v17 = vand.u32 4294901760, %v19578_v63  ;;  %v19614_v9 = vand.u32 4294901760, %v1651_v36 }
 0x1a3   : > { %3977 = vmatmul.mubr.f32.gmra.mrb[30].mxu0 %v18242_v20  ;;  %25679 = vst [vmem:[#allocation328_spill] sm:$0xff] %v19608_v57  ;;  %v2603_v20 = vsub.f32 %v19566_v19, %v19590_v31  ;;  %v19628_v31 = vand.u32 4294901760, %v19605_v16 }
 0x1a4   : > { %3982 = vmatprep.mubr.f32.mxu0 %v25415_v41  ;;  %v19599_v35 = vpop.f32.mrb[32].mxu1  ;;  %25677 = vst [vmem:[#allocation326_spill] sm:$0xff] %v19602_v17  ;;  %25681 = vst [vmem:[#allocation330_spill] sm:$0xff] %v19614_v9 }
 0x1a5   : > { %25676 = vst [vmem:[#allocation325_spill] sm:$0xff] %v19599_v35  ;;  %2583 = vmatmul.mubr.f32.gmra.mrb[138].mxu1 %v19583_v25  ;;  %v19610_v21 = vpop.f32.mrb[33].mxu1  ;;  %v1654_v35 = vsel %vm1427_vm0, %v773_v46, 0  ;;  %25683 = vst [vmem:[#allocation332_spill] sm:$0xff] %v19628_v31  ;;  %v19631_v25 = vand.u32 4294901760, %v2603_v20 }
 0x1a6   : > { %25680 = vst [vmem:[#allocation329_spill] sm:$0xff] %v19610_v21  ;;  %2588 = vmatprep.mubr.f32.mxu1 %v25415_v41  ;;  %v2614_v21 = vsub.f32 %v19578_v63, %v19602_v17  ;;  %v19638_v19 = vand.u32 4294901760, %v1654_v35  ;;  %v775_v17 = vld [vmem:[%s24622_s1 + $0x268] sm:$0xff] }
 0x1a7   : > { %3985 = vmatmul.mubr.f32.gmra.mrb[32].mxu0 %v18278_v33  ;;  %25684 = vst [vmem:[#allocation333_spill] sm:$0xff] %v19631_v25  ;;  %v19636_v33 = vsub.f32 %v1651_v36, %v19614_v9  ;;  %v2625_v36 = vsub.f32 %v19605_v16, %v19628_v31 }
 0x1a8   : > { %3990 = vmatprep.mubr.f32.mxu0 %v25415_v41  ;;  %v19623_v23 = vpop.f32.mrb[34].mxu1  ;;  %25687 = vst [vmem:[#allocation336_spill] sm:$0xff] %v19638_v19  ;;  %v19647_v20 = vand.u32 4294901760, %v2614_v21  ;;  %v19660_v63 = vsub.f32 %v1654_v35, %v19638_v19  ;;  %v1660_v21 = vsel %vm1427_vm0, %v775_v17, 0 }
 0x1a9   : > { %25682 = vst [vmem:[#allocation331_spill] sm:$0xff] %v19623_v23  ;;  %2594 = vmatmul.mubr.f32.gmra.mrb[140].mxu1 %v19608_v57  ;;  %v19633_v46 = vpop.f32.mrb[35].mxu1  ;;  %25686 = vst [vmem:[#allocation335_spill] sm:$0xff] %v19636_v33  ;;  %v1657_v23 = vsel %vm1427_vm0, %v774_v42, 0  ;;  %v19657_v42 = vand.u32 4294901760, %v19636_v33  ;;  %v19675_v31 = vand.u32 4294901760, %v1660_v21 }
 0x1aa   : > { %25685 = vst [vmem:[#allocation334_spill] sm:$0xff] %v19633_v46  ;;  %2599 = vmatprep.mubr.f32.mxu1 %v25415_v41  ;;  %25688 = vst [vmem:[#allocation337_spill] sm:$0xff] %v19647_v20  ;;  %v19683_v16 = vand.u32 4294901760, %v19660_v63 }
 0x1ab   : > { %3993 = vmatmul.mubr.f32.gmra.mrb[34].mxu0 %v18294_v30  ;;  %25691 = vst [vmem:[#allocation340_spill] sm:$0xff] %v19657_v42  ;;  %25692 = vst [vmem:[#allocation341_spill] sm:$0xff] %v19660_v63  ;;  %v19662_v30 = vand.u32 4294901760, %v1657_v23 }
 0x1ac   : > { %3998 = vmatprep.mubr.f32.mxu0 %v25415_v41  ;;  %v19649_v46 = vpop.f32.mrb[36].mxu1  ;;  %25696 = vst [vmem:[#allocation345_spill] sm:$0xff] %v19675_v31  ;;  %25698 = vst [vmem:[#allocation347_spill] sm:$0xff] %v19683_v16  ;;  %v2647_v9 = vsub.f32 %v19660_v63, %v19683_v16 }
 0x1ad   : > { %25689 = vst [vmem:[#allocation338_spill] sm:$0xff] %v19649_v46  ;;  %2605 = vmatmul.mubr.f32.gmra.mrb[142].mxu1 %v19631_v25  ;;  %v19654_v57 = vpop.f32.mrb[37].mxu1  ;;  %25693 = vst [vmem:[#allocation342_spill] sm:$0xff] %v19662_v30  ;;  %v776_v46 = vld [vmem:[%s24622_s1 + $0x270] sm:$0xff]  ;;  %v2636_v25 = vsub.f32 %v19636_v33, %v19657_v42 }
 0x1ae   : > { %25690 = vst [vmem:[#allocation339_spill] sm:$0xff] %v19654_v57  ;;  %2610 = vmatprep.mubr.f32.mxu1 %v25415_v41  ;;  %v19671_v57 = vand.u32 4294901760, %v2625_v36  ;;  %v1663_v36 = vsel %vm1427_vm0, %v776_v46, 0 }
 0x1af   : > { %4001 = vmatmul.mubr.f32.gmra.mrb[36].mxu0 %v18330_v28  ;;  %v19686_v28 = vsub.f32 %v1657_v23, %v19662_v30  ;;  %v19704_v23 = vsub.f32 %v1660_v21, %v19675_v31  ;;  %v19706_v46 = vand.u32 4294901760, %v1663_v36  ;;  %v19711_v30 = vand.u32 4294901760, %v2636_v25  ;;  %v778_v25 = vld [vmem:[%s24622_s1 + $0x280] sm:$0xff] }
 0x1b0   : > { %4006 = vmatprep.mubr.f32.mxu0 %v25415_v41  ;;  %25694 = vst [vmem:[#allocation343_spill] sm:$0xff] %v19671_v57  ;;  %v19673_v35 = vpop.f32.mrb[38].mxu1 }
 0x1b1   : > { %25695 = vst [vmem:[#allocation344_spill] sm:$0xff] %v19673_v35  ;;  %2616 = vmatmul.mubr.f32.gmra.mrb[144].mxu1 %v19647_v20  ;;  %v19678_v17 = vpop.f32.mrb[39].mxu1  ;;  %25699 = vst [vmem:[#allocation348_spill] sm:$0xff] %v19686_v28  ;;  %v777_v35 = vld [vmem:[%s24622_s1 + $0x278] sm:$0xff]  ;;  %v19698_v20 = vld [vmem:[%s17854_s4 + $0x28] sm:$0xff]  ;;  %v19736_v16 = vand.u32 4294901760, %v19704_v23 }
 0x1b2   : > { %25697 = vst [vmem:[#allocation346_spill] sm:$0xff] %v19678_v17  ;;  %2621 = vmatprep.mubr.f32.mxu1 %v25415_v41  ;;  %v19695_v17 = vld [vmem:[%s17854_s4 + $0x10] sm:$0xff]  ;;  %25701 = vst [vmem:[#allocation350_spill] sm:$0xff] %v19704_v23  ;;  %v1666_v21 = vsel %vm1427_vm0, %v777_v35, 0  ;;  %v19739_v35 = vsub.f32 %v1663_v36, %v19706_v46 }
 0x1b3   : > { %4009 = vmatmul.mubr.f32.gmra.mrb[38].mxu0 %v18348_v4  ;;  %25702 = vst [vmem:[#allocation351_spill] sm:$0xff] %v19706_v46  ;;  %v25077_v33 = vand.u32 4294901760, %v19695_v17  ;;  %v25076_v4 = vand.u32 4294901760, %v19698_v20  ;;  %25703 = vst [vmem:[#allocation352_spill] sm:$0xff] %v19711_v30  ;;  %v779_v36 = vld [vmem:[%s24622_s1 + $0x288] sm:$0xff] }
 0x1b4   : > { %4014 = vmatprep.mubr.f32.mxu0 %v25415_v41  ;;  %v19701_v42 = vpop.f32.mrb[40].mxu1  ;;  %25707 = vst [vmem:[#allocation356_spill] sm:$0xff] %v19736_v16  ;;  %25708 = vst [vmem:[#allocation357_spill] sm:$0xff] %v19739_v35 }
 0x1b5   : > { %25700 = vst [vmem:[#allocation349_spill] sm:$0xff] %v19701_v42  ;;  %2627 = vmatmul.mubr.f32.gmra.mrb[146].mxu1 %v19671_v57  ;;  %v19713_v19 = vpop.f32.mrb[41].mxu1  ;;  %v19718_v42 = vand.u32 4294901760, %v19686_v28  ;;  %v19726_v31 = vpack.c.bf16 %v25076_v4, %v25077_v33  ;;  %v19743_v4 = vand.u32 4294901760, %v2647_v9  ;;  %v19749_v57 = vand.u32 4294901760, %v1666_v21 }
 0x1b6   : > { %25704 = vst [vmem:[#allocation353_spill] sm:$0xff] %v19713_v19  ;;  %2632 = vmatprep.mubr.f32.mxu1 %v25415_v41 }
 0x1b7   : > { %25705 = vst [vmem:[#allocation354_spill] sm:$0xff] %v19718_v42  ;;  %4017 = vmatmul.mubr.f32.gmra.mrb[40].mxu0 %v18382_v40  ;;  %15237 = vmatprep.subr.bf16.mxu1 %v19726_v31  ;;  %25709 = vst [vmem:[#allocation358_spill] sm:$0xff] %v19743_v4  ;;  %v2658_v40 = vsub.f32 %v19686_v28, %v19718_v42  ;;  %v19763_v42 = vand.u32 4294901760, %v19739_v35 }
 0x1b8   : > { %4022 = vmatprep.mubr.f32.mxu0 %v25415_v41  ;;  %v19733_v19 = vpop.f32.mrb[42].mxu1  ;;  %25711 = vst [vmem:[#allocation360_spill] sm:$0xff] %v19749_v57 }
 0x1b9   : > { %25706 = vst [vmem:[#allocation355_spill] sm:$0xff] %v19733_v19  ;;  %2638 = vmatmul.mubr.f32.gmra.mrb[148].mxu1 %v19711_v30  ;;  %v19745_v33 = vpop.f32.mrb[43].mxu1  ;;  %v1669_v19 = vsel %vm1427_vm0, %v778_v25, 0  ;;  %25713 = vst [vmem:[#allocation362_spill] sm:$0xff] %v19763_v42  ;;  %v19766_v30 = vand.u32 4294901760, %v2658_v40 }
 0x1ba   : > { %25710 = vst [vmem:[#allocation359_spill] sm:$0xff] %v19745_v33  ;;  %2643 = vmatprep.mubr.f32.mxu1 %v25415_v41  ;;  %v2669_v33 = vsub.f32 %v19704_v23, %v19736_v16  ;;  %v19773_v28 = vand.u32 4294901760, %v1669_v19  ;;  %v780_v16 = vld [vmem:[%s24622_s1 + $0x290] sm:$0xff] }
 0x1bb   : > { %4025 = vmatmul.mubr.f32.gmra.mrb[42].mxu0 %v18408_v53  ;;  %25714 = vst [vmem:[#allocation363_spill] sm:$0xff] %v19766_v30  ;;  %v19771_v53 = vsub.f32 %v1666_v21, %v19749_v57  ;;  %v2680_v21 = vsub.f32 %v19739_v35, %v19763_v42 }
 0x1bc   : > { %4030 = vmatprep.mubr.f32.mxu0 %v25415_v41  ;;  %v19758_v9 = vpop.f32.mrb[44].mxu1  ;;  %25717 = vst [vmem:[#allocation366_spill] sm:$0xff] %v19773_v28  ;;  %v19782_v40 = vand.u32 4294901760, %v2669_v33  ;;  %v19795_v23 = vsub.f32 %v1669_v19, %v19773_v28  ;;  %v1675_v33 = vsel %vm1427_vm0, %v780_v16, 0 }
 0x1bd   : > { %25712 = vst [vmem:[#allocation361_spill] sm:$0xff] %v19758_v9  ;;  %2649 = vmatmul.mubr.f32.gmra.mrb[150].mxu1 %v19743_v4  ;;  %v19768_v25 = vpop.f32.mrb[45].mxu1  ;;  %25716 = vst [vmem:[#allocation365_spill] sm:$0xff] %v19771_v53  ;;  %v1672_v9 = vsel %vm1427_vm0, %v779_v36, 0  ;;  %v19792_v36 = vand.u32 4294901760, %v19771_v53  ;;  %v19810_v19 = vand.u32 4294901760, %v1675_v33 }
 0x1be   : > { %25715 = vst [vmem:[#allocation364_spill] sm:$0xff] %v19768_v25  ;;  %2654 = vmatprep.mubr.f32.mxu1 %v25415_v41  ;;  %25718 = vst [vmem:[#allocation367_spill] sm:$0xff] %v19782_v40  ;;  %v19818_v35 = vand.u32 4294901760, %v19795_v23 }
 0x1bf   : > { %4033 = vmatmul.mubr.f32.gmra.mrb[44].mxu0 %v18424_v32  ;;  %25721 = vst [vmem:[#allocation370_spill] sm:$0xff] %v19792_v36  ;;  %25722 = vst [vmem:[#allocation371_spill] sm:$0xff] %v19795_v23  ;;  %v19797_v32 = vand.u32 4294901760, %v1672_v9  ;;  %v2691_v16 = vsub.f32 %v19771_v53, %v19792_v36  ;;  %v19833_v36 = vsub.f32 %v1675_v33, %v19810_v19  ;;  %v783_v33 = vld [vmem:[%s24622_s1 + $0x2a8] sm:$0xff] }
 0x1c0   : > { %4038 = vmatprep.mubr.f32.mxu0 %v25415_v41  ;;  %v19784_v25 = vpop.f32.mrb[46].mxu1  ;;  %25726 = vst [vmem:[#allocation375_spill] sm:$0xff] %v19810_v19  ;;  %25728 = vst [vmem:[#allocation377_spill] sm:$0xff] %v19818_v35 }
 0x1c1   : > { %25719 = vst [vmem:[#allocation368_spill] sm:$0xff] %v19784_v25  ;;  %2660 = vmatmul.mubr.f32.gmra.mrb[152].mxu1 %v19766_v30  ;;  %v19789_v4 = vpop.f32.mrb[47].mxu1  ;;  %25723 = vst [vmem:[#allocation372_spill] sm:$0xff] %v19797_v32  ;;  %v781_v25 = vld [vmem:[%s24622_s1 + $0x298] sm:$0xff] }
 0x1c2   : > { %25720 = vst [vmem:[#allocation369_spill] sm:$0xff] %v19789_v4  ;;  %2665 = vmatprep.mubr.f32.mxu1 %v25415_v41  ;;  %v19806_v4 = vand.u32 4294901760, %v2680_v21  ;;  %v1678_v21 = vsel %vm1427_vm0, %v781_v25, 0  ;;  %25731 = vst [vmem:[#allocation380_spill] sm:$0xff] %v19833_v36 }
 0x1c3   : > { %4041 = vmatmul.mubr.f32.gmra.mrb[46].mxu0 %v18459_v10  ;;  %v19821_v10 = vsub.f32 %v1672_v9, %v19797_v32  ;;  %v19838_v9 = vand.u32 4294901760, %v2691_v16 }
 0x1c4   : > { %4046 = vmatprep.mubr.f32.mxu0 %v25415_v41  ;;  %25724 = vst [vmem:[#allocation373_spill] sm:$0xff] %v19806_v4  ;;  %v19808_v42 = vpop.f32.mrb[48].mxu1 }
 0x1c5   : > { %25725 = vst [vmem:[#allocation374_spill] sm:$0xff] %v19808_v42  ;;  %2671 = vmatmul.mubr.f32.gmra.mrb[154].mxu1 %v19782_v40  ;;  %v19813_v30 = vpop.f32.mrb[49].mxu1  ;;  %25729 = vst [vmem:[#allocation378_spill] sm:$0xff] %v19821_v10  ;;  %v782_v42 = vld [vmem:[%s24622_s1 + $0x2a0] sm:$0xff]  ;;  %v19835_v40 = vand.u32 4294901760, %v1678_v21  ;;  %v19845_v53 = vand.u32 4294901760, %v19821_v10 }
 0x1c6   : > { %25727 = vst [vmem:[#allocation376_spill] sm:$0xff] %v19813_v30  ;;  %2676 = vmatprep.mubr.f32.mxu1 %v25415_v41  ;;  %25733 = vst [vmem:[#allocation382_spill] sm:$0xff] %v19838_v9 }
 0x1c7   : > { %4049 = vmatmul.mubr.f32.gmra.mrb[48].mxu0 %v18486_v22  ;;  %25732 = vst [vmem:[#allocation381_spill] sm:$0xff] %v19835_v40  ;;  %v2702_v22 = vsub.f32 %v19795_v23, %v19818_v35  ;;  %25735 = vst [vmem:[#allocation384_spill] sm:$0xff] %v19845_v53  ;;  %v19860_v35 = vsub.f32 %v1678_v21, %v19835_v40  ;;  %v784_v21 = vld [vmem:[%s24622_s1 + $0x2b0] sm:$0xff] }
 0x1c8   : > { %4054 = vmatprep.mubr.f32.mxu0 %v25415_v41  ;;  %v19830_v30 = vpop.f32.mrb[50].mxu1 }
 0x1c9   : > { %25730 = vst [vmem:[#allocation379_spill] sm:$0xff] %v19830_v30  ;;  %2682 = vmatmul.mubr.f32.gmra.mrb[156].mxu1 %v19806_v4  ;;  %v19840_v25 = vpop.f32.mrb[51].mxu1  ;;  %v1681_v30 = vsel %vm1427_vm0, %v782_v42, 0  ;;  %25738 = vst [vmem:[#allocation387_spill] sm:$0xff] %v19860_v35  ;;  %v19863_v4 = vand.u32 4294901760, %v2702_v22 }
 0x1ca   : > { %25734 = vst [vmem:[#allocation383_spill] sm:$0xff] %v19840_v25  ;;  %2687 = vmatprep.mubr.f32.mxu1 %v25415_v41  ;;  %v19857_v25 = vand.u32 4294901760, %v19833_v36  ;;  %v19869_v23 = vand.u32 4294901760, %v1681_v30 }
 0x1cb   : > { %4057 = vmatmul.mubr.f32.gmra.mrb[50].mxu0 %v18502_v45  ;;  %25739 = vst [vmem:[#allocation388_spill] sm:$0xff] %v19863_v4  ;;  %v2713_v45 = vsub.f32 %v19821_v10, %v19845_v53  ;;  %v19883_v53 = vand.u32 4294901760, %v19860_v35 }
 0x1cc   : > { %4062 = vmatprep.mubr.f32.mxu0 %v25415_v41  ;;  %v19854_v16 = vpop.f32.mrb[52].mxu1  ;;  %25737 = vst [vmem:[#allocation386_spill] sm:$0xff] %v19857_v25  ;;  %25741 = vst [vmem:[#allocation390_spill] sm:$0xff] %v19869_v23 }
 0x1cd   : > { %25736 = vst [vmem:[#allocation385_spill] sm:$0xff] %v19854_v16  ;;  %2693 = vmatmul.mubr.f32.gmra.mrb[158].mxu1 %v19838_v9  ;;  %v19865_v42 = vpop.f32.mrb[53].mxu1  ;;  %v1684_v16 = vsel %vm1427_vm0, %v783_v33, 0  ;;  %25743 = vst [vmem:[#allocation392_spill] sm:$0xff] %v19883_v53  ;;  %v19886_v9 = vand.u32 4294901760, %v2713_v45 }
 0x1ce   : > { %25740 = vst [vmem:[#allocation389_spill] sm:$0xff] %v19865_v42  ;;  %2698 = vmatprep.mubr.f32.mxu1 %v25415_v41  ;;  %v2724_v42 = vsub.f32 %v19833_v36, %v19857_v25  ;;  %v19893_v10 = vand.u32 4294901760, %v1684_v16  ;;  %v785_v25 = vld [vmem:[%s24622_s1 + $0x2b8] sm:$0xff] }
 0x1cf   : > { %4065 = vmatmul.mubr.f32.gmra.mrb[52].mxu0 %v18538_v55  ;;  %25744 = vst [vmem:[#allocation393_spill] sm:$0xff] %v19886_v9  ;;  %v19891_v55 = vsub.f32 %v1681_v30, %v19869_v23  ;;  %v2735_v30 = vsub.f32 %v19860_v35, %v19883_v53 }
 0x1d0   : > { %4070 = vmatprep.mubr.f32.mxu0 %v25415_v41  ;;  %v19878_v22 = vpop.f32.mrb[54].mxu1  ;;  %25747 = vst [vmem:[#allocation396_spill] sm:$0xff] %v19893_v10  ;;  %v19902_v45 = vand.u32 4294901760, %v2724_v42  ;;  %v19915_v36 = vsub.f32 %v1684_v16, %v19893_v10  ;;  %v1690_v42 = vsel %vm1427_vm0, %v785_v25, 0 }
 0x1d1   : > { %25742 = vst [vmem:[#allocation391_spill] sm:$0xff] %v19878_v22  ;;  %2704 = vmatmul.mubr.f32.gmra.mrb[160].mxu1 %v19863_v4  ;;  %v19888_v33 = vpop.f32.mrb[55].mxu1  ;;  %25746 = vst [vmem:[#allocation395_spill] sm:$0xff] %v19891_v55  ;;  %v1687_v22 = vsel %vm1427_vm0, %v784_v21, 0  ;;  %v19912_v21 = vand.u32 4294901760, %v19891_v55  ;;  %v19930_v16 = vand.u32 4294901760, %v1690_v42 }
 0x1d2   : > { %25745 = vst [vmem:[#allocation394_spill] sm:$0xff] %v19888_v33  ;;  %2709 = vmatprep.mubr.f32.mxu1 %v25415_v41  ;;  %25748 = vst [vmem:[#allocation397_spill] sm:$0xff] %v19902_v45  ;;  %v19938_v35 = vand.u32 4294901760, %v19915_v36 }
 0x1d3   : > { %4073 = vmatmul.mubr.f32.gmra.mrb[54].mxu0 %v18554_v6  ;;  %25751 = vst [vmem:[#allocation400_spill] sm:$0xff] %v19912_v21  ;;  %25752 = vst [vmem:[#allocation401_spill] sm:$0xff] %v19915_v36  ;;  %v19917_v6 = vand.u32 4294901760, %v1687_v22  ;;  %v2746_v25 = vsub.f32 %v19891_v55, %v19912_v21  ;;  %v19953_v21 = vsub.f32 %v1690_v42, %v19930_v16  ;;  %v788_v42 = vld [vmem:[%s24622_s1 + $0x2d0] sm:$0xff] }
 0x1d4   : > { %4078 = vmatprep.mubr.f32.mxu0 %v25415_v41  ;;  %v19904_v33 = vpop.f32.mrb[56].mxu1  ;;  %25756 = vst [vmem:[#allocation405_spill] sm:$0xff] %v19930_v16  ;;  %25758 = vst [vmem:[#allocation407_spill] sm:$0xff] %v19938_v35 }
 0x1d5   : > { %25749 = vst [vmem:[#allocation398_spill] sm:$0xff] %v19904_v33  ;;  %2715 = vmatmul.mubr.f32.gmra.mrb[162].mxu1 %v19886_v9  ;;  %v19909_v4 = vpop.f32.mrb[57].mxu1  ;;  %25753 = vst [vmem:[#allocation402_spill] sm:$0xff] %v19917_v6  ;;  %v786_v33 = vld [vmem:[%s24622_s1 + $0x2c0] sm:$0xff] }
 0x1d6   : > { %25750 = vst [vmem:[#allocation399_spill] sm:$0xff] %v19909_v4  ;;  %2720 = vmatprep.mubr.f32.mxu1 %v25415_v41  ;;  %v19926_v4 = vand.u32 4294901760, %v2735_v30  ;;  %v1693_v30 = vsel %vm1427_vm0, %v786_v33, 0  ;;  %25761 = vst [vmem:[#allocation410_spill] sm:$0xff] %v19953_v21 }
 0x1d7   : > { %4081 = vmatmul.mubr.f32.gmra.mrb[56].mxu0 %v18586_v2  ;;  %v19941_v2 = vsub.f32 %v1687_v22, %v19917_v6  ;;  %v19958_v22 = vand.u32 4294901760, %v2746_v25 }
 0x1d8   : > { %4086 = vmatprep.mubr.f32.mxu0 %v25415_v41  ;;  %25754 = vst [vmem:[#allocation403_spill] sm:$0xff] %v19926_v4  ;;  %v19928_v53 = vpop.f32.mrb[58].mxu1 }
 0x1d9   : > { %25755 = vst [vmem:[#allocation404_spill] sm:$0xff] %v19928_v53  ;;  %2726 = vmatmul.mubr.f32.gmra.mrb[164].mxu1 %v19902_v45  ;;  %v19933_v9 = vpop.f32.mrb[59].mxu1  ;;  %25759 = vst [vmem:[#allocation408_spill] sm:$0xff] %v19941_v2  ;;  %v787_v53 = vld [vmem:[%s24622_s1 + $0x2c8] sm:$0xff]  ;;  %v19955_v45 = vand.u32 4294901760, %v1693_v30  ;;  %v19965_v55 = vand.u32 4294901760, %v19941_v2 }
 0x1da   : > { %25757 = vst [vmem:[#allocation406_spill] sm:$0xff] %v19933_v9  ;;  %2731 = vmatprep.mubr.f32.mxu1 %v25415_v41  ;;  %25763 = vst [vmem:[#allocation412_spill] sm:$0xff] %v19958_v22 }
 0x1db   : > { %4089 = vmatmul.mubr.f32.gmra.mrb[58].mxu0 %v18611_v62  ;;  %25762 = vst [vmem:[#allocation411_spill] sm:$0xff] %v19955_v45  ;;  %v2757_v62 = vsub.f32 %v19915_v36, %v19938_v35  ;;  %25765 = vst [vmem:[#allocation414_spill] sm:$0xff] %v19965_v55  ;;  %v19980_v35 = vsub.f32 %v1693_v30, %v19955_v45  ;;  %v789_v30 = vld [vmem:[%s24622_s1 + $0x2d8] sm:$0xff] }
 0x1dc   : > { %4094 = vmatprep.mubr.f32.mxu0 %v25415_v41  ;;  %v19950_v9 = vpop.f32.mrb[60].mxu1 }
 0x1dd   : > { %25760 = vst [vmem:[#allocation409_spill] sm:$0xff] %v19950_v9  ;;  %2737 = vmatmul.mubr.f32.gmra.mrb[166].mxu1 %v19926_v4  ;;  %v19960_v33 = vpop.f32.mrb[61].mxu1  ;;  %v1696_v9 = vsel %vm1427_vm0, %v787_v53, 0  ;;  %25768 = vst [vmem:[#allocation417_spill] sm:$0xff] %v19980_v35  ;;  %v19983_v4 = vand.u32 4294901760, %v2757_v62 }
 0x1de   : > { %25764 = vst [vmem:[#allocation413_spill] sm:$0xff] %v19960_v33  ;;  %2742 = vmatprep.mubr.f32.mxu1 %v25415_v41  ;;  %v19977_v33 = vand.u32 4294901760, %v19953_v21  ;;  %v19989_v36 = vand.u32 4294901760, %v1696_v9 }
 0x1df   : > { %4097 = vmatmul.mubr.f32.gmra.mrb[60].mxu0 %v18623_v54  ;;  %25769 = vst [vmem:[#allocation418_spill] sm:$0xff] %v19983_v4  ;;  %v2768_v54 = vsub.f32 %v19941_v2, %v19965_v55  ;;  %v20003_v55 = vand.u32 4294901760, %v19980_v35 }
 0x1e0   : > { %4102 = vmatprep.mubr.f32.mxu0 %v25415_v41  ;;  %v19974_v25 = vpop.f32.mrb[62].mxu1  ;;  %25767 = vst [vmem:[#allocation416_spill] sm:$0xff] %v19977_v33  ;;  %25771 = vst [vmem:[#allocation420_spill] sm:$0xff] %v19989_v36 }
 0x1e1   : > { %25766 = vst [vmem:[#allocation415_spill] sm:$0xff] %v19974_v25  ;;  %2748 = vmatmul.mubr.f32.gmra.mrb[168].mxu1 %v19958_v22  ;;  %v19985_v53 = vpop.f32.mrb[63].mxu1  ;;  %v1699_v25 = vsel %vm1427_vm0, %v788_v42, 0  ;;  %25773 = vst [vmem:[#allocation422_spill] sm:$0xff] %v20003_v55  ;;  %v20006_v22 = vand.u32 4294901760, %v2768_v54 }
 0x1e2   : > { %25770 = vst [vmem:[#allocation419_spill] sm:$0xff] %v19985_v53  ;;  %2753 = vmatprep.mubr.f32.mxu1 %v25415_v41  ;;  %v2779_v53 = vsub.f32 %v19953_v21, %v19977_v33  ;;  %v20013_v2 = vand.u32 4294901760, %v1699_v25  ;;  %v790_v33 = vld [vmem:[%s24622_s1 + $0x2e0] sm:$0xff] }
 0x1e3   : > { %4105 = vmatmul.mubr.f32.gmra.mrb[62].mxu0 %v18656_v61  ;;  %25774 = vst [vmem:[#allocation423_spill] sm:$0xff] %v20006_v22  ;;  %v20011_v61 = vsub.f32 %v1696_v9, %v19989_v36  ;;  %v2790_v9 = vsub.f32 %v19980_v35, %v20003_v55 }
 0x1e4   : > { %4110 = vmatprep.mubr.f32.mxu0 %v25415_v41  ;;  %v19998_v62 = vpop.f32.mrb[64].mxu1  ;;  %25777 = vst [vmem:[#allocation426_spill] sm:$0xff] %v20013_v2  ;;  %v20022_v54 = vand.u32 4294901760, %v2779_v53  ;;  %v20035_v21 = vsub.f32 %v1699_v25, %v20013_v2  ;;  %v1705_v53 = vsel %vm1427_vm0, %v790_v33, 0  ;;  %v25824_v2 = vld [vmem:[#allocation173_spill] sm:$0xff] }
 0x1e5   : > { %25772 = vst [vmem:[#allocation421_spill] sm:$0xff] %v19998_v62  ;;  %2759 = vmatmul.mubr.f32.gmra.mrb[170].mxu1 %v19983_v4  ;;  %v20008_v42 = vpop.f32.mrb[65].mxu1  ;;  %25776 = vst [vmem:[#allocation425_spill] sm:$0xff] %v20011_v61  ;;  %v1702_v62 = vsel %vm1427_vm0, %v789_v30, 0  ;;  %v20032_v30 = vand.u32 4294901760, %v20011_v61  ;;  %v20050_v25 = vand.u32 4294901760, %v1705_v53 }
 0x1e6   : > { %25775 = vst [vmem:[#allocation424_spill] sm:$0xff] %v20008_v42  ;;  %2764 = vmatprep.mubr.f32.mxu1 %v25415_v41  ;;  %25778 = vst [vmem:[#allocation427_spill] sm:$0xff] %v20022_v54  ;;  %v20058_v35 = vand.u32 4294901760, %v20035_v21 }
 0x1e7   : > { %4113 = vmatmul.mubr.f32.gmra.mrb[64].mxu0 %v18669_v11  ;;  %25781 = vst [vmem:[#allocation430_spill] sm:$0xff] %v20032_v30  ;;  %25782 = vst [vmem:[#allocation431_spill] sm:$0xff] %v20035_v21  ;;  %v20037_v11 = vand.u32 4294901760, %v1702_v62  ;;  %v2801_v33 = vsub.f32 %v20011_v61, %v20032_v30  ;;  %v20073_v30 = vsub.f32 %v1705_v53, %v20050_v25  ;;  %v25796_v53 = vld [vmem:[#allocation160_spill] sm:$0xff] }
 0x1e8   : > { %4118 = vmatprep.mubr.f32.mxu0 %v25415_v41  ;;  %v20024_v42 = vpop.f32.mrb[66].mxu1  ;;  %25786 = vst [vmem:[#allocation435_spill] sm:$0xff] %v20050_v25  ;;  %25788 = vst [vmem:[#allocation437_spill] sm:$0xff] %v20058_v35 }
 0x1e9   : > { %25779 = vst [vmem:[#allocation428_spill] sm:$0xff] %v20024_v42  ;;  %2770 = vmatmul.mubr.f32.gmra.mrb[172].mxu1 %v20006_v22  ;;  %v20029_v4 = vpop.f32.mrb[67].mxu1  ;;  %25783 = vst [vmem:[#allocation432_spill] sm:$0xff] %v20037_v11  ;;  %v791_v42 = vld [vmem:[%s24622_s1 + $0x2e8] sm:$0xff] }
 0x1ea   : > { %25780 = vst [vmem:[#allocation429_spill] sm:$0xff] %v20029_v4  ;;  %2775 = vmatprep.mubr.f32.mxu1 %v25415_v41  ;;  %v20046_v4 = vand.u32 4294901760, %v2790_v9  ;;  %v1708_v9 = vsel %vm1427_vm0, %v791_v42, 0  ;;  %25791 = vst [vmem:[#allocation440_spill] sm:$0xff] %v20073_v30 }
 0x1eb   : > { %4121 = vmatmul.mubr.f32.gmra.mrb[66].mxu0 %v18702_v52  ;;  %v20061_v52 = vsub.f32 %v1702_v62, %v20037_v11  ;;  %v20078_v62 = vand.u32 4294901760, %v2801_v33  ;;  %v25803_v11 = vld [vmem:[#allocation161_spill] sm:$0xff] }
 0x1ec   : > { %4126 = vmatprep.mubr.f32.mxu0 %v25415_v41  ;;  %25784 = vst [vmem:[#allocation433_spill] sm:$0xff] %v20046_v4  ;;  %v20048_v55 = vpop.f32.mrb[68].mxu1 }
 0x1ed   : > { %25785 = vst [vmem:[#allocation434_spill] sm:$0xff] %v20048_v55  ;;  %2781 = vmatmul.mubr.f32.gmra.mrb[174].mxu1 %v20022_v54  ;;  %v20053_v22 = vpop.f32.mrb[69].mxu1  ;;  %25789 = vst [vmem:[#allocation438_spill] sm:$0xff] %v20061_v52  ;;  %v792_v55 = vld [vmem:[%s24622_s1 + $0x2f0] sm:$0xff]  ;;  %v20075_v54 = vand.u32 4294901760, %v1708_v9  ;;  %v20085_v61 = vand.u32 4294901760, %v20061_v52 }
 0x1ee   : > { %25787 = vst [vmem:[#allocation436_spill] sm:$0xff] %v20053_v22  ;;  %2786 = vmatprep.mubr.f32.mxu1 %v25415_v41  ;;  %25793 = vst [vmem:[#allocation442_spill] sm:$0xff] %v20078_v62 }
 0x1ef   : > { %4129 = vmatmul.mubr.f32.gmra.mrb[68].mxu0 %v18715_v3  ;;  %25792 = vst [vmem:[#allocation441_spill] sm:$0xff] %v20075_v54  ;;  %v2812_v3 = vsub.f32 %v20035_v21, %v20058_v35  ;;  %25795 = vst [vmem:[#allocation444_spill] sm:$0xff] %v20085_v61  ;;  %v20100_v35 = vsub.f32 %v1708_v9, %v20075_v54  ;;  %v794_v9 = vld [vmem:[%s24622_s1 + $0x300] sm:$0xff] }
 0x1f0   : > { %4134 = vmatprep.mubr.f32.mxu0 %v25415_v41  ;;  %v20070_v22 = vpop.f32.mrb[70].mxu1 }
 0x1f1   : > { %25790 = vst [vmem:[#allocation439_spill] sm:$0xff] %v20070_v22  ;;  %2792 = vmatmul.mubr.f32.gmra.mrb[176].mxu1 %v20046_v4  ;;  %v20080_v42 = vpop.f32.mrb[71].mxu1  ;;  %v1711_v22 = vsel %vm1427_vm0, %v792_v55, 0  ;;  %v793_v4 = vld [vmem:[%s24622_s1 + $0x2f8] sm:$0xff]  ;;  %25799 = vst [vmem:[#allocation447_spill] sm:$0xff] %v20100_v35  ;;  %v20103_v21 = vand.u32 4294901760, %v2812_v3 }
 0x1f2   : > { %25794 = vst [vmem:[#allocation443_spill] sm:$0xff] %v20080_v42  ;;  %2797 = vmatprep.mubr.f32.mxu1 %v25415_v41  ;;  %v20097_v42 = vand.u32 4294901760, %v20073_v30  ;;  %v20109_v25 = vand.u32 4294901760, %v1711_v22 }
 0x1f3   : > { %4137 = vmatmul.mubr.f32.gmra.mrb[70].mxu0 %v25796_v53  ;;  %25800 = vst [vmem:[#allocation448_spill] sm:$0xff] %v20103_v21  ;;  %v2823_v53 = vsub.f32 %v20061_v52, %v20085_v61  ;;  %v20123_v61 = vand.u32 4294901760, %v20100_v35 }
 0x1f4   : > { %4142 = vmatprep.mubr.f32.mxu0 %v25415_v41  ;;  %v20094_v33 = vpop.f32.mrb[72].mxu1  ;;  %25798 = vst [vmem:[#allocation446_spill] sm:$0xff] %v20097_v42  ;;  %25802 = vst [vmem:[#allocation450_spill] sm:$0xff] %v20109_v25 }
 0x1f5   : > { %25797 = vst [vmem:[#allocation445_spill] sm:$0xff] %v20094_v33  ;;  %2803 = vmatmul.mubr.f32.gmra.mrb[178].mxu1 %v20078_v62  ;;  %v20105_v55 = vpop.f32.mrb[73].mxu1  ;;  %v1714_v33 = vsel %vm1427_vm0, %v793_v4, 0  ;;  %25805 = vst [vmem:[#allocation452_spill] sm:$0xff] %v20123_v61  ;;  %v20126_v62 = vand.u32 4294901760, %v2823_v53 }
 0x1f6   : > { %25801 = vst [vmem:[#allocation449_spill] sm:$0xff] %v20105_v55  ;;  %2808 = vmatprep.mubr.f32.mxu1 %v25415_v41  ;;  %v2834_v55 = vsub.f32 %v20073_v30, %v20097_v42  ;;  %v20133_v52 = vand.u32 4294901760, %v1714_v33  ;;  %v795_v42 = vld [vmem:[%s24622_s1 + $0x308] sm:$0xff]  ;;  %v25810_v30 = vld [vmem:[#allocation168_spill] sm:$0xff] }
 0x1f7   : > { %4145 = vmatmul.mubr.f32.gmra.mrb[72].mxu0 %v25803_v11  ;;  %25806 = vst [vmem:[#allocation453_spill] sm:$0xff] %v20126_v62  ;;  %v20131_v11 = vsub.f32 %v1711_v22, %v20109_v25  ;;  %v2845_v22 = vsub.f32 %v20100_v35, %v20123_v61  ;;  %v25817_v61 = vld [vmem:[#allocation172_spill] sm:$0xff] }
 0x1f8   : > { %4150 = vmatprep.mubr.f32.mxu0 %v25415_v41  ;;  %v20118_v3 = vpop.f32.mrb[74].mxu1  ;;  %25809 = vst [vmem:[#allocation456_spill] sm:$0xff] %v20133_v52  ;;  %v20142_v53 = vand.u32 4294901760, %v2834_v55 }
 0x1f9   : > { %25804 = vst [vmem:[#allocation451_spill] sm:$0xff] %v20118_v3  ;;  %2814 = vmatmul.mubr.f32.gmra.mrb[180].mxu1 %v20103_v21  ;;  %v20128_v4 = vpop.f32.mrb[75].mxu1  ;;  %25808 = vst [vmem:[#allocation455_spill] sm:$0xff] %v20131_v11  ;;  %v1717_v3 = vsel %vm1427_vm0, %v794_v9, 0  ;;  %v866_v21 = vld [vmem:[%s24623_s2 + $0x198] sm:$0xff]  ;;  %v20155_v25 = vand.u32 4294901760, %v20131_v11 }
 0x1fa   : > { %25807 = vst [vmem:[#allocation454_spill] sm:$0xff] %v20128_v4  ;;  %2819 = vmatprep.mubr.f32.mxu1 %v25415_v41  ;;  %25811 = vst [vmem:[#allocation457_spill] sm:$0xff] %v20142_v53  ;;  %v20160_v55 = vand.u32 4294901760, %v1717_v3  ;;  %1174 = vperm.xlu1 %17386, %v866_v21   ;;  %v20177_v21 = vand.u32 4294901760, %v2845_v22  ;;  %v797_v22 = vld [vmem:[%s24622_s1 + $0x318] sm:$0xff] }
 0x1fb   : > { %4153 = vmatmul.mubr.f32.gmra.mrb[74].mxu0 %v25810_v30  ;;  %25814 = vst [vmem:[#allocation460_spill] sm:$0xff] %v20155_v25  ;;  %v20158_v30 = vsub.f32 %v1714_v33, %v20133_v52  ;;  %v867_v33 = vld [vmem:[%s24623_s2 + $0x1a0] sm:$0xff] }
 0x1fc   : > { %4158 = vmatprep.mubr.f32.mxu0 %v25415_v41  ;;  %v20144_v4 = vpop.f32.mrb[76].mxu1  ;;  %25816 = vst [vmem:[#allocation462_spill] sm:$0xff] %v20160_v55  ;;  %25820 = vst [vmem:[#allocation465_spill] sm:$0xff] %v20177_v21  ;;  %1179 = vperm.xlu0 %17385, %v867_v33  }
 0x1fd   : > { %25812 = vst [vmem:[#allocation458_spill] sm:$0xff] %v20144_v4  ;;  %2825 = vmatmul.mubr.f32.gmra.mrb[182].mxu1 %v20126_v62  ;;  %v20152_v9 = vpop.f32.mrb[77].mxu1  ;;  %25815 = vst [vmem:[#allocation461_spill] sm:$0xff] %v20158_v30  ;;  %v1720_v4 = vsel %vm1427_vm0, %v795_v42, 0  ;;  %v796_v62 = vld [vmem:[%s24622_s1 + $0x310] sm:$0xff]  ;;  %v20184_v52 = vand.u32 4294901760, %v20158_v30 }
 0x1fe   : > { %25813 = vst [vmem:[#allocation459_spill] sm:$0xff] %v20152_v9  ;;  %2830 = vmatprep.mubr.f32.mxu1 %v25415_v41  ;;  %v20171_v35 = vand.u32 4294901760, %v1720_v4  ;;  %v1723_v54 = vsel %vm1427_vm0, %v796_v62, 0 }
 0x1ff   : > { %4161 = vmatmul.mubr.f32.gmra.mrb[76].mxu0 %v25817_v61  ;;  %v2856_v61 = vsub.f32 %v20131_v11, %v20155_v25  ;;  %25822 = vst [vmem:[#allocation467_spill] sm:$0xff] %v20184_v52 }
 0x200   : > { %4166 = vmatprep.mubr.f32.mxu0 %v25415_v41  ;;  %v20169_v9 = vpop.f32.mrb[78].mxu1  ;;  %25819 = vst [vmem:[#allocation464_spill] sm:$0xff] %v20171_v35  ;;  %v20199_v25 = vsub.f32 %v1720_v4, %v20171_v35  ;;  %v1726_v4 = vsel %vm1427_vm0, %v797_v22, 0  ;;  %v25831_v35 = vld [vmem:[#allocation179_spill] sm:$0xff] }
 0x201   : > { %25818 = vst [vmem:[#allocation463_spill] sm:$0xff] %v20169_v9  ;;  %2836 = vmatmul.mubr.f32.gmra.mrb[184].mxu1 %v20142_v53  ;;  %v20179_v42 = vpop.f32.mrb[79].mxu1  ;;  %v20187_v9 = vsub.f32 %v1717_v3, %v20160_v55  ;;  %v868_v3 = vld [vmem:[%s24623_s2 + $0x1a8] sm:$0xff]  ;;  %v20205_v62 = vand.u32 4294901760, %v2856_v61  ;;  %v798_v61 = vld [vmem:[%s24622_s1 + $0x320] sm:$0xff]  ;;  %v25838_v55 = vld [vmem:[#allocation184_spill] sm:$0xff] }
 0x202   : > { %25821 = vst [vmem:[#allocation466_spill] sm:$0xff] %v20179_v42  ;;  %2841 = vmatprep.mubr.f32.mxu1 %v25415_v41  ;;  %25826 = vst [vmem:[#allocation470_spill] sm:$0xff] %v20199_v25  ;;  %1184 = vperm.xlu1 %17386, %v868_v3   ;;  %v869_v3 = vld [vmem:[%s24623_s2 + $0x1b0] sm:$0xff]  ;;  %v1729_v11 = vsel %vm1427_vm0, %v798_v61, 0 }
 0x203   : > { %25823 = vst [vmem:[#allocation468_spill] sm:$0xff] %v20187_v9  ;;  %4169 = vmatmul.mubr.f32.gmra.mrb[78].mxu0 %v25824_v2  ;;  %25827 = vst [vmem:[#allocation471_spill] sm:$0xff] %v20205_v62  ;;  %v2867_v2 = vsub.f32 %v20158_v30, %v20184_v52  ;;  %v20212_v53 = vand.u32 4294901760, %v20187_v9  ;;  %v20226_v52 = vand.u32 4294901760, %v20199_v25  ;;  %1189 = vperm.xlu0 %17385, %v869_v3   ;;  %v870_v3 = vld [vmem:[%s24623_s2 + $0x1b8] sm:$0xff] }
 0x204   : > { %4174 = vmatprep.mubr.f32.mxu0 %v25415_v41  ;;  %v20196_v42 = vpop.f32.mrb[80].mxu1 }
 0x205   : > { %25825 = vst [vmem:[#allocation469_spill] sm:$0xff] %v20196_v42  ;;  %2847 = vmatmul.mubr.f32.gmra.mrb[186].mxu1 %v20177_v21  ;;  %v20207_v33 = vpop.f32.mrb[81].mxu1  ;;  %25829 = vst [vmem:[#allocation473_spill] sm:$0xff] %v20212_v53  ;;  %v20214_v42 = vand.u32 4294901760, %v1723_v54  ;;  %v20232_v22 = vand.u32 4294901760, %v2867_v2  ;;  %v2878_v21 = vsub.f32 %v20187_v9, %v20212_v53  ;;  %v799_v2 = vld [vmem:[%s24622_s1 + $0x328] sm:$0xff] }
 0x206   : > { %25828 = vst [vmem:[#allocation472_spill] sm:$0xff] %v20207_v33  ;;  %2852 = vmatprep.mubr.f32.mxu1 %v25415_v41  ;;  %25833 = vst [vmem:[#allocation476_spill] sm:$0xff] %v20226_v52  ;;  %1194 = vperm.xlu1 %17386, %v870_v3  }
 0x207   : > { %25830 = vst [vmem:[#allocation474_spill] sm:$0xff] %v20214_v42  ;;  %4177 = vmatmul.mubr.f32.gmra.mrb[80].mxu0 %v25831_v35  ;;  %25834 = vst [vmem:[#allocation477_spill] sm:$0xff] %v20232_v22  ;;  %v20239_v30 = vsub.f32 %v1723_v54, %v20214_v42  ;;  %v2889_v54 = vsub.f32 %v20199_v25, %v20226_v52  ;;  %v20258_v61 = vand.u32 4294901760, %v2878_v21  ;;  %v1732_v52 = vsel %vm1427_vm0, %v799_v2, 0  ;;  %v25845_v25 = vld [vmem:[#allocation185_spill] sm:$0xff] }
 0x208   : > { %4182 = vmatprep.mubr.f32.mxu0 %v25415_v41  ;;  %v20223_v33 = vpop.f32.mrb[82].mxu1 }
 0x209   : > { %25832 = vst [vmem:[#allocation475_spill] sm:$0xff] %v20223_v33  ;;  %2858 = vmatmul.mubr.f32.gmra.mrb[188].mxu1 %v20205_v62  ;;  %v20234_v35 = vpop.f32.mrb[83].mxu1  ;;  %25836 = vst [vmem:[#allocation479_spill] sm:$0xff] %v20239_v30  ;;  %v20241_v33 = vand.u32 4294901760, %v1726_v4  ;;  %v20263_v53 = vand.u32 4294901760, %v20239_v30  ;;  %v20274_v21 = vand.u32 4294901760, %v2889_v54 }
 0x20a   : > { %25835 = vst [vmem:[#allocation478_spill] sm:$0xff] %v20234_v35  ;;  %2863 = vmatprep.mubr.f32.mxu1 %v25415_v41  ;;  %25840 = vst [vmem:[#allocation482_spill] sm:$0xff] %v20258_v61  ;;  %v20292_v54 = vand.u32 4294901760, %v1732_v52 }
 0x20b   : > { %25837 = vst [vmem:[#allocation480_spill] sm:$0xff] %v20241_v33  ;;  %4185 = vmatmul.mubr.f32.gmra.mrb[82].mxu0 %v25838_v55  ;;  %25842 = vst [vmem:[#allocation484_spill] sm:$0xff] %v20263_v53  ;;  %v20266_v62 = vsub.f32 %v1726_v4, %v20241_v33  ;;  %v871_v4 = vld [vmem:[%s24623_s2 + $0x1c0] sm:$0xff]  ;;  %v2900_v3 = vsub.f32 %v20239_v30, %v20263_v53 }
 0x20c   : > { %4190 = vmatprep.mubr.f32.mxu0 %v25415_v41  ;;  %v20250_v35 = vpop.f32.mrb[84].mxu1  ;;  %25846 = vst [vmem:[#allocation487_spill] sm:$0xff] %v20274_v21  ;;  %25851 = vst [vmem:[#allocation492_spill] sm:$0xff] %v20292_v54  ;;  %1199 = vperm.xlu0 %17385, %v871_v4  }
 0x20d   : > { %25839 = vst [vmem:[#allocation481_spill] sm:$0xff] %v20250_v35  ;;  %2869 = vmatmul.mubr.f32.gmra.mrb[190].mxu1 %v20232_v22  ;;  %v20260_v55 = vpop.f32.mrb[85].mxu1  ;;  %25843 = vst [vmem:[#allocation485_spill] sm:$0xff] %v20266_v62  ;;  %v20268_v35 = vand.u32 4294901760, %v1729_v11  ;;  %v20287_v2 = vand.u32 4294901760, %v20266_v62  ;;  %v20303_v53 = vand.u32 4294901760, %v2900_v3 }
 0x20e   : > { %25841 = vst [vmem:[#allocation483_spill] sm:$0xff] %v20260_v55  ;;  %2874 = vmatprep.mubr.f32.mxu1 %v25415_v41 }
 0x20f   : > { %25844 = vst [vmem:[#allocation486_spill] sm:$0xff] %v20268_v35  ;;  %4193 = vmatmul.mubr.f32.gmra.mrb[84].mxu0 %v25845_v25  ;;  %25849 = vst [vmem:[#allocation490_spill] sm:$0xff] %v20287_v2  ;;  %v20290_v25 = vsub.f32 %v1729_v11, %v20268_v35  ;;  %v2911_v4 = vsub.f32 %v20266_v62, %v20287_v2 }
 0x210   : > { %4198 = vmatprep.mubr.f32.mxu0 %v25415_v41  ;;  %v20276_v55 = vpop.f32.mrb[86].mxu1  ;;  %25853 = vst [vmem:[#allocation494_spill] sm:$0xff] %v20303_v53 }
 0x211   : > { %25847 = vst [vmem:[#allocation488_spill] sm:$0xff] %v20276_v55  ;;  %2880 = vmatmul.mubr.f32.gmra.mrb[192].mxu1 %v20258_v61  ;;  %v20282_v22 = vpop.f32.mrb[87].mxu1  ;;  %25850 = vst [vmem:[#allocation491_spill] sm:$0xff] %v20290_v25  ;;  %v20310_v61 = vand.u32 4294901760, %v20290_v25  ;;  %v20324_v2 = vand.u32 4294901760, %v2911_v4  ;;  %v874_v4 = vld [vmem:[%s24623_s2 + $0x1d8] sm:$0xff] }
 0x212   : > { %25848 = vst [vmem:[#allocation489_spill] sm:$0xff] %v20282_v22  ;;  %2885 = vmatprep.mubr.f32.mxu1 %v25415_v41  ;;  %v872_v22 = vld [vmem:[%s24623_s2 + $0x1c8] sm:$0xff] }
 0x213   : > { %4201 = vmatmul.mubr.f32.gmra.mrb[86].mxu0 %v18932_v34  ;;  %25855 = vst [vmem:[#allocation496_spill] sm:$0xff] %v20310_v61  ;;  %v20313_v34 = vsub.f32 %v1732_v52, %v20292_v54  ;;  %1204 = vperm.xlu1 %17386, %v872_v22   ;;  %25859 = vst [vmem:[#allocation499_spill] sm:$0xff] %v20324_v2  ;;  %v2922_v52 = vsub.f32 %v20290_v25, %v20310_v61 }
 0x214   : > { %4206 = vmatprep.mubr.f32.mxu0 %v25415_v41  ;;  %v20297_v55 = vpop.f32.mrb[88].mxu1 }
 0x215   : > { %25852 = vst [vmem:[#allocation493_spill] sm:$0xff] %v20297_v55  ;;  %2891 = vmatmul.mubr.f32.gmra.mrb[194].mxu1 %v20274_v21  ;;  %v20305_v11 = vpop.f32.mrb[89].mxu1  ;;  %25856 = vst [vmem:[#allocation497_spill] sm:$0xff] %v20313_v34  ;;  %v25857_v55 = vld [vmem:[#allocation193_spill] sm:$0xff]  ;;  %v20331_v22 = vand.u32 4294901760, %v20313_v34 }
 0x216   : > { %25854 = vst [vmem:[#allocation495_spill] sm:$0xff] %v20305_v11  ;;  %2896 = vmatprep.mubr.f32.mxu1 %v25415_v41  ;;  %v873_v11 = vld [vmem:[%s24623_s2 + $0x1d0] sm:$0xff] }
 0x217   : > { %4209 = vmatmul.mubr.f32.gmra.mrb[88].mxu0 %v25857_v55  ;;  %25861 = vst [vmem:[#allocation501_spill] sm:$0xff] %v20331_v22  ;;  %1209 = vperm.xlu0 %17385, %v873_v11   ;;  %v2933_v11 = vsub.f32 %v20313_v34, %v20331_v22 }
 0x218   : > { %4214 = vmatprep.mubr.f32.mxu0 %v25415_v41  ;;  %v20318_v3 = vpop.f32.mrb[90].mxu1  ;;  %1214 = vperm.xlu1 %17386, %v874_v4  }
 0x219   : > { %25858 = vst [vmem:[#allocation498_spill] sm:$0xff] %v20318_v3  ;;  %2902 = vmatmul.mubr.f32.gmra.mrb[196].mxu1 %v20303_v53  ;;  %v20326_v21 = vpop.f32.mrb[91].mxu1  ;;  %v25862_v3 = vld [vmem:[#allocation200_spill] sm:$0xff]  ;;  %v20354_v53 = vld [vmem:[%s17854_s4 + $0x40] sm:$0xff]  ;;  %v20363_v4 = vand.u32 4294901760, %v2933_v11  ;;  %v876_v11 = vld [vmem:[%s24623_s2 + $0x1e8] sm:$0xff] }
 0x21a   : > { %25860 = vst [vmem:[#allocation500_spill] sm:$0xff] %v20326_v21  ;;  %2907 = vmatprep.mubr.f32.mxu1 %v25415_v41  ;;  %v20342_v21 = vand.u32 4294901760, %v2922_v52  ;;  %v875_v52 = vld [vmem:[%s24623_s2 + $0x1e0] sm:$0xff] }
 0x21b   : > { %4217 = vmatmul.mubr.f32.gmra.mrb[90].mxu0 %v25862_v3  ;;  %v25866_v3 = vld [vmem:[#allocation204_spill] sm:$0xff]  ;;  %1219 = vperm.xlu0 %17385, %v875_v52  }
 0x21c   : > { %4222 = vmatprep.mubr.f32.mxu0 %v25415_v41  ;;  %v20336_v55 = vpop.f32.mrb[92].mxu1  ;;  %25864 = vst [vmem:[#allocation503_spill] sm:$0xff] %v20342_v21  ;;  %1224 = vperm.xlu1 %17386, %v876_v11   ;;  %v877_v11 = vld [vmem:[%s24623_s2 + $0x1f0] sm:$0xff] }
 0x21d   : > { %25863 = vst [vmem:[#allocation502_spill] sm:$0xff] %v20336_v55  ;;  %2913 = vmatmul.mubr.f32.gmra.mrb[198].mxu1 %v20324_v2  ;;  %v20344_v61 = vpop.f32.mrb[93].mxu1  ;;  %v20357_v2 = vld [vmem:[%s17854_s4 + $0x58] sm:$0xff] }
 0x21e   : > { %25865 = vst [vmem:[#allocation504_spill] sm:$0xff] %v20344_v61  ;;  %2918 = vmatprep.mubr.f32.mxu1 %v25415_v41  ;;  %v25236_v22 = vand.u32 4294901760, %v20357_v2 }
 0x21f   : > { %4225 = vmatmul.mubr.f32.gmra.mrb[92].mxu0 %v25866_v3  ;;  %v25869_v3 = vld [vmem:[#allocation205_spill] sm:$0xff]  ;;  %1229 = vperm.xlu0 %17385, %v877_v11  }
 0x220   : > { %4230 = vmatprep.mubr.f32.mxu0 %v25415_v41  ;;  %v20351_v55 = vpop.f32.mrb[94].mxu1 }
 0x221   : > { %25867 = vst [vmem:[#allocation505_spill] sm:$0xff] %v20351_v55  ;;  %2924 = vmatmul.mubr.f32.gmra.mrb[200].mxu1 %v20342_v21  ;;  %v20365_v61 = vpop.f32.mrb[95].mxu1  ;;  %v25237_v55 = vand.u32 4294901760, %v20354_v53  ;;  %v814_v21 = vld [vmem:[%s17854_s4 + $0x70] sm:$0x3] }
 0x222   : > { %25868 = vst [vmem:[#allocation506_spill] sm:$0xff] %v20365_v61  ;;  %2929 = vmatprep.mubr.f32.mxu1 %v25415_v41  ;;  %v25872_v61 = vld [vmem:[#allocation211_spill] sm:$0xff] }
 0x223   : > { %4233 = vmatmul.mubr.f32.gmra.mrb[94].mxu0 %v25869_v3  ;;  %v20387_v3 = vpack.c.bf16 %v25236_v22, %v25237_v55  ;;  %v878_v55 = vld [vmem:[%s24623_s2 + $0x1f8] sm:$0xff] }
 0x224   : > { %4238 = vmatprep.mubr.f32.mxu0 %v25415_v41  ;;  %v20372_v34 = vpop.f32.mrb[96].mxu1  ;;  %1234 = vperm.xlu1 %17386, %v878_v55   ;;  %v25880_v55 = vld [vmem:[#allocation224_spill] sm:$0xff] }
 0x225   : > { %25870 = vst [vmem:[#allocation507_spill] sm:$0xff] %v20372_v34  ;;  %2935 = vmatmul.mubr.f32.gmra.mrb[202].mxu1 %v20363_v4  ;;  %v20379_v52 = vpop.f32.mrb[97].mxu1  ;;  %25873 = vst [vmem:[#allocation509_spill] sm:$0xff] %v20387_v3  ;;  %v20390_v34 = vsel %vm1734_vm1, %v814_v21, 0 }
 0x226   : > { %25871 = vst [vmem:[#allocation508_spill] sm:$0xff] %v20379_v52  ;;  %3412 = vmatprep.mubr.f32.mxu1 %v25415_v41  ;;  %v20404_v21 = vand.u32 4294901760, %v20390_v34 }
 0x227   : > { %4241 = vmatmul.mubr.f32.gmra.mrb[96].mxu0 %v25872_v61  ;;  %v17388_v61 = vld [vmem:[%s17854_s4 + $0x28] sm:$0xff] }
 0x228   : > { %4246 = vmatprep.mubr.f32.mxu0 %v25415_v41  ;;  %v20393_v25 = vpop.f32.mrb[98].mxu1  ;;  %25876 = vst [vmem:[#allocation512_spill] sm:$0xff] %v20404_v21 }
 0x229   : > { %25874 = vst [vmem:[#allocation510_spill] sm:$0xff] %v20393_v25  ;;  %3414 = vmatmul.mubr.f32.vlgmr.msra.gmra.mrb[102].mxu1 %v19082_v56  ;;  %v20399_v52 = vpop.f32.mrb[99].mxu1  ;;  %v25881_v25 = vld [vmem:[#allocation232_spill] sm:$0xff] }
 0x22a   : > { %25875 = vst [vmem:[#allocation511_spill] sm:$0xff] %v20399_v52  ;;  %3419 = vmatprep.mubr.f32.mxu1 %v25415_v41  ;;  %15239 = vmatpush3.bf16.msra.mxu1 %v19726_v31  ;;  %v25879_v52 = vld [vmem:[#allocation217_spill] sm:$0xff] }
 0x22b   : > { %4249 = vmatmul.mubr.f32.gmra.mrb[98].mxu0 %v19061_v24  ;;  %15241 = vmatprep.subr.bf16.mxu1 %v20387_v3 }
 0x22c   : > { %4254 = vmatprep.mubr.f32.mxu0 %v25415_v41  ;;  %v20409_v22 = vpop.f32.mrb[100].mxu1 }
 0x22d   : > { %25877 = vst [vmem:[#allocation513_spill] sm:$0xff] %v20409_v22  ;;  %3421 = vmatmul.mubr.f32.gmra.mrb[104].mxu1 %v19093_v27  ;;  %v20415_v11 = vpop.f32.mrb[101].mxu1  ;;  %v879_v22 = vld [vmem:[%s24623_s2 + $0x200] sm:$0xff] }
 0x22e   : > { %25878 = vst [vmem:[#allocation514_spill] sm:$0xff] %v20415_v11  ;;  %3426 = vmatprep.mubr.f32.mxu1 %v25415_v41  ;;  %15243 = vmatpush3.bf16.msra.mxu1 %v20387_v3  ;;  %v880_v11 = vld [vmem:[%s24623_s2 + $0x208] sm:$0xff]  ;;  %v25902_v3 = vand.u32 4294901760, %v19698_v20 }
 0x22f   : > { %4257 = vmatmul.mubr.f32.gmra.mrb[100].mxu0 %v25879_v52  ;;  %14218 = vmatprep.subr.mxu1 %v20404_v21  ;;  %v25882_v52 = vld [vmem:[#allocation225_spill] sm:$0xff] }
 0x230   : > { %4262 = vmatprep.mubr.f32.mxu0 %v25415_v41  ;;  %1239 = vperm.xlu0 %17385, %v879_v22   ;;  %v881_v22 = vld [vmem:[%s24623_s2 + $0x210] sm:$0xff] }
 0x231   : > { %3428 = vmatmul.mubr.f32.gmra.mrb[106].mxu1 %v19113_v44  ;;  %1244 = vperm.xlu1 %17386, %v880_v11   ;;  %v882_v11 = vld [vmem:[%s24623_s2 + $0x218] sm:$0xff] }
 0x232   : > { %3433 = vmatprep.mubr.f32.mxu1 %v25415_v41  ;;  %14219 = vmatpush3.msra.mxu1 %v20404_v21 }
 0x233   : > { %4265 = vmatmul.mubr.f32.gmra.mrb[102].mxu0 %v25880_v55  ;;  %v25883_v55 = vld [vmem:[#allocation230_spill] sm:$0xff] }
 0x234   : > { %4270 = vmatprep.mubr.f32.mxu0 %v25415_v41  ;;  %1249 = vperm.xlu0 %17385, %v881_v22   ;;  %v883_v22 = vld [vmem:[%s24623_s2 + $0x220] sm:$0xff] }
 0x235   : > { %3435 = vmatmul.mubr.f32.gmra.mrb[108].mxu1 %v25881_v25  ;;  %1254 = vperm.xlu1 %17386, %v882_v11   ;;  %v884_v11 = vld [vmem:[%s24623_s2 + $0x228] sm:$0xff] }
 0x236   : > { %3440 = vmatprep.mubr.f32.mxu1 %v25415_v41 }
 0x237   : > { %4273 = vmatmul.mubr.f32.gmra.mrb[104].mxu0 %v25882_v52  ;;  %v25884_v52 = vld [vmem:[#allocation235_spill] sm:$0xff] }
 0x238   : > { %4278 = vmatprep.mubr.f32.mxu0 %v25415_v41  ;;  %1259 = vperm.xlu0 %17385, %v883_v22   ;;  %v885_v22 = vld [vmem:[%s24623_s2 + $0x230] sm:$0xff] }
 0x239   : > { %3442 = vmatmul.mubr.f32.gmra.mrb[110].mxu1 %v19161_v39  ;;  %1264 = vperm.xlu1 %17386, %v884_v11   ;;  %v886_v11 = vld [vmem:[%s24623_s2 + $0x238] sm:$0xff] }
 0x23a   : > { %3447 = vmatprep.mubr.f32.mxu1 %v25415_v41 }
 0x23b   : > { %4281 = vmatmul.mubr.f32.gmra.mrb[106].mxu0 %v25883_v55  ;;  %v17387_v55 = vld [vmem:[%s17854_s4 + $0x10] sm:$0xff] }
 0x23c   : > { %4286 = vmatprep.mubr.f32.mxu0 %v25415_v41  ;;  %1269 = vperm.xlu0 %17385, %v885_v22   ;;  %v887_v22 = vld [vmem:[%s24623_s2 + $0x240] sm:$0xff] }
 0x23d   : > { %3449 = vmatmul.mubr.f32.gmra.mrb[112].mxu1 %v19181_v43  ;;  %1274 = vperm.xlu1 %17386, %v886_v11   ;;  %v888_v11 = vld [vmem:[%s24623_s2 + $0x248] sm:$0xff] }
 0x23e   : > { %3454 = vmatprep.mubr.f32.mxu1 %v25415_v41 }
 0x23f   : > { %4289 = vmatmul.mubr.f32.gmra.mrb[108].mxu0 %v25884_v52 }
 0x240   : > { %4294 = vmatprep.mubr.f32.mxu0 %v25415_v41  ;;  %1279 = vperm.xlu0 %17385, %v887_v22   ;;  %v889_v22 = vld [vmem:[%s24623_s2 + $0x250] sm:$0xff] }
 0x241   : > { %3456 = vmatmul.mubr.f32.gmra.mrb[114].mxu1 %v19192_v51  ;;  %1284 = vperm.xlu1 %17386, %v888_v11   ;;  %v890_v11 = vld [vmem:[%s24623_s2 + $0x258] sm:$0xff] }
 0x242   : > { %3461 = vmatprep.mubr.f32.mxu1 %v25415_v41 }
 0x243   : > { %4297 = vmatmul.mubr.f32.gmra.mrb[110].mxu0 %v19179_v50 }
 0x244   : > { %4302 = vmatprep.mubr.f32.mxu0 %v25415_v41  ;;  %1289 = vperm.xlu0 %17385, %v889_v22   ;;  %v891_v22 = vld [vmem:[%s24623_s2 + $0x260] sm:$0xff] }
 0x245   : > { %3463 = vmatmul.mubr.f32.gmra.mrb[116].mxu1 %v19217_v7  ;;  %1294 = vperm.xlu1 %17386, %v890_v11   ;;  %v892_v11 = vld [vmem:[%s24623_s2 + $0x268] sm:$0xff] }
 0x246   : > { %3468 = vmatprep.mubr.f32.mxu1 %v25415_v41 }
 0x247   : > { %4305 = vmatmul.mubr.f32.gmra.mrb[112].mxu0 %v19201_v14 }
 0x248   : > { %4310 = vmatprep.mubr.f32.mxu0 %v25415_v41  ;;  %1299 = vperm.xlu0 %17385, %v891_v22   ;;  %v893_v22 = vld [vmem:[%s24623_s2 + $0x270] sm:$0xff] }
 0x249   : > { %3470 = vmatmul.mubr.f32.gmra.mrb[118].mxu1 %v19250_v38  ;;  %1304 = vperm.xlu1 %17386, %v892_v11   ;;  %v894_v11 = vld [vmem:[%s24623_s2 + $0x278] sm:$0xff] }
 0x24a   : > { %3475 = vmatprep.mubr.f32.mxu1 %v25415_v41 }
 0x24b   : > { %4313 = vmatmul.mubr.f32.gmra.mrb[114].mxu0 %v19215_v59  ;;  %v25896_v59 = vld [vmem:[#allocation13_spill] sm:$0xff] }
 0x24c   : > { %4318 = vmatprep.mubr.f32.mxu0 %v25415_v41  ;;  %1309 = vperm.xlu0 %17385, %v893_v22   ;;  %v895_v22 = vld [vmem:[%s24623_s2 + $0x280] sm:$0xff]  ;;  %v25897_v14 = vand.u32 4294901760, %v25896_v59 }
 0x24d   : > { %3477 = vmatmul.mubr.f32.gmra.mrb[120].mxu1 %v19276_v48  ;;  %1314 = vperm.xlu1 %17386, %v894_v11   ;;  %v896_v11 = vld [vmem:[%s24623_s2 + $0x288] sm:$0xff] }
 0x24e   : > { %3482 = vmatprep.mubr.f32.mxu1 %v25415_v41 }
 0x24f   : > { %4321 = vmatmul.mubr.f32.gmra.mrb[116].mxu0 %v19243_v1  ;;  %v25885_v1 = vld [vmem:[#allocation261_spill] sm:$0xff] }
 0x250   : > { %4326 = vmatprep.mubr.f32.mxu0 %v25415_v41  ;;  %1319 = vperm.xlu0 %17385, %v895_v22   ;;  %v897_v22 = vld [vmem:[%s24623_s2 + $0x290] sm:$0xff] }
 0x251   : > { %3484 = vmatmul.mubr.f32.gmra.mrb[122].mxu1 %v19302_v49  ;;  %1324 = vperm.xlu1 %17386, %v896_v11   ;;  %v898_v11 = vld [vmem:[%s24623_s2 + $0x298] sm:$0xff] }
 0x252   : > { %3489 = vmatprep.mubr.f32.mxu1 %v25415_v41 }
 0x253   : > { %4329 = vmatmul.mubr.f32.gmra.mrb[118].mxu0 %v19274_v60  ;;  %v25886_v60 = vld [vmem:[#allocation266_spill] sm:$0xff] }
 0x254   : > { %4334 = vmatprep.mubr.f32.mxu0 %v25415_v41  ;;  %1329 = vperm.xlu0 %17385, %v897_v22   ;;  %v25898_v22 = vld [vmem:[#allocation14_spill] sm:$0xff] }
 0x255   : > { %3491 = vmatmul.mubr.f32.gmra.mrb[124].mxu1 %v19315_v0  ;;  %1334 = vperm.xlu1 %17386, %v898_v11   ;;  %v25899_v50 = vand.u32 4294901760, %v25898_v22 }
 0x256   : > { %3496 = vmatprep.mubr.f32.mxu1 %v25415_v41 }
 0x257   : > { %4337 = vmatmul.mubr.f32.gmra.mrb[120].mxu0 %v25885_v1  ;;  %v25887_v1 = vld [vmem:[#allocation268_spill] sm:$0xff]  ;;  %v15220_v52 = vpack.c.bf16 %v25899_v50, %v25897_v14  ;;  %v899_v14 = vld [vmem:[%s24623_s2 + $0x2a0] sm:$0xff] }
 0x258   : > { %4342 = vmatprep.mubr.f32.mxu0 %v25415_v41  ;;  %1339 = vperm.xlu0 %17385, %v899_v14   ;;  %v25907_v14 = vld [vmem:[#allocation336_spill] sm:$0xff] }
 0x259   : > { %3498 = vmatmul.mubr.f32.gmra.mrb[126].mxu1 %v19340_v15  ;;  %15221 = vmatprep.subr.bf16.mxu0 %v15220_v52  ;;  %v900_v52 = vld [vmem:[%s24623_s2 + $0x2a8] sm:$0xff] }
 0x25a   : > { %3503 = vmatprep.mubr.f32.mxu1 %v25415_v41  ;;  %1344 = vperm.xlu1 %17386, %v900_v52   ;;  %v25909_v52 = vld [vmem:[#allocation342_spill] sm:$0xff] }
 0x25b   : > { %4345 = vmatmul.mubr.f32.gmra.mrb[122].mxu0 %v25886_v60  ;;  %v25888_v60 = vld [vmem:[#allocation274_spill] sm:$0xff] }
 0x25c   : > { %4350 = vmatprep.mubr.f32.mxu0 %v25415_v41 }
 0x25d   : > { %3505 = vmatmul.mubr.f32.gmra.mrb[128].mxu1 %v19374_v8 }
 0x25e   : > { %3510 = vmatprep.mubr.f32.mxu1 %v25415_v41 }
 0x25f   : > { %4353 = vmatmul.mubr.f32.gmra.mrb[124].mxu0 %v25887_v1  ;;  %v25889_v1 = vld [vmem:[#allocation281_spill] sm:$0xff] }
 0x260   : > { %4358 = vmatprep.mubr.f32.mxu0 %v25415_v41 }
 0x261   : > { %3512 = vmatmul.mubr.f32.gmra.mrb[130].mxu1 %v19398_v26 }
 0x262   : > { %3517 = vmatprep.mubr.f32.mxu1 %v25415_v41 }
 0x263   : > { %4361 = vmatmul.mubr.f32.gmra.mrb[126].mxu0 %v25888_v60  ;;  %v25890_v60 = vld [vmem:[#allocation286_spill] sm:$0xff] }
 0x264   : > { %4366 = vmatprep.mubr.f32.mxu0 %v25415_v41 }
 0x265   : > { %3519 = vmatmul.mubr.f32.gmra.mrb[132].mxu1 %v19422_v47 }
 0x266   : > { %3524 = vmatprep.mubr.f32.mxu1 %v25415_v41 }
 0x267   : > { %4369 = vmatmul.mubr.f32.gmra.mrb[128].mxu0 %v25889_v1  ;;  %v25891_v1 = vld [vmem:[#allocation292_spill] sm:$0xff] }
 0x268   : > { %4374 = vmatprep.mubr.f32.mxu0 %v25415_v41 }
 0x269   : > { %3526 = vmatmul.mubr.f32.gmra.mrb[134].mxu1 %v19435_v5 }
 0x26a   : > { %3531 = vmatprep.mubr.f32.mxu1 %v25415_v41 }
 0x26b   : > { %4377 = vmatmul.mubr.f32.gmra.mrb[130].mxu0 %v25890_v60  ;;  %v25892_v60 = vld [vmem:[#allocation294_spill] sm:$0xff] }
 0x26c   : > { %4382 = vmatprep.mubr.f32.mxu0 %v25415_v41 }
 0x26d   : > { %3533 = vmatmul.mubr.f32.gmra.mrb[136].mxu1 %v19460_v37 }
 0x26e   : > { %3538 = vmatprep.mubr.f32.mxu1 %v25415_v41 }
 0x26f   : > { %4385 = vmatmul.mubr.f32.gmra.mrb[132].mxu0 %v25891_v1  ;;  %v25893_v1 = vld [vmem:[#allocation300_spill] sm:$0xff] }
 0x270   : > { %4390 = vmatprep.mubr.f32.mxu0 %v25415_v41 }
 0x271   : > { %3540 = vmatmul.mubr.f32.gmra.mrb[138].mxu1 %v19494_v12 }
 0x272   : > { %3545 = vmatprep.mubr.f32.mxu1 %v25415_v41 }
 0x273   : > { %4393 = vmatmul.mubr.f32.gmra.mrb[134].mxu0 %v25892_v60  ;;  %v25894_v60 = vld [vmem:[#allocation307_spill] sm:$0xff] }
 0x274   : > { %4398 = vmatprep.mubr.f32.mxu0 %v25415_v41 }
 0x275   : > { %3547 = vmatmul.mubr.f32.gmra.mrb[140].mxu1 %v19518_v58 }
 0x276   : > { %3552 = vmatprep.mubr.f32.mxu1 %v25415_v41 }
 0x277   : > { %4401 = vmatmul.mubr.f32.gmra.mrb[136].mxu0 %v25893_v1  ;;  %v25895_v1 = vld [vmem:[#allocation312_spill] sm:$0xff] }
 0x278   : > { %4406 = vmatprep.mubr.f32.mxu0 %v25415_v41 }
 0x279   : > { %3554 = vmatmul.mubr.f32.gmra.mrb[142].mxu1 %v19542_v18 }
 0x27a   : > { %3559 = vmatprep.mubr.f32.mxu1 %v25415_v41 }
 0x27b   : > { %4409 = vmatmul.mubr.f32.gmra.mrb[138].mxu0 %v25894_v60  ;;  %v25900_v60 = vand.u32 4294901760, %v19695_v17  ;;  %v25905_v17 = vld [vmem:[#allocation330_spill] sm:$0xff] }
 0x27c   : > { %4414 = vmatprep.mubr.f32.mxu0 %v25415_v41 }
 0x27d   : > { %3561 = vmatmul.mubr.f32.gmra.mrb[144].mxu1 %v19555_v29  ;;  %v20569_v24 = vsub.f32 %v17387_v55, %v25900_v60  ;;  %v20574_v29 = vsub.f32 %v17388_v61, %v25902_v3  ;;  %v25904_v60 = vld [vmem:[#allocation318_spill] sm:$0xff]  ;;  %v25906_v55 = vld [vmem:[#allocation320_spill] sm:$0xff] }
 0x27e   : > { %3566 = vmatprep.mubr.f32.mxu1 %v25415_v41 }
 0x27f   : > { %4417 = vmatmul.mubr.f32.gmra.mrb[140].mxu0 %v25895_v1  ;;  %25901 = vst [vmem:[#allocation232_spill] sm:$0xff] %v20569_v24  ;;  %25903 = vst [vmem:[#allocation13_spill] sm:$0xff] %v20574_v29  ;;  %v25249_v59 = vand.u32 4294901760, %v20569_v24  ;;  %v25248_v11 = vand.u32 4294901760, %v20574_v29  ;;  %v25938_v1 = vld [vmem:[#allocation456_spill] sm:$0xff] }
 0x280   : > { %4422 = vmatprep.mubr.f32.mxu0 %v25415_v41 }
 0x281   : > { %3568 = vmatmul.mubr.f32.gmra.mrb[146].mxu1 %v19580_v13  ;;  %v8356_v50 = vsub.f32 %v20569_v24, %v25249_v59  ;;  %v8363_v20 = vsub.f32 %v20574_v29, %v25248_v11  ;;  %v25911_v11 = vld [vmem:[#allocation345_spill] sm:$0xff]  ;;  %v25912_v59 = vld [vmem:[#allocation348_spill] sm:$0xff] }
 0x282   : > { %3573 = vmatprep.mubr.f32.mxu1 %v25415_v41 }
 0x283   : > { %4425 = vmatmul.mubr.f32.gmra.mrb[142].mxu0 %v25904_v60  ;;  %v8357_v61 = vand.u32 4294901760, %v8356_v50  ;;  %v8364_v3 = vand.u32 4294901760, %v8363_v20  ;;  %v901_v50 = vld [vmem:[%s24623_s2 + $0x2b0] sm:$0xff]  ;;  %v25908_v20 = vld [vmem:[#allocation327_spill] sm:$0xff]  ;;  %v25936_v60 = vld [vmem:[#allocation450_spill] sm:$0xff] }
 0x284   : > { %4430 = vmatprep.mubr.f32.mxu0 %v25415_v41  ;;  %1349 = vperm.xlu0 %17385, %v901_v50   ;;  %v903_v50 = vld [vmem:[%s24623_s2 + $0x2c0] sm:$0xff] }
 0x285   : > { %3575 = vmatmul.mubr.f32.gmra.mrb[148].mxu1 %v25905_v17  ;;  %v20598_v22 = vpack.c.bf16 %v8364_v3, %v8357_v61  ;;  %v902_v61 = vld [vmem:[%s24623_s2 + $0x2b8] sm:$0xff]  ;;  %v25910_v3 = vld [vmem:[#allocation335_spill] sm:$0xff] }
 0x286   : > { %3580 = vmatprep.mubr.f32.mxu1 %v25415_v41  ;;  %1354 = vperm.xlu1 %17386, %v902_v61   ;;  %v904_v61 = vld [vmem:[%s24623_s2 + $0x2c8] sm:$0xff] }
 0x287   : > { %4433 = vmatmul.mubr.f32.gmra.mrb[144].mxu0 %v25906_v55  ;;  %15245 = vmatprep.subr.bf16.mxu1 %v20598_v22  ;;  %v25929_v55 = vld [vmem:[#allocation417_spill] sm:$0xff] }
 0x288   : > { %4438 = vmatprep.mubr.f32.mxu0 %v25415_v41  ;;  %1359 = vperm.xlu0 %17385, %v903_v50   ;;  %v905_v50 = vld [vmem:[%s24623_s2 + $0x2d0] sm:$0xff] }
 0x289   : > { %3582 = vmatmul.mubr.f32.gmra.mrb[150].mxu1 %v25907_v14 }
 0x28a   : > { %3587 = vmatprep.mubr.f32.mxu1 %v25415_v41  ;;  %1364 = vperm.xlu1 %17386, %v904_v61   ;;  %v906_v61 = vld [vmem:[%s24623_s2 + $0x2d8] sm:$0xff] }
 0x28b   : > { %4441 = vmatmul.mubr.f32.gmra.mrb[146].mxu0 %v25908_v20  ;;  %v25924_v20 = vld [vmem:[#allocation408_spill] sm:$0xff] }
 0x28c   : > { %4446 = vmatprep.mubr.f32.mxu0 %v25415_v41  ;;  %1369 = vperm.xlu0 %17385, %v905_v50   ;;  %v907_v50 = vld [vmem:[%s24623_s2 + $0x2e0] sm:$0xff] }
 0x28d   : > { %3589 = vmatmul.mubr.f32.gmra.mrb[152].mxu1 %v25909_v52 }
 0x28e   : > { %3594 = vmatprep.mubr.f32.mxu1 %v25415_v41  ;;  %1374 = vperm.xlu1 %17386, %v906_v61   ;;  %v908_v61 = vld [vmem:[%s24623_s2 + $0x2e8] sm:$0xff] }
 0x28f   : > { %4449 = vmatmul.mubr.f32.gmra.mrb[148].mxu0 %v25910_v3  ;;  %v25922_v3 = vld [vmem:[#allocation401_spill] sm:$0xff] }
 0x290   : > { %4454 = vmatprep.mubr.f32.mxu0 %v25415_v41  ;;  %1379 = vperm.xlu0 %17385, %v907_v50   ;;  %v909_v50 = vld [vmem:[%s24623_s2 + $0x2f0] sm:$0xff] }
 0x291   : > { %3596 = vmatmul.mubr.f32.gmra.mrb[154].mxu1 %v25911_v11 }
 0x292   : > { %3601 = vmatprep.mubr.f32.mxu1 %v25415_v41  ;;  %1384 = vperm.xlu1 %17386, %v908_v61   ;;  %v910_v61 = vld [vmem:[%s24623_s2 + $0x2f8] sm:$0xff] }
 0x293   : > { %4457 = vmatmul.mubr.f32.gmra.mrb[150].mxu0 %v19660_v63  ;;  %v25913_v63 = vld [vmem:[#allocation350_spill] sm:$0xff] }
 0x294   : > { %4462 = vmatprep.mubr.f32.mxu0 %v25415_v41  ;;  %1389 = vperm.xlu0 %17385, %v909_v50   ;;  %v911_v50 = vld [vmem:[%s24623_s2 + $0x300] sm:$0xff] }
 0x295   : > { %3603 = vmatmul.mubr.f32.gmra.mrb[156].mxu1 %v19706_v46 }
 0x296   : > { %3608 = vmatprep.mubr.f32.mxu1 %v25415_v41  ;;  %1394 = vperm.xlu1 %17386, %v910_v61   ;;  %v912_v61 = vld [vmem:[%s24623_s2 + $0x308] sm:$0xff] }
 0x297   : > { %4465 = vmatmul.mubr.f32.gmra.mrb[152].mxu0 %v25912_v59  ;;  %v25914_v59 = vld [vmem:[#allocation357_spill] sm:$0xff] }
 0x298   : > { %4470 = vmatprep.mubr.f32.mxu0 %v25415_v41  ;;  %1399 = vperm.xlu0 %17385, %v911_v50   ;;  %v913_v50 = vld [vmem:[%s24623_s2 + $0x310] sm:$0xff] }
 0x299   : > { %3610 = vmatmul.mubr.f32.gmra.mrb[158].mxu1 %v19749_v57 }
 0x29a   : > { %3615 = vmatprep.mubr.f32.mxu1 %v25415_v41  ;;  %1404 = vperm.xlu1 %17386, %v912_v61   ;;  %v914_v61 = vld [vmem:[%s24623_s2 + $0x318] sm:$0xff] }
 0x29b   : > { %4473 = vmatmul.mubr.f32.gmra.mrb[154].mxu0 %v25913_v63  ;;  %v25915_v63 = vld [vmem:[#allocation365_spill] sm:$0xff] }
 0x29c   : > { %4478 = vmatprep.mubr.f32.mxu0 %v25415_v41 }
 0x29d   : > { %3617 = vmatmul.mubr.f32.gmra.mrb[160].mxu1 %v19773_v28 }
 0x29e   : > { %3622 = vmatprep.mubr.f32.mxu1 %v25415_v41 }
 0x29f   : > { %4481 = vmatmul.mubr.f32.gmra.mrb[156].mxu0 %v25914_v59  ;;  %v25916_v59 = vld [vmem:[#allocation371_spill] sm:$0xff] }
 0x2a0   : > { %4486 = vmatprep.mubr.f32.mxu0 %v25415_v41 }
 0x2a1   : > { %3624 = vmatmul.mubr.f32.gmra.mrb[162].mxu1 %v19797_v32 }
 0x2a2   : > { %3629 = vmatprep.mubr.f32.mxu1 %v25415_v41 }
 0x2a3   : > { %4489 = vmatmul.mubr.f32.gmra.mrb[158].mxu0 %v25915_v63  ;;  %v25917_v63 = vld [vmem:[#allocation378_spill] sm:$0xff] }
 0x2a4   : > { %4494 = vmatprep.mubr.f32.mxu0 %v25415_v41 }
 0x2a5   : > { %3631 = vmatmul.mubr.f32.gmra.mrb[164].mxu1 %v19810_v19 }
 0x2a6   : > { %3636 = vmatprep.mubr.f32.mxu1 %v25415_v41 }
 0x2a7   : > { %4497 = vmatmul.mubr.f32.gmra.mrb[160].mxu0 %v25916_v59  ;;  %v25918_v59 = vld [vmem:[#allocation380_spill] sm:$0xff] }
 0x2a8   : > { %4502 = vmatprep.mubr.f32.mxu0 %v25415_v41 }
 0x2a9   : > { %3638 = vmatmul.mubr.f32.gmra.mrb[166].mxu1 %v19835_v40 }
 0x2aa   : > { %3643 = vmatprep.mubr.f32.mxu1 %v25415_v41 }
 0x2ab   : > { %4505 = vmatmul.mubr.f32.gmra.mrb[162].mxu0 %v25917_v63  ;;  %v25919_v63 = vld [vmem:[#allocation387_spill] sm:$0xff] }
 0x2ac   : > { %4510 = vmatprep.mubr.f32.mxu0 %v25415_v41 }
 0x2ad   : > { %3645 = vmatmul.mubr.f32.gmra.mrb[168].mxu1 %v19869_v23 }
 0x2ae   : > { %3650 = vmatprep.mubr.f32.mxu1 %v25415_v41 }
 0x2af   : > { %4513 = vmatmul.mubr.f32.gmra.mrb[164].mxu0 %v25918_v59  ;;  %v25920_v59 = vld [vmem:[#allocation395_spill] sm:$0xff] }
 0x2b0   : > { %4518 = vmatprep.mubr.f32.mxu0 %v25415_v41 }
 0x2b1   : > { %3652 = vmatmul.mubr.f32.gmra.mrb[170].mxu1 %v19893_v10 }
 0x2b2   : > { %3657 = vmatprep.mubr.f32.mxu1 %v25415_v41 }
 0x2b3   : > { %4521 = vmatmul.mubr.f32.gmra.mrb[166].mxu0 %v25919_v63  ;;  %v20690_v63 = vpop.permute.xlu0 %919  ;;  %1409 = vperm.xlu0 %17385, %v913_v50   ;;  %v915_v50 = vld [vmem:[%s24623_s2 + $0x320] sm:$0xff] }
 0x2b4   : > { %4526 = vmatprep.mubr.f32.mxu0 %v25415_v41  ;;  %25921 = vst [vmem:[#allocation14_spill] sm:$0xff] %v20690_v63 }
 0x2b5   : > { %3659 = vmatmul.mubr.f32.gmra.mrb[172].mxu1 %v19917_v6 }
 0x2b6   : > { %3664 = vmatprep.mubr.f32.mxu1 %v25415_v41 }
 0x2b7   : > { %4529 = vmatmul.mubr.f32.gmra.mrb[168].mxu0 %v25920_v59  ;;  %v20699_v59 = vpop.permute.xlu1 %929  ;;  %1414 = vperm.xlu1 %17386, %v914_v61   ;;  %v20708_v63 = vpop.permute.xlu0 %924  ;;  %v25927_v61 = vld [vmem:[#allocation426_spill] sm:$0xff] }
 0x2b8   : > { %4534 = vmatprep.mubr.f32.mxu0 %v25415_v41  ;;  %25923 = vst [vmem:[#allocation515_spill] sm:$0xff] %v20699_v59  ;;  %25925 = vst [vmem:[#allocation516_spill] sm:$0xff] %v20708_v63  ;;  %1419 = vperm.xlu0 %17385, %v915_v50   ;;  %v916_v59 = vld [vmem:[%s24623_s2 + $0x328] sm:$0xff]  ;;  %v25930_v50 = vld [vmem:[#allocation432_spill] sm:$0xff] }
 0x2b9   : > { %3666 = vmatmul.mubr.f32.gmra.mrb[174].mxu1 %v19930_v16  ;;  %v25931_v63 = vld [vmem:[#allocation425_spill] sm:$0xff] }
 0x2ba   : > { %3671 = vmatprep.mubr.f32.mxu1 %v25415_v41 }
 0x2bb   : > { %4537 = vmatmul.mubr.f32.gmra.mrb[170].mxu0 %v25922_v3  ;;  %v25926_v3 = vld [vmem:[#allocation410_spill] sm:$0xff] }
 0x2bc   : > { %4542 = vmatprep.mubr.f32.mxu0 %v25415_v41 }
 0x2bd   : > { %3673 = vmatmul.mubr.f32.gmra.mrb[176].mxu1 %v19955_v45 }
 0x2be   : > { %3678 = vmatprep.mubr.f32.mxu1 %v25415_v41 }
 0x2bf   : > { %4545 = vmatmul.mubr.f32.gmra.mrb[172].mxu0 %v25924_v20  ;;  %v20717_v20 = vpop.permute.xlu1 %934  ;;  %1424 = vperm.xlu1 %17386, %v916_v59   ;;  %v25934_v59 = vld [vmem:[#allocation441_spill] sm:$0xff] }
 0x2c0   : > { %4550 = vmatprep.mubr.f32.mxu0 %v25415_v41  ;;  %25928 = vst [vmem:[#allocation517_spill] sm:$0xff] %v20717_v20  ;;  %v25933_v20 = vld [vmem:[#allocation431_spill] sm:$0xff] }
 0x2c1   : > { %3680 = vmatmul.mubr.f32.gmra.mrb[178].mxu1 %v19989_v36 }
 0x2c2   : > { %3685 = vmatprep.mubr.f32.mxu1 %v25415_v41 }
 0x2c3   : > { %4553 = vmatmul.mubr.f32.gmra.mrb[174].mxu0 %v25926_v3  ;;  %v25932_v3 = vld [vmem:[#allocation435_spill] sm:$0xff] }
 0x2c4   : > { %4558 = vmatprep.mubr.f32.mxu0 %v25415_v41 }
 0x2c5   : > { %3687 = vmatmul.mubr.f32.gmra.mrb[180].mxu1 %v25927_v61 }
 0x2c6   : > { %3692 = vmatprep.mubr.f32.mxu1 %v25415_v41 }
 0x2c7   : > { %4561 = vmatmul.mubr.f32.gmra.mrb[176].mxu0 %v25929_v55  ;;  %v25935_v55 = vld [vmem:[#allocation438_spill] sm:$0xff] }
 0x2c8   : > { %4566 = vmatprep.mubr.f32.mxu0 %v25415_v41 }
 0x2c9   : > { %3694 = vmatmul.mubr.f32.gmra.mrb[182].mxu1 %v25930_v50 }
 0x2ca   : > { %3699 = vmatprep.mubr.f32.mxu1 %v25415_v41 }
 0x2cb   : > { %4569 = vmatmul.mubr.f32.gmra.mrb[178].mxu0 %v25931_v63  ;;  %v25937_v63 = vld [vmem:[#allocation440_spill] sm:$0xff] }
 0x2cc   : > { %4574 = vmatprep.mubr.f32.mxu0 %v25415_v41 }
 0x2cd   : > { %3701 = vmatmul.mubr.f32.gmra.mrb[184].mxu1 %v25932_v3  ;;  %v25946_v3 = vand.u32 4294901760, %v20357_v2 }
 0x2ce   : > { %3706 = vmatprep.mubr.f32.mxu1 %v25415_v41 }
 0x2cf   : > { %4577 = vmatmul.mubr.f32.gmra.mrb[180].mxu0 %v25933_v20  ;;  %v25939_v20 = vld [vmem:[#allocation447_spill] sm:$0xff] }
 0x2d0   : > { %4582 = vmatprep.mubr.f32.mxu0 %v25415_v41 }
 0x2d1   : > { %3708 = vmatmul.mubr.f32.gmra.mrb[186].mxu1 %v25934_v59  ;;  %v25940_v59 = vld [vmem:[#allocation462_spill] sm:$0xff] }
 0x2d2   : > { %3713 = vmatprep.mubr.f32.mxu1 %v25415_v41 }
 0x2d3   : > { %4585 = vmatmul.mubr.f32.gmra.mrb[182].mxu0 %v25935_v55  ;;  %v25941_v55 = vld [vmem:[#allocation455_spill] sm:$0xff] }
 0x2d4   : > { %4590 = vmatprep.mubr.f32.mxu0 %v25415_v41 }
 0x2d5   : > { %3715 = vmatmul.mubr.f32.gmra.mrb[188].mxu1 %v25936_v60  ;;  %v25942_v60 = vld [vmem:[#allocation464_spill] sm:$0xff] }
 0x2d6   : > { %3720 = vmatprep.mubr.f32.mxu1 %v25415_v41 }
 0x2d7   : > { %4593 = vmatmul.mubr.f32.gmra.mrb[184].mxu0 %v25937_v63  ;;  %v25943_v63 = vld [vmem:[#allocation461_spill] sm:$0xff] }
 0x2d8   : > { %4598 = vmatprep.mubr.f32.mxu0 %v25415_v41 }
 0x2d9   : > { %3722 = vmatmul.mubr.f32.gmra.mrb[190].mxu1 %v25938_v1  ;;  %v25944_v1 = vand.u32 4294901760, %v20354_v53 }
 0x2da   : > { %3727 = vmatprep.mubr.f32.mxu1 %v25415_v41 }
 0x2db   : > { %4601 = vmatmul.mubr.f32.gmra.mrb[186].mxu0 %v25939_v20  ;;  %v20752_v20 = vsub.f32 %v20354_v53, %v25944_v1  ;;  %v25948_v1 = vld [vmem:[#allocation470_spill] sm:$0xff] }
 0x2dc   : > { %4606 = vmatprep.mubr.f32.mxu0 %v25415_v41 }
 0x2dd   : > { %3729 = vmatmul.mubr.f32.gmra.mrb[192].mxu1 %v25940_v59  ;;  %25945 = vst [vmem:[#allocation518_spill] sm:$0xff] %v20752_v20  ;;  %v20757_v59 = vsub.f32 %v20357_v2, %v25946_v3 }
 0x2de   : > { %3734 = vmatprep.mubr.f32.mxu1 %v25415_v41 }
 0x2df   : > { %4609 = vmatmul.mubr.f32.gmra.mrb[188].mxu0 %v25941_v55  ;;  %25947 = vst [vmem:[#allocation519_spill] sm:$0xff] %v20757_v59  ;;  %v25257_v55 = vand.u32 4294901760, %v20757_v59 }
 0x2e0   : > { %4614 = vmatprep.mubr.f32.mxu0 %v25415_v41 }
 0x2e1   : > { %3736 = vmatmul.mubr.f32.gmra.mrb[194].mxu1 %v25942_v60  ;;  %v8377_v2 = vsub.f32 %v20757_v59, %v25257_v55  ;;  %v25950_v55 = vld [vmem:[#allocation33_spill] sm:$0xff] }
 0x2e2   : > { %3741 = vmatprep.mubr.f32.mxu1 %v25415_v41 }
 0x2e3   : > { %4617 = vmatmul.mubr.f32.gmra.mrb[190].mxu0 %v25943_v63  ;;  %v25256_v63 = vand.u32 4294901760, %v20752_v20 }
 0x2e4   : > { %4622 = vmatprep.mubr.f32.mxu0 %v25415_v41 }
 0x2e5   : > { %3743 = vmatmul.mubr.f32.gmra.mrb[196].mxu1 %v20214_v42  ;;  %v8370_v53 = vsub.f32 %v20752_v20, %v25256_v63 }
 0x2e6   : > { %3748 = vmatprep.mubr.f32.mxu1 %v25415_v41 }
 0x2e7   : > { %4625 = vmatmul.mubr.f32.gmra.mrb[192].mxu0 %v20187_v9  ;;  %v8371_v3 = vand.u32 4294901760, %v8370_v53  ;;  %v8378_v9 = vand.u32 4294901760, %v8377_v2  ;;  %v25953_v53 = vld [vmem:[#allocation42_spill] sm:$0xff] }
 0x2e8   : > { %4630 = vmatprep.mubr.f32.mxu0 %v25415_v41  ;;  %v25954_v2 = vld [vmem:[#allocation46_spill] sm:$0xff] }
 0x2e9   : > { %3750 = vmatmul.mubr.f32.gmra.mrb[198].mxu1 %v20241_v33  ;;  %v15248_v63 = vpack.c.bf16 %v8378_v9, %v8371_v3  ;;  %v25959_v3 = vld [vmem:[#allocation18_spill] sm:$0xff]  ;;  %v25963_v33 = vld [vmem:[#allocation55_spill] sm:$0xff] }
 0x2ea   : > { %3755 = vmatprep.mubr.f32.mxu1 %v25415_v41 }
 0x2eb   : > { %4633 = vmatmul.mubr.f32.gmra.mrb[194].mxu0 %v25948_v1  ;;  %v25949_v1 = vld [vmem:[#allocation28_spill] sm:$0xff] }
 0x2ec   : > { %4638 = vmatprep.mubr.f32.mxu0 %v25415_v41 }
 0x2ed   : > { %3757 = vmatmul.mubr.f32.gmra.mrb[200].mxu1 %v20268_v35  ;;  %v25951_v35 = vld [vmem:[#allocation35_spill] sm:$0xff] }
 0x2ee   : > { %3762 = vmatprep.mubr.f32.mxu1 %v25415_v41 }
 0x2ef   : > { %4641 = vmatmul.mubr.f32.gmra.mrb[196].mxu0 %v20239_v30  ;;  %v25952_v30 = vld [vmem:[#allocation491_spill] sm:$0xff] }
 0x2f0   : > { %4646 = vmatprep.mubr.f32.mxu0 %v25415_v41 }
 0x2f1   : > { %3764 = vmatmul.mubr.f32.gmra.mrb[202].mxu1 %v20292_v54  ;;  %v25962_v54 = vld [vmem:[#allocation50_spill] sm:$0xff] }
 0x2f2   : > { %14220 = vmatprep.mubr.f32.mxu1 %v25949_v1  ;;  %v25955_v1 = vld [vmem:[#allocation497_spill] sm:$0xff] }
 0x2f3   : > { %4649 = vmatmul.mubr.f32.gmra.mrb[198].mxu0 %v20266_v62 }
 0x2f4   : > { %4654 = vmatprep.mubr.f32.mxu0 %v25415_v41 }
 0x2f5   : > { %14221 = vmatmul.mubr.f32.vlgmr.msra.gmra.mrb[204].mxu1 %v25950_v55  ;;  %v25957_v55 = vld [vmem:[#allocation17_spill] sm:$0xff] }
 0x2f6   : > { %14223 = vmatprep.mubr.f32.mxu1 %v25951_v35  ;;  %15247 = vmatpush3.bf16.msra.mxu1 %v20598_v22  ;;  %v25958_v35 = vand.u32 4294901760, %v25957_v55  ;;  %v25960_v22 = vand.u32 4294901760, %v25959_v3  ;;  %v25968_v55 = vld [vmem:[#allocation63_spill] sm:$0xff] }
 0x2f7   : > { %4657 = vmatmul.mubr.f32.gmra.mrb[200].mxu0 %v25952_v30  ;;  %15249 = vmatprep.subr.bf16.mxu1 %v15248_v63 }
 0x2f8   : > { %4662 = vmatprep.mubr.f32.mxu0 %v25415_v41  ;;  %v15222_v62 = vpack.c.bf16 %v25960_v22, %v25958_v35  ;;  %v25969_v35 = vld [vmem:[#allocation29_spill] sm:$0xff]  ;;  %v25974_v22 = vld [vmem:[#allocation32_spill] sm:$0xff] }
 0x2f9   : > { %14224 = vmatmul.mubr.f32.gmra.mrb[206].mxu1 %v25953_v53  ;;  %v25964_v53 = vld [vmem:[#allocation15_spill] sm:$0xff] }
 0x2fa   : > { %14226 = vmatprep.mubr.f32.mxu1 %v25954_v2  ;;  %15251 = vmatpush3.bf16.msra.mxu1 %v15248_v63 }
 0x2fb   : > { %4665 = vmatmul.mubr.f32.gmra.mrb[202].mxu0 %v25955_v1  ;;  %v25981_v1 = vld [vmem:[#allocation25_spill] sm:$0xff] }
 0x2fc   : > { %v20792_v9 = vpop.f32.mrb[102].mxu1  ;;  %4745 = vmatprep.mubr.f32.mxu0 %v25415_v41  ;;  %v25982_v42 = vand.u32 4294901760, %v25981_v1  ;;  %v25989_v1 = vld [vmem:[#allocation30_spill] sm:$0xff] }
 0x2fd   : > { %25956 = vst [vmem:[#allocation28_spill] sm:$0xff] %v20792_v9  ;;  %v20799_v30 = vpop.f32.mrb[103].mxu1  ;;  %14227 = vmatmul.mubr.f32.gmra.mrb[208].mxu1 %v25962_v54  ;;  %v25967_v9 = vld [vmem:[#allocation59_spill] sm:$0xff] }
 0x2fe   : > { %25961 = vst [vmem:[#allocation33_spill] sm:$0xff] %v20799_v30  ;;  %14229 = vmatprep.mubr.f32.mxu1 %v25963_v33  ;;  %v25972_v54 = vld [vmem:[#allocation67_spill] sm:$0xff]  ;;  %v25977_v30 = vld [vmem:[#allocation21_spill] sm:$0xff] }
 0x2ff   : > { %4749 = vmatmul.mubr.f32.vlgmr.msra.gmra.mrb[0].mxu0 %v25964_v53 }
 0x300   : > { %15223 = vmatpush1.bf16.msra.mxu0 %v15222_v62  ;;  %v20804_v63 = vpop.f32.mrb[104].mxu1  ;;  %4754 = vmatprep.mubr.f32.mxu0 %v25415_v41  ;;  %v25973_v62 = vld [vmem:[#allocation71_spill] sm:$0xff] }
 0x301   : > { %25965 = vst [vmem:[#allocation35_spill] sm:$0xff] %v20804_v63  ;;  %v20807_v2 = vpop.f32.mrb[105].mxu1  ;;  %14230 = vmatmul.mubr.f32.gmra.mrb[210].mxu1 %v25967_v9  ;;  %v25975_v63 = vld [vmem:[#allocation20_spill] sm:$0xff]  ;;  %v25978_v9 = vand.u32 4294901760, %v25977_v30 }
 0x302   : > { %25966 = vst [vmem:[#allocation42_spill] sm:$0xff] %v20807_v2  ;;  %14232 = vmatprep.mubr.f32.mxu1 %v25968_v55  ;;  %v25976_v2 = vand.u32 4294901760, %v25975_v63  ;;  %v20826_v55 = vsub.f32 %v20390_v34, %v20404_v21  ;;  %v25987_v63 = vld [vmem:[#allocation79_spill] sm:$0xff]  ;;  %v25988_v34 = vld [vmem:[#allocation38_spill] sm:$0xff] }
 0x303   : > { %4758 = vmatmul.mubr.f32.gmra.mrb[2].mxu0 %v25969_v35 }
 0x304   : > { %v20812_v3 = vpop.f32.mrb[106].mxu1  ;;  %4763 = vmatprep.mubr.f32.mxu0 %v25415_v41  ;;  %v15224_v53 = vpack.c.bf16 %v25978_v9, %v25976_v2  ;;  %v20839_v30 = vand.u32 4294901760, %v20826_v55  ;;  %v25990_v2 = vand.u32 4294901760, %v25989_v1 }
 0x305   : > { %25970 = vst [vmem:[#allocation46_spill] sm:$0xff] %v20812_v3  ;;  %v20815_v33 = vpop.f32.mrb[107].mxu1  ;;  %14233 = vmatmul.mubr.f32.gmra.mrb[212].mxu1 %v25972_v54  ;;  %v25979_v3 = vld [vmem:[#allocation24_spill] sm:$0xff] }
 0x306   : > { %25971 = vst [vmem:[#allocation17_spill] sm:$0xff] %v20815_v33  ;;  %14235 = vmatprep.mubr.f32.mxu1 %v25973_v62  ;;  %v25980_v35 = vand.u32 4294901760, %v25979_v3  ;;  %v25985_v62 = vld [vmem:[#allocation74_spill] sm:$0xff]  ;;  %15225 = vmatprep.subr.bf16.mxu0 %v15224_v53  ;;  %25986 = vst [vmem:[#allocation55_spill] sm:$0xff] %v20839_v30 }
 0x307   : > { %4767 = vmatmul.mubr.f32.gmra.mrb[4].mxu0 %v25974_v22  ;;  %v25993_v53 = vld [vmem:[#allocation82_spill] sm:$0xff] }
 0x308   : > { %v15226_v33 = vpack.c.bf16 %v25982_v42, %v25980_v35  ;;  %v20832_v60 = vpop.f32.mrb[108].mxu1  ;;  %4772 = vmatprep.mubr.f32.mxu0 %v25415_v41  ;;  %v8384_v42 = vsub.f32 %v20826_v55, %v20839_v30  ;;  %v26235_v30 = vld [vmem:[#allocation54_spill] sm:$0xff] }
 0x309   : > { %25983 = vst [vmem:[#allocation18_spill] sm:$0xff] %v20832_v60  ;;  %v20835_v54 = vpop.f32.mrb[109].mxu1  ;;  %14236 = vmatmul.mubr.f32.gmra.mrb[214].mxu1 %v25985_v62  ;;  %v25994_v62 = vld [vmem:[#allocation86_spill] sm:$0xff] }
 0x30a   : > { %25984 = vst [vmem:[#allocation50_spill] sm:$0xff] %v20835_v54  ;;  %14238 = vmatprep.mubr.f32.mxu1 %v25987_v63  ;;  %15227 = vmatpush1.bf16.msra.mxu0 %v15226_v33  ;;  %v8385_v9 = vand.u32 4294901760, %v8384_v42  ;;  %v25995_v33 = vld [vmem:[#allocation31_spill] sm:$0xff]  ;;  %v25997_v54 = vld [vmem:[#allocation40_spill] sm:$0xff]  ;;  %v26002_v42 = vld [vmem:[#allocation94_spill] sm:$0xff] }
 0x30b   : > { %4776 = vmatmul.mubr.f32.gmra.mrb[6].mxu0 %v25988_v34  ;;  %5699 = vmatprep.subr.mxu0 %v25990_v2  ;;  %v25996_v63 = vand.u32 4294901760, %v25995_v33  ;;  %v26000_v2 = vld [vmem:[#allocation91_spill] sm:$0xff]  ;;  %v26239_v34 = vld [vmem:[#allocation237_spill] sm:$0xff]  ;;  %v26240_v22 = vld [vmem:[#allocation66_spill] sm:$0xff] }
 0x30c   : > { %v20847_v35 = vpop.f32.mrb[110].mxu1  ;;  %4781 = vmatprep.mubr.f32.mxu0 %v25415_v41  ;;  %14381 = vmatprep.subr.mxu1 %v8385_v9 }
 0x30d   : > { %25991 = vst [vmem:[#allocation59_spill] sm:$0xff] %v20847_v35  ;;  %v20850_v3 = vpop.f32.mrb[111].mxu1  ;;  %14239 = vmatmul.mubr.f32.gmra.mrb[216].mxu1 %v25993_v53  ;;  %v26003_v53 = vld [vmem:[#allocation41_spill] sm:$0xff] }
 0x30e   : > { %25992 = vst [vmem:[#allocation63_spill] sm:$0xff] %v20850_v3  ;;  %14241 = vmatprep.mubr.f32.mxu1 %v25994_v62  ;;  %5703 = vmatpush1.msra.mxu0 %v25996_v63  ;;  %v26001_v3 = vld [vmem:[#allocation12_spill] sm:$0xff]  ;;  %v26006_v63 = vld [vmem:[#allocation99_spill] sm:$0xff] }
 0x30f   : > { %4785 = vmatmul.mubr.f32.gmra.mrb[8].mxu0 %v25997_v54  ;;  %14382 = vmatpush3.msra.mxu1 %v8385_v9  ;;  %v26008_v9 = vld [vmem:[#allocation47_spill] sm:$0xff]  ;;  %v26236_v54 = vld [vmem:[#allocation233_spill] sm:$0xff] }
 0x310   : > { %v20857_v60 = vpop.f32.mrb[112].mxu1  ;;  %4790 = vmatprep.mubr.f32.mxu0 %v25415_v41  ;;  %15229 = vmatprep.subr.bf16.mxu0 %v26001_v3 }
 0x311   : > { %25998 = vst [vmem:[#allocation67_spill] sm:$0xff] %v20857_v60  ;;  %v20860_v1 = vpop.f32.mrb[113].mxu1  ;;  %14242 = vmatmul.mubr.f32.gmra.mrb[218].mxu1 %v26000_v2  ;;  %v26007_v60 = vld [vmem:[#allocation102_spill] sm:$0xff] }
 0x312   : > { %25999 = vst [vmem:[#allocation71_spill] sm:$0xff] %v20860_v1  ;;  %14244 = vmatprep.mubr.f32.mxu1 %v26002_v42  ;;  %v26011_v2 = vld [vmem:[#allocation106_spill] sm:$0xff] }
 0x313   : > { %4794 = vmatmul.mubr.f32.gmra.mrb[10].mxu0 %v26003_v53  ;;  %v26012_v42 = vld [vmem:[#allocation110_spill] sm:$0xff] }
 0x314   : > { %v20866_v62 = vpop.f32.mrb[114].mxu1  ;;  %4799 = vmatprep.mubr.f32.mxu0 %v25415_v41 }
 0x315   : > { %26004 = vst [vmem:[#allocation20_spill] sm:$0xff] %v20866_v62  ;;  %v20869_v33 = vpop.f32.mrb[115].mxu1  ;;  %14245 = vmatmul.mubr.f32.gmra.mrb[220].mxu1 %v26006_v63  ;;  %v26013_v62 = vld [vmem:[#allocation51_spill] sm:$0xff] }
 0x316   : > { %26005 = vst [vmem:[#allocation21_spill] sm:$0xff] %v20869_v33  ;;  %14247 = vmatprep.mubr.f32.mxu1 %v26007_v60  ;;  %v26016_v60 = vld [vmem:[#allocation114_spill] sm:$0xff] }
 0x317   : > { %4803 = vmatmul.mubr.f32.gmra.mrb[12].mxu0 %v26008_v9  ;;  %v26017_v33 = vld [vmem:[#allocation118_spill] sm:$0xff] }
 0x318   : > { %v20874_v1 = vpop.f32.mrb[116].mxu1  ;;  %4808 = vmatprep.mubr.f32.mxu0 %v25415_v41 }
 0x319   : > { %26009 = vst [vmem:[#allocation24_spill] sm:$0xff] %v20874_v1  ;;  %v20877_v3 = vpop.f32.mrb[117].mxu1  ;;  %14248 = vmatmul.mubr.f32.gmra.mrb[222].mxu1 %v26011_v2  ;;  %v26018_v1 = vld [vmem:[#allocation53_spill] sm:$0xff] }
 0x31a   : > { %26010 = vst [vmem:[#allocation25_spill] sm:$0xff] %v20877_v3  ;;  %14250 = vmatprep.mubr.f32.mxu1 %v26012_v42  ;;  %v26021_v42 = vld [vmem:[#allocation122_spill] sm:$0xff] }
 0x31b   : > { %4812 = vmatmul.mubr.f32.gmra.mrb[14].mxu0 %v26013_v62  ;;  %v26022_v3 = vld [vmem:[#allocation126_spill] sm:$0xff] }
 0x31c   : > { %v20882_v35 = vpop.f32.mrb[118].mxu1  ;;  %4817 = vmatprep.mubr.f32.mxu0 %v25415_v41 }
 0x31d   : > { %26014 = vst [vmem:[#allocation74_spill] sm:$0xff] %v20882_v35  ;;  %v20885_v63 = vpop.f32.mrb[119].mxu1  ;;  %14251 = vmatmul.mubr.f32.gmra.mrb[224].mxu1 %v26016_v60  ;;  %v26023_v35 = vld [vmem:[#allocation60_spill] sm:$0xff] }
 0x31e   : > { %26015 = vst [vmem:[#allocation79_spill] sm:$0xff] %v20885_v63  ;;  %14253 = vmatprep.mubr.f32.mxu1 %v26017_v33  ;;  %v26026_v33 = vld [vmem:[#allocation130_spill] sm:$0xff] }
 0x31f   : > { %4821 = vmatmul.mubr.f32.gmra.mrb[16].mxu0 %v26018_v1  ;;  %v26027_v63 = vld [vmem:[#allocation134_spill] sm:$0xff] }
 0x320   : > { %v20890_v9 = vpop.f32.mrb[120].mxu1  ;;  %4826 = vmatprep.mubr.f32.mxu0 %v25415_v41 }
 0x321   : > { %26019 = vst [vmem:[#allocation30_spill] sm:$0xff] %v20890_v9  ;;  %v20893_v2 = vpop.f32.mrb[121].mxu1  ;;  %14254 = vmatmul.mubr.f32.gmra.mrb[226].mxu1 %v26021_v42  ;;  %v26028_v9 = vld [vmem:[#allocation61_spill] sm:$0xff] }
 0x322   : > { %26020 = vst [vmem:[#allocation82_spill] sm:$0xff] %v20893_v2  ;;  %14256 = vmatprep.mubr.f32.mxu1 %v26022_v3  ;;  %v26031_v3 = vld [vmem:[#allocation139_spill] sm:$0xff] }
 0x323   : > { %4830 = vmatmul.mubr.f32.gmra.mrb[18].mxu0 %v26023_v35  ;;  %v26032_v2 = vld [vmem:[#allocation143_spill] sm:$0xff] }
 0x324   : > { %v20898_v62 = vpop.f32.mrb[122].mxu1  ;;  %4835 = vmatprep.mubr.f32.mxu0 %v25415_v41 }
 0x325   : > { %26024 = vst [vmem:[#allocation86_spill] sm:$0xff] %v20898_v62  ;;  %v20901_v60 = vpop.f32.mrb[123].mxu1  ;;  %14257 = vmatmul.mubr.f32.gmra.mrb[228].mxu1 %v26026_v33  ;;  %v26033_v62 = vld [vmem:[#allocation68_spill] sm:$0xff] }
 0x326   : > { %26025 = vst [vmem:[#allocation31_spill] sm:$0xff] %v20901_v60  ;;  %14259 = vmatprep.mubr.f32.mxu1 %v26027_v63  ;;  %v26036_v63 = vld [vmem:[#allocation147_spill] sm:$0xff]  ;;  %v26037_v60 = vld [vmem:[#allocation150_spill] sm:$0xff] }
 0x327   : > { %4839 = vmatmul.mubr.f32.gmra.mrb[20].mxu0 %v26028_v9 }
 0x328   : > { %v20906_v1 = vpop.f32.mrb[124].mxu1  ;;  %4844 = vmatprep.mubr.f32.mxu0 %v25415_v41 }
 0x329   : > { %26029 = vst [vmem:[#allocation91_spill] sm:$0xff] %v20906_v1  ;;  %v20909_v42 = vpop.f32.mrb[125].mxu1  ;;  %14260 = vmatmul.mubr.f32.gmra.mrb[230].mxu1 %v26031_v3  ;;  %v26038_v1 = vld [vmem:[#allocation69_spill] sm:$0xff] }
 0x32a   : > { %26030 = vst [vmem:[#allocation12_spill] sm:$0xff] %v20909_v42  ;;  %14262 = vmatprep.mubr.f32.mxu1 %v26032_v2  ;;  %v26041_v2 = vld [vmem:[#allocation154_spill] sm:$0xff] }
 0x32b   : > { %4848 = vmatmul.mubr.f32.gmra.mrb[22].mxu0 %v26033_v62  ;;  %v26042_v42 = vld [vmem:[#allocation158_spill] sm:$0xff] }
 0x32c   : > { %v20914_v35 = vpop.f32.mrb[126].mxu1  ;;  %4853 = vmatprep.mubr.f32.mxu0 %v25415_v41 }
 0x32d   : > { %26034 = vst [vmem:[#allocation94_spill] sm:$0xff] %v20914_v35  ;;  %v20917_v33 = vpop.f32.mrb[127].mxu1  ;;  %14263 = vmatmul.mubr.f32.gmra.mrb[232].mxu1 %v26036_v63  ;;  %v26043_v35 = vld [vmem:[#allocation75_spill] sm:$0xff] }
 0x32e   : > { %26035 = vst [vmem:[#allocation99_spill] sm:$0xff] %v20917_v33  ;;  %14265 = vmatprep.mubr.f32.mxu1 %v26037_v60  ;;  %v26046_v60 = vld [vmem:[#allocation162_spill] sm:$0xff] }
 0x32f   : > { %4857 = vmatmul.mubr.f32.gmra.mrb[24].mxu0 %v26038_v1  ;;  %v26047_v33 = vld [vmem:[#allocation166_spill] sm:$0xff] }
 0x330   : > { %v20922_v9 = vpop.f32.mrb[128].mxu1  ;;  %4862 = vmatprep.mubr.f32.mxu0 %v25415_v41 }
 0x331   : > { %26039 = vst [vmem:[#allocation102_spill] sm:$0xff] %v20922_v9  ;;  %v20925_v3 = vpop.f32.mrb[129].mxu1  ;;  %14266 = vmatmul.mubr.f32.gmra.mrb[234].mxu1 %v26041_v2  ;;  %v26048_v9 = vld [vmem:[#allocation80_spill] sm:$0xff] }
 0x332   : > { %26040 = vst [vmem:[#allocation106_spill] sm:$0xff] %v20925_v3  ;;  %14268 = vmatprep.mubr.f32.mxu1 %v26042_v42  ;;  %v26051_v42 = vld [vmem:[#allocation170_spill] sm:$0xff] }
 0x333   : > { %4866 = vmatmul.mubr.f32.gmra.mrb[26].mxu0 %v26043_v35  ;;  %v26052_v3 = vld [vmem:[#allocation174_spill] sm:$0xff] }
 0x334   : > { %v20930_v62 = vpop.f32.mrb[130].mxu1  ;;  %4871 = vmatprep.mubr.f32.mxu0 %v25415_v41 }
 0x335   : > { %26044 = vst [vmem:[#allocation110_spill] sm:$0xff] %v20930_v62  ;;  %v20933_v63 = vpop.f32.mrb[131].mxu1  ;;  %14269 = vmatmul.mubr.f32.gmra.mrb[236].mxu1 %v26046_v60  ;;  %v26053_v62 = vld [vmem:[#allocation83_spill] sm:$0xff] }
 0x336   : > { %26045 = vst [vmem:[#allocation114_spill] sm:$0xff] %v20933_v63  ;;  %14271 = vmatprep.mubr.f32.mxu1 %v26047_v33  ;;  %v26056_v33 = vld [vmem:[#allocation178_spill] sm:$0xff] }
 0x337   : > { %4875 = vmatmul.mubr.f32.gmra.mrb[28].mxu0 %v26048_v9  ;;  %v26057_v63 = vld [vmem:[#allocation182_spill] sm:$0xff] }
 0x338   : > { %v20938_v1 = vpop.f32.mrb[132].mxu1  ;;  %4880 = vmatprep.mubr.f32.mxu0 %v25415_v41 }
 0x339   : > { %26049 = vst [vmem:[#allocation118_spill] sm:$0xff] %v20938_v1  ;;  %v20941_v2 = vpop.f32.mrb[133].mxu1  ;;  %14272 = vmatmul.mubr.f32.gmra.mrb[238].mxu1 %v26051_v42  ;;  %v26058_v1 = vld [vmem:[#allocation87_spill] sm:$0xff] }
 0x33a   : > { %26050 = vst [vmem:[#allocation122_spill] sm:$0xff] %v20941_v2  ;;  %14274 = vmatprep.mubr.f32.mxu1 %v26052_v3  ;;  %v26061_v3 = vld [vmem:[#allocation186_spill] sm:$0xff] }
 0x33b   : > { %4884 = vmatmul.mubr.f32.gmra.mrb[30].mxu0 %v26053_v62  ;;  %v26062_v2 = vld [vmem:[#allocation190_spill] sm:$0xff] }
 0x33c   : > { %v20946_v35 = vpop.f32.mrb[134].mxu1  ;;  %4889 = vmatprep.mubr.f32.mxu0 %v25415_v41 }
 0x33d   : > { %26054 = vst [vmem:[#allocation126_spill] sm:$0xff] %v20946_v35  ;;  %v20949_v60 = vpop.f32.mrb[135].mxu1  ;;  %14275 = vmatmul.mubr.f32.gmra.mrb[240].mxu1 %v26056_v33  ;;  %v26063_v35 = vld [vmem:[#allocation89_spill] sm:$0xff] }
 0x33e   : > { %26055 = vst [vmem:[#allocation130_spill] sm:$0xff] %v20949_v60  ;;  %14277 = vmatprep.mubr.f32.mxu1 %v26057_v63  ;;  %v26066_v63 = vld [vmem:[#allocation194_spill] sm:$0xff] }
 0x33f   : > { %4893 = vmatmul.mubr.f32.gmra.mrb[32].mxu0 %v26058_v1  ;;  %v26067_v60 = vld [vmem:[#allocation198_spill] sm:$0xff] }
 0x340   : > { %v20954_v9 = vpop.f32.mrb[136].mxu1  ;;  %4898 = vmatprep.mubr.f32.mxu0 %v25415_v41 }
 0x341   : > { %26059 = vst [vmem:[#allocation134_spill] sm:$0xff] %v20954_v9  ;;  %v20957_v42 = vpop.f32.mrb[137].mxu1  ;;  %14278 = vmatmul.mubr.f32.gmra.mrb[242].mxu1 %v26061_v3  ;;  %v26068_v9 = vld [vmem:[#allocation95_spill] sm:$0xff] }
 0x342   : > { %26060 = vst [vmem:[#allocation139_spill] sm:$0xff] %v20957_v42  ;;  %14280 = vmatprep.mubr.f32.mxu1 %v26062_v2  ;;  %v26071_v2 = vld [vmem:[#allocation202_spill] sm:$0xff] }
 0x343   : > { %4902 = vmatmul.mubr.f32.gmra.mrb[34].mxu0 %v26063_v35  ;;  %v26072_v42 = vld [vmem:[#allocation206_spill] sm:$0xff]  ;;  %v26083_v35 = vld [vmem:[#allocation107_spill] sm:$0xff] }
 0x344   : > { %v20962_v62 = vpop.f32.mrb[138].mxu1  ;;  %4907 = vmatprep.mubr.f32.mxu0 %v25415_v41 }
 0x345   : > { %26064 = vst [vmem:[#allocation143_spill] sm:$0xff] %v20962_v62  ;;  %v20965_v33 = vpop.f32.mrb[139].mxu1  ;;  %14281 = vmatmul.mubr.f32.gmra.mrb[244].mxu1 %v26066_v63  ;;  %v26073_v62 = vld [vmem:[#allocation97_spill] sm:$0xff] }
 0x346   : > { %26065 = vst [vmem:[#allocation147_spill] sm:$0xff] %v20965_v33  ;;  %14283 = vmatprep.mubr.f32.mxu1 %v26067_v60  ;;  %v20980_v33 = vpack.c.bf16 %v20574_v29, %v20569_v24  ;;  %v26245_v29 = vld [vmem:[#allocation246_spill] sm:$0xff]  ;;  %v26246_v24 = vld [vmem:[#allocation81_spill] sm:$0xff] }
 0x347   : > { %4911 = vmatmul.mubr.f32.gmra.mrb[36].mxu0 %v26068_v9  ;;  %v26081_v9 = vld [vmem:[#allocation218_spill] sm:$0xff] }
 0x348   : > { %v20970_v1 = vpop.f32.mrb[140].mxu1  ;;  %4916 = vmatprep.mubr.f32.mxu0 %v25415_v41  ;;  %15253 = vmatprep.subr.bf16.mxu1 %v20980_v33 }
 0x349   : > { %26069 = vst [vmem:[#allocation150_spill] sm:$0xff] %v20970_v1  ;;  %v20973_v3 = vpop.f32.mrb[141].mxu1  ;;  %14284 = vmatmul.mubr.f32.gmra.mrb[246].mxu1 %v26071_v2  ;;  %v26076_v1 = vld [vmem:[#allocation210_spill] sm:$0xff]  ;;  %v26078_v2 = vld [vmem:[#allocation103_spill] sm:$0xff] }
 0x34a   : > { %26070 = vst [vmem:[#allocation154_spill] sm:$0xff] %v20973_v3  ;;  %14286 = vmatprep.mubr.f32.mxu1 %v26072_v42  ;;  %v26077_v3 = vld [vmem:[#allocation214_spill] sm:$0xff] }
 0x34b   : > { %4920 = vmatmul.mubr.f32.gmra.mrb[38].mxu0 %v26073_v62 }
 0x34c   : > { %v20982_v63 = vpop.f32.mrb[142].mxu1  ;;  %4925 = vmatprep.mubr.f32.mxu0 %v25415_v41 }
 0x34d   : > { %26074 = vst [vmem:[#allocation158_spill] sm:$0xff] %v20982_v63  ;;  %v20985_v60 = vpop.f32.mrb[143].mxu1  ;;  %14287 = vmatmul.mubr.f32.gmra.mrb[248].mxu1 %v26076_v1  ;;  %v26082_v63 = vld [vmem:[#allocation223_spill] sm:$0xff] }
 0x34e   : > { %26075 = vst [vmem:[#allocation162_spill] sm:$0xff] %v20985_v60  ;;  %14289 = vmatprep.mubr.f32.mxu1 %v26077_v3  ;;  %v26086_v3 = vld [vmem:[#allocation227_spill] sm:$0xff] }
 0x34f   : > { %4929 = vmatmul.mubr.f32.gmra.mrb[40].mxu0 %v26078_v2  ;;  %v26087_v2 = vld [vmem:[#allocation231_spill] sm:$0xff] }
 0x350   : > { %v20991_v42 = vpop.f32.mrb[144].mxu1  ;;  %4934 = vmatprep.mubr.f32.mxu0 %v25415_v41 }
 0x351   : > { %26079 = vst [vmem:[#allocation166_spill] sm:$0xff] %v20991_v42  ;;  %v20994_v62 = vpop.f32.mrb[145].mxu1  ;;  %14290 = vmatmul.mubr.f32.gmra.mrb[250].mxu1 %v26081_v9  ;;  %v26088_v42 = vld [vmem:[#allocation109_spill] sm:$0xff] }
 0x352   : > { %26080 = vst [vmem:[#allocation170_spill] sm:$0xff] %v20994_v62  ;;  %14292 = vmatprep.mubr.f32.mxu1 %v26082_v63  ;;  %v26091_v63 = vld [vmem:[#allocation234_spill] sm:$0xff]  ;;  %v26092_v62 = vld [vmem:[#allocation236_spill] sm:$0xff] }
 0x353   : > { %4938 = vmatmul.mubr.f32.gmra.mrb[42].mxu0 %v26083_v35 }
 0x354   : > { %v20999_v60 = vpop.f32.mrb[146].mxu1  ;;  %4943 = vmatprep.mubr.f32.mxu0 %v25415_v41 }
 0x355   : > { %26084 = vst [vmem:[#allocation174_spill] sm:$0xff] %v20999_v60  ;;  %v21002_v1 = vpop.f32.mrb[147].mxu1  ;;  %14293 = vmatmul.mubr.f32.gmra.mrb[252].mxu1 %v26086_v3  ;;  %v26093_v60 = vld [vmem:[#allocation115_spill] sm:$0xff] }
 0x356   : > { %26085 = vst [vmem:[#allocation178_spill] sm:$0xff] %v21002_v1  ;;  %14295 = vmatprep.mubr.f32.mxu1 %v26087_v2  ;;  %v26096_v2 = vld [vmem:[#allocation239_spill] sm:$0xff]  ;;  %v26097_v1 = vld [vmem:[#allocation245_spill] sm:$0xff] }
 0x357   : > { %4947 = vmatmul.mubr.f32.gmra.mrb[44].mxu0 %v26088_v42 }
 0x358   : > { %v21007_v53 = vpop.f32.mrb[148].mxu1  ;;  %4952 = vmatprep.mubr.f32.mxu0 %v25415_v41 }
 0x359   : > { %26089 = vst [vmem:[#allocation182_spill] sm:$0xff] %v21007_v53  ;;  %v21010_v9 = vpop.f32.mrb[149].mxu1  ;;  %14296 = vmatmul.mubr.f32.gmra.mrb[254].mxu1 %v26091_v63  ;;  %v26098_v53 = vld [vmem:[#allocation119_spill] sm:$0xff] }
 0x35a   : > { %26090 = vst [vmem:[#allocation186_spill] sm:$0xff] %v21010_v9  ;;  %14298 = vmatprep.mubr.f32.mxu1 %v26092_v62  ;;  %v26101_v62 = vld [vmem:[#allocation251_spill] sm:$0xff] }
 0x35b   : > { %4956 = vmatmul.mubr.f32.gmra.mrb[46].mxu0 %v26093_v60  ;;  %v26102_v9 = vld [vmem:[#allocation255_spill] sm:$0xff] }
 0x35c   : > { %v21015_v35 = vpop.f32.mrb[150].mxu1  ;;  %4961 = vmatprep.mubr.f32.mxu0 %v25415_v41 }
 0x35d   : > { %26094 = vst [vmem:[#allocation190_spill] sm:$0xff] %v21015_v35  ;;  %v21018_v3 = vpop.f32.mrb[151].mxu1  ;;  %14299 = vmatmul.mubr.f32.gmra.mrb[0].mxu1 %v26096_v2  ;;  %v26103_v35 = vld [vmem:[#allocation123_spill] sm:$0xff] }
 0x35e   : > { %26095 = vst [vmem:[#allocation194_spill] sm:$0xff] %v21018_v3  ;;  %14301 = vmatprep.mubr.f32.mxu1 %v26097_v1  ;;  %v26106_v1 = vld [vmem:[#allocation257_spill] sm:$0xff]  ;;  %v26107_v3 = vld [vmem:[#allocation262_spill] sm:$0xff] }
 0x35f   : > { %4965 = vmatmul.mubr.f32.gmra.mrb[48].mxu0 %v26098_v53 }
 0x360   : > { %v21023_v42 = vpop.f32.mrb[152].mxu1  ;;  %4970 = vmatprep.mubr.f32.mxu0 %v25415_v41 }
 0x361   : > { %26099 = vst [vmem:[#allocation198_spill] sm:$0xff] %v21023_v42  ;;  %v21026_v63 = vpop.f32.mrb[153].mxu1  ;;  %14302 = vmatmul.mubr.f32.gmra.mrb[2].mxu1 %v26101_v62  ;;  %v26108_v42 = vld [vmem:[#allocation127_spill] sm:$0xff] }
 0x362   : > { %26100 = vst [vmem:[#allocation202_spill] sm:$0xff] %v21026_v63  ;;  %14304 = vmatprep.mubr.f32.mxu1 %v26102_v9  ;;  %v26111_v9 = vld [vmem:[#allocation269_spill] sm:$0xff]  ;;  %v26112_v63 = vld [vmem:[#allocation275_spill] sm:$0xff] }
 0x363   : > { %4974 = vmatmul.mubr.f32.gmra.mrb[50].mxu0 %v26103_v35 }
 0x364   : > { %v21031_v60 = vpop.f32.mrb[154].mxu1  ;;  %4979 = vmatprep.mubr.f32.mxu0 %v25415_v41 }
 0x365   : > { %26104 = vst [vmem:[#allocation206_spill] sm:$0xff] %v21031_v60  ;;  %v21034_v2 = vpop.f32.mrb[155].mxu1  ;;  %14305 = vmatmul.mubr.f32.gmra.mrb[4].mxu1 %v26106_v1  ;;  %v26113_v60 = vld [vmem:[#allocation129_spill] sm:$0xff] }
 0x366   : > { %26105 = vst [vmem:[#allocation210_spill] sm:$0xff] %v21034_v2  ;;  %14307 = vmatprep.mubr.f32.mxu1 %v26107_v3  ;;  %v26116_v3 = vld [vmem:[#allocation279_spill] sm:$0xff]  ;;  %v26117_v2 = vld [vmem:[#allocation282_spill] sm:$0xff] }
 0x367   : > { %4983 = vmatmul.mubr.f32.gmra.mrb[52].mxu0 %v26108_v42 }
 0x368   : > { %v21039_v53 = vpop.f32.mrb[156].mxu1  ;;  %4988 = vmatprep.mubr.f32.mxu0 %v25415_v41 }
 0x369   : > { %26109 = vst [vmem:[#allocation214_spill] sm:$0xff] %v21039_v53  ;;  %v21042_v62 = vpop.f32.mrb[157].mxu1  ;;  %14308 = vmatmul.mubr.f32.gmra.mrb[6].mxu1 %v26111_v9  ;;  %v26118_v53 = vld [vmem:[#allocation135_spill] sm:$0xff] }
 0x36a   : > { %26110 = vst [vmem:[#allocation218_spill] sm:$0xff] %v21042_v62  ;;  %14310 = vmatprep.mubr.f32.mxu1 %v26112_v63  ;;  %v26121_v63 = vld [vmem:[#allocation288_spill] sm:$0xff]  ;;  %v26122_v62 = vld [vmem:[#allocation295_spill] sm:$0xff] }
 0x36b   : > { %4992 = vmatmul.mubr.f32.gmra.mrb[54].mxu0 %v26113_v60 }
 0x36c   : > { %v21047_v35 = vpop.f32.mrb[158].mxu1  ;;  %4997 = vmatprep.mubr.f32.mxu0 %v25415_v41 }
 0x36d   : > { %26114 = vst [vmem:[#allocation223_spill] sm:$0xff] %v21047_v35  ;;  %v21050_v1 = vpop.f32.mrb[159].mxu1  ;;  %14311 = vmatmul.mubr.f32.gmra.mrb[8].mxu1 %v26116_v3  ;;  %v26123_v35 = vld [vmem:[#allocation140_spill] sm:$0xff] }
 0x36e   : > { %26115 = vst [vmem:[#allocation227_spill] sm:$0xff] %v21050_v1  ;;  %14313 = vmatprep.mubr.f32.mxu1 %v26117_v2  ;;  %v26126_v2 = vld [vmem:[#allocation301_spill] sm:$0xff] }
 0x36f   : > { %5001 = vmatmul.mubr.f32.gmra.mrb[56].mxu0 %v26118_v53  ;;  %v26127_v1 = vld [vmem:[#allocation305_spill] sm:$0xff] }
 0x370   : > { %v21055_v42 = vpop.f32.mrb[160].mxu1  ;;  %5006 = vmatprep.mubr.f32.mxu0 %v25415_v41 }
 0x371   : > { %26119 = vst [vmem:[#allocation231_spill] sm:$0xff] %v21055_v42  ;;  %v21058_v9 = vpop.f32.mrb[161].mxu1  ;;  %14314 = vmatmul.mubr.f32.gmra.mrb[10].mxu1 %v26121_v63  ;;  %v26128_v42 = vld [vmem:[#allocation141_spill] sm:$0xff] }
 0x372   : > { %26120 = vst [vmem:[#allocation234_spill] sm:$0xff] %v21058_v9  ;;  %14316 = vmatprep.mubr.f32.mxu1 %v26122_v62  ;;  %v26131_v62 = vld [vmem:[#allocation308_spill] sm:$0xff]  ;;  %v26132_v9 = vld [vmem:[#allocation313_spill] sm:$0xff] }
 0x373   : > { %5010 = vmatmul.mubr.f32.gmra.mrb[58].mxu0 %v26123_v35 }
 0x374   : > { %v21063_v60 = vpop.f32.mrb[162].mxu1  ;;  %5015 = vmatprep.mubr.f32.mxu0 %v25415_v41 }
 0x375   : > { %26124 = vst [vmem:[#allocation236_spill] sm:$0xff] %v21063_v60  ;;  %v21066_v3 = vpop.f32.mrb[163].mxu1  ;;  %14317 = vmatmul.mubr.f32.gmra.mrb[12].mxu1 %v26126_v2  ;;  %v26133_v60 = vld [vmem:[#allocation148_spill] sm:$0xff] }
 0x376   : > { %26125 = vst [vmem:[#allocation239_spill] sm:$0xff] %v21066_v3  ;;  %14319 = vmatprep.mubr.f32.mxu1 %v26127_v1  ;;  %v26136_v1 = vld [vmem:[#allocation322_spill] sm:$0xff]  ;;  %v26137_v3 = vld [vmem:[#allocation328_spill] sm:$0xff] }
 0x377   : > { %5019 = vmatmul.mubr.f32.gmra.mrb[60].mxu0 %v26128_v42 }
 0x378   : > { %v21071_v53 = vpop.f32.mrb[164].mxu1  ;;  %5024 = vmatprep.mubr.f32.mxu0 %v25415_v41 }
 0x379   : > { %26129 = vst [vmem:[#allocation245_spill] sm:$0xff] %v21071_v53  ;;  %v21074_v63 = vpop.f32.mrb[165].mxu1  ;;  %14320 = vmatmul.mubr.f32.gmra.mrb[14].mxu1 %v26131_v62  ;;  %v26138_v53 = vld [vmem:[#allocation151_spill] sm:$0xff] }
 0x37a   : > { %26130 = vst [vmem:[#allocation251_spill] sm:$0xff] %v21074_v63  ;;  %14322 = vmatprep.mubr.f32.mxu1 %v26132_v9  ;;  %v26141_v9 = vld [vmem:[#allocation333_spill] sm:$0xff] }
 0x37b   : > { %5028 = vmatmul.mubr.f32.gmra.mrb[62].mxu0 %v26133_v60  ;;  %v26142_v63 = vld [vmem:[#allocation337_spill] sm:$0xff] }
 0x37c   : > { %v21079_v35 = vpop.f32.mrb[166].mxu1  ;;  %5033 = vmatprep.mubr.f32.mxu0 %v25415_v41 }
 0x37d   : > { %26134 = vst [vmem:[#allocation255_spill] sm:$0xff] %v21079_v35  ;;  %v21082_v2 = vpop.f32.mrb[167].mxu1  ;;  %14323 = vmatmul.mubr.f32.gmra.mrb[16].mxu1 %v26136_v1  ;;  %v26143_v35 = vld [vmem:[#allocation155_spill] sm:$0xff] }
 0x37e   : > { %26135 = vst [vmem:[#allocation257_spill] sm:$0xff] %v21082_v2  ;;  %14325 = vmatprep.mubr.f32.mxu1 %v26137_v3  ;;  %v26146_v3 = vld [vmem:[#allocation343_spill] sm:$0xff]  ;;  %v26147_v2 = vld [vmem:[#allocation352_spill] sm:$0xff] }
 0x37f   : > { %5037 = vmatmul.mubr.f32.gmra.mrb[64].mxu0 %v26138_v53 }
 0x380   : > { %v21087_v42 = vpop.f32.mrb[168].mxu1  ;;  %5042 = vmatprep.mubr.f32.mxu0 %v25415_v41 }
 0x381   : > { %26139 = vst [vmem:[#allocation262_spill] sm:$0xff] %v21087_v42  ;;  %v21090_v62 = vpop.f32.mrb[169].mxu1  ;;  %14326 = vmatmul.mubr.f32.gmra.mrb[18].mxu1 %v26141_v9  ;;  %v26148_v42 = vld [vmem:[#allocation159_spill] sm:$0xff] }
 0x382   : > { %26140 = vst [vmem:[#allocation269_spill] sm:$0xff] %v21090_v62  ;;  %14328 = vmatprep.mubr.f32.mxu1 %v26142_v63  ;;  %v26151_v63 = vld [vmem:[#allocation358_spill] sm:$0xff]  ;;  %v26152_v62 = vld [vmem:[#allocation363_spill] sm:$0xff] }
 0x383   : > { %5046 = vmatmul.mubr.f32.gmra.mrb[66].mxu0 %v26143_v35 }
 0x384   : > { %v21095_v60 = vpop.f32.mrb[170].mxu1  ;;  %5051 = vmatprep.mubr.f32.mxu0 %v25415_v41 }
 0x385   : > { %26144 = vst [vmem:[#allocation275_spill] sm:$0xff] %v21095_v60  ;;  %v21098_v1 = vpop.f32.mrb[171].mxu1  ;;  %14329 = vmatmul.mubr.f32.gmra.mrb[20].mxu1 %v26146_v3  ;;  %v26153_v60 = vld [vmem:[#allocation163_spill] sm:$0xff] }
 0x386   : > { %26145 = vst [vmem:[#allocation279_spill] sm:$0xff] %v21098_v1  ;;  %14331 = vmatprep.mubr.f32.mxu1 %v26147_v2  ;;  %v26156_v2 = vld [vmem:[#allocation367_spill] sm:$0xff]  ;;  %v26157_v1 = vld [vmem:[#allocation373_spill] sm:$0xff] }
 0x387   : > { %5055 = vmatmul.mubr.f32.gmra.mrb[68].mxu0 %v26148_v42 }
 0x388   : > { %v21103_v53 = vpop.f32.mrb[172].mxu1  ;;  %5060 = vmatprep.mubr.f32.mxu0 %v25415_v41 }
 0x389   : > { %26149 = vst [vmem:[#allocation282_spill] sm:$0xff] %v21103_v53  ;;  %v21106_v9 = vpop.f32.mrb[173].mxu1  ;;  %14332 = vmatmul.mubr.f32.gmra.mrb[22].mxu1 %v26151_v63  ;;  %v26158_v53 = vld [vmem:[#allocation167_spill] sm:$0xff] }
 0x38a   : > { %26150 = vst [vmem:[#allocation288_spill] sm:$0xff] %v21106_v9  ;;  %14334 = vmatprep.mubr.f32.mxu1 %v26152_v62  ;;  %v26161_v62 = vld [vmem:[#allocation382_spill] sm:$0xff]  ;;  %v26162_v9 = vld [vmem:[#allocation388_spill] sm:$0xff] }
 0x38b   : > { %5064 = vmatmul.mubr.f32.gmra.mrb[70].mxu0 %v26153_v60 }
 0x38c   : > { %v21111_v35 = vpop.f32.mrb[174].mxu1  ;;  %5069 = vmatprep.mubr.f32.mxu0 %v25415_v41 }
 0x38d   : > { %26154 = vst [vmem:[#allocation295_spill] sm:$0xff] %v21111_v35  ;;  %v21114_v3 = vpop.f32.mrb[175].mxu1  ;;  %14335 = vmatmul.mubr.f32.gmra.mrb[24].mxu1 %v26156_v2  ;;  %v26163_v35 = vld [vmem:[#allocation171_spill] sm:$0xff] }
 0x38e   : > { %26155 = vst [vmem:[#allocation301_spill] sm:$0xff] %v21114_v3  ;;  %14337 = vmatprep.mubr.f32.mxu1 %v26157_v1  ;;  %v26166_v1 = vld [vmem:[#allocation393_spill] sm:$0xff] }
 0x38f   : > { %5073 = vmatmul.mubr.f32.gmra.mrb[72].mxu0 %v26158_v53  ;;  %v26167_v3 = vld [vmem:[#allocation397_spill] sm:$0xff] }
 0x390   : > { %v21119_v42 = vpop.f32.mrb[176].mxu1  ;;  %5078 = vmatprep.mubr.f32.mxu0 %v25415_v41 }
 0x391   : > { %26159 = vst [vmem:[#allocation305_spill] sm:$0xff] %v21119_v42  ;;  %v21122_v63 = vpop.f32.mrb[177].mxu1  ;;  %14338 = vmatmul.mubr.f32.gmra.mrb[26].mxu1 %v26161_v62  ;;  %v26168_v42 = vld [vmem:[#allocation175_spill] sm:$0xff] }
 0x392   : > { %26160 = vst [vmem:[#allocation308_spill] sm:$0xff] %v21122_v63  ;;  %14340 = vmatprep.mubr.f32.mxu1 %v26162_v9  ;;  %v26171_v9 = vld [vmem:[#allocation403_spill] sm:$0xff]  ;;  %v26172_v63 = vld [vmem:[#allocation412_spill] sm:$0xff] }
 0x393   : > { %5082 = vmatmul.mubr.f32.gmra.mrb[74].mxu0 %v26163_v35 }
 0x394   : > { %v21127_v60 = vpop.f32.mrb[178].mxu1  ;;  %5087 = vmatprep.mubr.f32.mxu0 %v25415_v41 }
 0x395   : > { %26164 = vst [vmem:[#allocation313_spill] sm:$0xff] %v21127_v60  ;;  %v21130_v2 = vpop.f32.mrb[179].mxu1  ;;  %14341 = vmatmul.mubr.f32.gmra.mrb[28].mxu1 %v26166_v1  ;;  %v26173_v60 = vld [vmem:[#allocation177_spill] sm:$0xff] }
 0x396   : > { %26165 = vst [vmem:[#allocation322_spill] sm:$0xff] %v21130_v2  ;;  %14343 = vmatprep.mubr.f32.mxu1 %v26167_v3  ;;  %v26176_v3 = vld [vmem:[#allocation418_spill] sm:$0xff]  ;;  %v26177_v2 = vld [vmem:[#allocation423_spill] sm:$0xff] }
 0x397   : > { %5091 = vmatmul.mubr.f32.gmra.mrb[76].mxu0 %v26168_v42 }
 0x398   : > { %v21135_v53 = vpop.f32.mrb[180].mxu1  ;;  %5096 = vmatprep.mubr.f32.mxu0 %v25415_v41 }
 0x399   : > { %26169 = vst [vmem:[#allocation328_spill] sm:$0xff] %v21135_v53  ;;  %v21138_v62 = vpop.f32.mrb[181].mxu1  ;;  %14344 = vmatmul.mubr.f32.gmra.mrb[30].mxu1 %v26171_v9  ;;  %v26178_v53 = vld [vmem:[#allocation183_spill] sm:$0xff] }
 0x39a   : > { %26170 = vst [vmem:[#allocation333_spill] sm:$0xff] %v21138_v62  ;;  %14346 = vmatprep.mubr.f32.mxu1 %v26172_v63  ;;  %v26181_v63 = vld [vmem:[#allocation427_spill] sm:$0xff]  ;;  %v26182_v62 = vld [vmem:[#allocation433_spill] sm:$0xff] }
 0x39b   : > { %5100 = vmatmul.mubr.f32.gmra.mrb[78].mxu0 %v26173_v60 }
 0x39c   : > { %v21143_v35 = vpop.f32.mrb[182].mxu1  ;;  %5105 = vmatprep.mubr.f32.mxu0 %v25415_v41 }
 0x39d   : > { %26174 = vst [vmem:[#allocation337_spill] sm:$0xff] %v21143_v35  ;;  %v21146_v1 = vpop.f32.mrb[183].mxu1  ;;  %14347 = vmatmul.mubr.f32.gmra.mrb[32].mxu1 %v26176_v3  ;;  %v26183_v35 = vld [vmem:[#allocation187_spill] sm:$0xff] }
 0x39e   : > { %26175 = vst [vmem:[#allocation343_spill] sm:$0xff] %v21146_v1  ;;  %14349 = vmatprep.mubr.f32.mxu1 %v26177_v2  ;;  %v26186_v2 = vld [vmem:[#allocation442_spill] sm:$0xff]  ;;  %v26187_v1 = vld [vmem:[#allocation448_spill] sm:$0xff] }
 0x39f   : > { %5109 = vmatmul.mubr.f32.gmra.mrb[80].mxu0 %v26178_v53 }
 0x3a0   : > { %v21151_v42 = vpop.f32.mrb[184].mxu1  ;;  %5114 = vmatprep.mubr.f32.mxu0 %v25415_v41 }
 0x3a1   : > { %26179 = vst [vmem:[#allocation352_spill] sm:$0xff] %v21151_v42  ;;  %v21154_v9 = vpop.f32.mrb[185].mxu1  ;;  %14350 = vmatmul.mubr.f32.gmra.mrb[34].mxu1 %v26181_v63  ;;  %v26188_v42 = vld [vmem:[#allocation191_spill] sm:$0xff] }
 0x3a2   : > { %26180 = vst [vmem:[#allocation358_spill] sm:$0xff] %v21154_v9  ;;  %14352 = vmatprep.mubr.f32.mxu1 %v26182_v62  ;;  %v26191_v62 = vld [vmem:[#allocation453_spill] sm:$0xff] }
 0x3a3   : > { %5118 = vmatmul.mubr.f32.gmra.mrb[82].mxu0 %v26183_v35  ;;  %v26192_v9 = vld [vmem:[#allocation457_spill] sm:$0xff] }
 0x3a4   : > { %v21159_v60 = vpop.f32.mrb[186].mxu1  ;;  %5123 = vmatprep.mubr.f32.mxu0 %v25415_v41 }
 0x3a5   : > { %26184 = vst [vmem:[#allocation363_spill] sm:$0xff] %v21159_v60  ;;  %v21162_v3 = vpop.f32.mrb[187].mxu1  ;;  %14353 = vmatmul.mubr.f32.gmra.mrb[36].mxu1 %v26186_v2  ;;  %v26193_v60 = vld [vmem:[#allocation195_spill] sm:$0xff] }
 0x3a6   : > { %26185 = vst [vmem:[#allocation367_spill] sm:$0xff] %v21162_v3  ;;  %14355 = vmatprep.mubr.f32.mxu1 %v26187_v1  ;;  %v26196_v1 = vld [vmem:[#allocation465_spill] sm:$0xff]  ;;  %v26197_v3 = vld [vmem:[#allocation471_spill] sm:$0xff] }
 0x3a7   : > { %5127 = vmatmul.mubr.f32.gmra.mrb[84].mxu0 %v26188_v42 }
 0x3a8   : > { %v21167_v53 = vpop.f32.mrb[188].mxu1  ;;  %5132 = vmatprep.mubr.f32.mxu0 %v25415_v41 }
 0x3a9   : > { %26189 = vst [vmem:[#allocation373_spill] sm:$0xff] %v21167_v53  ;;  %v21170_v63 = vpop.f32.mrb[189].mxu1  ;;  %14356 = vmatmul.mubr.f32.gmra.mrb[38].mxu1 %v26191_v62  ;;  %v26198_v53 = vld [vmem:[#allocation199_spill] sm:$0xff] }
 0x3aa   : > { %26190 = vst [vmem:[#allocation382_spill] sm:$0xff] %v21170_v63  ;;  %14358 = vmatprep.mubr.f32.mxu1 %v26192_v9  ;;  %v26201_v9 = vld [vmem:[#allocation477_spill] sm:$0xff]  ;;  %v26202_v63 = vld [vmem:[#allocation482_spill] sm:$0xff] }
 0x3ab   : > { %5136 = vmatmul.mubr.f32.gmra.mrb[86].mxu0 %v26193_v60 }
 0x3ac   : > { %v21175_v35 = vpop.f32.mrb[190].mxu1  ;;  %5141 = vmatprep.mubr.f32.mxu0 %v25415_v41 }
 0x3ad   : > { %26194 = vst [vmem:[#allocation388_spill] sm:$0xff] %v21175_v35  ;;  %v21178_v2 = vpop.f32.mrb[191].mxu1  ;;  %14359 = vmatmul.mubr.f32.gmra.mrb[40].mxu1 %v26196_v1  ;;  %v26203_v35 = vld [vmem:[#allocation203_spill] sm:$0xff] }
 0x3ae   : > { %26195 = vst [vmem:[#allocation393_spill] sm:$0xff] %v21178_v2  ;;  %14361 = vmatprep.mubr.f32.mxu1 %v26197_v3  ;;  %v26206_v3 = vld [vmem:[#allocation487_spill] sm:$0xff]  ;;  %v26207_v2 = vld [vmem:[#allocation494_spill] sm:$0xff] }
 0x3af   : > { %5145 = vmatmul.mubr.f32.gmra.mrb[88].mxu0 %v26198_v53 }
 0x3b0   : > { %v21183_v42 = vpop.f32.mrb[192].mxu1  ;;  %5150 = vmatprep.mubr.f32.mxu0 %v25415_v41 }
 0x3b1   : > { %26199 = vst [vmem:[#allocation397_spill] sm:$0xff] %v21183_v42  ;;  %v21186_v62 = vpop.f32.mrb[193].mxu1  ;;  %14362 = vmatmul.mubr.f32.gmra.mrb[42].mxu1 %v26201_v9  ;;  %v26208_v42 = vld [vmem:[#allocation207_spill] sm:$0xff] }
 0x3b2   : > { %26200 = vst [vmem:[#allocation403_spill] sm:$0xff] %v21186_v62  ;;  %14364 = vmatprep.mubr.f32.mxu1 %v26202_v63  ;;  %v26211_v63 = vld [vmem:[#allocation499_spill] sm:$0xff] }
 0x3b3   : > { %5154 = vmatmul.mubr.f32.gmra.mrb[90].mxu0 %v26203_v35  ;;  %v26212_v62 = vld [vmem:[#allocation503_spill] sm:$0xff] }
 0x3b4   : > { %v21191_v60 = vpop.f32.mrb[194].mxu1  ;;  %5159 = vmatprep.mubr.f32.mxu0 %v25415_v41 }
 0x3b5   : > { %26204 = vst [vmem:[#allocation412_spill] sm:$0xff] %v21191_v60  ;;  %v21194_v1 = vpop.f32.mrb[195].mxu1  ;;  %14365 = vmatmul.mubr.f32.gmra.mrb[44].mxu1 %v26206_v3  ;;  %v26213_v60 = vld [vmem:[#allocation209_spill] sm:$0xff] }
 0x3b6   : > { %26205 = vst [vmem:[#allocation418_spill] sm:$0xff] %v21194_v1  ;;  %14367 = vmatprep.mubr.f32.mxu1 %v26207_v2  ;;  %v26216_v2 = vld [vmem:[#allocation4_spill] sm:$0xff]  ;;  %v26221_v1 = vld [vmem:[#allocation7_spill] sm:$0xff] }
 0x3b7   : > { %5163 = vmatmul.mubr.f32.gmra.mrb[92].mxu0 %v26208_v42  ;;  %v26234_v42 = vld [vmem:[#allocation52_spill] sm:$0xff] }
 0x3b8   : > { %v21199_v53 = vpop.f32.mrb[196].mxu1  ;;  %5168 = vmatprep.mubr.f32.mxu0 %v25415_v41 }
 0x3b9   : > { %26209 = vst [vmem:[#allocation423_spill] sm:$0xff] %v21199_v53  ;;  %v21202_v9 = vpop.f32.mrb[197].mxu1  ;;  %14368 = vmatmul.mubr.f32.gmra.mrb[46].mxu1 %v26211_v63  ;;  %v26217_v53 = vld [vmem:[#allocation215_spill] sm:$0xff] }
 0x3ba   : > { %26210 = vst [vmem:[#allocation427_spill] sm:$0xff] %v21202_v9  ;;  %14370 = vmatprep.mubr.f32.mxu1 %v26212_v62  ;;  %v15256_v9 = vpack.c.bf16 %v20757_v59, %v20752_v20  ;;  %v26242_v59 = vld [vmem:[#allocation240_spill] sm:$0xff]  ;;  %v26243_v20 = vld [vmem:[#allocation73_spill] sm:$0xff] }
 0x3bb   : > { %5172 = vmatmul.mubr.f32.gmra.mrb[94].mxu0 %v26213_v60  ;;  %v26226_v60 = vld [vmem:[#allocation9_spill] sm:$0xff] }
 0x3bc   : > { %v21207_v35 = vpop.f32.mrb[198].mxu1  ;;  %5177 = vmatprep.mubr.f32.mxu0 %v25415_v41 }
 0x3bd   : > { %26214 = vst [vmem:[#allocation433_spill] sm:$0xff] %v21207_v35  ;;  %v21210_v3 = vpop.f32.mrb[199].mxu1  ;;  %14371 = vmatmul.mubr.f32.gmra.mrb[48].mxu1 %v20363_v4  ;;  %v26220_v35 = vld [vmem:[#allocation5_spill] sm:$0xff]  ;;  %v26222_v4 = vld [vmem:[#allocation219_spill] sm:$0xff] }
 0x3be   : > { %26215 = vst [vmem:[#allocation442_spill] sm:$0xff] %v21210_v3  ;;  %14383 = vmatprep.mubr.f32.mxu1 %v26216_v2 }
 0x3bf   : > { %5181 = vmatmul.mubr.f32.gmra.mrb[96].mxu0 %v26217_v53 }
 0x3c0   : > { %v21217_v63 = vpop.f32.mrb[200].mxu1  ;;  %5186 = vmatprep.mubr.f32.mxu0 %v25415_v41 }
 0x3c1   : > { %26218 = vst [vmem:[#allocation448_spill] sm:$0xff] %v21217_v63  ;;  %v21220_v62 = vpop.f32.mrb[201].mxu1  ;;  %14384 = vmatmul.mubr.f32.vlgmr.msra.gmra.mrb[204].mxu1 %v26220_v35  ;;  %v26225_v63 = vld [vmem:[#allocation8_spill] sm:$0xff] }
 0x3c2   : > { %26219 = vst [vmem:[#allocation453_spill] sm:$0xff] %v21220_v62  ;;  %14386 = vmatprep.mubr.f32.mxu1 %v26221_v1  ;;  %15255 = vmatpush3.bf16.msra.mxu1 %v20980_v33  ;;  %v26227_v62 = vld [vmem:[#allocation221_spill] sm:$0xff]  ;;  %v26228_v33 = vld [vmem:[#allocation11_spill] sm:$0xff] }
 0x3c3   : > { %5190 = vmatmul.mubr.f32.gmra.mrb[98].mxu0 %v26222_v4  ;;  %15257 = vmatprep.subr.bf16.mxu1 %v15256_v9  ;;  %v26229_v4 = vld [vmem:[#allocation39_spill] sm:$0xff] }
 0x3c4   : > { %v21226_v3 = vpop.f32.mrb[202].mxu1  ;;  %5195 = vmatprep.mubr.f32.mxu0 %v25415_v41 }
 0x3c5   : > { %26223 = vst [vmem:[#allocation457_spill] sm:$0xff] %v21226_v3  ;;  %v21229_v53 = vpop.f32.mrb[203].mxu1  ;;  %14387 = vmatmul.mubr.f32.gmra.mrb[206].mxu1 %v26225_v63  ;;  %v26230_v3 = vld [vmem:[#allocation228_spill] sm:$0xff] }
 0x3c6   : > { %26224 = vst [vmem:[#allocation465_spill] sm:$0xff] %v21229_v53  ;;  %14389 = vmatprep.mubr.f32.mxu1 %v26226_v60  ;;  %15259 = vmatpush3.bf16.msra.mxu1 %v15256_v9  ;;  %v26231_v53 = vld [vmem:[#allocation44_spill] sm:$0xff]  ;;  %v26232_v9 = vld [vmem:[#allocation45_spill] sm:$0xff] }
 0x3c7   : > { %5199 = vmatmul.mubr.f32.gmra.mrb[100].mxu0 %v26227_v62  ;;  %14544 = vmatprep.subr.mxu1 %v20826_v55  ;;  %v26233_v62 = vld [vmem:[#allocation229_spill] sm:$0xff] }
 0x3c8   : > { %5204 = vmatprep.mubr.f32.mxu0 %v25415_v41 }
 0x3c9   : > { %14390 = vmatmul.mubr.f32.gmra.mrb[208].mxu1 %v26228_v33 }
 0x3ca   : > { %14392 = vmatprep.mubr.f32.mxu1 %v26229_v4  ;;  %14545 = vmatpush3.msra.mxu1 %v20826_v55  ;;  %v26237_v55 = vld [vmem:[#allocation58_spill] sm:$0xff] }
 0x3cb   : > { %5208 = vmatmul.mubr.f32.gmra.mrb[102].mxu0 %v26230_v3  ;;  %15261 = vmatprep.subr.bf16.mxu1 %v19726_v31  ;;  %v26238_v3 = vld [vmem:[#allocation62_spill] sm:$0xff] }
 0x3cc   : > { %5213 = vmatprep.mubr.f32.mxu0 %v25415_v41 }
 0x3cd   : > { %14393 = vmatmul.mubr.f32.gmra.mrb[210].mxu1 %v26231_v53 }
 0x3ce   : > { %14395 = vmatprep.mubr.f32.mxu1 %v26232_v9 }
 0x3cf   : > { %5217 = vmatmul.mubr.f32.gmra.mrb[104].mxu0 %v26233_v62  ;;  %v26241_v62 = vld [vmem:[#allocation72_spill] sm:$0xff] }
 0x3d0   : > { %5222 = vmatprep.mubr.f32.mxu0 %v25415_v41 }
 0x3d1   : > { %14396 = vmatmul.mubr.f32.gmra.mrb[212].mxu1 %v26234_v42 }
 0x3d2   : > { %14398 = vmatprep.mubr.f32.mxu1 %v26235_v30 }
 0x3d3   : > { %5226 = vmatmul.mubr.f32.gmra.mrb[106].mxu0 %v26236_v54  ;;  %v26244_v54 = vld [vmem:[#allocation78_spill] sm:$0xff] }
 0x3d4   : > { %5231 = vmatprep.mubr.f32.mxu0 %v25415_v41 }
 0x3d5   : > { %14399 = vmatmul.mubr.f32.gmra.mrb[214].mxu1 %v26237_v55 }
 0x3d6   : > { %14401 = vmatprep.mubr.f32.mxu1 %v26238_v3  ;;  %v26248_v3 = vld [vmem:[#allocation249_spill] sm:$0xff] }
 0x3d7   : > { %5235 = vmatmul.mubr.f32.gmra.mrb[108].mxu0 %v26239_v34  ;;  %v26247_v34 = vld [vmem:[#allocation88_spill] sm:$0xff] }
 0x3d8   : > { %5240 = vmatprep.mubr.f32.mxu0 %v25415_v41 }
 0x3d9   : > { %14402 = vmatmul.mubr.f32.gmra.mrb[216].mxu1 %v26240_v22  ;;  %v26251_v22 = vld [vmem:[#allocation254_spill] sm:$0xff] }
 0x3da   : > { %14404 = vmatprep.mubr.f32.mxu1 %v26241_v62  ;;  %v26249_v62 = vld [vmem:[#allocation90_spill] sm:$0xff] }
 0x3db   : > { %5244 = vmatmul.mubr.f32.gmra.mrb[110].mxu0 %v26242_v59  ;;  %v26250_v59 = vld [vmem:[#allocation96_spill] sm:$0xff] }
 0x3dc   : > { %5249 = vmatprep.mubr.f32.mxu0 %v25415_v41 }
 0x3dd   : > { %14405 = vmatmul.mubr.f32.gmra.mrb[218].mxu1 %v26243_v20  ;;  %v26254_v20 = vld [vmem:[#allocation260_spill] sm:$0xff] }
 0x3de   : > { %14407 = vmatprep.mubr.f32.mxu1 %v26244_v54  ;;  %v26252_v54 = vld [vmem:[#allocation98_spill] sm:$0xff] }
 0x3df   : > { %5253 = vmatmul.mubr.f32.gmra.mrb[112].mxu0 %v26245_v29  ;;  %v26253_v29 = vld [vmem:[#allocation101_spill] sm:$0xff] }
 0x3e0   : > { %5258 = vmatprep.mubr.f32.mxu0 %v25415_v41 }
 0x3e1   : > { %14408 = vmatmul.mubr.f32.gmra.mrb[220].mxu1 %v26246_v24  ;;  %v26257_v24 = vld [vmem:[#allocation265_spill] sm:$0xff] }
 0x3e2   : > { %14410 = vmatprep.mubr.f32.mxu1 %v26247_v34  ;;  %v26255_v34 = vld [vmem:[#allocation108_spill] sm:$0xff] }
 0x3e3   : > { %5262 = vmatmul.mubr.f32.gmra.mrb[114].mxu0 %v26248_v3  ;;  %v26256_v3 = vld [vmem:[#allocation112_spill] sm:$0xff] }
 0x3e4   : > { %5267 = vmatprep.mubr.f32.mxu0 %v25415_v41 }
 0x3e5   : > { %14411 = vmatmul.mubr.f32.gmra.mrb[222].mxu1 %v26249_v62  ;;  %v26260_v62 = vld [vmem:[#allocation271_spill] sm:$0xff] }
 0x3e6   : > { %14413 = vmatprep.mubr.f32.mxu1 %v26250_v59  ;;  %v26258_v59 = vld [vmem:[#allocation113_spill] sm:$0xff] }
 0x3e7   : > { %5271 = vmatmul.mubr.f32.gmra.mrb[116].mxu0 %v26251_v22  ;;  %v26259_v22 = vld [vmem:[#allocation120_spill] sm:$0xff] }
 0x3e8   : > { %5276 = vmatprep.mubr.f32.mxu0 %v25415_v41 }
 0x3e9   : > { %14414 = vmatmul.mubr.f32.gmra.mrb[224].mxu1 %v26252_v54  ;;  %v26263_v54 = vld [vmem:[#allocation273_spill] sm:$0xff] }
 0x3ea   : > { %14416 = vmatprep.mubr.f32.mxu1 %v26253_v29  ;;  %v26261_v29 = vld [vmem:[#allocation121_spill] sm:$0xff] }
 0x3eb   : > { %5280 = vmatmul.mubr.f32.gmra.mrb[118].mxu0 %v26254_v20  ;;  %v26262_v20 = vld [vmem:[#allocation128_spill] sm:$0xff] }
 0x3ec   : > { %5285 = vmatprep.mubr.f32.mxu0 %v25415_v41 }
 0x3ed   : > { %14417 = vmatmul.mubr.f32.gmra.mrb[226].mxu1 %v26255_v34  ;;  %v26266_v34 = vld [vmem:[#allocation278_spill] sm:$0xff] }
 0x3ee   : > { %14419 = vmatprep.mubr.f32.mxu1 %v26256_v3  ;;  %v26264_v3 = vld [vmem:[#allocation132_spill] sm:$0xff] }
 0x3ef   : > { %5289 = vmatmul.mubr.f32.gmra.mrb[120].mxu0 %v26257_v24  ;;  %v26265_v24 = vld [vmem:[#allocation133_spill] sm:$0xff] }
 0x3f0   : > { %5294 = vmatprep.mubr.f32.mxu0 %v25415_v41 }
 0x3f1   : > { %14420 = vmatmul.mubr.f32.gmra.mrb[228].mxu1 %v26258_v59  ;;  %v26269_v59 = vld [vmem:[#allocation285_spill] sm:$0xff] }
 0x3f2   : > { %14422 = vmatprep.mubr.f32.mxu1 %v26259_v22  ;;  %v26267_v22 = vld [vmem:[#allocation138_spill] sm:$0xff] }
 0x3f3   : > { %5298 = vmatmul.mubr.f32.gmra.mrb[122].mxu0 %v26260_v62  ;;  %v26268_v62 = vld [vmem:[#allocation142_spill] sm:$0xff] }
 0x3f4   : > { %5303 = vmatprep.mubr.f32.mxu0 %v25415_v41 }
 0x3f5   : > { %14423 = vmatmul.mubr.f32.gmra.mrb[230].mxu1 %v26261_v29  ;;  %v26272_v29 = vld [vmem:[#allocation291_spill] sm:$0xff] }
 0x3f6   : > { %14425 = vmatprep.mubr.f32.mxu1 %v26262_v20  ;;  %v26270_v20 = vld [vmem:[#allocation146_spill] sm:$0xff] }
 0x3f7   : > { %5307 = vmatmul.mubr.f32.gmra.mrb[124].mxu0 %v26263_v54  ;;  %v26271_v54 = vld [vmem:[#allocation149_spill] sm:$0xff] }
 0x3f8   : > { %5312 = vmatprep.mubr.f32.mxu0 %v25415_v41 }
 0x3f9   : > { %14426 = vmatmul.mubr.f32.gmra.mrb[232].mxu1 %v26264_v3  ;;  %v26275_v3 = vld [vmem:[#allocation297_spill] sm:$0xff] }
 0x3fa   : > { %14428 = vmatprep.mubr.f32.mxu1 %v26265_v24  ;;  %v26273_v24 = vld [vmem:[#allocation156_spill] sm:$0xff] }
 0x3fb   : > { %5316 = vmatmul.mubr.f32.gmra.mrb[126].mxu0 %v26266_v34  ;;  %v26274_v34 = vld [vmem:[#allocation157_spill] sm:$0xff] }
 0x3fc   : > { %5321 = vmatprep.mubr.f32.mxu0 %v25415_v41 }
 0x3fd   : > { %14429 = vmatmul.mubr.f32.gmra.mrb[234].mxu1 %v26267_v22  ;;  %v26278_v22 = vld [vmem:[#allocation299_spill] sm:$0xff] }
 0x3fe   : > { %14431 = vmatprep.mubr.f32.mxu1 %v26268_v62  ;;  %v26276_v62 = vld [vmem:[#allocation164_spill] sm:$0xff] }
 0x3ff   : > { %5325 = vmatmul.mubr.f32.gmra.mrb[128].mxu0 %v26269_v59  ;;  %v26277_v59 = vld [vmem:[#allocation165_spill] sm:$0xff] }
 0x400   : > { %5330 = vmatprep.mubr.f32.mxu0 %v25415_v41 }
 0x401   : > { %14432 = vmatmul.mubr.f32.gmra.mrb[236].mxu1 %v26270_v20  ;;  %v26281_v20 = vld [vmem:[#allocation304_spill] sm:$0xff] }
 0x402   : > { %14434 = vmatprep.mubr.f32.mxu1 %v26271_v54  ;;  %v26279_v54 = vld [vmem:[#allocation169_spill] sm:$0xff] }
 0x403   : > { %5334 = vmatmul.mubr.f32.gmra.mrb[130].mxu0 %v26272_v29  ;;  %v26280_v29 = vld [vmem:[#allocation176_spill] sm:$0xff] }
 0x404   : > { %5339 = vmatprep.mubr.f32.mxu0 %v25415_v41 }
 0x405   : > { %14435 = vmatmul.mubr.f32.gmra.mrb[238].mxu1 %v26273_v24  ;;  %v26284_v24 = vld [vmem:[#allocation311_spill] sm:$0xff] }
 0x406   : > { %14437 = vmatprep.mubr.f32.mxu1 %v26274_v34  ;;  %v26282_v34 = vld [vmem:[#allocation180_spill] sm:$0xff] }
 0x407   : > { %5343 = vmatmul.mubr.f32.gmra.mrb[132].mxu0 %v26275_v3  ;;  %v26283_v3 = vld [vmem:[#allocation181_spill] sm:$0xff] }
 0x408   : > { %5348 = vmatprep.mubr.f32.mxu0 %v25415_v41 }
 0x409   : > { %14438 = vmatmul.mubr.f32.gmra.mrb[240].mxu1 %v26276_v62  ;;  %v26287_v62 = vld [vmem:[#allocation317_spill] sm:$0xff] }
 0x40a   : > { %14440 = vmatprep.mubr.f32.mxu1 %v26277_v59  ;;  %v26285_v59 = vld [vmem:[#allocation188_spill] sm:$0xff] }
 0x40b   : > { %5352 = vmatmul.mubr.f32.gmra.mrb[134].mxu0 %v26278_v22  ;;  %v26286_v22 = vld [vmem:[#allocation189_spill] sm:$0xff] }
 0x40c   : > { %5357 = vmatprep.mubr.f32.mxu0 %v25415_v41 }
 0x40d   : > { %14441 = vmatmul.mubr.f32.gmra.mrb[242].mxu1 %v26279_v54  ;;  %v26290_v54 = vld [vmem:[#allocation324_spill] sm:$0xff] }
 0x40e   : > { %14443 = vmatprep.mubr.f32.mxu1 %v26280_v29  ;;  %v26288_v29 = vld [vmem:[#allocation196_spill] sm:$0xff] }
 0x40f   : > { %5361 = vmatmul.mubr.f32.gmra.mrb[136].mxu0 %v26281_v20  ;;  %v26289_v20 = vld [vmem:[#allocation197_spill] sm:$0xff] }
 0x410   : > { %5366 = vmatprep.mubr.f32.mxu0 %v25415_v41 }
 0x411   : > { %14444 = vmatmul.mubr.f32.gmra.mrb[244].mxu1 %v26282_v34  ;;  %v26293_v34 = vld [vmem:[#allocation326_spill] sm:$0xff] }
 0x412   : > { %14446 = vmatprep.mubr.f32.mxu1 %v26283_v3  ;;  %v26291_v3 = vld [vmem:[#allocation201_spill] sm:$0xff] }
 0x413   : > { %5370 = vmatmul.mubr.f32.gmra.mrb[138].mxu0 %v26284_v24  ;;  %v26292_v24 = vld [vmem:[#allocation208_spill] sm:$0xff] }
 0x414   : > { %5375 = vmatprep.mubr.f32.mxu0 %v25415_v41 }
 0x415   : > { %14447 = vmatmul.mubr.f32.gmra.mrb[246].mxu1 %v26285_v59  ;;  %v26296_v59 = vld [vmem:[#allocation332_spill] sm:$0xff] }
 0x416   : > { %14449 = vmatprep.mubr.f32.mxu1 %v26286_v22  ;;  %v26294_v22 = vld [vmem:[#allocation212_spill] sm:$0xff] }
 0x417   : > { %5379 = vmatmul.mubr.f32.gmra.mrb[140].mxu0 %v26287_v62  ;;  %v26295_v62 = vld [vmem:[#allocation213_spill] sm:$0xff] }
 0x418   : > { %5384 = vmatprep.mubr.f32.mxu0 %v25415_v41 }
 0x419   : > { %14450 = vmatmul.mubr.f32.gmra.mrb[248].mxu1 %v26288_v29 }
 0x41a   : > { %14452 = vmatprep.mubr.f32.mxu1 %v26289_v20 }
 0x41b   : > { %5388 = vmatmul.mubr.f32.gmra.mrb[142].mxu0 %v26290_v54  ;;  %v26297_v54 = vld [vmem:[#allocation340_spill] sm:$0xff] }
 0x41c   : > { %5393 = vmatprep.mubr.f32.mxu0 %v25415_v41 }
 0x41d   : > { %14453 = vmatmul.mubr.f32.gmra.mrb[250].mxu1 %v26291_v3 }
 0x41e   : > { %14455 = vmatprep.mubr.f32.mxu1 %v26292_v24 }
 0x41f   : > { %5397 = vmatmul.mubr.f32.gmra.mrb[144].mxu0 %v26293_v34  ;;  %v26298_v34 = vld [vmem:[#allocation347_spill] sm:$0xff] }
 0x420   : > { %5402 = vmatprep.mubr.f32.mxu0 %v25415_v41 }
 0x421   : > { %14456 = vmatmul.mubr.f32.gmra.mrb[252].mxu1 %v26294_v22 }
 0x422   : > { %14458 = vmatprep.mubr.f32.mxu1 %v26295_v62 }
 0x423   : > { %5406 = vmatmul.mubr.f32.gmra.mrb[146].mxu0 %v26296_v59  ;;  %v26299_v59 = vld [vmem:[#allocation354_spill] sm:$0xff] }
 0x424   : > { %5411 = vmatprep.mubr.f32.mxu0 %v25415_v41 }
 0x425   : > { %14459 = vmatmul.mubr.f32.gmra.mrb[254].mxu1 %v19082_v56 }
 0x426   : > { %14461 = vmatprep.mubr.f32.mxu1 %v19093_v27 }
 0x427   : > { %5415 = vmatmul.mubr.f32.gmra.mrb[148].mxu0 %v26297_v54  ;;  %v26300_v54 = vld [vmem:[#allocation356_spill] sm:$0xff] }
 0x428   : > { %5420 = vmatprep.mubr.f32.mxu0 %v25415_v41 }
 0x429   : > { %14462 = vmatmul.mubr.f32.gmra.mrb[0].mxu1 %v19113_v44 }
 0x42a   : > { %14464 = vmatprep.mubr.f32.mxu1 %v25881_v25 }
 0x42b   : > { %5424 = vmatmul.mubr.f32.gmra.mrb[150].mxu0 %v26298_v34  ;;  %v26301_v34 = vld [vmem:[#allocation362_spill] sm:$0xff] }
 0x42c   : > { %5429 = vmatprep.mubr.f32.mxu0 %v25415_v41 }
 0x42d   : > { %14465 = vmatmul.mubr.f32.gmra.mrb[2].mxu1 %v19161_v39 }
 0x42e   : > { %14467 = vmatprep.mubr.f32.mxu1 %v19181_v43 }
 0x42f   : > { %5433 = vmatmul.mubr.f32.gmra.mrb[152].mxu0 %v26299_v59  ;;  %v26302_v59 = vld [vmem:[#allocation370_spill] sm:$0xff] }
 0x430   : > { %5438 = vmatprep.mubr.f32.mxu0 %v25415_v41 }
 0x431   : > { %14468 = vmatmul.mubr.f32.gmra.mrb[4].mxu1 %v19192_v51 }
 0x432   : > { %14470 = vmatprep.mubr.f32.mxu1 %v19217_v7 }
 0x433   : > { %5442 = vmatmul.mubr.f32.gmra.mrb[154].mxu0 %v26300_v54  ;;  %v26303_v54 = vld [vmem:[#allocation377_spill] sm:$0xff] }
 0x434   : > { %5447 = vmatprep.mubr.f32.mxu0 %v25415_v41 }
 0x435   : > { %14471 = vmatmul.mubr.f32.gmra.mrb[6].mxu1 %v19250_v38 }
 0x436   : > { %14473 = vmatprep.mubr.f32.mxu1 %v19276_v48 }
 0x437   : > { %5451 = vmatmul.mubr.f32.gmra.mrb[156].mxu0 %v26301_v34  ;;  %v26304_v34 = vld [vmem:[#allocation384_spill] sm:$0xff] }
 0x438   : > { %5456 = vmatprep.mubr.f32.mxu0 %v25415_v41 }
 0x439   : > { %14474 = vmatmul.mubr.f32.gmra.mrb[8].mxu1 %v19302_v49 }
 0x43a   : > { %14476 = vmatprep.mubr.f32.mxu1 %v19315_v0 }
 0x43b   : > { %5460 = vmatmul.mubr.f32.gmra.mrb[158].mxu0 %v26302_v59  ;;  %v26305_v59 = vld [vmem:[#allocation386_spill] sm:$0xff] }
 0x43c   : > { %5465 = vmatprep.mubr.f32.mxu0 %v25415_v41 }
 0x43d   : > { %14477 = vmatmul.mubr.f32.gmra.mrb[10].mxu1 %v19340_v15 }
 0x43e   : > { %14479 = vmatprep.mubr.f32.mxu1 %v19374_v8 }
 0x43f   : > { %5469 = vmatmul.mubr.f32.gmra.mrb[160].mxu0 %v26303_v54  ;;  %v26306_v54 = vld [vmem:[#allocation392_spill] sm:$0xff] }
 0x440   : > { %5474 = vmatprep.mubr.f32.mxu0 %v25415_v41 }
 0x441   : > { %14480 = vmatmul.mubr.f32.gmra.mrb[12].mxu1 %v19398_v26 }
 0x442   : > { %14482 = vmatprep.mubr.f32.mxu1 %v19422_v47  ;;  %v26308_v47 = vld [vmem:[#allocation400_spill] sm:$0xff] }
 0x443   : > { %5478 = vmatmul.mubr.f32.gmra.mrb[162].mxu0 %v26304_v34  ;;  %v26307_v34 = vld [vmem:[#allocation315_spill] sm:$0xff] }
 0x444   : > { %5483 = vmatprep.mubr.f32.mxu0 %v25415_v41 }
 0x445   : > { %14483 = vmatmul.mubr.f32.gmra.mrb[14].mxu1 %v19435_v5 }
 0x446   : > { %14485 = vmatprep.mubr.f32.mxu1 %v19460_v37 }
 0x447   : > { %5487 = vmatmul.mubr.f32.gmra.mrb[164].mxu0 %v26305_v59  ;;  %v26309_v59 = vld [vmem:[#allocation407_spill] sm:$0xff] }
 0x448   : > { %5492 = vmatprep.mubr.f32.mxu0 %v25415_v41 }
 0x449   : > { %14486 = vmatmul.mubr.f32.gmra.mrb[16].mxu1 %v19494_v12 }
 0x44a   : > { %14488 = vmatprep.mubr.f32.mxu1 %v19518_v58 }
 0x44b   : > { %5496 = vmatmul.mubr.f32.gmra.mrb[166].mxu0 %v26306_v54  ;;  %v26310_v54 = vld [vmem:[#allocation414_spill] sm:$0xff] }
 0x44c   : > { %5501 = vmatprep.mubr.f32.mxu0 %v25415_v41 }
 0x44d   : > { %14489 = vmatmul.mubr.f32.gmra.mrb[18].mxu1 %v19542_v18 }
 0x44e   : > { %14491 = vmatprep.mubr.f32.mxu1 %v26307_v34 }
 0x44f   : > { %5505 = vmatmul.mubr.f32.gmra.mrb[168].mxu0 %v26308_v47  ;;  %v26311_v47 = vld [vmem:[#allocation416_spill] sm:$0xff] }
 0x450   : > { %5510 = vmatprep.mubr.f32.mxu0 %v25415_v41 }
 0x451   : > { %14492 = vmatmul.mubr.f32.gmra.mrb[20].mxu1 %v19580_v13 }
 0x452   : > { %14494 = vmatprep.mubr.f32.mxu1 %v25905_v17 }
 0x453   : > { %5514 = vmatmul.mubr.f32.gmra.mrb[170].mxu0 %v26309_v59  ;;  %v26312_v59 = vld [vmem:[#allocation422_spill] sm:$0xff] }
 0x454   : > { %5519 = vmatprep.mubr.f32.mxu0 %v25415_v41 }
 0x455   : > { %14495 = vmatmul.mubr.f32.gmra.mrb[22].mxu1 %v25907_v14 }
 0x456   : > { %14497 = vmatprep.mubr.f32.mxu1 %v25909_v52 }
 0x457   : > { %5523 = vmatmul.mubr.f32.gmra.mrb[172].mxu0 %v26310_v54  ;;  %v26313_v54 = vld [vmem:[#allocation430_spill] sm:$0xff] }
 0x458   : > { %5528 = vmatprep.mubr.f32.mxu0 %v25415_v41 }
 0x459   : > { %14498 = vmatmul.mubr.f32.gmra.mrb[24].mxu1 %v25911_v11 }
 0x45a   : > { %14500 = vmatprep.mubr.f32.mxu1 %v19706_v46 }
 0x45b   : > { %5532 = vmatmul.mubr.f32.gmra.mrb[174].mxu0 %v26311_v47  ;;  %v26314_v47 = vld [vmem:[#allocation437_spill] sm:$0xff] }
 0x45c   : > { %5537 = vmatprep.mubr.f32.mxu0 %v25415_v41 }
 0x45d   : > { %14501 = vmatmul.mubr.f32.gmra.mrb[26].mxu1 %v19749_v57 }
 0x45e   : > { %14503 = vmatprep.mubr.f32.mxu1 %v19773_v28 }
 0x45f   : > { %5541 = vmatmul.mubr.f32.gmra.mrb[176].mxu0 %v26312_v59  ;;  %v26315_v59 = vld [vmem:[#allocation444_spill] sm:$0xff] }
 0x460   : > { %5546 = vmatprep.mubr.f32.mxu0 %v25415_v41 }
 0x461   : > { %14504 = vmatmul.mubr.f32.gmra.mrb[28].mxu1 %v19797_v32 }
 0x462   : > { %14506 = vmatprep.mubr.f32.mxu1 %v19810_v19 }
 0x463   : > { %5550 = vmatmul.mubr.f32.gmra.mrb[178].mxu0 %v26313_v54  ;;  %v26316_v54 = vld [vmem:[#allocation446_spill] sm:$0xff] }
 0x464   : > { %5555 = vmatprep.mubr.f32.mxu0 %v25415_v41 }
 0x465   : > { %14507 = vmatmul.mubr.f32.gmra.mrb[30].mxu1 %v19835_v40 }
 0x466   : > { %14509 = vmatprep.mubr.f32.mxu1 %v19869_v23 }
 0x467   : > { %5559 = vmatmul.mubr.f32.gmra.mrb[180].mxu0 %v26314_v47  ;;  %v26317_v47 = vld [vmem:[#allocation452_spill] sm:$0xff] }
 0x468   : > { %5564 = vmatprep.mubr.f32.mxu0 %v25415_v41 }
 0x469   : > { %14510 = vmatmul.mubr.f32.gmra.mrb[32].mxu1 %v19893_v10 }
 0x46a   : > { %14512 = vmatprep.mubr.f32.mxu1 %v19917_v6  ;;  %v26319_v6 = vld [vmem:[#allocation460_spill] sm:$0xff] }
 0x46b   : > { %5568 = vmatmul.mubr.f32.gmra.mrb[182].mxu0 %v26315_v59  ;;  %v26318_v59 = vld [vmem:[#allocation435_spill] sm:$0xff] }
 0x46c   : > { %5573 = vmatprep.mubr.f32.mxu0 %v25415_v41 }
 0x46d   : > { %14513 = vmatmul.mubr.f32.gmra.mrb[34].mxu1 %v19930_v16  ;;  %v26322_v16 = vld [vmem:[#allocation467_spill] sm:$0xff] }
 0x46e   : > { %14515 = vmatprep.mubr.f32.mxu1 %v19955_v45  ;;  %v26320_v45 = vld [vmem:[#allocation441_spill] sm:$0xff] }
 0x46f   : > { %5577 = vmatmul.mubr.f32.gmra.mrb[184].mxu0 %v26316_v54  ;;  %v26321_v54 = vld [vmem:[#allocation450_spill] sm:$0xff] }
 0x470   : > { %5582 = vmatprep.mubr.f32.mxu0 %v25415_v41 }
 0x471   : > { %14516 = vmatmul.mubr.f32.gmra.mrb[36].mxu1 %v19989_v36  ;;  %v26325_v36 = vld [vmem:[#allocation473_spill] sm:$0xff] }
 0x472   : > { %14518 = vmatprep.mubr.f32.mxu1 %v25927_v61  ;;  %v26323_v61 = vld [vmem:[#allocation456_spill] sm:$0xff] }
 0x473   : > { %5586 = vmatmul.mubr.f32.gmra.mrb[186].mxu0 %v26317_v47  ;;  %v26324_v47 = vld [vmem:[#allocation462_spill] sm:$0xff] }
 0x474   : > { %5591 = vmatprep.mubr.f32.mxu0 %v25415_v41 }
 0x475   : > { %14519 = vmatmul.mubr.f32.gmra.mrb[38].mxu1 %v25930_v50  ;;  %v26328_v50 = vld [vmem:[#allocation476_spill] sm:$0xff] }
 0x476   : > { %14521 = vmatprep.mubr.f32.mxu1 %v26318_v59  ;;  %v26326_v59 = vld [vmem:[#allocation464_spill] sm:$0xff] }
 0x477   : > { %5595 = vmatmul.mubr.f32.gmra.mrb[188].mxu0 %v26319_v6  ;;  %v26327_v6 = vld [vmem:[#allocation474_spill] sm:$0xff] }
 0x478   : > { %5600 = vmatprep.mubr.f32.mxu0 %v25415_v41 }
 0x479   : > { %14522 = vmatmul.mubr.f32.gmra.mrb[40].mxu1 %v26320_v45  ;;  %v26331_v45 = vld [vmem:[#allocation484_spill] sm:$0xff] }
 0x47a   : > { %14524 = vmatprep.mubr.f32.mxu1 %v26321_v54  ;;  %v26329_v54 = vld [vmem:[#allocation480_spill] sm:$0xff] }
 0x47b   : > { %5604 = vmatmul.mubr.f32.gmra.mrb[190].mxu0 %v26322_v16  ;;  %v26330_v16 = vld [vmem:[#allocation486_spill] sm:$0xff] }
 0x47c   : > { %5609 = vmatprep.mubr.f32.mxu0 %v25415_v41 }
 0x47d   : > { %14525 = vmatmul.mubr.f32.gmra.mrb[42].mxu1 %v26323_v61  ;;  %v26334_v61 = vld [vmem:[#allocation490_spill] sm:$0xff] }
 0x47e   : > { %14527 = vmatprep.mubr.f32.mxu1 %v26324_v47  ;;  %v26332_v47 = vld [vmem:[#allocation492_spill] sm:$0xff] }
 0x47f   : > { %5613 = vmatmul.mubr.f32.gmra.mrb[192].mxu0 %v26325_v36  ;;  %v26333_v36 = vld [vmem:[#allocation6_spill] sm:$0xff] }
 0x480   : > { %5618 = vmatprep.mubr.f32.mxu0 %v25415_v41 }
 0x481   : > { %14528 = vmatmul.mubr.f32.gmra.mrb[44].mxu1 %v26326_v59  ;;  %v26336_v59 = vld [vmem:[#allocation22_spill] sm:$0xff] }
 0x482   : > { %14530 = vmatprep.mubr.f32.mxu1 %v26327_v6  ;;  %v26335_v6 = vld [vmem:[#allocation10_spill] sm:$0xff] }
 0x483   : > { %5622 = vmatmul.mubr.f32.gmra.mrb[194].mxu0 %v26328_v50 }
 0x484   : > { %5627 = vmatprep.mubr.f32.mxu0 %v25415_v41 }
 0x485   : > { %14531 = vmatmul.mubr.f32.gmra.mrb[46].mxu1 %v26329_v54  ;;  %v26337_v54 = vld [vmem:[#allocation496_spill] sm:$0xff] }
 0x486   : > { %14533 = vmatprep.mubr.f32.mxu1 %v26330_v16  ;;  %v26338_v16 = vld [vmem:[#allocation509_spill] sm:$0xff] }
 0x487   : > { %5631 = vmatmul.mubr.f32.gmra.mrb[196].mxu0 %v26331_v45  ;;  %v26339_v45 = vld [vmem:[#allocation34_spill] sm:$0xff] }
 0x488   : > { %5636 = vmatprep.mubr.f32.mxu0 %v25415_v41 }
 0x489   : > { %14534 = vmatmul.mubr.f32.gmra.mrb[48].mxu1 %v26332_v47  ;;  %v26340_v47 = vld [vmem:[#allocation36_spill] sm:$0xff] }
 0x48a   : > { %14546 = vmatprep.mubr.f32.mxu1 %v26333_v36  ;;  %v26341_v36 = vld [vmem:[#allocation501_spill] sm:$0xff] }
 0x48b   : > { %5640 = vmatmul.mubr.f32.gmra.mrb[198].mxu0 %v26334_v61 }
 0x48c   : > { %5645 = vmatprep.mubr.f32.mxu0 %v25415_v41 }
 0x48d   : > { %14547 = vmatmul.mubr.f32.vlgmr.msra.gmra.mrb[204].mxu1 %v26335_v6  ;;  %v26342_v6 = vld [vmem:[#allocation37_spill] sm:$0xff] }
 0x48e   : > { %14549 = vmatprep.mubr.f32.mxu1 %v26336_v59  ;;  %15263 = vmatpush3.bf16.msra.mxu1 %v19726_v31  ;;  %v26343_v59 = vld [vmem:[#allocation43_spill] sm:$0xff] }
 0x48f   : > { %5649 = vmatmul.mubr.f32.gmra.mrb[200].mxu0 %v26337_v54  ;;  %15265 = vmatprep.subr.bf16.mxu1 %v26338_v16  ;;  %v26344_v54 = vld [vmem:[#allocation16_spill] sm:$0xff] }
 0x490   : > { %5654 = vmatprep.mubr.f32.mxu0 %v25415_v41 }
 0x491   : > { %14550 = vmatmul.mubr.f32.gmra.mrb[206].mxu1 %v26339_v45  ;;  %v26346_v45 = vld [vmem:[#allocation19_spill] sm:$0xff] }
 0x492   : > { %14552 = vmatprep.mubr.f32.mxu1 %v26340_v47  ;;  %15267 = vmatpush3.bf16.msra.mxu1 %v26338_v16  ;;  %v26345_v47 = vld [vmem:[#allocation48_spill] sm:$0xff]  ;;  %v26347_v16 = vld [vmem:[#allocation49_spill] sm:$0xff] }
 0x493   : > { %5658 = vmatmul.mubr.f32.gmra.mrb[202].mxu0 %v26341_v36  ;;  %14707 = vmatprep.subr.mxu1 %v20404_v21 }
 0x494   : > { %5758 = vmatprep.mubr.f32.mxu0 %v25415_v41 }
 0x495   : > { %14553 = vmatmul.mubr.f32.gmra.mrb[208].mxu1 %v26342_v6  ;;  %v26348_v6 = vld [vmem:[#allocation23_spill] sm:$0xff] }
 0x496   : > { %14555 = vmatprep.mubr.f32.mxu1 %v26343_v59  ;;  %14708 = vmatpush3.msra.mxu1 %v20404_v21  ;;  %v26349_v59 = vld [vmem:[#allocation56_spill] sm:$0xff]  ;;  %v26350_v21 = vld [vmem:[#allocation26_spill] sm:$0xff] }
 0x497   : > { %5760 = vmatmul.mubr.f32.vlgmr.msra.gmra.mrb[0].mxu0 %v26216_v2  ;;  %v26351_v2 = vld [vmem:[#allocation57_spill] sm:$0xff] }
 0x498   : > { %15231 = vmatpush1.bf16.msra.mxu0 %v26344_v54  ;;  %5765 = vmatprep.mubr.f32.mxu0 %v25415_v41  ;;  %v26352_v54 = vld [vmem:[#allocation27_spill] sm:$0xff] }
 0x499   : > { %14556 = vmatmul.mubr.f32.gmra.mrb[210].mxu1 %v26345_v47  ;;  %15233 = vmatprep.subr.bf16.mxu0 %v26346_v45  ;;  %v26353_v47 = vld [vmem:[#allocation64_spill] sm:$0xff]  ;;  %v26355_v45 = vld [vmem:[#allocation70_spill] sm:$0xff] }
 0x49a   : > { %14558 = vmatprep.mubr.f32.mxu1 %v26347_v16  ;;  %v26354_v16 = vld [vmem:[#allocation65_spill] sm:$0xff] }
 0x49b   : > { %5767 = vmatmul.mubr.f32.gmra.mrb[2].mxu0 %v26220_v35 }
 0x49c   : > { %5772 = vmatprep.mubr.f32.mxu0 %v25415_v41  ;;  %15235 = vmatpush1.bf16.msra.mxu0 %v26348_v6  ;;  %v26356_v6 = vld [vmem:[#allocation76_spill] sm:$0xff] }
 0x49d   : > { %14559 = vmatmul.mubr.f32.gmra.mrb[212].mxu1 %v26349_v59  ;;  %6490 = vmatprep.subr.mxu0 %v26350_v21  ;;  %v26357_v21 = vld [vmem:[#allocation77_spill] sm:$0xff] }
 0x49e   : > { %14561 = vmatprep.mubr.f32.mxu1 %v26351_v2  ;;  %v26358_v2 = vld [vmem:[#allocation84_spill] sm:$0xff]  ;;  %v26359_v59 = vld [vmem:[#allocation85_spill] sm:$0xff] }
 0x49f   : > { %5774 = vmatmul.mubr.f32.gmra.mrb[4].mxu0 %v26221_v1 }
 0x4a0   : > { %5779 = vmatprep.mubr.f32.mxu0 %v25415_v41  ;;  %6492 = vmatpush1.msra.mxu0 %v26352_v54  ;;  %v26360_v54 = vld [vmem:[#allocation92_spill] sm:$0xff] }
 0x4a1   : > { %14562 = vmatmul.mubr.f32.gmra.mrb[214].mxu1 %v26353_v47  ;;  %v26361_v47 = vld [vmem:[#allocation93_spill] sm:$0xff] }
 0x4a2   : > { %14564 = vmatprep.mubr.f32.mxu1 %v26354_v16  ;;  %v26362_v16 = vld [vmem:[#allocation100_spill] sm:$0xff] }
 0x4a3   : > { %5781 = vmatmul.mubr.f32.gmra.mrb[6].mxu0 %v26225_v63 }
 0x4a4   : > { %5786 = vmatprep.mubr.f32.mxu0 %v25415_v41 }
 0x4a5   : > { %14565 = vmatmul.mubr.f32.gmra.mrb[216].mxu1 %v26355_v45  ;;  %v26363_v45 = vld [vmem:[#allocation104_spill] sm:$0xff] }
 0x4a6   : > { %14567 = vmatprep.mubr.f32.mxu1 %v26356_v6  ;;  %v26364_v6 = vld [vmem:[#allocation105_spill] sm:$0xff] }
 0x4a7   : > { %5788 = vmatmul.mubr.f32.gmra.mrb[8].mxu0 %v26226_v60 }
 0x4a8   : > { %5793 = vmatprep.mubr.f32.mxu0 %v25415_v41 }
 0x4a9   : > { %14568 = vmatmul.mubr.f32.gmra.mrb[218].mxu1 %v26357_v21  ;;  %v26365_v21 = vld [vmem:[#allocation111_spill] sm:$0xff] }
 0x4aa   : > { %14570 = vmatprep.mubr.f32.mxu1 %v26358_v2  ;;  %v26366_v2 = vld [vmem:[#allocation116_spill] sm:$0xff] }
 0x4ab   : > { %5795 = vmatmul.mubr.f32.gmra.mrb[10].mxu0 %v26228_v33 }
 0x4ac   : > { %5800 = vmatprep.mubr.f32.mxu0 %v25415_v41 }
 0x4ad   : > { %14571 = vmatmul.mubr.f32.gmra.mrb[220].mxu1 %v26359_v59  ;;  %v26367_v59 = vld [vmem:[#allocation117_spill] sm:$0xff] }
 0x4ae   : > { %14573 = vmatprep.mubr.f32.mxu1 %v26360_v54  ;;  %v26368_v54 = vld [vmem:[#allocation124_spill] sm:$0xff] }
 0x4af   : > { %5802 = vmatmul.mubr.f32.gmra.mrb[12].mxu0 %v26229_v4 }
 0x4b0   : > { %5807 = vmatprep.mubr.f32.mxu0 %v25415_v41 }
 0x4b1   : > { %14574 = vmatmul.mubr.f32.gmra.mrb[222].mxu1 %v26361_v47  ;;  %v26369_v47 = vld [vmem:[#allocation125_spill] sm:$0xff] }
 0x4b2   : > { %14576 = vmatprep.mubr.f32.mxu1 %v26362_v16  ;;  %v26370_v16 = vld [vmem:[#allocation131_spill] sm:$0xff] }
 0x4b3   : > { %5809 = vmatmul.mubr.f32.gmra.mrb[14].mxu0 %v26231_v53 }
 0x4b4   : > { %5814 = vmatprep.mubr.f32.mxu0 %v25415_v41 }
 0x4b5   : > { %14577 = vmatmul.mubr.f32.gmra.mrb[224].mxu1 %v26363_v45  ;;  %v26371_v45 = vld [vmem:[#allocation136_spill] sm:$0xff] }
 0x4b6   : > { %14579 = vmatprep.mubr.f32.mxu1 %v26364_v6  ;;  %v26372_v6 = vld [vmem:[#allocation137_spill] sm:$0xff] }
 0x4b7   : > { %5816 = vmatmul.mubr.f32.gmra.mrb[16].mxu0 %v26232_v9 }
 0x4b8   : > { %5821 = vmatprep.mubr.f32.mxu0 %v25415_v41 }
 0x4b9   : > { %14580 = vmatmul.mubr.f32.gmra.mrb[226].mxu1 %v26365_v21  ;;  %v26373_v21 = vld [vmem:[#allocation62_spill] sm:$0xff] }
 0x4ba   : > { %14582 = vmatprep.mubr.f32.mxu1 %v26366_v2  ;;  %v26374_v2 = vld [vmem:[#allocation144_spill] sm:$0xff] }
 0x4bb   : > { %5823 = vmatmul.mubr.f32.gmra.mrb[18].mxu0 %v26234_v42 }
 0x4bc   : > { %5828 = vmatprep.mubr.f32.mxu0 %v25415_v41 }
 0x4bd   : > { %14583 = vmatmul.mubr.f32.gmra.mrb[228].mxu1 %v26367_v59  ;;  %v26375_v59 = vld [vmem:[#allocation145_spill] sm:$0xff] }
 0x4be   : > { %14585 = vmatprep.mubr.f32.mxu1 %v26368_v54  ;;  %v26376_v54 = vld [vmem:[#allocation66_spill] sm:$0xff] }
 0x4bf   : > { %5830 = vmatmul.mubr.f32.gmra.mrb[20].mxu0 %v26235_v30  ;;  %v26397_v30 = vld [vmem:[#allocation13_spill] sm:$0xff] }
 0x4c0   : > { %5835 = vmatprep.mubr.f32.mxu0 %v25415_v41 }
 0x4c1   : > { %14586 = vmatmul.mubr.f32.gmra.mrb[230].mxu1 %v26369_v47  ;;  %v26377_v47 = vld [vmem:[#allocation152_spill] sm:$0xff] }
 0x4c2   : > { %14588 = vmatprep.mubr.f32.mxu1 %v26370_v16  ;;  %v26378_v16 = vld [vmem:[#allocation153_spill] sm:$0xff] }
 0x4c3   : > { %5837 = vmatmul.mubr.f32.gmra.mrb[22].mxu0 %v26237_v55  ;;  %v26379_v55 = vld [vmem:[#allocation72_spill] sm:$0xff] }
 0x4c4   : > { %5842 = vmatprep.mubr.f32.mxu0 %v25415_v41 }
 0x4c5   : > { %14589 = vmatmul.mubr.f32.gmra.mrb[232].mxu1 %v26371_v45  ;;  %v26380_v45 = vld [vmem:[#allocation160_spill] sm:$0xff] }
 0x4c6   : > { %14591 = vmatprep.mubr.f32.mxu1 %v26372_v6  ;;  %v26381_v6 = vld [vmem:[#allocation161_spill] sm:$0xff] }
 0x4c7   : > { %5844 = vmatmul.mubr.f32.gmra.mrb[24].mxu0 %v26373_v21  ;;  %v26382_v21 = vld [vmem:[#allocation73_spill] sm:$0xff] }
 0x4c8   : > { %5849 = vmatprep.mubr.f32.mxu0 %v25415_v41 }
 0x4c9   : > { %14592 = vmatmul.mubr.f32.gmra.mrb[234].mxu1 %v26374_v2  ;;  %v26383_v2 = vld [vmem:[#allocation168_spill] sm:$0xff] }
 0x4ca   : > { %14594 = vmatprep.mubr.f32.mxu1 %v26375_v59  ;;  %v26384_v59 = vld [vmem:[#allocation172_spill] sm:$0xff] }
 0x4cb   : > { %5851 = vmatmul.mubr.f32.gmra.mrb[26].mxu0 %v26376_v54  ;;  %v26385_v54 = vld [vmem:[#allocation78_spill] sm:$0xff] }
 0x4cc   : > { %5856 = vmatprep.mubr.f32.mxu0 %v25415_v41 }
 0x4cd   : > { %14595 = vmatmul.mubr.f32.gmra.mrb[236].mxu1 %v26377_v47  ;;  %v26386_v47 = vld [vmem:[#allocation173_spill] sm:$0xff] }
 0x4ce   : > { %14597 = vmatprep.mubr.f32.mxu1 %v26378_v16  ;;  %v26387_v16 = vld [vmem:[#allocation179_spill] sm:$0xff] }
 0x4cf   : > { %5858 = vmatmul.mubr.f32.gmra.mrb[28].mxu0 %v26379_v55  ;;  %v26388_v55 = vld [vmem:[#allocation81_spill] sm:$0xff] }
 0x4d0   : > { %5863 = vmatprep.mubr.f32.mxu0 %v25415_v41 }
 0x4d1   : > { %14598 = vmatmul.mubr.f32.gmra.mrb[238].mxu1 %v26380_v45  ;;  %v26389_v45 = vld [vmem:[#allocation184_spill] sm:$0xff] }
 0x4d2   : > { %14600 = vmatprep.mubr.f32.mxu1 %v26381_v6  ;;  %v26390_v6 = vld [vmem:[#allocation185_spill] sm:$0xff] }
 0x4d3   : > { %5865 = vmatmul.mubr.f32.gmra.mrb[30].mxu0 %v26382_v21  ;;  %v26391_v21 = vld [vmem:[#allocation88_spill] sm:$0xff] }
 0x4d4   : > { %5870 = vmatprep.mubr.f32.mxu0 %v25415_v41 }
 0x4d5   : > { %14601 = vmatmul.mubr.f32.gmra.mrb[240].mxu1 %v26383_v2  ;;  %v26392_v2 = vld [vmem:[#allocation192_spill] sm:$0xff] }
 0x4d6   : > { %14603 = vmatprep.mubr.f32.mxu1 %v26384_v59  ;;  %v26393_v59 = vld [vmem:[#allocation193_spill] sm:$0xff] }
 0x4d7   : > { %5872 = vmatmul.mubr.f32.gmra.mrb[32].mxu0 %v26385_v54  ;;  %v26394_v54 = vld [vmem:[#allocation90_spill] sm:$0xff] }
 0x4d8   : > { %5877 = vmatprep.mubr.f32.mxu0 %v25415_v41 }
 0x4d9   : > { %14604 = vmatmul.mubr.f32.gmra.mrb[242].mxu1 %v26386_v47  ;;  %v26395_v47 = vld [vmem:[#allocation232_spill] sm:$0xff] }
 0x4da   : > { %14606 = vmatprep.mubr.f32.mxu1 %v26387_v16  ;;  %v26396_v16 = vand.u32 4294901760, %v26395_v47  ;;  %v26404_v47 = vld [vmem:[#allocation98_spill] sm:$0xff] }
 0x4db   : > { %5879 = vmatmul.mubr.f32.gmra.mrb[34].mxu0 %v26388_v55  ;;  %v26398_v55 = vand.u32 4294901760, %v26397_v30  ;;  %v26405_v30 = vld [vmem:[#allocation216_spill] sm:$0xff] }
 0x4dc   : > { %5884 = vmatprep.mubr.f32.mxu0 %v25415_v41 }
 0x4dd   : > { %14607 = vmatmul.mubr.f32.gmra.mrb[244].mxu1 %v26389_v45  ;;  %v21535_v42 = vpack.c.bf16 %v26398_v55, %v26396_v16  ;;  %v26399_v45 = vld [vmem:[#allocation200_spill] sm:$0xff]  ;;  %v26406_v55 = vld [vmem:[#allocation217_spill] sm:$0xff] }
 0x4de   : > { %14609 = vmatprep.mubr.f32.mxu1 %v26390_v6  ;;  %v26400_v6 = vld [vmem:[#allocation204_spill] sm:$0xff]  ;;  %v26407_v16 = vld [vmem:[#allocation101_spill] sm:$0xff] }
 0x4df   : > { %5886 = vmatmul.mubr.f32.gmra.mrb[36].mxu0 %v26391_v21  ;;  %15269 = vmatprep.subr.bf16.mxu1 %v21535_v42  ;;  %v26401_v21 = vld [vmem:[#allocation96_spill] sm:$0xff] }
 0x4e0   : > { %5891 = vmatprep.mubr.f32.mxu0 %v25415_v41 }
 0x4e1   : > { %14610 = vmatmul.mubr.f32.gmra.mrb[246].mxu1 %v26392_v2  ;;  %v26402_v2 = vld [vmem:[#allocation205_spill] sm:$0xff] }
 0x4e2   : > { %14612 = vmatprep.mubr.f32.mxu1 %v26393_v59  ;;  %v26403_v59 = vld [vmem:[#allocation211_spill] sm:$0xff] }
 0x4e3   : > { %5893 = vmatmul.mubr.f32.gmra.mrb[38].mxu0 %v26394_v54 }
 0x4e4   : > { %5898 = vmatprep.mubr.f32.mxu0 %v25415_v41 }
 0x4e5   : > { %14613 = vmatmul.mubr.f32.gmra.mrb[248].mxu1 %v26399_v45  ;;  %v26408_v45 = vld [vmem:[#allocation224_spill] sm:$0xff] }
 0x4e6   : > { %14615 = vmatprep.mubr.f32.mxu1 %v26400_v6  ;;  %v26409_v6 = vld [vmem:[#allocation225_spill] sm:$0xff] }
 0x4e7   : > { %5900 = vmatmul.mubr.f32.gmra.mrb[40].mxu0 %v26401_v21  ;;  %v26410_v21 = vld [vmem:[#allocation108_spill] sm:$0xff] }
 0x4e8   : > { %5905 = vmatprep.mubr.f32.mxu0 %v25415_v41 }
 0x4e9   : > { %14616 = vmatmul.mubr.f32.gmra.mrb[250].mxu1 %v26402_v2  ;;  %v26411_v2 = vld [vmem:[#allocation230_spill] sm:$0xff] }
 0x4ea   : > { %14618 = vmatprep.mubr.f32.mxu1 %v26403_v59  ;;  %v26412_v59 = vld [vmem:[#allocation235_spill] sm:$0xff] }
 0x4eb   : > { %5907 = vmatmul.mubr.f32.gmra.mrb[42].mxu0 %v26404_v47  ;;  %v26413_v47 = vld [vmem:[#allocation112_spill] sm:$0xff] }
 0x4ec   : > { %5912 = vmatprep.mubr.f32.mxu0 %v25415_v41 }
 0x4ed   : > { %14619 = vmatmul.mubr.f32.gmra.mrb[252].mxu1 %v26405_v30  ;;  %v26414_v30 = vld [vmem:[#allocation238_spill] sm:$0xff] }
 0x4ee   : > { %14621 = vmatprep.mubr.f32.mxu1 %v26406_v55  ;;  %v26415_v55 = vld [vmem:[#allocation241_spill] sm:$0xff] }
 0x4ef   : > { %5914 = vmatmul.mubr.f32.gmra.mrb[44].mxu0 %v26407_v16  ;;  %v26416_v16 = vld [vmem:[#allocation113_spill] sm:$0xff] }
 0x4f0   : > { %5919 = vmatprep.mubr.f32.mxu0 %v25415_v41 }
 0x4f1   : > { %14622 = vmatmul.mubr.f32.gmra.mrb[254].mxu1 %v26408_v45  ;;  %v26417_v45 = vld [vmem:[#allocation244_spill] sm:$0xff] }
 0x4f2   : > { %14624 = vmatprep.mubr.f32.mxu1 %v26409_v6  ;;  %v26418_v6 = vld [vmem:[#allocation250_spill] sm:$0xff] }
 0x4f3   : > { %5921 = vmatmul.mubr.f32.gmra.mrb[46].mxu0 %v26410_v21  ;;  %v26419_v21 = vld [vmem:[#allocation120_spill] sm:$0xff] }
 0x4f4   : > { %5926 = vmatprep.mubr.f32.mxu0 %v25415_v41 }
 0x4f5   : > { %14625 = vmatmul.mubr.f32.gmra.mrb[0].mxu1 %v26411_v2  ;;  %v26420_v2 = vld [vmem:[#allocation256_spill] sm:$0xff] }
 0x4f6   : > { %14627 = vmatprep.mubr.f32.mxu1 %v26412_v59  ;;  %v26421_v59 = vld [vmem:[#allocation261_spill] sm:$0xff] }
 0x4f7   : > { %5928 = vmatmul.mubr.f32.gmra.mrb[48].mxu0 %v26413_v47  ;;  %v26422_v47 = vld [vmem:[#allocation121_spill] sm:$0xff] }
 0x4f8   : > { %5933 = vmatprep.mubr.f32.mxu0 %v25415_v41 }
 0x4f9   : > { %14628 = vmatmul.mubr.f32.gmra.mrb[2].mxu1 %v26414_v30  ;;  %v26423_v30 = vld [vmem:[#allocation266_spill] sm:$0xff] }
 0x4fa   : > { %14630 = vmatprep.mubr.f32.mxu1 %v26415_v55  ;;  %v26424_v55 = vld [vmem:[#allocation268_spill] sm:$0xff] }
 0x4fb   : > { %5935 = vmatmul.mubr.f32.gmra.mrb[50].mxu0 %v26416_v16  ;;  %v26425_v16 = vld [vmem:[#allocation128_spill] sm:$0xff] }
 0x4fc   : > { %5940 = vmatprep.mubr.f32.mxu0 %v25415_v41 }
 0x4fd   : > { %14631 = vmatmul.mubr.f32.gmra.mrb[4].mxu1 %v26417_v45  ;;  %v26426_v45 = vld [vmem:[#allocation274_spill] sm:$0xff] }
 0x4fe   : > { %14633 = vmatprep.mubr.f32.mxu1 %v26418_v6  ;;  %v26427_v6 = vld [vmem:[#allocation281_spill] sm:$0xff] }
 0x4ff   : > { %5942 = vmatmul.mubr.f32.gmra.mrb[52].mxu0 %v26419_v21  ;;  %v26428_v21 = vld [vmem:[#allocation132_spill] sm:$0xff] }
 0x500   : > { %5947 = vmatprep.mubr.f32.mxu0 %v25415_v41 }
 0x501   : > { %14634 = vmatmul.mubr.f32.gmra.mrb[6].mxu1 %v26420_v2  ;;  %v26429_v2 = vld [vmem:[#allocation286_spill] sm:$0xff] }
 0x502   : > { %14636 = vmatprep.mubr.f32.mxu1 %v26421_v59  ;;  %v26430_v59 = vld [vmem:[#allocation292_spill] sm:$0xff] }
 0x503   : > { %5949 = vmatmul.mubr.f32.gmra.mrb[54].mxu0 %v26422_v47  ;;  %v26431_v47 = vld [vmem:[#allocation133_spill] sm:$0xff] }
 0x504   : > { %5954 = vmatprep.mubr.f32.mxu0 %v25415_v41 }
 0x505   : > { %14637 = vmatmul.mubr.f32.gmra.mrb[8].mxu1 %v26423_v30  ;;  %v26432_v30 = vld [vmem:[#allocation294_spill] sm:$0xff] }
 0x506   : > { %14639 = vmatprep.mubr.f32.mxu1 %v26424_v55  ;;  %v26433_v55 = vld [vmem:[#allocation300_spill] sm:$0xff] }
 0x507   : > { %5956 = vmatmul.mubr.f32.gmra.mrb[56].mxu0 %v26425_v16  ;;  %v26434_v16 = vld [vmem:[#allocation138_spill] sm:$0xff] }
 0x508   : > { %5961 = vmatprep.mubr.f32.mxu0 %v25415_v41 }
 0x509   : > { %14640 = vmatmul.mubr.f32.gmra.mrb[10].mxu1 %v26426_v45  ;;  %v26435_v45 = vld [vmem:[#allocation307_spill] sm:$0xff] }
 0x50a   : > { %14642 = vmatprep.mubr.f32.mxu1 %v26427_v6  ;;  %v26436_v6 = vld [vmem:[#allocation312_spill] sm:$0xff] }
 0x50b   : > { %5963 = vmatmul.mubr.f32.gmra.mrb[58].mxu0 %v26428_v21  ;;  %v26437_v21 = vld [vmem:[#allocation142_spill] sm:$0xff] }
 0x50c   : > { %5968 = vmatprep.mubr.f32.mxu0 %v25415_v41 }
 0x50d   : > { %14643 = vmatmul.mubr.f32.gmra.mrb[12].mxu1 %v26429_v2  ;;  %v26438_v2 = vld [vmem:[#allocation318_spill] sm:$0xff] }
 0x50e   : > { %14645 = vmatprep.mubr.f32.mxu1 %v26430_v59  ;;  %v26439_v59 = vld [vmem:[#allocation320_spill] sm:$0xff] }
 0x50f   : > { %5970 = vmatmul.mubr.f32.gmra.mrb[60].mxu0 %v26431_v47  ;;  %v26440_v47 = vld [vmem:[#allocation146_spill] sm:$0xff] }
 0x510   : > { %5975 = vmatprep.mubr.f32.mxu0 %v25415_v41 }
 0x511   : > { %14646 = vmatmul.mubr.f32.gmra.mrb[14].mxu1 %v26432_v30  ;;  %v26441_v30 = vld [vmem:[#allocation327_spill] sm:$0xff] }
 0x512   : > { %14648 = vmatprep.mubr.f32.mxu1 %v26433_v55  ;;  %v26442_v55 = vld [vmem:[#allocation335_spill] sm:$0xff] }
 0x513   : > { %5977 = vmatmul.mubr.f32.gmra.mrb[62].mxu0 %v26434_v16  ;;  %v26443_v16 = vld [vmem:[#allocation149_spill] sm:$0xff] }
 0x514   : > { %5982 = vmatprep.mubr.f32.mxu0 %v25415_v41 }
 0x515   : > { %14649 = vmatmul.mubr.f32.gmra.mrb[16].mxu1 %v26435_v45  ;;  %v26444_v45 = vld [vmem:[#allocation341_spill] sm:$0xff] }
 0x516   : > { %14651 = vmatprep.mubr.f32.mxu1 %v26436_v6  ;;  %v26445_v6 = vld [vmem:[#allocation348_spill] sm:$0xff] }
 0x517   : > { %5984 = vmatmul.mubr.f32.gmra.mrb[64].mxu0 %v26437_v21  ;;  %v26446_v21 = vld [vmem:[#allocation156_spill] sm:$0xff] }
 0x518   : > { %5989 = vmatprep.mubr.f32.mxu0 %v25415_v41 }
 0x519   : > { %14652 = vmatmul.mubr.f32.gmra.mrb[18].mxu1 %v26438_v2  ;;  %v26447_v2 = vld [vmem:[#allocation350_spill] sm:$0xff] }
 0x51a   : > { %14654 = vmatprep.mubr.f32.mxu1 %v26439_v59  ;;  %v26448_v59 = vld [vmem:[#allocation357_spill] sm:$0xff] }
 0x51b   : > { %5991 = vmatmul.mubr.f32.gmra.mrb[66].mxu0 %v26440_v47  ;;  %v26449_v47 = vld [vmem:[#allocation157_spill] sm:$0xff] }
 0x51c   : > { %5996 = vmatprep.mubr.f32.mxu0 %v25415_v41 }
 0x51d   : > { %14655 = vmatmul.mubr.f32.gmra.mrb[20].mxu1 %v26441_v30  ;;  %v26450_v30 = vld [vmem:[#allocation365_spill] sm:$0xff] }
 0x51e   : > { %14657 = vmatprep.mubr.f32.mxu1 %v26442_v55  ;;  %v26451_v55 = vld [vmem:[#allocation371_spill] sm:$0xff] }
 0x51f   : > { %5998 = vmatmul.mubr.f32.gmra.mrb[68].mxu0 %v26443_v16  ;;  %v26452_v16 = vld [vmem:[#allocation164_spill] sm:$0xff] }
 0x520   : > { %6003 = vmatprep.mubr.f32.mxu0 %v25415_v41 }
 0x521   : > { %14658 = vmatmul.mubr.f32.gmra.mrb[22].mxu1 %v26444_v45  ;;  %v26453_v45 = vld [vmem:[#allocation378_spill] sm:$0xff] }
 0x522   : > { %14660 = vmatprep.mubr.f32.mxu1 %v26445_v6  ;;  %v26454_v6 = vld [vmem:[#allocation380_spill] sm:$0xff] }
 0x523   : > { %6005 = vmatmul.mubr.f32.gmra.mrb[70].mxu0 %v26446_v21  ;;  %v26455_v21 = vld [vmem:[#allocation165_spill] sm:$0xff] }
 0x524   : > { %6010 = vmatprep.mubr.f32.mxu0 %v25415_v41 }
 0x525   : > { %14661 = vmatmul.mubr.f32.gmra.mrb[24].mxu1 %v26447_v2  ;;  %v26456_v2 = vld [vmem:[#allocation387_spill] sm:$0xff] }
 0x526   : > { %14663 = vmatprep.mubr.f32.mxu1 %v26448_v59  ;;  %v26457_v59 = vld [vmem:[#allocation395_spill] sm:$0xff] }
 0x527   : > { %6012 = vmatmul.mubr.f32.gmra.mrb[72].mxu0 %v26449_v47  ;;  %v26458_v47 = vld [vmem:[#allocation169_spill] sm:$0xff] }
 0x528   : > { %6017 = vmatprep.mubr.f32.mxu0 %v25415_v41 }
 0x529   : > { %14664 = vmatmul.mubr.f32.gmra.mrb[26].mxu1 %v26450_v30  ;;  %v26459_v30 = vld [vmem:[#allocation401_spill] sm:$0xff] }
 0x52a   : > { %14666 = vmatprep.mubr.f32.mxu1 %v26451_v55  ;;  %v26460_v55 = vld [vmem:[#allocation408_spill] sm:$0xff] }
 0x52b   : > { %6019 = vmatmul.mubr.f32.gmra.mrb[74].mxu0 %v26452_v16  ;;  %v26461_v16 = vld [vmem:[#allocation176_spill] sm:$0xff] }
 0x52c   : > { %6024 = vmatprep.mubr.f32.mxu0 %v25415_v41 }
 0x52d   : > { %14667 = vmatmul.mubr.f32.gmra.mrb[28].mxu1 %v26453_v45  ;;  %v26462_v45 = vld [vmem:[#allocation410_spill] sm:$0xff] }
 0x52e   : > { %14669 = vmatprep.mubr.f32.mxu1 %v26454_v6  ;;  %v26463_v6 = vld [vmem:[#allocation417_spill] sm:$0xff] }
 0x52f   : > { %6026 = vmatmul.mubr.f32.gmra.mrb[76].mxu0 %v26455_v21  ;;  %v26464_v21 = vld [vmem:[#allocation180_spill] sm:$0xff] }
 0x530   : > { %6031 = vmatprep.mubr.f32.mxu0 %v25415_v41 }
 0x531   : > { %14670 = vmatmul.mubr.f32.gmra.mrb[30].mxu1 %v26456_v2  ;;  %v26465_v2 = vld [vmem:[#allocation425_spill] sm:$0xff] }
 0x532   : > { %14672 = vmatprep.mubr.f32.mxu1 %v26457_v59  ;;  %v26466_v59 = vld [vmem:[#allocation431_spill] sm:$0xff] }
 0x533   : > { %6033 = vmatmul.mubr.f32.gmra.mrb[78].mxu0 %v26458_v47  ;;  %v26467_v47 = vld [vmem:[#allocation181_spill] sm:$0xff] }
 0x534   : > { %6038 = vmatprep.mubr.f32.mxu0 %v25415_v41 }
 0x535   : > { %14673 = vmatmul.mubr.f32.gmra.mrb[32].mxu1 %v26459_v30  ;;  %v26468_v30 = vld [vmem:[#allocation438_spill] sm:$0xff] }
 0x536   : > { %14675 = vmatprep.mubr.f32.mxu1 %v26460_v55  ;;  %v26469_v55 = vld [vmem:[#allocation440_spill] sm:$0xff] }
 0x537   : > { %6040 = vmatmul.mubr.f32.gmra.mrb[80].mxu0 %v26461_v16  ;;  %v26470_v16 = vld [vmem:[#allocation188_spill] sm:$0xff] }
 0x538   : > { %6045 = vmatprep.mubr.f32.mxu0 %v25415_v41 }
 0x539   : > { %14676 = vmatmul.mubr.f32.gmra.mrb[34].mxu1 %v26462_v45  ;;  %v26471_v45 = vld [vmem:[#allocation447_spill] sm:$0xff] }
 0x53a   : > { %14678 = vmatprep.mubr.f32.mxu1 %v26463_v6  ;;  %v26472_v6 = vld [vmem:[#allocation455_spill] sm:$0xff] }
 0x53b   : > { %6047 = vmatmul.mubr.f32.gmra.mrb[82].mxu0 %v26464_v21  ;;  %v26473_v21 = vld [vmem:[#allocation189_spill] sm:$0xff] }
 0x53c   : > { %6052 = vmatprep.mubr.f32.mxu0 %v25415_v41 }
 0x53d   : > { %14679 = vmatmul.mubr.f32.gmra.mrb[36].mxu1 %v26465_v2  ;;  %v26474_v2 = vld [vmem:[#allocation461_spill] sm:$0xff] }
 0x53e   : > { %14681 = vmatprep.mubr.f32.mxu1 %v26466_v59  ;;  %v26475_v59 = vld [vmem:[#allocation468_spill] sm:$0xff] }
 0x53f   : > { %6054 = vmatmul.mubr.f32.gmra.mrb[84].mxu0 %v26467_v47 }
 0x540   : > { %6059 = vmatprep.mubr.f32.mxu0 %v25415_v41 }
 0x541   : > { %14682 = vmatmul.mubr.f32.gmra.mrb[38].mxu1 %v26468_v30  ;;  %v26476_v30 = vld [vmem:[#allocation470_spill] sm:$0xff] }
 0x542   : > { %14684 = vmatprep.mubr.f32.mxu1 %v26469_v55  ;;  %v26477_v55 = vld [vmem:[#allocation479_spill] sm:$0xff] }
 0x543   : > { %6061 = vmatmul.mubr.f32.gmra.mrb[86].mxu0 %v26470_v16 }
 0x544   : > { %6066 = vmatprep.mubr.f32.mxu0 %v25415_v41 }
 0x545   : > { %14685 = vmatmul.mubr.f32.gmra.mrb[40].mxu1 %v26471_v45  ;;  %v26478_v45 = vld [vmem:[#allocation485_spill] sm:$0xff] }
 0x546   : > { %14687 = vmatprep.mubr.f32.mxu1 %v26472_v6  ;;  %v26479_v6 = vld [vmem:[#allocation491_spill] sm:$0xff] }
 0x547   : > { %6068 = vmatmul.mubr.f32.gmra.mrb[88].mxu0 %v26473_v21 }
 0x548   : > { %6073 = vmatprep.mubr.f32.mxu0 %v25415_v41 }
 0x549   : > { %14688 = vmatmul.mubr.f32.gmra.mrb[42].mxu1 %v26474_v2  ;;  %v26480_v2 = vld [vmem:[#allocation497_spill] sm:$0xff] }
 0x54a   : > { %14690 = vmatprep.mubr.f32.mxu1 %v26475_v59  ;;  %v26481_v59 = vld [vmem:[#allocation15_spill] sm:$0xff] }
 0x54b   : > { %6075 = vmatmul.mubr.f32.gmra.mrb[90].mxu0 %v26288_v29  ;;  %v26484_v29 = vld [vmem:[#allocation519_spill] sm:$0xff] }
 0x54c   : > { %6080 = vmatprep.mubr.f32.mxu0 %v25415_v41 }
 0x54d   : > { %14691 = vmatmul.mubr.f32.gmra.mrb[44].mxu1 %v26476_v30  ;;  %v26482_v30 = vld [vmem:[#allocation518_spill] sm:$0xff] }
 0x54e   : > { %14693 = vmatprep.mubr.f32.mxu1 %v26477_v55  ;;  %v26483_v55 = vand.u32 4294901760, %v26482_v30  ;;  %v26492_v30 = vld [vmem:[#allocation47_spill] sm:$0xff] }
 0x54f   : > { %6082 = vmatmul.mubr.f32.gmra.mrb[92].mxu0 %v26289_v20  ;;  %v26485_v20 = vand.u32 4294901760, %v26484_v29  ;;  %v26490_v29 = vld [vmem:[#allocation55_spill] sm:$0xff] }
 0x550   : > { %6087 = vmatprep.mubr.f32.mxu0 %v25415_v41 }
 0x551   : > { %14694 = vmatmul.mubr.f32.gmra.mrb[46].mxu1 %v26478_v45  ;;  %v15272_v21 = vpack.c.bf16 %v26485_v20, %v26483_v55  ;;  %v26486_v45 = vld [vmem:[#allocation29_spill] sm:$0xff]  ;;  %v26495_v55 = vld [vmem:[#allocation60_spill] sm:$0xff] }
 0x552   : > { %14696 = vmatprep.mubr.f32.mxu1 %v26479_v6  ;;  %v26487_v6 = vld [vmem:[#allocation32_spill] sm:$0xff]  ;;  %v26491_v20 = vld [vmem:[#allocation41_spill] sm:$0xff] }
 0x553   : > { %6089 = vmatmul.mubr.f32.gmra.mrb[94].mxu0 %v26291_v3 }
 0x554   : > { %6094 = vmatprep.mubr.f32.mxu0 %v25415_v41 }
 0x555   : > { %14697 = vmatmul.mubr.f32.gmra.mrb[48].mxu1 %v26480_v2  ;;  %v26488_v2 = vld [vmem:[#allocation38_spill] sm:$0xff] }
 0x556   : > { %14709 = vmatprep.mubr.f32.mxu1 %v26481_v59  ;;  %v26489_v59 = vld [vmem:[#allocation40_spill] sm:$0xff] }
 0x557   : > { %6096 = vmatmul.mubr.f32.gmra.mrb[96].mxu0 %v26292_v24 }
 0x558   : > { %6101 = vmatprep.mubr.f32.mxu0 %v25415_v41 }
 0x559   : > { %14710 = vmatmul.mubr.f32.vlgmr.msra.gmra.mrb[204].mxu1 %v26486_v45  ;;  %v26496_v45 = vld [vmem:[#allocation61_spill] sm:$0xff] }
 0x55a   : > { %14712 = vmatprep.mubr.f32.mxu1 %v26487_v6  ;;  %15271 = vmatpush3.bf16.msra.mxu1 %v21535_v42  ;;  %v26493_v42 = vld [vmem:[#allocation51_spill] sm:$0xff]  ;;  %v26497_v6 = vld [vmem:[#allocation68_spill] sm:$0xff] }
 0x55b   : > { %6103 = vmatmul.mubr.f32.gmra.mrb[98].mxu0 %v26294_v22  ;;  %15273 = vmatprep.subr.bf16.mxu1 %v15272_v21 }
 0x55c   : > { %6108 = vmatprep.mubr.f32.mxu0 %v25415_v41 }
 0x55d   : > { %14713 = vmatmul.mubr.f32.gmra.mrb[206].mxu1 %v26488_v2  ;;  %v26498_v2 = vld [vmem:[#allocation69_spill] sm:$0xff] }
 0x55e   : > { %14715 = vmatprep.mubr.f32.mxu1 %v26489_v59  ;;  %15275 = vmatpush3.bf16.msra.mxu1 %v15272_v21  ;;  %v26494_v21 = vld [vmem:[#allocation53_spill] sm:$0xff]  ;;  %v26499_v59 = vld [vmem:[#allocation75_spill] sm:$0xff] }
 0x55f   : > { %6110 = vmatmul.mubr.f32.gmra.mrb[100].mxu0 %v26295_v62  ;;  %14870 = vmatprep.subr.mxu1 %v26490_v29 }
 0x560   : > { %6115 = vmatprep.mubr.f32.mxu0 %v25415_v41 }
 0x561   : > { %14716 = vmatmul.mubr.f32.gmra.mrb[208].mxu1 %v26491_v20  ;;  %v26501_v20 = vld [vmem:[#allocation83_spill] sm:$0xff] }
 0x562   : > { %14718 = vmatprep.mubr.f32.mxu1 %v26492_v30  ;;  %14871 = vmatpush3.msra.mxu1 %v26490_v29  ;;  %v26500_v29 = vld [vmem:[#allocation80_spill] sm:$0xff]  ;;  %v26502_v30 = vld [vmem:[#allocation87_spill] sm:$0xff] }
 0x563   : > { %6117 = vmatmul.mubr.f32.gmra.mrb[102].mxu0 %v19082_v56  ;;  %15277 = vmatprep.subr.bf16.mxu1 %v19726_v31 }
 0x564   : > { %6122 = vmatprep.mubr.f32.mxu0 %v25415_v41 }
 0x565   : > { %14719 = vmatmul.mubr.f32.gmra.mrb[210].mxu1 %v26493_v42  ;;  %v26503_v42 = vld [vmem:[#allocation89_spill] sm:$0xff] }
 0x566   : > { %14721 = vmatprep.mubr.f32.mxu1 %v26494_v21  ;;  %v26504_v21 = vld [vmem:[#allocation95_spill] sm:$0xff] }
 0x567   : > { %6124 = vmatmul.mubr.f32.gmra.mrb[104].mxu0 %v19093_v27 }
 0x568   : > { %6129 = vmatprep.mubr.f32.mxu0 %v25415_v41 }
 0x569   : > { %14722 = vmatmul.mubr.f32.gmra.mrb[212].mxu1 %v26495_v55  ;;  %v26505_v55 = vld [vmem:[#allocation97_spill] sm:$0xff] }
 0x56a   : > { %14724 = vmatprep.mubr.f32.mxu1 %v26496_v45  ;;  %v26506_v45 = vld [vmem:[#allocation103_spill] sm:$0xff] }
 0x56b   : > { %6131 = vmatmul.mubr.f32.gmra.mrb[106].mxu0 %v19113_v44 }
 0x56c   : > { %6136 = vmatprep.mubr.f32.mxu0 %v25415_v41 }
 0x56d   : > { %14725 = vmatmul.mubr.f32.gmra.mrb[214].mxu1 %v26497_v6  ;;  %v26507_v6 = vld [vmem:[#allocation107_spill] sm:$0xff] }
 0x56e   : > { %14727 = vmatprep.mubr.f32.mxu1 %v26498_v2  ;;  %v26508_v2 = vld [vmem:[#allocation109_spill] sm:$0xff] }
 0x56f   : > { %6138 = vmatmul.mubr.f32.gmra.mrb[108].mxu0 %v25881_v25 }
 0x570   : > { %6143 = vmatprep.mubr.f32.mxu0 %v25415_v41 }
 0x571   : > { %14728 = vmatmul.mubr.f32.gmra.mrb[216].mxu1 %v26499_v59  ;;  %v26509_v59 = vld [vmem:[#allocation115_spill] sm:$0xff] }
 0x572   : > { %14730 = vmatprep.mubr.f32.mxu1 %v26500_v29  ;;  %v26510_v29 = vld [vmem:[#allocation119_spill] sm:$0xff] }
 0x573   : > { %6145 = vmatmul.mubr.f32.gmra.mrb[110].mxu0 %v19161_v39 }
 0x574   : > { %6150 = vmatprep.mubr.f32.mxu0 %v25415_v41 }
 0x575   : > { %14731 = vmatmul.mubr.f32.gmra.mrb[218].mxu1 %v26501_v20  ;;  %v26511_v20 = vld [vmem:[#allocation123_spill] sm:$0xff] }
 0x576   : > { %14733 = vmatprep.mubr.f32.mxu1 %v26502_v30  ;;  %v26512_v30 = vld [vmem:[#allocation127_spill] sm:$0xff] }
 0x577   : > { %6152 = vmatmul.mubr.f32.gmra.mrb[112].mxu0 %v19181_v43 }
 0x578   : > { %6157 = vmatprep.mubr.f32.mxu0 %v25415_v41 }
 0x579   : > { %14734 = vmatmul.mubr.f32.gmra.mrb[220].mxu1 %v26503_v42  ;;  %v26513_v42 = vld [vmem:[#allocation129_spill] sm:$0xff] }
 0x57a   : > { %14736 = vmatprep.mubr.f32.mxu1 %v26504_v21  ;;  %v26514_v21 = vld [vmem:[#allocation135_spill] sm:$0xff] }
 0x57b   : > { %6159 = vmatmul.mubr.f32.gmra.mrb[114].mxu0 %v19192_v51 }
 0x57c   : > { %6164 = vmatprep.mubr.f32.mxu0 %v25415_v41 }
 0x57d   : > { %14737 = vmatmul.mubr.f32.gmra.mrb[222].mxu1 %v26505_v55  ;;  %v26515_v55 = vld [vmem:[#allocation140_spill] sm:$0xff] }
 0x57e   : > { %14739 = vmatprep.mubr.f32.mxu1 %v26506_v45  ;;  %v26516_v45 = vld [vmem:[#allocation141_spill] sm:$0xff] }
 0x57f   : > { %6166 = vmatmul.mubr.f32.gmra.mrb[116].mxu0 %v19217_v7 }
 0x580   : > { %6171 = vmatprep.mubr.f32.mxu0 %v25415_v41 }
 0x581   : > { %14740 = vmatmul.mubr.f32.gmra.mrb[224].mxu1 %v26507_v6  ;;  %v26517_v6 = vld [vmem:[#allocation148_spill] sm:$0xff] }
 0x582   : > { %14742 = vmatprep.mubr.f32.mxu1 %v26508_v2  ;;  %v26518_v2 = vld [vmem:[#allocation151_spill] sm:$0xff] }
 0x583   : > { %6173 = vmatmul.mubr.f32.gmra.mrb[118].mxu0 %v19250_v38 }
 0x584   : > { %6178 = vmatprep.mubr.f32.mxu0 %v25415_v41 }
 0x585   : > { %14743 = vmatmul.mubr.f32.gmra.mrb[226].mxu1 %v26509_v59  ;;  %v26519_v59 = vld [vmem:[#allocation155_spill] sm:$0xff] }
 0x586   : > { %14745 = vmatprep.mubr.f32.mxu1 %v26510_v29  ;;  %v26520_v29 = vld [vmem:[#allocation159_spill] sm:$0xff] }
 0x587   : > { %6180 = vmatmul.mubr.f32.gmra.mrb[120].mxu0 %v19276_v48 }
 0x588   : > { %6185 = vmatprep.mubr.f32.mxu0 %v25415_v41 }
 0x589   : > { %14746 = vmatmul.mubr.f32.gmra.mrb[228].mxu1 %v26511_v20  ;;  %v26521_v20 = vld [vmem:[#allocation163_spill] sm:$0xff] }
 0x58a   : > { %14748 = vmatprep.mubr.f32.mxu1 %v26512_v30  ;;  %v26522_v30 = vld [vmem:[#allocation167_spill] sm:$0xff] }
 0x58b   : > { %6187 = vmatmul.mubr.f32.gmra.mrb[122].mxu0 %v19302_v49 }
 0x58c   : > { %6192 = vmatprep.mubr.f32.mxu0 %v25415_v41 }
 0x58d   : > { %14749 = vmatmul.mubr.f32.gmra.mrb[230].mxu1 %v26513_v42  ;;  %v26523_v42 = vld [vmem:[#allocation287_spill] sm:$0xff] }
 0x58e   : > { %14751 = vmatprep.mubr.f32.mxu1 %v26514_v21  ;;  %v26524_v21 = vld [vmem:[#allocation171_spill] sm:$0xff] }
 0x58f   : > { %6194 = vmatmul.mubr.f32.gmra.mrb[124].mxu0 %v19315_v0 }
 0x590   : > { %6199 = vmatprep.mubr.f32.mxu0 %v25415_v41 }
 0x591   : > { %14752 = vmatmul.mubr.f32.gmra.mrb[232].mxu1 %v26515_v55  ;;  %v26525_v55 = vld [vmem:[#allocation175_spill] sm:$0xff] }
 0x592   : > { %14754 = vmatprep.mubr.f32.mxu1 %v26516_v45  ;;  %v26526_v45 = vld [vmem:[#allocation177_spill] sm:$0xff] }
 0x593   : > { %6201 = vmatmul.mubr.f32.gmra.mrb[126].mxu0 %v19340_v15 }
 0x594   : > { %6206 = vmatprep.mubr.f32.mxu0 %v25415_v41 }
 0x595   : > { %14755 = vmatmul.mubr.f32.gmra.mrb[234].mxu1 %v26517_v6  ;;  %v26527_v6 = vld [vmem:[#allocation183_spill] sm:$0xff] }
 0x596   : > { %14757 = vmatprep.mubr.f32.mxu1 %v26518_v2  ;;  %v26528_v2 = vld [vmem:[#allocation187_spill] sm:$0xff] }
 0x597   : > { %6208 = vmatmul.mubr.f32.gmra.mrb[128].mxu0 %v19374_v8 }
 0x598   : > { %6213 = vmatprep.mubr.f32.mxu0 %v25415_v41 }
 0x599   : > { %14758 = vmatmul.mubr.f32.gmra.mrb[236].mxu1 %v26519_v59  ;;  %v26529_v59 = vld [vmem:[#allocation191_spill] sm:$0xff] }
 0x59a   : > { %14760 = vmatprep.mubr.f32.mxu1 %v26520_v29  ;;  %v26530_v29 = vld [vmem:[#allocation195_spill] sm:$0xff] }
 0x59b   : > { %6215 = vmatmul.mubr.f32.gmra.mrb[130].mxu0 %v19398_v26 }
 0x59c   : > { %6220 = vmatprep.mubr.f32.mxu0 %v25415_v41 }
 0x59d   : > { %14761 = vmatmul.mubr.f32.gmra.mrb[238].mxu1 %v26521_v20  ;;  %v26531_v20 = vld [vmem:[#allocation199_spill] sm:$0xff] }
 0x59e   : > { %14763 = vmatprep.mubr.f32.mxu1 %v26522_v30  ;;  %v26532_v30 = vld [vmem:[#allocation203_spill] sm:$0xff] }
 0x59f   : > { %6222 = vmatmul.mubr.f32.gmra.mrb[132].mxu0 %v26523_v42 }
 0x5a0   : > { %6227 = vmatprep.mubr.f32.mxu0 %v25415_v41 }
 0x5a1   : > { %14764 = vmatmul.mubr.f32.gmra.mrb[240].mxu1 %v26524_v21  ;;  %v26533_v21 = vld [vmem:[#allocation207_spill] sm:$0xff] }
 0x5a2   : > { %14766 = vmatprep.mubr.f32.mxu1 %v26525_v55  ;;  %v26534_v55 = vld [vmem:[#allocation209_spill] sm:$0xff] }
 0x5a3   : > { %6229 = vmatmul.mubr.f32.gmra.mrb[134].mxu0 %v19435_v5 }
 0x5a4   : > { %6234 = vmatprep.mubr.f32.mxu0 %v25415_v41 }
 0x5a5   : > { %14767 = vmatmul.mubr.f32.gmra.mrb[242].mxu1 %v26526_v45  ;;  %v26535_v45 = vld [vmem:[#allocation215_spill] sm:$0xff] }
 0x5a6   : > { %14769 = vmatprep.mubr.f32.mxu1 %v26527_v6  ;;  %v26536_v6 = vld [vmem:[#allocation219_spill] sm:$0xff] }
 0x5a7   : > { %6236 = vmatmul.mubr.f32.gmra.mrb[136].mxu0 %v19460_v37 }
 0x5a8   : > { %6241 = vmatprep.mubr.f32.mxu0 %v25415_v41 }
 0x5a9   : > { %14770 = vmatmul.mubr.f32.gmra.mrb[244].mxu1 %v26528_v2  ;;  %v26537_v2 = vld [vmem:[#allocation221_spill] sm:$0xff] }
 0x5aa   : > { %14772 = vmatprep.mubr.f32.mxu1 %v26529_v59  ;;  %v26538_v59 = vld [vmem:[#allocation228_spill] sm:$0xff] }
 0x5ab   : > { %6243 = vmatmul.mubr.f32.gmra.mrb[138].mxu0 %v19494_v12 }
 0x5ac   : > { %6248 = vmatprep.mubr.f32.mxu0 %v25415_v41 }
 0x5ad   : > { %14773 = vmatmul.mubr.f32.gmra.mrb[246].mxu1 %v26530_v29  ;;  %v26539_v29 = vld [vmem:[#allocation229_spill] sm:$0xff] }
 0x5ae   : > { %14775 = vmatprep.mubr.f32.mxu1 %v26531_v20  ;;  %v26540_v20 = vld [vmem:[#allocation233_spill] sm:$0xff] }
 0x5af   : > { %6250 = vmatmul.mubr.f32.gmra.mrb[140].mxu0 %v19518_v58 }
 0x5b0   : > { %6255 = vmatprep.mubr.f32.mxu0 %v25415_v41 }
 0x5b1   : > { %14776 = vmatmul.mubr.f32.gmra.mrb[248].mxu1 %v26532_v30  ;;  %v26541_v30 = vld [vmem:[#allocation237_spill] sm:$0xff] }
 0x5b2   : > { %14778 = vmatprep.mubr.f32.mxu1 %v26533_v21  ;;  %v26542_v21 = vld [vmem:[#allocation240_spill] sm:$0xff] }
 0x5b3   : > { %6257 = vmatmul.mubr.f32.gmra.mrb[142].mxu0 %v19542_v18 }
 0x5b4   : > { %6262 = vmatprep.mubr.f32.mxu0 %v25415_v41 }
 0x5b5   : > { %14779 = vmatmul.mubr.f32.gmra.mrb[250].mxu1 %v26534_v55  ;;  %v26543_v55 = vld [vmem:[#allocation246_spill] sm:$0xff] }
 0x5b6   : > { %14781 = vmatprep.mubr.f32.mxu1 %v26535_v45  ;;  %v26544_v45 = vld [vmem:[#allocation249_spill] sm:$0xff] }
 0x5b7   : > { %6264 = vmatmul.mubr.f32.gmra.mrb[144].mxu0 %v26307_v34 }
 0x5b8   : > { %6269 = vmatprep.mubr.f32.mxu0 %v25415_v41 }
 0x5b9   : > { %14782 = vmatmul.mubr.f32.gmra.mrb[252].mxu1 %v26536_v6  ;;  %v26545_v6 = vld [vmem:[#allocation254_spill] sm:$0xff] }
 0x5ba   : > { %14784 = vmatprep.mubr.f32.mxu1 %v26537_v2  ;;  %v26546_v2 = vld [vmem:[#allocation260_spill] sm:$0xff] }
 0x5bb   : > { %6271 = vmatmul.mubr.f32.gmra.mrb[146].mxu0 %v19580_v13 }
 0x5bc   : > { %6276 = vmatprep.mubr.f32.mxu0 %v25415_v41 }
 0x5bd   : > { %14785 = vmatmul.mubr.f32.gmra.mrb[254].mxu1 %v26538_v59  ;;  %v26547_v59 = vld [vmem:[#allocation265_spill] sm:$0xff] }
 0x5be   : > { %14787 = vmatprep.mubr.f32.mxu1 %v26539_v29  ;;  %v26548_v29 = vld [vmem:[#allocation271_spill] sm:$0xff] }
 0x5bf   : > { %6278 = vmatmul.mubr.f32.gmra.mrb[148].mxu0 %v25905_v17 }
 0x5c0   : > { %6283 = vmatprep.mubr.f32.mxu0 %v25415_v41 }
 0x5c1   : > { %14788 = vmatmul.mubr.f32.gmra.mrb[0].mxu1 %v26540_v20  ;;  %v26549_v20 = vld [vmem:[#allocation273_spill] sm:$0xff] }
 0x5c2   : > { %14790 = vmatprep.mubr.f32.mxu1 %v26541_v30  ;;  %v26550_v30 = vld [vmem:[#allocation278_spill] sm:$0xff] }
 0x5c3   : > { %6285 = vmatmul.mubr.f32.gmra.mrb[150].mxu0 %v25907_v14 }
 0x5c4   : > { %6290 = vmatprep.mubr.f32.mxu0 %v25415_v41 }
 0x5c5   : > { %14791 = vmatmul.mubr.f32.gmra.mrb[2].mxu1 %v26542_v21  ;;  %v26551_v21 = vld [vmem:[#allocation285_spill] sm:$0xff] }
 0x5c6   : > { %14793 = vmatprep.mubr.f32.mxu1 %v26543_v55  ;;  %v26552_v55 = vld [vmem:[#allocation291_spill] sm:$0xff] }
 0x5c7   : > { %6292 = vmatmul.mubr.f32.gmra.mrb[152].mxu0 %v25909_v52 }
 0x5c8   : > { %6297 = vmatprep.mubr.f32.mxu0 %v25415_v41 }
 0x5c9   : > { %14794 = vmatmul.mubr.f32.gmra.mrb[4].mxu1 %v26544_v45  ;;  %v26553_v45 = vld [vmem:[#allocation297_spill] sm:$0xff] }
 0x5ca   : > { %14796 = vmatprep.mubr.f32.mxu1 %v26545_v6  ;;  %v26554_v6 = vld [vmem:[#allocation299_spill] sm:$0xff] }
 0x5cb   : > { %6299 = vmatmul.mubr.f32.gmra.mrb[154].mxu0 %v25911_v11 }
 0x5cc   : > { %6304 = vmatprep.mubr.f32.mxu0 %v25415_v41 }
 0x5cd   : > { %14797 = vmatmul.mubr.f32.gmra.mrb[6].mxu1 %v26546_v2  ;;  %v26555_v2 = vld [vmem:[#allocation304_spill] sm:$0xff] }
 0x5ce   : > { %14799 = vmatprep.mubr.f32.mxu1 %v26547_v59  ;;  %v26556_v59 = vld [vmem:[#allocation311_spill] sm:$0xff] }
 0x5cf   : > { %6306 = vmatmul.mubr.f32.gmra.mrb[156].mxu0 %v19706_v46 }
 0x5d0   : > { %6311 = vmatprep.mubr.f32.mxu0 %v25415_v41 }
 0x5d1   : > { %14800 = vmatmul.mubr.f32.gmra.mrb[8].mxu1 %v26548_v29  ;;  %v26557_v29 = vld [vmem:[#allocation317_spill] sm:$0xff] }
 0x5d2   : > { %14802 = vmatprep.mubr.f32.mxu1 %v26549_v20  ;;  %v26558_v20 = vld [vmem:[#allocation324_spill] sm:$0xff] }
 0x5d3   : > { %6313 = vmatmul.mubr.f32.gmra.mrb[158].mxu0 %v19749_v57 }
 0x5d4   : > { %6318 = vmatprep.mubr.f32.mxu0 %v25415_v41 }
 0x5d5   : > { %14803 = vmatmul.mubr.f32.gmra.mrb[10].mxu1 %v26550_v30  ;;  %v26559_v30 = vld [vmem:[#allocation326_spill] sm:$0xff] }
 0x5d6   : > { %14805 = vmatprep.mubr.f32.mxu1 %v26551_v21  ;;  %v26560_v21 = vld [vmem:[#allocation332_spill] sm:$0xff] }
 0x5d7   : > { %6320 = vmatmul.mubr.f32.gmra.mrb[160].mxu0 %v19773_v28 }
 0x5d8   : > { %6325 = vmatprep.mubr.f32.mxu0 %v25415_v41 }
 0x5d9   : > { %14806 = vmatmul.mubr.f32.gmra.mrb[12].mxu1 %v26552_v55  ;;  %v26561_v55 = vld [vmem:[#allocation340_spill] sm:$0xff] }
 0x5da   : > { %14808 = vmatprep.mubr.f32.mxu1 %v26553_v45  ;;  %v26562_v45 = vld [vmem:[#allocation347_spill] sm:$0xff] }
 0x5db   : > { %6327 = vmatmul.mubr.f32.gmra.mrb[162].mxu0 %v19797_v32  ;;  %v26636_v32 = vld [vmem:[#allocation180_spill] sm:$0xff] }
 0x5dc   : > { %6332 = vmatprep.mubr.f32.mxu0 %v25415_v41 }
 0x5dd   : > { %14809 = vmatmul.mubr.f32.gmra.mrb[14].mxu1 %v26554_v6  ;;  %v26563_v6 = vld [vmem:[#allocation354_spill] sm:$0xff] }
 0x5de   : > { %14811 = vmatprep.mubr.f32.mxu1 %v26555_v2  ;;  %v26564_v2 = vld [vmem:[#allocation402_spill] sm:$0xff] }
 0x5df   : > { %6334 = vmatmul.mubr.f32.gmra.mrb[164].mxu0 %v19810_v19  ;;  %v26634_v19 = vld [vmem:[#allocation169_spill] sm:$0xff] }
 0x5e0   : > { %6339 = vmatprep.mubr.f32.mxu0 %v25415_v41 }
 0x5e1   : > { %14812 = vmatmul.mubr.f32.gmra.mrb[16].mxu1 %v26556_v59  ;;  %v26565_v59 = vld [vmem:[#allocation356_spill] sm:$0xff] }
 0x5e2   : > { %14814 = vmatprep.mubr.f32.mxu1 %v26557_v29  ;;  %v26566_v29 = vld [vmem:[#allocation362_spill] sm:$0xff] }
 0x5e3   : > { %6341 = vmatmul.mubr.f32.gmra.mrb[166].mxu0 %v19835_v40  ;;  %v26632_v40 = vld [vmem:[#allocation164_spill] sm:$0xff] }
 0x5e4   : > { %6346 = vmatprep.mubr.f32.mxu0 %v25415_v41 }
 0x5e5   : > { %14815 = vmatmul.mubr.f32.gmra.mrb[18].mxu1 %v26558_v20  ;;  %v26567_v20 = vld [vmem:[#allocation405_spill] sm:$0xff] }
 0x5e6   : > { %14817 = vmatprep.mubr.f32.mxu1 %v26559_v30  ;;  %v26568_v30 = vld [vmem:[#allocation370_spill] sm:$0xff] }
 0x5e7   : > { %6348 = vmatmul.mubr.f32.gmra.mrb[168].mxu0 %v19869_v23  ;;  %v26630_v23 = vld [vmem:[#allocation156_spill] sm:$0xff] }
 0x5e8   : > { %6353 = vmatprep.mubr.f32.mxu0 %v25415_v41 }
 0x5e9   : > { %14818 = vmatmul.mubr.f32.gmra.mrb[20].mxu1 %v26560_v21  ;;  %v26569_v21 = vld [vmem:[#allocation377_spill] sm:$0xff] }
 0x5ea   : > { %14820 = vmatprep.mubr.f32.mxu1 %v26561_v55  ;;  %v26570_v55 = vld [vmem:[#allocation411_spill] sm:$0xff] }
 0x5eb   : > { %6355 = vmatmul.mubr.f32.gmra.mrb[170].mxu0 %v19893_v10  ;;  %v26628_v10 = vld [vmem:[#allocation146_spill] sm:$0xff] }
 0x5ec   : > { %6360 = vmatprep.mubr.f32.mxu0 %v25415_v41 }
 0x5ed   : > { %14821 = vmatmul.mubr.f32.gmra.mrb[22].mxu1 %v26562_v45  ;;  %v26571_v45 = vld [vmem:[#allocation384_spill] sm:$0xff] }
 0x5ee   : > { %14823 = vmatprep.mubr.f32.mxu1 %v26563_v6  ;;  %v26572_v6 = vld [vmem:[#allocation386_spill] sm:$0xff] }
 0x5ef   : > { %6362 = vmatmul.mubr.f32.gmra.mrb[172].mxu0 %v26564_v2  ;;  %v26573_v2 = vld [vmem:[#allocation420_spill] sm:$0xff] }
 0x5f0   : > { %6367 = vmatprep.mubr.f32.mxu0 %v25415_v41 }
 0x5f1   : > { %14824 = vmatmul.mubr.f32.gmra.mrb[24].mxu1 %v26565_v59  ;;  %v26574_v59 = vld [vmem:[#allocation392_spill] sm:$0xff] }
 0x5f2   : > { %14826 = vmatprep.mubr.f32.mxu1 %v26566_v29  ;;  %v26575_v29 = vld [vmem:[#allocation400_spill] sm:$0xff] }
 0x5f3   : > { %6369 = vmatmul.mubr.f32.gmra.mrb[174].mxu0 %v26567_v20  ;;  %v26576_v20 = vld [vmem:[#allocation426_spill] sm:$0xff] }
 0x5f4   : > { %6374 = vmatprep.mubr.f32.mxu0 %v25415_v41 }
 0x5f5   : > { %14827 = vmatmul.mubr.f32.gmra.mrb[26].mxu1 %v26568_v30  ;;  %v26577_v30 = vld [vmem:[#allocation407_spill] sm:$0xff] }
 0x5f6   : > { %14829 = vmatprep.mubr.f32.mxu1 %v26569_v21  ;;  %v26578_v21 = vld [vmem:[#allocation414_spill] sm:$0xff] }
 0x5f7   : > { %6376 = vmatmul.mubr.f32.gmra.mrb[176].mxu0 %v26570_v55  ;;  %v26579_v55 = vld [vmem:[#allocation432_spill] sm:$0xff] }
 0x5f8   : > { %6381 = vmatprep.mubr.f32.mxu0 %v25415_v41 }
 0x5f9   : > { %14830 = vmatmul.mubr.f32.gmra.mrb[28].mxu1 %v26571_v45  ;;  %v26580_v45 = vld [vmem:[#allocation416_spill] sm:$0xff] }
 0x5fa   : > { %14832 = vmatprep.mubr.f32.mxu1 %v26572_v6  ;;  %v26581_v6 = vld [vmem:[#allocation422_spill] sm:$0xff] }
 0x5fb   : > { %6383 = vmatmul.mubr.f32.gmra.mrb[178].mxu0 %v26573_v2  ;;  %v26582_v2 = vld [vmem:[#allocation435_spill] sm:$0xff] }
 0x5fc   : > { %6388 = vmatprep.mubr.f32.mxu0 %v25415_v41 }
 0x5fd   : > { %14833 = vmatmul.mubr.f32.gmra.mrb[30].mxu1 %v26574_v59  ;;  %v26583_v59 = vld [vmem:[#allocation430_spill] sm:$0xff] }
 0x5fe   : > { %14835 = vmatprep.mubr.f32.mxu1 %v26575_v29  ;;  %v26584_v29 = vld [vmem:[#allocation437_spill] sm:$0xff] }
 0x5ff   : > { %6390 = vmatmul.mubr.f32.gmra.mrb[180].mxu0 %v26576_v20  ;;  %v26585_v20 = vld [vmem:[#allocation441_spill] sm:$0xff] }
 0x600   : > { %6395 = vmatprep.mubr.f32.mxu0 %v25415_v41 }
 0x601   : > { %14836 = vmatmul.mubr.f32.gmra.mrb[32].mxu1 %v26577_v30  ;;  %v26586_v30 = vld [vmem:[#allocation444_spill] sm:$0xff] }
 0x602   : > { %14838 = vmatprep.mubr.f32.mxu1 %v26578_v21  ;;  %v26587_v21 = vld [vmem:[#allocation446_spill] sm:$0xff] }
 0x603   : > { %6397 = vmatmul.mubr.f32.gmra.mrb[182].mxu0 %v26579_v55  ;;  %v26588_v55 = vld [vmem:[#allocation450_spill] sm:$0xff] }
 0x604   : > { %6402 = vmatprep.mubr.f32.mxu0 %v25415_v41 }
 0x605   : > { %14839 = vmatmul.mubr.f32.gmra.mrb[34].mxu1 %v26580_v45  ;;  %v26589_v45 = vld [vmem:[#allocation452_spill] sm:$0xff] }
 0x606   : > { %14841 = vmatprep.mubr.f32.mxu1 %v26581_v6  ;;  %v26590_v6 = vld [vmem:[#allocation460_spill] sm:$0xff] }
 0x607   : > { %6404 = vmatmul.mubr.f32.gmra.mrb[184].mxu0 %v26582_v2  ;;  %v26591_v2 = vld [vmem:[#allocation456_spill] sm:$0xff] }
 0x608   : > { %6409 = vmatprep.mubr.f32.mxu0 %v25415_v41 }
 0x609   : > { %14842 = vmatmul.mubr.f32.gmra.mrb[36].mxu1 %v26583_v59  ;;  %v26592_v59 = vld [vmem:[#allocation467_spill] sm:$0xff] }
 0x60a   : > { %14844 = vmatprep.mubr.f32.mxu1 %v26584_v29  ;;  %v26593_v29 = vld [vmem:[#allocation473_spill] sm:$0xff] }
 0x60b   : > { %6411 = vmatmul.mubr.f32.gmra.mrb[186].mxu0 %v26585_v20  ;;  %v26594_v20 = vld [vmem:[#allocation462_spill] sm:$0xff] }
 0x60c   : > { %6416 = vmatprep.mubr.f32.mxu0 %v25415_v41 }
 0x60d   : > { %14845 = vmatmul.mubr.f32.gmra.mrb[38].mxu1 %v26586_v30  ;;  %v26595_v30 = vld [vmem:[#allocation484_spill] sm:$0xff] }
 0x60e   : > { %14847 = vmatprep.mubr.f32.mxu1 %v26587_v21  ;;  %v26596_v21 = vld [vmem:[#allocation464_spill] sm:$0xff] }
 0x60f   : > { %6418 = vmatmul.mubr.f32.gmra.mrb[188].mxu0 %v26588_v55  ;;  %v26626_v55 = vld [vmem:[#allocation138_spill] sm:$0xff] }
 0x610   : > { %6423 = vmatprep.mubr.f32.mxu0 %v25415_v41 }
 0x611   : > { %14848 = vmatmul.mubr.f32.gmra.mrb[40].mxu1 %v26589_v45  ;;  %v26597_v45 = vld [vmem:[#allocation496_spill] sm:$0xff] }
 0x612   : > { %14850 = vmatprep.mubr.f32.mxu1 %v26590_v6  ;;  %v26598_v6 = vld [vmem:[#allocation474_spill] sm:$0xff] }
 0x613   : > { %6425 = vmatmul.mubr.f32.gmra.mrb[190].mxu0 %v26591_v2  ;;  %v26624_v2 = vld [vmem:[#allocation132_spill] sm:$0xff] }
 0x614   : > { %6430 = vmatprep.mubr.f32.mxu0 %v25415_v41 }
 0x615   : > { %14851 = vmatmul.mubr.f32.gmra.mrb[42].mxu1 %v26592_v59  ;;  %v26599_v59 = vld [vmem:[#allocation4_spill] sm:$0xff] }
 0x616   : > { %14853 = vmatprep.mubr.f32.mxu1 %v26593_v29  ;;  %v26600_v29 = vld [vmem:[#allocation480_spill] sm:$0xff] }
 0x617   : > { %6432 = vmatmul.mubr.f32.gmra.mrb[192].mxu0 %v26594_v20  ;;  %v26622_v20 = vld [vmem:[#allocation121_spill] sm:$0xff] }
 0x618   : > { %6437 = vmatprep.mubr.f32.mxu0 %v25415_v41 }
 0x619   : > { %14854 = vmatmul.mubr.f32.gmra.mrb[44].mxu1 %v26328_v50  ;;  %v26602_v50 = vld [vmem:[#allocation509_spill] sm:$0xff] }
 0x61a   : > { %14856 = vmatprep.mubr.f32.mxu1 %v26595_v30  ;;  %v26604_v30 = vld [vmem:[#allocation512_spill] sm:$0xff] }
 0x61b   : > { %6439 = vmatmul.mubr.f32.gmra.mrb[194].mxu0 %v26596_v21  ;;  %v26620_v21 = vld [vmem:[#allocation113_spill] sm:$0xff] }
 0x61c   : > { %6444 = vmatprep.mubr.f32.mxu0 %v25415_v41 }
 0x61d   : > { %14857 = vmatmul.mubr.f32.gmra.mrb[46].mxu1 %v26334_v61  ;;  %v26601_v61 = vld [vmem:[#allocation486_spill] sm:$0xff] }
 0x61e   : > { %14859 = vmatprep.mubr.f32.mxu1 %v26597_v45  ;;  %v26606_v45 = vld [vmem:[#allocation54_spill] sm:$0xff] }
 0x61f   : > { %6446 = vmatmul.mubr.f32.gmra.mrb[196].mxu0 %v26598_v6  ;;  %v26618_v6 = vld [vmem:[#allocation108_spill] sm:$0xff] }
 0x620   : > { %6451 = vmatprep.mubr.f32.mxu0 %v25415_v41 }
 0x621   : > { %14860 = vmatmul.mubr.f32.gmra.mrb[48].mxu1 %v26341_v36  ;;  %v26603_v36 = vld [vmem:[#allocation492_spill] sm:$0xff] }
 0x622   : > { %14872 = vmatprep.mubr.f32.mxu1 %v26599_v59 }
 0x623   : > { %6453 = vmatmul.mubr.f32.gmra.mrb[198].mxu0 %v26600_v29  ;;  %v26616_v29 = vld [vmem:[#allocation98_spill] sm:$0xff] }
 0x624   : > { %6458 = vmatprep.mubr.f32.mxu0 %v25415_v41 }
 0x625   : > { %14873 = vmatmul.mubr.f32.vlgmr.msra.gmra.mrb[204].mxu1 %v26220_v35 }
 0x626   : > { %14875 = vmatprep.mubr.f32.mxu1 %v26221_v1  ;;  %15279 = vmatpush3.bf16.msra.mxu1 %v19726_v31  ;;  %v26605_v31 = vld [vmem:[#allocation52_spill] sm:$0xff] }
 0x627   : > { %6460 = vmatmul.mubr.f32.gmra.mrb[200].mxu0 %v26601_v61  ;;  %15281 = vmatprep.subr.bf16.mxu1 %v26602_v50  ;;  %v26613_v61 = vld [vmem:[#allocation81_spill] sm:$0xff] }
 0x628   : > { %6465 = vmatprep.mubr.f32.mxu0 %v25415_v41 }
 0x629   : > { %14876 = vmatmul.mubr.f32.gmra.mrb[206].mxu1 %v26225_v63 }
 0x62a   : > { %14878 = vmatprep.mubr.f32.mxu1 %v26226_v60  ;;  %15283 = vmatpush3.bf16.msra.mxu1 %v26602_v50  ;;  %v26607_v50 = vld [vmem:[#allocation58_spill] sm:$0xff] }
 0x62b   : > { %6467 = vmatmul.mubr.f32.gmra.mrb[202].mxu0 %v26603_v36  ;;  %15033 = vmatprep.subr.mxu1 %v26604_v30  ;;  %v26611_v36 = vld [vmem:[#allocation73_spill] sm:$0xff] }
 0x62c   : > { %6547 = vmatprep.mubr.f32.mxu0 %v25415_v41 }
 0x62d   : > { %14879 = vmatmul.mubr.f32.gmra.mrb[208].mxu1 %v26228_v33 }
 0x62e   : > { %14881 = vmatprep.mubr.f32.mxu1 %v26229_v4  ;;  %15034 = vmatpush3.msra.mxu1 %v26604_v30  ;;  %v26608_v30 = vld [vmem:[#allocation62_spill] sm:$0xff] }
 0x62f   : > { %6549 = vmatmul.mubr.f32.vlgmr.msra.gmra.mrb[0].mxu0 %v26599_v59  ;;  %v26609_v59 = vld [vmem:[#allocation66_spill] sm:$0xff] }
 0x630   : > { %6554 = vmatprep.mubr.f32.mxu0 %v25415_v41 }
 0x631   : > { %14882 = vmatmul.mubr.f32.gmra.mrb[210].mxu1 %v26231_v53 }
 0x632   : > { %14884 = vmatprep.mubr.f32.mxu1 %v26232_v9 }
 0x633   : > { %6556 = vmatmul.mubr.f32.gmra.mrb[2].mxu0 %v26220_v35  ;;  %v26610_v35 = vld [vmem:[#allocation72_spill] sm:$0xff] }
 0x634   : > { %6561 = vmatprep.mubr.f32.mxu0 %v25415_v41 }
 0x635   : > { %14885 = vmatmul.mubr.f32.gmra.mrb[212].mxu1 %v26605_v31 }
 0x636   : > { %14887 = vmatprep.mubr.f32.mxu1 %v26606_v45 }
 0x637   : > { %6563 = vmatmul.mubr.f32.gmra.mrb[4].mxu0 %v26221_v1  ;;  %v26612_v1 = vld [vmem:[#allocation78_spill] sm:$0xff] }
 0x638   : > { %6568 = vmatprep.mubr.f32.mxu0 %v25415_v41 }
 0x639   : > { %14888 = vmatmul.mubr.f32.gmra.mrb[214].mxu1 %v26607_v50 }
 0x63a   : > { %14890 = vmatprep.mubr.f32.mxu1 %v26608_v30 }
 0x63b   : > { %6570 = vmatmul.mubr.f32.gmra.mrb[6].mxu0 %v26225_v63  ;;  %v26614_v63 = vld [vmem:[#allocation88_spill] sm:$0xff] }
 0x63c   : > { %6575 = vmatprep.mubr.f32.mxu0 %v25415_v41 }
 0x63d   : > { %14891 = vmatmul.mubr.f32.gmra.mrb[216].mxu1 %v26609_v59 }
 0x63e   : > { %14893 = vmatprep.mubr.f32.mxu1 %v26610_v35 }
 0x63f   : > { %6577 = vmatmul.mubr.f32.gmra.mrb[8].mxu0 %v26226_v60  ;;  %v26615_v60 = vld [vmem:[#allocation96_spill] sm:$0xff] }
 0x640   : > { %6582 = vmatprep.mubr.f32.mxu0 %v25415_v41 }
 0x641   : > { %14894 = vmatmul.mubr.f32.gmra.mrb[218].mxu1 %v26611_v36 }
 0x642   : > { %14896 = vmatprep.mubr.f32.mxu1 %v26612_v1 }
 0x643   : > { %6584 = vmatmul.mubr.f32.gmra.mrb[10].mxu0 %v26228_v33  ;;  %v26617_v33 = vld [vmem:[#allocation101_spill] sm:$0xff] }
 0x644   : > { %6589 = vmatprep.mubr.f32.mxu0 %v25415_v41 }
 0x645   : > { %14897 = vmatmul.mubr.f32.gmra.mrb[220].mxu1 %v26613_v61 }
 0x646   : > { %14899 = vmatprep.mubr.f32.mxu1 %v26614_v63 }
 0x647   : > { %6591 = vmatmul.mubr.f32.gmra.mrb[12].mxu0 %v26229_v4  ;;  %v26619_v4 = vld [vmem:[#allocation112_spill] sm:$0xff] }
 0x648   : > { %6596 = vmatprep.mubr.f32.mxu0 %v25415_v41 }
 0x649   : > { %14900 = vmatmul.mubr.f32.gmra.mrb[222].mxu1 %v26394_v54 }
 0x64a   : > { %14902 = vmatprep.mubr.f32.mxu1 %v26615_v60 }
 0x64b   : > { %6598 = vmatmul.mubr.f32.gmra.mrb[14].mxu0 %v26231_v53  ;;  %v26621_v53 = vld [vmem:[#allocation120_spill] sm:$0xff] }
 0x64c   : > { %6603 = vmatprep.mubr.f32.mxu0 %v25415_v41 }
 0x64d   : > { %14903 = vmatmul.mubr.f32.gmra.mrb[224].mxu1 %v26616_v29 }
 0x64e   : > { %14905 = vmatprep.mubr.f32.mxu1 %v26617_v33 }
 0x64f   : > { %6605 = vmatmul.mubr.f32.gmra.mrb[16].mxu0 %v26232_v9  ;;  %v26623_v9 = vld [vmem:[#allocation128_spill] sm:$0xff] }
 0x650   : > { %6610 = vmatprep.mubr.f32.mxu0 %v25415_v41 }
 0x651   : > { %14906 = vmatmul.mubr.f32.gmra.mrb[226].mxu1 %v26618_v6 }
 0x652   : > { %14908 = vmatprep.mubr.f32.mxu1 %v26619_v4 }
 0x653   : > { %6612 = vmatmul.mubr.f32.gmra.mrb[18].mxu0 %v26605_v31  ;;  %v26625_v31 = vld [vmem:[#allocation133_spill] sm:$0xff] }
 0x654   : > { %6617 = vmatprep.mubr.f32.mxu0 %v25415_v41 }
 0x655   : > { %14909 = vmatmul.mubr.f32.gmra.mrb[228].mxu1 %v26620_v21 }
 0x656   : > { %14911 = vmatprep.mubr.f32.mxu1 %v26621_v53 }
 0x657   : > { %6619 = vmatmul.mubr.f32.gmra.mrb[20].mxu0 %v26606_v45  ;;  %v26627_v45 = vld [vmem:[#allocation142_spill] sm:$0xff] }
 0x658   : > { %6624 = vmatprep.mubr.f32.mxu0 %v25415_v41 }
 0x659   : > { %14912 = vmatmul.mubr.f32.gmra.mrb[230].mxu1 %v26622_v20 }
 0x65a   : > { %14914 = vmatprep.mubr.f32.mxu1 %v26623_v9 }
 0x65b   : > { %6626 = vmatmul.mubr.f32.gmra.mrb[22].mxu0 %v26607_v50  ;;  %v26629_v50 = vld [vmem:[#allocation149_spill] sm:$0xff] }
 0x65c   : > { %6631 = vmatprep.mubr.f32.mxu0 %v25415_v41 }
 0x65d   : > { %14915 = vmatmul.mubr.f32.gmra.mrb[232].mxu1 %v26624_v2 }
 0x65e   : > { %14917 = vmatprep.mubr.f32.mxu1 %v26625_v31 }
 0x65f   : > { %6633 = vmatmul.mubr.f32.gmra.mrb[24].mxu0 %v26608_v30  ;;  %v26631_v30 = vld [vmem:[#allocation157_spill] sm:$0xff] }
 0x660   : > { %6638 = vmatprep.mubr.f32.mxu0 %v25415_v41 }
 0x661   : > { %14918 = vmatmul.mubr.f32.gmra.mrb[234].mxu1 %v26626_v55 }
 0x662   : > { %14920 = vmatprep.mubr.f32.mxu1 %v26627_v45 }
 0x663   : > { %6640 = vmatmul.mubr.f32.gmra.mrb[26].mxu0 %v26609_v59  ;;  %v26633_v59 = vld [vmem:[#allocation165_spill] sm:$0xff] }
 0x664   : > { %6645 = vmatprep.mubr.f32.mxu0 %v25415_v41 }
 0x665   : > { %14921 = vmatmul.mubr.f32.gmra.mrb[236].mxu1 %v26628_v10 }
 0x666   : > { %14923 = vmatprep.mubr.f32.mxu1 %v26629_v50 }
 0x667   : > { %6647 = vmatmul.mubr.f32.gmra.mrb[28].mxu0 %v26610_v35  ;;  %v26635_v35 = vld [vmem:[#allocation176_spill] sm:$0xff] }
 0x668   : > { %6652 = vmatprep.mubr.f32.mxu0 %v25415_v41 }
 0x669   : > { %14924 = vmatmul.mubr.f32.gmra.mrb[238].mxu1 %v26630_v23 }
 0x66a   : > { %14926 = vmatprep.mubr.f32.mxu1 %v26631_v30 }
 0x66b   : > { %6654 = vmatmul.mubr.f32.gmra.mrb[30].mxu0 %v26611_v36  ;;  %v26638_v36 = vld [vmem:[#allocation196_spill] sm:$0xff] }
 0x66c   : > { %6659 = vmatprep.mubr.f32.mxu0 %v25415_v41 }
 0x66d   : > { %14927 = vmatmul.mubr.f32.gmra.mrb[240].mxu1 %v26632_v40 }
 0x66e   : > { %14929 = vmatprep.mubr.f32.mxu1 %v26633_v59 }
 0x66f   : > { %6661 = vmatmul.mubr.f32.gmra.mrb[32].mxu0 %v26612_v1  ;;  %v26637_v1 = vld [vmem:[#allocation189_spill] sm:$0xff] }
 0x670   : > { %6666 = vmatprep.mubr.f32.mxu0 %v25415_v41 }
 0x671   : > { %14930 = vmatmul.mubr.f32.gmra.mrb[242].mxu1 %v26634_v19 }
 0x672   : > { %14932 = vmatprep.mubr.f32.mxu1 %v26635_v35 }
 0x673   : > { %6668 = vmatmul.mubr.f32.gmra.mrb[34].mxu0 %v26613_v61  ;;  %v26639_v61 = vld [vmem:[#allocation197_spill] sm:$0xff] }
 0x674   : > { %6673 = vmatprep.mubr.f32.mxu0 %v25415_v41 }
 0x675   : > { %14933 = vmatmul.mubr.f32.gmra.mrb[244].mxu1 %v26636_v32 }
 0x676   : > { %14935 = vmatprep.mubr.f32.mxu1 %v26467_v47 }
 0x677   : > { %6675 = vmatmul.mubr.f32.gmra.mrb[36].mxu0 %v26614_v63 }
 0x678   : > { %6680 = vmatprep.mubr.f32.mxu0 %v25415_v41 }
 0x679   : > { %14936 = vmatmul.mubr.f32.gmra.mrb[246].mxu1 %v26470_v16 }
 0x67a   : > { %14938 = vmatprep.mubr.f32.mxu1 %v26637_v1 }
 0x67b   : > { %6682 = vmatmul.mubr.f32.gmra.mrb[38].mxu0 %v26394_v54 }
 0x67c   : > { %6687 = vmatprep.mubr.f32.mxu0 %v25415_v41 }
 0x67d   : > { %14939 = vmatmul.mubr.f32.gmra.mrb[248].mxu1 %v26638_v36 }
 0x67e   : > { %14941 = vmatprep.mubr.f32.mxu1 %v26639_v61 }
 0x67f   : > { %6689 = vmatmul.mubr.f32.gmra.mrb[40].mxu0 %v26615_v60 }
 0x680   : > { %6694 = vmatprep.mubr.f32.mxu0 %v25415_v41 }
 0x681   : > { %14942 = vmatmul.mubr.f32.gmra.mrb[250].mxu1 %v26291_v3 }
 0x682   : > { %14944 = vmatprep.mubr.f32.mxu1 %v26292_v24 }
 0x683   : > { %6696 = vmatmul.mubr.f32.gmra.mrb[42].mxu0 %v26616_v29 }
 0x684   : > { %6701 = vmatprep.mubr.f32.mxu0 %v25415_v41 }
 0x685   : > { %14945 = vmatmul.mubr.f32.gmra.mrb[252].mxu1 %v26294_v22 }
 0x686   : > { %14947 = vmatprep.mubr.f32.mxu1 %v26295_v62 }
 0x687   : > { %6703 = vmatmul.mubr.f32.gmra.mrb[44].mxu0 %v26617_v33 }
 0x688   : > { %6708 = vmatprep.mubr.f32.mxu0 %v25415_v41 }
 0x689   : > { %14948 = vmatmul.mubr.f32.gmra.mrb[254].mxu1 %v19082_v56 }
 0x68a   : > { %14950 = vmatprep.mubr.f32.mxu1 %v19093_v27 }
 0x68b   : > { %6710 = vmatmul.mubr.f32.gmra.mrb[46].mxu0 %v26618_v6 }
 0x68c   : > { %6715 = vmatprep.mubr.f32.mxu0 %v25415_v41 }
 0x68d   : > { %14951 = vmatmul.mubr.f32.gmra.mrb[0].mxu1 %v19113_v44 }
 0x68e   : > { %14953 = vmatprep.mubr.f32.mxu1 %v25881_v25 }
 0x68f   : > { %6717 = vmatmul.mubr.f32.gmra.mrb[48].mxu0 %v26619_v4 }
 0x690   : > { %6722 = vmatprep.mubr.f32.mxu0 %v25415_v41 }
 0x691   : > { %14954 = vmatmul.mubr.f32.gmra.mrb[2].mxu1 %v19161_v39 }
 0x692   : > { %14956 = vmatprep.mubr.f32.mxu1 %v19181_v43 }
 0x693   : > { %6724 = vmatmul.mubr.f32.gmra.mrb[50].mxu0 %v26620_v21 }
 0x694   : > { %6729 = vmatprep.mubr.f32.mxu0 %v25415_v41 }
 0x695   : > { %14957 = vmatmul.mubr.f32.gmra.mrb[4].mxu1 %v19192_v51 }
 0x696   : > { %14959 = vmatprep.mubr.f32.mxu1 %v19217_v7 }
 0x697   : > { %6731 = vmatmul.mubr.f32.gmra.mrb[52].mxu0 %v26621_v53 }
 0x698   : > { %6736 = vmatprep.mubr.f32.mxu0 %v25415_v41 }
 0x699   : > { %14960 = vmatmul.mubr.f32.gmra.mrb[6].mxu1 %v19250_v38 }
 0x69a   : > { %14962 = vmatprep.mubr.f32.mxu1 %v19276_v48 }
 0x69b   : > { %6738 = vmatmul.mubr.f32.gmra.mrb[54].mxu0 %v26622_v20 }
 0x69c   : > { %6743 = vmatprep.mubr.f32.mxu0 %v25415_v41 }
 0x69d   : > { %14963 = vmatmul.mubr.f32.gmra.mrb[8].mxu1 %v19302_v49 }
 0x69e   : > { %14965 = vmatprep.mubr.f32.mxu1 %v19315_v0 }
 0x69f   : > { %6745 = vmatmul.mubr.f32.gmra.mrb[56].mxu0 %v26623_v9 }
 0x6a0   : > { %6750 = vmatprep.mubr.f32.mxu0 %v25415_v41 }
 0x6a1   : > { %14966 = vmatmul.mubr.f32.gmra.mrb[10].mxu1 %v19340_v15 }
 0x6a2   : > { %14968 = vmatprep.mubr.f32.mxu1 %v19374_v8 }
 0x6a3   : > { %6752 = vmatmul.mubr.f32.gmra.mrb[58].mxu0 %v26624_v2 }
 0x6a4   : > { %6757 = vmatprep.mubr.f32.mxu0 %v25415_v41 }
 0x6a5   : > { %14969 = vmatmul.mubr.f32.gmra.mrb[12].mxu1 %v19398_v26 }
 0x6a6   : > { %14971 = vmatprep.mubr.f32.mxu1 %v26523_v42 }
 0x6a7   : > { %6759 = vmatmul.mubr.f32.gmra.mrb[60].mxu0 %v26625_v31 }
 0x6a8   : > { %6764 = vmatprep.mubr.f32.mxu0 %v25415_v41 }
 0x6a9   : > { %14972 = vmatmul.mubr.f32.gmra.mrb[14].mxu1 %v19435_v5 }
 0x6aa   : > { %14974 = vmatprep.mubr.f32.mxu1 %v19460_v37 }
 0x6ab   : > { %6766 = vmatmul.mubr.f32.gmra.mrb[62].mxu0 %v26626_v55 }
 0x6ac   : > { %6771 = vmatprep.mubr.f32.mxu0 %v25415_v41 }
 0x6ad   : > { %14975 = vmatmul.mubr.f32.gmra.mrb[16].mxu1 %v19494_v12 }
 0x6ae   : > { %14977 = vmatprep.mubr.f32.mxu1 %v19518_v58 }
 0x6af   : > { %6773 = vmatmul.mubr.f32.gmra.mrb[64].mxu0 %v26627_v45 }
 0x6b0   : > { %6778 = vmatprep.mubr.f32.mxu0 %v25415_v41 }
 0x6b1   : > { %14978 = vmatmul.mubr.f32.gmra.mrb[18].mxu1 %v19542_v18 }
 0x6b2   : > { %14980 = vmatprep.mubr.f32.mxu1 %v26307_v34 }
 0x6b3   : > { %6780 = vmatmul.mubr.f32.gmra.mrb[66].mxu0 %v26628_v10 }
 0x6b4   : > { %6785 = vmatprep.mubr.f32.mxu0 %v25415_v41 }
 0x6b5   : > { %14981 = vmatmul.mubr.f32.gmra.mrb[20].mxu1 %v19580_v13 }
 0x6b6   : > { %14983 = vmatprep.mubr.f32.mxu1 %v25905_v17 }
 0x6b7   : > { %6787 = vmatmul.mubr.f32.gmra.mrb[68].mxu0 %v26629_v50 }
 0x6b8   : > { %6792 = vmatprep.mubr.f32.mxu0 %v25415_v41 }
 0x6b9   : > { %14984 = vmatmul.mubr.f32.gmra.mrb[22].mxu1 %v25907_v14  ;;  %v26641_v14 = vld [vmem:[#allocation375_spill] sm:$0xff] }
 0x6ba   : > { %14986 = vmatprep.mubr.f32.mxu1 %v25909_v52  ;;  %v26640_v52 = vld [vmem:[#allocation372_spill] sm:$0xff] }
 0x6bb   : > { %6794 = vmatmul.mubr.f32.gmra.mrb[70].mxu0 %v26630_v23 }
 0x6bc   : > { %6799 = vmatprep.mubr.f32.mxu0 %v25415_v41 }
 0x6bd   : > { %14987 = vmatmul.mubr.f32.gmra.mrb[24].mxu1 %v25911_v11  ;;  %v26643_v11 = vld [vmem:[#allocation390_spill] sm:$0xff] }
 0x6be   : > { %14989 = vmatprep.mubr.f32.mxu1 %v19706_v46  ;;  %v26642_v46 = vld [vmem:[#allocation381_spill] sm:$0xff] }
 0x6bf   : > { %6801 = vmatmul.mubr.f32.gmra.mrb[72].mxu0 %v26631_v30 }
 0x6c0   : > { %6806 = vmatprep.mubr.f32.mxu0 %v25415_v41 }
 0x6c1   : > { %14990 = vmatmul.mubr.f32.gmra.mrb[26].mxu1 %v19749_v57  ;;  %v26645_v57 = vld [vmem:[#allocation402_spill] sm:$0xff] }
 0x6c2   : > { %14992 = vmatprep.mubr.f32.mxu1 %v19773_v28  ;;  %v26644_v28 = vld [vmem:[#allocation396_spill] sm:$0xff] }
 0x6c3   : > { %6808 = vmatmul.mubr.f32.gmra.mrb[74].mxu0 %v26632_v40 }
 0x6c4   : > { %6813 = vmatprep.mubr.f32.mxu0 %v25415_v41 }
 0x6c5   : > { %14993 = vmatmul.mubr.f32.gmra.mrb[28].mxu1 %v26640_v52  ;;  %v26647_v52 = vld [vmem:[#allocation411_spill] sm:$0xff] }
 0x6c6   : > { %14995 = vmatprep.mubr.f32.mxu1 %v26641_v14  ;;  %v26646_v14 = vld [vmem:[#allocation405_spill] sm:$0xff] }
 0x6c7   : > { %6815 = vmatmul.mubr.f32.gmra.mrb[76].mxu0 %v26633_v59 }
 0x6c8   : > { %6820 = vmatprep.mubr.f32.mxu0 %v25415_v41 }
 0x6c9   : > { %14996 = vmatmul.mubr.f32.gmra.mrb[30].mxu1 %v26642_v46  ;;  %v26649_v46 = vld [vmem:[#allocation426_spill] sm:$0xff] }
 0x6ca   : > { %14998 = vmatprep.mubr.f32.mxu1 %v26643_v11  ;;  %v26648_v11 = vld [vmem:[#allocation420_spill] sm:$0xff] }
 0x6cb   : > { %6822 = vmatmul.mubr.f32.gmra.mrb[78].mxu0 %v26634_v19 }
 0x6cc   : > { %6827 = vmatprep.mubr.f32.mxu0 %v25415_v41 }
 0x6cd   : > { %14999 = vmatmul.mubr.f32.gmra.mrb[32].mxu1 %v26644_v28  ;;  %v26651_v28 = vld [vmem:[#allocation435_spill] sm:$0xff] }
 0x6ce   : > { %15001 = vmatprep.mubr.f32.mxu1 %v26645_v57  ;;  %v26650_v57 = vld [vmem:[#allocation432_spill] sm:$0xff] }
 0x6cf   : > { %6829 = vmatmul.mubr.f32.gmra.mrb[80].mxu0 %v26635_v35 }
 0x6d0   : > { %6834 = vmatprep.mubr.f32.mxu0 %v25415_v41 }
 0x6d1   : > { %15002 = vmatmul.mubr.f32.gmra.mrb[34].mxu1 %v26646_v14  ;;  %v26653_v14 = vld [vmem:[#allocation450_spill] sm:$0xff] }
 0x6d2   : > { %15004 = vmatprep.mubr.f32.mxu1 %v26647_v52  ;;  %v26652_v52 = vld [vmem:[#allocation441_spill] sm:$0xff] }
 0x6d3   : > { %6836 = vmatmul.mubr.f32.gmra.mrb[82].mxu0 %v26636_v32 }
 0x6d4   : > { %6841 = vmatprep.mubr.f32.mxu0 %v25415_v41 }
 0x6d5   : > { %15005 = vmatmul.mubr.f32.gmra.mrb[36].mxu1 %v26648_v11  ;;  %v26655_v11 = vld [vmem:[#allocation462_spill] sm:$0xff] }
 0x6d6   : > { %15007 = vmatprep.mubr.f32.mxu1 %v26649_v46  ;;  %v26654_v46 = vld [vmem:[#allocation456_spill] sm:$0xff] }
 0x6d7   : > { %6843 = vmatmul.mubr.f32.gmra.mrb[84].mxu0 %v26467_v47 }
 0x6d8   : > { %6848 = vmatprep.mubr.f32.mxu0 %v25415_v41 }
 0x6d9   : > { %15008 = vmatmul.mubr.f32.gmra.mrb[38].mxu1 %v26650_v57  ;;  %v26657_v57 = vld [vmem:[#allocation474_spill] sm:$0xff] }
 0x6da   : > { %15010 = vmatprep.mubr.f32.mxu1 %v26651_v28  ;;  %v26656_v28 = vld [vmem:[#allocation464_spill] sm:$0xff] }
 0x6db   : > { %6850 = vmatmul.mubr.f32.gmra.mrb[86].mxu0 %v26470_v16 }
 0x6dc   : > { %6855 = vmatprep.mubr.f32.mxu0 %v25415_v41 }
 0x6dd   : > { %15011 = vmatmul.mubr.f32.gmra.mrb[40].mxu1 %v26652_v52  ;;  %v26659_v52 = vld [vmem:[#allocation486_spill] sm:$0xff] }
 0x6de   : > { %15013 = vmatprep.mubr.f32.mxu1 %v26653_v14  ;;  %v26658_v14 = vld [vmem:[#allocation480_spill] sm:$0xff] }
 0x6df   : > { %6857 = vmatmul.mubr.f32.gmra.mrb[88].mxu0 %v26637_v1 }
 0x6e0   : > { %6862 = vmatprep.mubr.f32.mxu0 %v25415_v41 }
 0x6e1   : > { %15014 = vmatmul.mubr.f32.gmra.mrb[42].mxu1 %v26654_v46  ;;  %v26661_v46 = vld [vmem:[#allocation4_spill] sm:$0xff] }
 0x6e2   : > { %15016 = vmatprep.mubr.f32.mxu1 %v26655_v11  ;;  %v26660_v11 = vld [vmem:[#allocation492_spill] sm:$0xff] }
 0x6e3   : > { %6864 = vmatmul.mubr.f32.gmra.mrb[90].mxu0 %v26638_v36 }
 0x6e4   : > { %6869 = vmatprep.mubr.f32.mxu0 %v25415_v41 }
 0x6e5   : > { %15017 = vmatmul.mubr.f32.gmra.mrb[44].mxu1 %v26656_v28  ;;  %v26663_v28 = vld [vmem:[#allocation7_spill] sm:$0xff] }
 0x6e6   : > { %15019 = vmatprep.mubr.f32.mxu1 %v26657_v57  ;;  %v26662_v57 = vld [vmem:[#allocation5_spill] sm:$0xff] }
 0x6e7   : > { %6871 = vmatmul.mubr.f32.gmra.mrb[92].mxu0 %v26639_v61 }
 0x6e8   : > { %6876 = vmatprep.mubr.f32.mxu0 %v25415_v41 }
 0x6e9   : > { %15020 = vmatmul.mubr.f32.gmra.mrb[46].mxu1 %v26658_v14  ;;  %v26665_v14 = vld [vmem:[#allocation9_spill] sm:$0xff] }
 0x6ea   : > { %15022 = vmatprep.mubr.f32.mxu1 %v26659_v52  ;;  %v26664_v52 = vld [vmem:[#allocation8_spill] sm:$0xff] }
 0x6eb   : > { %6878 = vmatmul.mubr.f32.gmra.mrb[94].mxu0 %v26291_v3 }
 0x6ec   : > { %6883 = vmatprep.mubr.f32.mxu0 %v25415_v41 }
 0x6ed   : > { %15023 = vmatmul.mubr.f32.gmra.mrb[48].mxu1 %v26660_v11  ;;  %v26667_v11 = vld [vmem:[#allocation39_spill] sm:$0xff] }
 0x6ee   : > { %15035 = vmatprep.mubr.f32.mxu1 %v26661_v46  ;;  %v26666_v46 = vld [vmem:[#allocation11_spill] sm:$0xff] }
 0x6ef   : > { %6885 = vmatmul.mubr.f32.gmra.mrb[96].mxu0 %v26292_v24 }
 0x6f0   : > { %6890 = vmatprep.mubr.f32.mxu0 %v25415_v41 }
 0x6f1   : > { %15036 = vmatmul.mubr.f32.vlgmr.msra.gmra.mrb[204].mxu1 %v26662_v57  ;;  %v26669_v57 = vld [vmem:[#allocation45_spill] sm:$0xff] }
 0x6f2   : > { %15038 = vmatprep.mubr.f32.mxu1 %v26663_v28  ;;  %v26668_v28 = vld [vmem:[#allocation44_spill] sm:$0xff] }
 0x6f3   : > { %6892 = vmatmul.mubr.f32.gmra.mrb[98].mxu0 %v26294_v22 }
 0x6f4   : > { %6897 = vmatprep.mubr.f32.mxu0 %v25415_v41 }
 0x6f5   : > { %15039 = vmatmul.mubr.f32.gmra.mrb[206].mxu1 %v26664_v52  ;;  %v26671_v52 = vld [vmem:[#allocation242_spill] sm:$0xff] }
 0x6f6   : > { %15041 = vmatprep.mubr.f32.mxu1 %v26665_v14  ;;  %v26670_v14 = vld [vmem:[#allocation14_spill] sm:$0xff] }
 0x6f7   : > { %6899 = vmatmul.mubr.f32.gmra.mrb[100].mxu0 %v26295_v62  ;;  %v1826_v17 = vadd.f32 %v26671_v52, %v26670_v14  ;;  %v26674_v62 = vld [vmem:[#allocation54_spill] sm:$0xff]  ;;  %v26675_v52 = vld [vmem:[#allocation516_spill] sm:$0xff] }
 0x6f8   : > { %6904 = vmatprep.mubr.f32.mxu0 %v25415_v41 }
 0x6f9   : > { %15042 = vmatmul.mubr.f32.gmra.mrb[208].mxu1 %v26666_v46  ;;  %v26672_v46 = vld [vmem:[#allocation52_spill] sm:$0xff] }
 0x6fa   : > { %15044 = vmatprep.mubr.f32.mxu1 %v26667_v11 }
 0x6fb   : > { %6906 = vmatmul.mubr.f32.gmra.mrb[102].mxu0 %v19082_v56  ;;  %v26673_v56 = vld [vmem:[#allocation243_spill] sm:$0xff] }
 0x6fc   : > { %6911 = vmatprep.mubr.f32.mxu0 %v25415_v41  ;;  %v1828_v13 = vadd.f32 %v26673_v56, %v26670_v14  ;;  %v26677_v56 = vld [vmem:[#allocation58_spill] sm:$0xff] }
 0x6fd   : > { %15045 = vmatmul.mubr.f32.gmra.mrb[210].mxu1 %v26668_v28 }
 0x6fe   : > { %15047 = vmatprep.mubr.f32.mxu1 %v26669_v57 }
 0x6ff   : > { %6913 = vmatmul.mubr.f32.gmra.mrb[104].mxu0 %v19093_v27 }
 0x700   : > { %6918 = vmatprep.mubr.f32.mxu0 %v25415_v41 }
 0x701   : > { %15048 = vmatmul.mubr.f32.gmra.mrb[212].mxu1 %v26672_v46  ;;  %v26676_v46 = vld [vmem:[#allocation247_spill] sm:$0xff] }
 0x702   : > { %v6550_v11 = vpop.f32.mrb[0].mxu0  ;;  %15050 = vmatprep.mubr.f32.mxu1 %v26674_v62  ;;  %v1837_v27 = vadd.f32 %v26676_v46, %v26675_v52  ;;  %v26678_v62 = vld [vmem:[#allocation248_spill] sm:$0xff] }
 0x703   : > { %v15291_v28 = vadd.f32 %v6550_v11, %v1826_v17  ;;  %v6552_v22 = vpop.f32.mrb[1].mxu0  ;;  %6920 = vmatmul.mubr.f32.gmra.mrb[106].mxu0 %v19113_v44  ;;  %v1839_v11 = vadd.f32 %v26678_v62, %v26675_v52  ;;  %v26681_v46 = vld [vmem:[#allocation252_spill] sm:$0xff]  ;;  %v26683_v62 = vld [vmem:[#allocation253_spill] sm:$0xff] }
 0x704   : > { %v15293_v57 = vadd.f32 %v6552_v22, %v1828_v13  ;;  %6925 = vmatprep.mubr.f32.mxu0 %v25415_v41  ;;  %v26679_v13 = vld [vmem:[#allocation62_spill] sm:$0xff] }
 0x705   : > { %12103 = vst [vmem:[%s22102_s12] sm:$0xff] %v15291_v28  ;;  %15051 = vmatmul.mubr.f32.gmra.mrb[214].mxu1 %v26677_v56  ;;  %v26680_v28 = vld [vmem:[#allocation515_spill] sm:$0xff] }
 0x706   : > { %12104 = vst [vmem:[%s22102_s12 + $0x8] sm:$0xff] %v15293_v57  ;;  %v6557_v17 = vpop.f32.mrb[2].mxu0  ;;  %15053 = vmatprep.mubr.f32.mxu1 %v26679_v13  ;;  %v1848_v56 = vadd.f32 %v26681_v46, %v26680_v28  ;;  %v26682_v57 = vld [vmem:[#allocation66_spill] sm:$0xff]  ;;  %v1850_v13 = vadd.f32 %v26683_v62, %v26680_v28 }
 0x707   : > { %v15295_v22 = vadd.f32 %v6557_v17, %v1837_v27  ;;  %v6559_v14 = vpop.f32.mrb[3].mxu0  ;;  %6927 = vmatmul.mubr.f32.gmra.mrb[108].mxu0 %v25881_v25  ;;  %v26684_v27 = vld [vmem:[#allocation72_spill] sm:$0xff] }
 0x708   : > { %v15297_v44 = vadd.f32 %v6559_v14, %v1839_v11  ;;  %6932 = vmatprep.mubr.f32.mxu0 %v25415_v41  ;;  %v26685_v11 = vld [vmem:[#allocation517_spill] sm:$0xff] }
 0x709   : > { %12106 = vst [vmem:[%s22102_s12 + $0x18] sm:$0xff] %v15295_v22  ;;  %15054 = vmatmul.mubr.f32.gmra.mrb[216].mxu1 %v26682_v57  ;;  %v26686_v22 = vld [vmem:[#allocation258_spill] sm:$0xff]  ;;  %v26687_v57 = vld [vmem:[#allocation73_spill] sm:$0xff] }
 0x70a   : > { %12107 = vst [vmem:[%s22102_s12 + $0x20] sm:$0xff] %v15297_v44  ;;  %v6564_v34 = vpop.f32.mrb[4].mxu0  ;;  %15056 = vmatprep.mubr.f32.mxu1 %v26684_v27  ;;  %v1859_v46 = vadd.f32 %v26686_v22, %v26685_v11  ;;  %v22128_v44 = vpop.permute.xlu0 %939  ;;  %v26689_v27 = vld [vmem:[#allocation78_spill] sm:$0xff] }
 0x70b   : > { %v15299_v17 = vadd.f32 %v6564_v34, %v1848_v56  ;;  %v6566_v52 = vpop.f32.mrb[5].mxu0  ;;  %6934 = vmatmul.mubr.f32.gmra.mrb[110].mxu0 %v19161_v39  ;;  %v26688_v34 = vld [vmem:[#allocation259_spill] sm:$0xff] }
 0x70c   : > { %v15301_v14 = vadd.f32 %v6566_v52, %v1850_v13  ;;  %6939 = vmatprep.mubr.f32.mxu0 %v25415_v41  ;;  %v1861_v56 = vadd.f32 %v26688_v34, %v26685_v11 }
 0x70d   : > { %12109 = vst [vmem:[%s22102_s12 + $0x30] sm:$0xff] %v15299_v17  ;;  %15057 = vmatmul.mubr.f32.gmra.mrb[218].mxu1 %v26687_v57  ;;  %v26690_v17 = vld [vmem:[#allocation263_spill] sm:$0xff]  ;;  %v26691_v57 = vld [vmem:[#allocation81_spill] sm:$0xff] }
 0x70e   : > { %12110 = vst [vmem:[%s22102_s12 + $0x38] sm:$0xff] %v15301_v14  ;;  %v6571_v62 = vpop.f32.mrb[6].mxu0  ;;  %15059 = vmatprep.mubr.f32.mxu1 %v26689_v27  ;;  %v1870_v22 = vadd.f32 %v26690_v17, %v22128_v44  ;;  %v22140_v14 = vpop.permute.xlu1 %944 }
 0x70f   : > { %v15303_v28 = vadd.f32 %v6571_v62, %v1859_v46  ;;  %v6573_v52 = vpop.f32.mrb[7].mxu0  ;;  %6941 = vmatmul.mubr.f32.gmra.mrb[112].mxu0 %v19181_v43  ;;  %v26692_v46 = vld [vmem:[#allocation264_spill] sm:$0xff] }
 0x710   : > { %v15305_v13 = vadd.f32 %v6573_v52, %v1861_v56  ;;  %6946 = vmatprep.mubr.f32.mxu0 %v25415_v41  ;;  %v1872_v62 = vadd.f32 %v26692_v46, %v22128_v44  ;;  %v26693_v52 = vld [vmem:[#allocation267_spill] sm:$0xff] }
 0x711   : > { %12112 = vst [vmem:[%s22102_s12 + $0x48] sm:$0xff] %v15303_v28  ;;  %15060 = vmatmul.mubr.f32.gmra.mrb[220].mxu1 %v26691_v57  ;;  %v1881_v17 = vadd.f32 %v26693_v52, %v22140_v14 }
 0x712   : > { %12113 = vst [vmem:[%s22102_s12 + $0x50] sm:$0xff] %v15305_v13  ;;  %v6578_v34 = vpop.f32.mrb[8].mxu0  ;;  %15062 = vmatprep.mubr.f32.mxu1 %v26614_v63  ;;  %v22152_v13 = vpop.permute.xlu0 %949  ;;  %v26694_v63 = vld [vmem:[#allocation270_spill] sm:$0xff] }
 0x713   : > { %v15307_v27 = vadd.f32 %v6578_v34, %v1870_v22  ;;  %v6580_v56 = vpop.f32.mrb[9].mxu0  ;;  %6948 = vmatmul.mubr.f32.gmra.mrb[114].mxu0 %v19192_v51  ;;  %v1883_v22 = vadd.f32 %v26694_v63, %v22140_v14 }
 0x714   : > { %v15309_v28 = vadd.f32 %v6580_v56, %v1872_v62  ;;  %6953 = vmatprep.mubr.f32.mxu0 %v25415_v41  ;;  %v22164_v56 = vpop.permute.xlu1 %954 }
 0x715   : > { %12115 = vst [vmem:[%s22102_s12 + $0x60] sm:$0xff] %v15307_v27  ;;  %15063 = vmatmul.mubr.f32.gmra.mrb[222].mxu1 %v26394_v54  ;;  %v26695_v54 = vld [vmem:[#allocation272_spill] sm:$0xff] }
 0x716   : > { %12116 = vst [vmem:[%s22102_s12 + $0x68] sm:$0xff] %v15309_v28  ;;  %v6585_v57 = vpop.f32.mrb[10].mxu0  ;;  %15065 = vmatprep.mubr.f32.mxu1 %v26615_v60  ;;  %v1892_v27 = vadd.f32 %v26695_v54, %v22152_v13  ;;  %v26696_v60 = vld [vmem:[#allocation276_spill] sm:$0xff] }
 0x717   : > { %v15311_v34 = vadd.f32 %v6585_v57, %v1881_v17  ;;  %v6587_v46 = vpop.f32.mrb[11].mxu0  ;;  %6955 = vmatmul.mubr.f32.gmra.mrb[116].mxu0 %v19217_v7  ;;  %v1894_v52 = vadd.f32 %v26696_v60, %v22152_v13 }
 0x718   : > { %v15313_v62 = vadd.f32 %v6587_v46, %v1883_v22  ;;  %6960 = vmatprep.mubr.f32.mxu0 %v25415_v41 }
 0x719   : > { %12118 = vst [vmem:[%s22102_s12 + $0x78] sm:$0xff] %v15311_v34  ;;  %15066 = vmatmul.mubr.f32.gmra.mrb[224].mxu1 %v26616_v29  ;;  %v26697_v29 = vld [vmem:[#allocation277_spill] sm:$0xff]  ;;  %v22176_v34 = vpop.permute.xlu0 %959 }
 0x71a   : > { %12119 = vst [vmem:[%s22102_s12 + $0x80] sm:$0xff] %v15313_v62  ;;  %v6592_v28 = vpop.f32.mrb[12].mxu0  ;;  %15068 = vmatprep.mubr.f32.mxu1 %v26617_v33  ;;  %v1903_v22 = vadd.f32 %v26697_v29, %v22164_v56  ;;  %v26698_v33 = vld [vmem:[#allocation280_spill] sm:$0xff] }
 0x71b   : > { %v15315_v17 = vadd.f32 %v6592_v28, %v1892_v27  ;;  %v6594_v57 = vpop.f32.mrb[13].mxu0  ;;  %6962 = vmatmul.mubr.f32.gmra.mrb[118].mxu0 %v19250_v38  ;;  %v1905_v62 = vadd.f32 %v26698_v33, %v22164_v56 }
 0x71c   : > { %v15317_v63 = vadd.f32 %v6594_v57, %v1894_v52  ;;  %6967 = vmatprep.mubr.f32.mxu0 %v25415_v41  ;;  %v22188_v52 = vpop.permute.xlu1 %964 }
 0x71d   : > { %12121 = vst [vmem:[%s22102_s12 + $0x90] sm:$0xff] %v15315_v17  ;;  %15069 = vmatmul.mubr.f32.gmra.mrb[226].mxu1 %v26618_v6  ;;  %v26699_v6 = vld [vmem:[#allocation283_spill] sm:$0xff]  ;;  %v22200_v33 = vpop.permute.xlu0 %969 }
 0x71e   : > { %12122 = vst [vmem:[%s22102_s12 + $0x98] sm:$0xff] %v15317_v63  ;;  %v6599_v46 = vpop.f32.mrb[14].mxu0  ;;  %15071 = vmatprep.mubr.f32.mxu1 %v26619_v4  ;;  %v1914_v60 = vadd.f32 %v26699_v6, %v22176_v34  ;;  %v26700_v4 = vld [vmem:[#allocation284_spill] sm:$0xff] }
 0x71f   : > { %v15319_v54 = vadd.f32 %v6599_v46, %v1903_v22  ;;  %v6601_v27 = vpop.f32.mrb[15].mxu0  ;;  %6969 = vmatmul.mubr.f32.gmra.mrb[120].mxu0 %v19276_v48  ;;  %v1916_v57 = vadd.f32 %v26700_v4, %v22176_v34 }
 0x720   : > { %v15321_v28 = vadd.f32 %v6601_v27, %v1905_v62  ;;  %6974 = vmatprep.mubr.f32.mxu0 %v25415_v41 }
 0x721   : > { %12124 = vst [vmem:[%s22102_s12 + $0xa8] sm:$0xff] %v15319_v54  ;;  %15072 = vmatmul.mubr.f32.gmra.mrb[228].mxu1 %v26620_v21  ;;  %v26701_v21 = vld [vmem:[#allocation289_spill] sm:$0xff] }
 0x722   : > { %12125 = vst [vmem:[%s22102_s12 + $0xb0] sm:$0xff] %v15321_v28  ;;  %v6606_v17 = vpop.f32.mrb[16].mxu0  ;;  %15074 = vmatprep.mubr.f32.mxu1 %v26621_v53  ;;  %v1925_v46 = vadd.f32 %v26701_v21, %v22188_v52  ;;  %v26702_v53 = vld [vmem:[#allocation290_spill] sm:$0xff] }
 0x723   : > { %v15323_v63 = vadd.f32 %v6606_v17, %v1914_v60  ;;  %v6608_v29 = vpop.f32.mrb[17].mxu0  ;;  %6976 = vmatmul.mubr.f32.gmra.mrb[122].mxu0 %v19302_v49  ;;  %v1927_v54 = vadd.f32 %v26702_v53, %v22188_v52  ;;  %v22212_v17 = vpop.permute.xlu1 %974 }
 0x724   : > { %v15325_v22 = vadd.f32 %v6608_v29, %v1916_v57  ;;  %6981 = vmatprep.mubr.f32.mxu0 %v25415_v41 }
 0x725   : > { %12127 = vst [vmem:[%s22102_s12 + $0xc0] sm:$0xff] %v15323_v63  ;;  %15075 = vmatmul.mubr.f32.gmra.mrb[230].mxu1 %v26622_v20  ;;  %v26703_v20 = vld [vmem:[#allocation293_spill] sm:$0xff] }
 0x726   : > { %12128 = vst [vmem:[%s22102_s12 + $0xc8] sm:$0xff] %v15325_v22  ;;  %v6613_v62 = vpop.f32.mrb[18].mxu0  ;;  %15077 = vmatprep.mubr.f32.mxu1 %v26623_v9  ;;  %v1936_v60 = vadd.f32 %v26703_v20, %v22200_v33  ;;  %v26704_v9 = vld [vmem:[#allocation296_spill] sm:$0xff] }
 0x727   : > { %v15327_v27 = vadd.f32 %v6613_v62, %v1925_v46  ;;  %v6615_v28 = vpop.f32.mrb[19].mxu0  ;;  %6983 = vmatmul.mubr.f32.gmra.mrb[124].mxu0 %v19315_v0  ;;  %v1938_v57 = vadd.f32 %v26704_v9, %v22200_v33  ;;  %v22224_v46 = vpop.permute.xlu0 %979 }
 0x728   : > { %v15329_v6 = vadd.f32 %v6615_v28, %v1927_v54  ;;  %6988 = vmatprep.mubr.f32.mxu0 %v25415_v41  ;;  %v22236_v20 = vpop.permute.xlu1 %984 }
 0x729   : > { %12130 = vst [vmem:[%s22102_s12 + $0xd8] sm:$0xff] %v15327_v27  ;;  %15078 = vmatmul.mubr.f32.gmra.mrb[232].mxu1 %v26624_v2  ;;  %v26705_v2 = vld [vmem:[#allocation298_spill] sm:$0xff] }
 0x72a   : > { %12131 = vst [vmem:[%s22102_s12 + $0xe0] sm:$0xff] %v15329_v6  ;;  %v6620_v4 = vpop.f32.mrb[20].mxu0  ;;  %15080 = vmatprep.mubr.f32.mxu1 %v26625_v31  ;;  %v1947_v21 = vadd.f32 %v26705_v2, %v22212_v17  ;;  %v26706_v31 = vld [vmem:[#allocation302_spill] sm:$0xff] }
 0x72b   : > { %v15331_v63 = vadd.f32 %v6620_v4, %v1936_v60  ;;  %v6622_v29 = vpop.f32.mrb[21].mxu0  ;;  %6990 = vmatmul.mubr.f32.gmra.mrb[126].mxu0 %v19340_v15  ;;  %v1949_v53 = vadd.f32 %v26706_v31, %v22212_v17 }
 0x72c   : > { %v15333_v22 = vadd.f32 %v6622_v29, %v1938_v57  ;;  %6995 = vmatprep.mubr.f32.mxu0 %v25415_v41 }
 0x72d   : > { %12133 = vst [vmem:[%s22102_s12 + $0xf0] sm:$0xff] %v15331_v63  ;;  %15081 = vmatmul.mubr.f32.gmra.mrb[234].mxu1 %v26626_v55  ;;  %v26707_v55 = vld [vmem:[#allocation303_spill] sm:$0xff] }
 0x72e   : > { %12134 = vst [vmem:[%s22102_s12 + $0xf8] sm:$0xff] %v15333_v22  ;;  %v6627_v62 = vpop.f32.mrb[22].mxu0  ;;  %15083 = vmatprep.mubr.f32.mxu1 %v26627_v45  ;;  %v1958_v6 = vadd.f32 %v26707_v55, %v22224_v46  ;;  %v26708_v45 = vld [vmem:[#allocation306_spill] sm:$0xff]  ;;  %v22248_v22 = vpop.permute.xlu0 %989 }
 0x72f   : > { %v15335_v54 = vadd.f32 %v6627_v62, %v1947_v21  ;;  %v6629_v27 = vpop.f32.mrb[23].mxu0  ;;  %6997 = vmatmul.mubr.f32.gmra.mrb[128].mxu0 %v19374_v8  ;;  %v1960_v4 = vadd.f32 %v26708_v45, %v22224_v46 }
 0x730   : > { %v15337_v28 = vadd.f32 %v6629_v27, %v1949_v53  ;;  %7002 = vmatprep.mubr.f32.mxu0 %v25415_v41  ;;  %v22260_v27 = vpop.permute.xlu1 %994 }
 0x731   : > { %12136 = vst [vmem:[%s22102_s12 + $0x108] sm:$0xff] %v15335_v54  ;;  %15084 = vmatmul.mubr.f32.gmra.mrb[236].mxu1 %v26628_v10  ;;  %v26709_v10 = vld [vmem:[#allocation309_spill] sm:$0xff] }
 0x732   : > { %12137 = vst [vmem:[%s22102_s12 + $0x110] sm:$0xff] %v15337_v28  ;;  %v6634_v60 = vpop.f32.mrb[24].mxu0  ;;  %15086 = vmatprep.mubr.f32.mxu1 %v26629_v50  ;;  %v1969_v29 = vadd.f32 %v26709_v10, %v22236_v20  ;;  %v26710_v50 = vld [vmem:[#allocation310_spill] sm:$0xff] }
 0x733   : > { %v15339_v9 = vadd.f32 %v6634_v60, %v1958_v6  ;;  %v6636_v57 = vpop.f32.mrb[25].mxu0  ;;  %7004 = vmatmul.mubr.f32.gmra.mrb[130].mxu0 %v19398_v26  ;;  %v1971_v21 = vadd.f32 %v26710_v50, %v22236_v20 }
 0x734   : > { %v15341_v63 = vadd.f32 %v6636_v57, %v1960_v4  ;;  %7009 = vmatprep.mubr.f32.mxu0 %v25415_v41 }
 0x735   : > { %12139 = vst [vmem:[%s22102_s12 + $0x120] sm:$0xff] %v15339_v9  ;;  %15087 = vmatmul.mubr.f32.gmra.mrb[238].mxu1 %v26630_v23  ;;  %v26711_v23 = vld [vmem:[#allocation314_spill] sm:$0xff]  ;;  %v22272_v9 = vpop.permute.xlu0 %999 }
 0x736   : > { %12140 = vst [vmem:[%s22102_s12 + $0x128] sm:$0xff] %v15341_v63  ;;  %v6641_v2 = vpop.f32.mrb[26].mxu0  ;;  %15089 = vmatprep.mubr.f32.mxu1 %v26631_v30  ;;  %v1980_v54 = vadd.f32 %v26711_v23, %v22248_v22  ;;  %v26712_v30 = vld [vmem:[#allocation316_spill] sm:$0xff] }
 0x737   : > { %v15343_v62 = vadd.f32 %v6641_v2, %v1969_v29  ;;  %v6643_v31 = vpop.f32.mrb[27].mxu0  ;;  %7011 = vmatmul.mubr.f32.gmra.mrb[132].mxu0 %v26523_v42  ;;  %v1982_v55 = vadd.f32 %v26712_v30, %v22248_v22 }
 0x738   : > { %v15345_v53 = vadd.f32 %v6643_v31, %v1971_v21  ;;  %7016 = vmatprep.mubr.f32.mxu0 %v25415_v41  ;;  %v22284_v21 = vpop.permute.xlu1 %1004 }
 0x739   : > { %12142 = vst [vmem:[%s22102_s12 + $0x138] sm:$0xff] %v15343_v62  ;;  %15090 = vmatmul.mubr.f32.gmra.mrb[240].mxu1 %v26632_v40  ;;  %v26713_v40 = vld [vmem:[#allocation319_spill] sm:$0xff]  ;;  %v22296_v30 = vpop.permute.xlu0 %1009 }
 0x73a   : > { %12143 = vst [vmem:[%s22102_s12 + $0x140] sm:$0xff] %v15345_v53  ;;  %v6648_v28 = vpop.f32.mrb[28].mxu0  ;;  %15092 = vmatprep.mubr.f32.mxu1 %v26633_v59  ;;  %v1991_v4 = vadd.f32 %v26713_v40, %v22260_v27  ;;  %v26714_v59 = vld [vmem:[#allocation323_spill] sm:$0xff] }
 0x73b   : > { %v15347_v6 = vadd.f32 %v6648_v28, %v1980_v54  ;;  %v6650_v60 = vpop.f32.mrb[29].mxu0  ;;  %7018 = vmatmul.mubr.f32.gmra.mrb[134].mxu0 %v19435_v5  ;;  %v1993_v63 = vadd.f32 %v26714_v59, %v22260_v27 }
 0x73c   : > { %v15349_v45 = vadd.f32 %v6650_v60, %v1982_v55  ;;  %7023 = vmatprep.mubr.f32.mxu0 %v25415_v41 }
 0x73d   : > { %12145 = vst [vmem:[%s22102_s12 + $0x150] sm:$0xff] %v15347_v6  ;;  %15093 = vmatmul.mubr.f32.gmra.mrb[242].mxu1 %v26634_v19  ;;  %v26715_v19 = vld [vmem:[#allocation325_spill] sm:$0xff] }
 0x73e   : > { %12146 = vst [vmem:[%s22102_s12 + $0x158] sm:$0xff] %v15349_v45  ;;  %v6655_v57 = vpop.f32.mrb[30].mxu0  ;;  %15095 = vmatprep.mubr.f32.mxu1 %v26635_v35  ;;  %v2002_v50 = vadd.f32 %v26715_v19, %v22272_v9  ;;  %v26716_v35 = vld [vmem:[#allocation329_spill] sm:$0xff] }
 0x73f   : > { %v15351_v10 = vadd.f32 %v6655_v57, %v1991_v4  ;;  %v6657_v29 = vpop.f32.mrb[31].mxu0  ;;  %7025 = vmatmul.mubr.f32.gmra.mrb[136].mxu0 %v19460_v37  ;;  %v2004_v31 = vadd.f32 %v26716_v35, %v22272_v9  ;;  %v22308_v57 = vpop.permute.xlu1 %1014 }
 0x740   : > { %v15353_v2 = vadd.f32 %v6657_v29, %v1993_v63  ;;  %7030 = vmatprep.mubr.f32.mxu0 %v25415_v41 }
 0x741   : > { %12148 = vst [vmem:[%s22102_s12 + $0x168] sm:$0xff] %v15351_v10  ;;  %15096 = vmatmul.mubr.f32.gmra.mrb[244].mxu1 %v26636_v32  ;;  %v26717_v32 = vld [vmem:[#allocation331_spill] sm:$0xff] }
 0x742   : > { %12149 = vst [vmem:[%s22102_s12 + $0x170] sm:$0xff] %v15353_v2  ;;  %v6662_v62 = vpop.f32.mrb[32].mxu0  ;;  %15098 = vmatprep.mubr.f32.mxu1 %v26467_v47  ;;  %v2013_v28 = vadd.f32 %v26717_v32, %v22284_v21  ;;  %v26718_v47 = vld [vmem:[#allocation334_spill] sm:$0xff] }
 0x743   : > { %v15355_v53 = vadd.f32 %v6662_v62, %v2002_v50  ;;  %v6664_v23 = vpop.f32.mrb[33].mxu0  ;;  %7032 = vmatmul.mubr.f32.gmra.mrb[138].mxu0 %v19494_v12  ;;  %v2015_v6 = vadd.f32 %v26718_v47, %v22284_v21  ;;  %v22320_v50 = vpop.permute.xlu0 %1019 }
 0x744   : > { %v15357_v54 = vadd.f32 %v6664_v23, %v2004_v31  ;;  %7037 = vmatprep.mubr.f32.mxu0 %v25415_v41  ;;  %v26723_v23 = vld [vmem:[#allocation315_spill] sm:$0xff] }
 0x745   : > { %12151 = vst [vmem:[%s22102_s12 + $0x180] sm:$0xff] %v15355_v53  ;;  %15099 = vmatmul.mubr.f32.gmra.mrb[246].mxu1 %v26470_v16  ;;  %v26719_v16 = vld [vmem:[#allocation338_spill] sm:$0xff] }
 0x746   : > { %12152 = vst [vmem:[%s22102_s12 + $0x188] sm:$0xff] %v15357_v54  ;;  %v6669_v55 = vpop.f32.mrb[34].mxu0  ;;  %15101 = vmatprep.mubr.f32.mxu1 %v26637_v1  ;;  %v2024_v4 = vadd.f32 %v26719_v16, %v22296_v30  ;;  %v26720_v1 = vld [vmem:[#allocation339_spill] sm:$0xff]  ;;  %v26728_v16 = vld [vmem:[#allocation321_spill] sm:$0xff] }
 0x747   : > { %v15359_v60 = vadd.f32 %v6669_v55, %v2013_v28  ;;  %v6671_v45 = vpop.f32.mrb[35].mxu0  ;;  %7039 = vmatmul.mubr.f32.gmra.mrb[140].mxu0 %v19518_v58  ;;  %v2026_v63 = vadd.f32 %v26720_v1, %v22296_v30  ;;  %v26725_v28 = vld [vmem:[#allocation212_spill] sm:$0xff]  ;;  %v22332_v55 = vpop.permute.xlu1 %1024 }
 0x748   : > { %v15361_v40 = vadd.f32 %v6671_v45, %v2015_v6  ;;  %7044 = vmatprep.mubr.f32.mxu0 %v25415_v41 }
 0x749   : > { %12154 = vst [vmem:[%s22102_s12 + $0x198] sm:$0xff] %v15359_v60  ;;  %15102 = vmatmul.mubr.f32.gmra.mrb[248].mxu1 %v26638_v36  ;;  %v26721_v36 = vld [vmem:[#allocation344_spill] sm:$0xff]  ;;  %v26727_v60 = vld [vmem:[#allocation213_spill] sm:$0xff] }
 0x74a   : > { %12155 = vst [vmem:[%s22102_s12 + $0x1a0] sm:$0xff] %v15361_v40  ;;  %v6676_v59 = vpop.f32.mrb[36].mxu0  ;;  %15104 = vmatprep.mubr.f32.mxu1 %v26639_v61  ;;  %v2035_v19 = vadd.f32 %v26721_v36, %v22308_v57  ;;  %v26722_v61 = vld [vmem:[#allocation346_spill] sm:$0xff] }
 0x74b   : > { %v15363_v10 = vadd.f32 %v6676_v59, %v2024_v4  ;;  %v6678_v29 = vpop.f32.mrb[37].mxu0  ;;  %7046 = vmatmul.mubr.f32.gmra.mrb[142].mxu0 %v19542_v18  ;;  %v2037_v35 = vadd.f32 %v26722_v61, %v22308_v57  ;;  %v26729_v59 = vld [vmem:[#allocation355_spill] sm:$0xff] }
 0x74c   : > { %v15365_v2 = vadd.f32 %v6678_v29, %v2026_v63  ;;  %7051 = vmatprep.mubr.f32.mxu0 %v25415_v41  ;;  %v2057_v1 = vadd.f32 %v26729_v59, %v22332_v55  ;;  %v26730_v63 = vld [vmem:[#allocation220_spill] sm:$0xff] }
 0x74d   : > { %12157 = vst [vmem:[%s22102_s12 + $0x1b0] sm:$0xff] %v15363_v10  ;;  %15105 = vmatmul.mubr.f32.gmra.mrb[250].mxu1 %v26291_v3  ;;  %v26724_v3 = vld [vmem:[#allocation349_spill] sm:$0xff]  ;;  %v22344_v10 = vpop.permute.xlu0 %1029 }
 0x74e   : > { %12158 = vst [vmem:[%s22102_s12 + $0x1b8] sm:$0xff] %v15365_v2  ;;  %v6683_v62 = vpop.f32.mrb[38].mxu0  ;;  %15107 = vmatprep.mubr.f32.mxu1 %v26292_v24  ;;  %v2046_v32 = vadd.f32 %v26724_v3, %v22320_v50  ;;  %v26726_v24 = vld [vmem:[#allocation353_spill] sm:$0xff]  ;;  %v26731_v2 = vld [vmem:[#allocation359_spill] sm:$0xff]  ;;  %v26735_v3 = vld [vmem:[#allocation226_spill] sm:$0xff] }
 0x74f   : > { %v15367_v31 = vadd.f32 %v6683_v62, %v2035_v19  ;;  %v6685_v53 = vpop.f32.mrb[39].mxu0  ;;  %7053 = vmatmul.mubr.f32.gmra.mrb[144].mxu0 %v26723_v23  ;;  %v2048_v6 = vadd.f32 %v26726_v24, %v22320_v50  ;;  %v2059_v36 = vadd.f32 %v26731_v2, %v22332_v55  ;;  %v26732_v19 = vld [vmem:[#allocation222_spill] sm:$0xff] }
 0x750   : > { %v15369_v54 = vadd.f32 %v6685_v53, %v2037_v35  ;;  %7058 = vmatprep.mubr.f32.mxu0 %v25415_v41  ;;  %v26733_v35 = vld [vmem:[#allocation330_spill] sm:$0xff]  ;;  %v26734_v53 = vld [vmem:[#allocation361_spill] sm:$0xff] }
 0x751   : > { %12160 = vst [vmem:[%s22102_s12 + $0x1c8] sm:$0xff] %v15367_v31  ;;  %15108 = vmatmul.mubr.f32.gmra.mrb[252].mxu1 %v26725_v28 }
 0x752   : > { %12161 = vst [vmem:[%s22102_s12 + $0x1d0] sm:$0xff] %v15369_v54  ;;  %v6690_v47 = vpop.f32.mrb[40].mxu0  ;;  %15110 = vmatprep.mubr.f32.mxu1 %v26727_v60  ;;  %v2068_v54 = vadd.f32 %v26734_v53, %v22344_v10 }
 0x753   : > { %v15371_v45 = vadd.f32 %v6690_v47, %v2046_v32  ;;  %v6692_v40 = vpop.f32.mrb[41].mxu0  ;;  %7060 = vmatmul.mubr.f32.gmra.mrb[146].mxu0 %v26728_v16  ;;  %v22356_v32 = vpop.permute.xlu1 %1034  ;;  %v26736_v47 = vld [vmem:[#allocation364_spill] sm:$0xff] }
 0x754   : > { %v15373_v4 = vadd.f32 %v6692_v40, %v2048_v6  ;;  %7065 = vmatprep.mubr.f32.mxu0 %v25415_v41  ;;  %v2070_v24 = vadd.f32 %v26736_v47, %v22344_v10  ;;  %v26743_v47 = vld [vmem:[#allocation345_spill] sm:$0xff] }
 0x755   : > { %12163 = vst [vmem:[%s22102_s12 + $0x1e0] sm:$0xff] %v15371_v45  ;;  %15111 = vmatmul.mubr.f32.gmra.mrb[254].mxu1 %v26730_v63  ;;  %v26737_v45 = vld [vmem:[#allocation336_spill] sm:$0xff] }
 0x756   : > { %12164 = vst [vmem:[%s22102_s12 + $0x1e8] sm:$0xff] %v15373_v4  ;;  %v6697_v29 = vpop.f32.mrb[42].mxu0  ;;  %15113 = vmatprep.mubr.f32.mxu1 %v26732_v19  ;;  %v26738_v4 = vld [vmem:[#allocation368_spill] sm:$0xff]  ;;  %v26740_v19 = vld [vmem:[#allocation342_spill] sm:$0xff] }
 0x757   : > { %v15375_v62 = vadd.f32 %v6697_v29, %v2057_v1  ;;  %v6699_v61 = vpop.f32.mrb[43].mxu0  ;;  %7067 = vmatmul.mubr.f32.gmra.mrb[148].mxu0 %v26733_v35  ;;  %v2079_v59 = vadd.f32 %v26738_v4, %v22356_v32  ;;  %v22368_v1 = vpop.permute.xlu0 %1039 }
 0x758   : > { %v15377_v31 = vadd.f32 %v6699_v61, %v2059_v36  ;;  %7072 = vmatprep.mubr.f32.mxu0 %v25415_v41 }
 0x759   : > { %12166 = vst [vmem:[%s22102_s12 + $0x1f8] sm:$0xff] %v15375_v62  ;;  %15114 = vmatmul.mubr.f32.gmra.mrb[0].mxu1 %v26735_v3 }
 0x75a   : > { %12167 = vst [vmem:[%s22102_s12 + $0x200] sm:$0xff] %v15377_v31  ;;  %v6704_v28 = vpop.f32.mrb[44].mxu0  ;;  %15116 = vmatprep.mubr.f32.mxu1 %v25881_v25  ;;  %v26739_v25 = vld [vmem:[#allocation369_spill] sm:$0xff]  ;;  %v22380_v31 = vpop.permute.xlu1 %1044 }
 0x75b   : > { %v15379_v6 = vadd.f32 %v6704_v28, %v2068_v54  ;;  %v6706_v60 = vpop.f32.mrb[45].mxu0  ;;  %7074 = vmatmul.mubr.f32.gmra.mrb[150].mxu0 %v26737_v45  ;;  %v2081_v29 = vadd.f32 %v26739_v25, %v22356_v32  ;;  %v22394_v4 = vpop.permute.xlu0 %1049  ;;  %v26746_v25 = vld [vmem:[#allocation351_spill] sm:$0xff] }
 0x75c   : > { %v15381_v40 = vadd.f32 %v6706_v60, %v2070_v24  ;;  %7079 = vmatprep.mubr.f32.mxu0 %v25415_v41  ;;  %v26745_v60 = vld [vmem:[#allocation383_spill] sm:$0xff] }
 0x75d   : > { %12169 = vst [vmem:[%s22102_s12 + $0x210] sm:$0xff] %v15379_v6  ;;  %15117 = vmatmul.mubr.f32.gmra.mrb[2].mxu1 %v19161_v39  ;;  %v26741_v39 = vld [vmem:[#allocation374_spill] sm:$0xff] }
 0x75e   : > { %12170 = vst [vmem:[%s22102_s12 + $0x218] sm:$0xff] %v15381_v40  ;;  %v6711_v63 = vpop.f32.mrb[46].mxu0  ;;  %15119 = vmatprep.mubr.f32.mxu1 %v19181_v43  ;;  %v2090_v61 = vadd.f32 %v26741_v39, %v22368_v1  ;;  %v26742_v43 = vld [vmem:[#allocation376_spill] sm:$0xff]  ;;  %v2103_v40 = vadd.f32 %v26745_v60, %v22380_v31  ;;  %v22406_v39 = vpop.permute.xlu1 %1054 }
 0x75f   : > { %v15383_v2 = vadd.f32 %v6711_v63, %v2079_v59  ;;  %v6713_v36 = vpop.f32.mrb[47].mxu0  ;;  %7081 = vmatmul.mubr.f32.gmra.mrb[152].mxu0 %v26740_v19  ;;  %v2092_v54 = vadd.f32 %v26742_v43, %v22368_v1  ;;  %v26749_v43 = vld [vmem:[#allocation360_spill] sm:$0xff] }
 0x760   : > { %v15385_v62 = vadd.f32 %v6713_v36, %v2081_v29  ;;  %7086 = vmatprep.mubr.f32.mxu0 %v25415_v41  ;;  %v26748_v36 = vld [vmem:[#allocation389_spill] sm:$0xff] }
 0x761   : > { %12172 = vst [vmem:[%s22102_s12 + $0x228] sm:$0xff] %v15383_v2  ;;  %15120 = vmatmul.mubr.f32.gmra.mrb[4].mxu1 %v19192_v51  ;;  %v26744_v51 = vld [vmem:[#allocation379_spill] sm:$0xff] }
 0x762   : > { %12173 = vst [vmem:[%s22102_s12 + $0x230] sm:$0xff] %v15385_v62  ;;  %v6718_v53 = vpop.f32.mrb[48].mxu0  ;;  %15122 = vmatprep.mubr.f32.mxu1 %v19217_v7  ;;  %v2101_v6 = vadd.f32 %v26744_v51, %v22380_v31  ;;  %v2114_v62 = vadd.f32 %v26748_v36, %v22394_v4  ;;  %v22418_v51 = vpop.permute.xlu0 %1059 }
 0x763   : > { %v15387_v3 = vadd.f32 %v6718_v53, %v2090_v61  ;;  %v6720_v28 = vpop.f32.mrb[49].mxu0  ;;  %7088 = vmatmul.mubr.f32.gmra.mrb[154].mxu0 %v26743_v47 }
 0x764   : > { %v15389_v24 = vadd.f32 %v6720_v28, %v2092_v54  ;;  %7093 = vmatprep.mubr.f32.mxu0 %v25415_v41  ;;  %v26751_v28 = vld [vmem:[#allocation394_spill] sm:$0xff] }
 0x765   : > { %12175 = vst [vmem:[%s22102_s12 + $0x240] sm:$0xff] %v15387_v3  ;;  %15123 = vmatmul.mubr.f32.gmra.mrb[6].mxu1 %v19250_v38  ;;  %v26747_v38 = vld [vmem:[#allocation385_spill] sm:$0xff] }
 0x766   : > { %12176 = vst [vmem:[%s22102_s12 + $0x248] sm:$0xff] %v15389_v24  ;;  %v6725_v7 = vpop.f32.mrb[50].mxu0  ;;  %15125 = vmatprep.mubr.f32.mxu1 %v19276_v48  ;;  %v2112_v2 = vadd.f32 %v26747_v38, %v22394_v4  ;;  %v2125_v24 = vadd.f32 %v26751_v28, %v22406_v39  ;;  %v22430_v38 = vpop.permute.xlu1 %1064 }
 0x767   : > { %v15391_v59 = vadd.f32 %v6725_v7, %v2101_v6  ;;  %v6727_v63 = vpop.f32.mrb[51].mxu0  ;;  %7095 = vmatmul.mubr.f32.gmra.mrb[156].mxu0 %v26746_v25 }
 0x768   : > { %v15393_v29 = vadd.f32 %v6727_v63, %v2103_v40  ;;  %7100 = vmatprep.mubr.f32.mxu0 %v25415_v41  ;;  %v26752_v40 = vld [vmem:[#allocation366_spill] sm:$0xff]  ;;  %v26754_v63 = vld [vmem:[#allocation399_spill] sm:$0xff] }
 0x769   : > { %12178 = vst [vmem:[%s22102_s12 + $0x258] sm:$0xff] %v15391_v59  ;;  %15126 = vmatmul.mubr.f32.gmra.mrb[8].mxu1 %v19302_v49  ;;  %v26750_v49 = vld [vmem:[#allocation391_spill] sm:$0xff] }
 0x76a   : > { %12179 = vst [vmem:[%s22102_s12 + $0x260] sm:$0xff] %v15393_v29  ;;  %v6732_v48 = vpop.f32.mrb[52].mxu0  ;;  %15128 = vmatprep.mubr.f32.mxu1 %v19315_v0  ;;  %v2123_v3 = vadd.f32 %v26750_v49, %v22406_v39  ;;  %v2136_v29 = vadd.f32 %v26754_v63, %v22418_v51  ;;  %v22442_v49 = vpop.permute.xlu0 %1069 }
 0x76b   : > { %v15395_v61 = vadd.f32 %v6732_v48, %v2112_v2  ;;  %v6734_v53 = vpop.f32.mrb[53].mxu0  ;;  %7102 = vmatmul.mubr.f32.gmra.mrb[158].mxu0 %v26749_v43 }
 0x76c   : > { %v15397_v54 = vadd.f32 %v6734_v53, %v2114_v62  ;;  %7107 = vmatprep.mubr.f32.mxu0 %v25415_v41  ;;  %v26755_v62 = vld [vmem:[#allocation372_spill] sm:$0xff]  ;;  %v26757_v53 = vld [vmem:[#allocation406_spill] sm:$0xff] }
 0x76d   : > { %12181 = vst [vmem:[%s22102_s12 + $0x270] sm:$0xff] %v15395_v61  ;;  %15129 = vmatmul.mubr.f32.gmra.mrb[10].mxu1 %v19340_v15  ;;  %v26753_v15 = vld [vmem:[#allocation398_spill] sm:$0xff] }
 0x76e   : > { %12182 = vst [vmem:[%s22102_s12 + $0x278] sm:$0xff] %v15397_v54  ;;  %v6739_v0 = vpop.f32.mrb[54].mxu0  ;;  %15131 = vmatprep.mubr.f32.mxu1 %v19374_v8  ;;  %v2134_v59 = vadd.f32 %v26753_v15, %v22418_v51  ;;  %v2147_v54 = vadd.f32 %v26757_v53, %v22430_v38  ;;  %v22454_v15 = vpop.permute.xlu1 %1074 }
 0x76f   : > { %v15399_v6 = vadd.f32 %v6739_v0, %v2123_v3  ;;  %v6741_v60 = vpop.f32.mrb[55].mxu0  ;;  %7109 = vmatmul.mubr.f32.gmra.mrb[160].mxu0 %v26752_v40 }
 0x770   : > { %v15401_v7 = vadd.f32 %v6741_v60, %v2125_v24  ;;  %7114 = vmatprep.mubr.f32.mxu0 %v25415_v41  ;;  %v26758_v24 = vld [vmem:[#allocation375_spill] sm:$0xff]  ;;  %v26760_v60 = vld [vmem:[#allocation413_spill] sm:$0xff] }
 0x771   : > { %12184 = vst [vmem:[%s22102_s12 + $0x288] sm:$0xff] %v15399_v6  ;;  %15132 = vmatmul.mubr.f32.gmra.mrb[12].mxu1 %v19398_v26  ;;  %v26756_v26 = vld [vmem:[#allocation404_spill] sm:$0xff] }
 0x772   : > { %12185 = vst [vmem:[%s22102_s12 + $0x290] sm:$0xff] %v15401_v7  ;;  %v6746_v8 = vpop.f32.mrb[56].mxu0  ;;  %15134 = vmatprep.mubr.f32.mxu1 %v26523_v42  ;;  %v2145_v61 = vadd.f32 %v26756_v26, %v22430_v38  ;;  %v2158_v7 = vadd.f32 %v26760_v60, %v22442_v49  ;;  %v22466_v26 = vpop.permute.xlu0 %1079 }
 0x773   : > { %v15403_v2 = vadd.f32 %v6746_v8, %v2134_v59  ;;  %v6748_v36 = vpop.f32.mrb[57].mxu0  ;;  %7116 = vmatmul.mubr.f32.gmra.mrb[162].mxu0 %v26755_v62 }
 0x774   : > { %v15405_v48 = vadd.f32 %v6748_v36, %v2136_v29  ;;  %7121 = vmatprep.mubr.f32.mxu0 %v25415_v41  ;;  %v26761_v29 = vld [vmem:[#allocation381_spill] sm:$0xff]  ;;  %v26763_v36 = vld [vmem:[#allocation419_spill] sm:$0xff] }
 0x775   : > { %12187 = vst [vmem:[%s22102_s12 + $0x2a0] sm:$0xff] %v15403_v2  ;;  %15135 = vmatmul.mubr.f32.gmra.mrb[14].mxu1 %v19435_v5  ;;  %v26759_v5 = vld [vmem:[#allocation409_spill] sm:$0xff] }
 0x776   : > { %12188 = vst [vmem:[%s22102_s12 + $0x2a8] sm:$0xff] %v15405_v48  ;;  %v6753_v42 = vpop.f32.mrb[58].mxu0  ;;  %15137 = vmatprep.mubr.f32.mxu1 %v19460_v37  ;;  %v2156_v6 = vadd.f32 %v26759_v5, %v22442_v49  ;;  %v2169_v48 = vadd.f32 %v26763_v36, %v22454_v15  ;;  %v22478_v5 = vpop.permute.xlu1 %1084 }
 0x777   : > { %v15407_v3 = vadd.f32 %v6753_v42, %v2145_v61  ;;  %v6755_v28 = vpop.f32.mrb[59].mxu0  ;;  %7123 = vmatmul.mubr.f32.gmra.mrb[164].mxu0 %v26758_v24 }
 0x778   : > { %v15409_v0 = vadd.f32 %v6755_v28, %v2147_v54  ;;  %7128 = vmatprep.mubr.f32.mxu0 %v25415_v41  ;;  %v26764_v54 = vld [vmem:[#allocation390_spill] sm:$0xff]  ;;  %v26766_v28 = vld [vmem:[#allocation424_spill] sm:$0xff] }
 0x779   : > { %12190 = vst [vmem:[%s22102_s12 + $0x2b8] sm:$0xff] %v15407_v3  ;;  %15138 = vmatmul.mubr.f32.gmra.mrb[16].mxu1 %v19494_v12  ;;  %v26762_v12 = vld [vmem:[#allocation415_spill] sm:$0xff] }
 0x77a   : > { %12191 = vst [vmem:[%s22102_s12 + $0x2c0] sm:$0xff] %v15409_v0  ;;  %v6760_v37 = vpop.f32.mrb[60].mxu0  ;;  %15140 = vmatprep.mubr.f32.mxu1 %v19518_v58  ;;  %v2167_v2 = vadd.f32 %v26762_v12, %v22454_v15  ;;  %v2180_v0 = vadd.f32 %v26766_v28, %v22466_v26  ;;  %v22490_v12 = vpop.permute.xlu0 %1089 }
 0x77b   : > { %v15411_v59 = vadd.f32 %v6760_v37, %v2156_v6  ;;  %v6762_v63 = vpop.f32.mrb[61].mxu0  ;;  %7130 = vmatmul.mubr.f32.gmra.mrb[166].mxu0 %v26761_v29 }
 0x77c   : > { %v15413_v8 = vadd.f32 %v6762_v63, %v2158_v7  ;;  %7135 = vmatprep.mubr.f32.mxu0 %v25415_v41  ;;  %v26767_v7 = vld [vmem:[#allocation396_spill] sm:$0xff]  ;;  %v26769_v63 = vld [vmem:[#allocation429_spill] sm:$0xff] }
 0x77d   : > { %12193 = vst [vmem:[%s22102_s12 + $0x2d0] sm:$0xff] %v15411_v59  ;;  %15141 = vmatmul.mubr.f32.gmra.mrb[18].mxu1 %v19542_v18  ;;  %v26765_v18 = vld [vmem:[#allocation421_spill] sm:$0xff] }
 0x77e   : > { %12194 = vst [vmem:[%s22102_s12 + $0x2d8] sm:$0xff] %v15413_v8  ;;  %v6767_v58 = vpop.f32.mrb[62].mxu0  ;;  %15143 = vmatprep.mubr.f32.mxu1 %v26723_v23  ;;  %v2178_v3 = vadd.f32 %v26765_v18, %v22466_v26  ;;  %v2191_v8 = vadd.f32 %v26769_v63, %v22478_v5  ;;  %v22502_v18 = vpop.permute.xlu1 %1094 }
 0x77f   : > { %v15415_v61 = vadd.f32 %v6767_v58, %v2167_v2  ;;  %v6769_v53 = vpop.f32.mrb[63].mxu0  ;;  %7137 = vmatmul.mubr.f32.gmra.mrb[168].mxu0 %v26764_v54 }
 0x780   : > { %v15417_v42 = vadd.f32 %v6769_v53, %v2169_v48  ;;  %7142 = vmatprep.mubr.f32.mxu0 %v25415_v41  ;;  %v26770_v48 = vld [vmem:[#allocation402_spill] sm:$0xff]  ;;  %v26772_v53 = vld [vmem:[#allocation436_spill] sm:$0xff] }
 0x781   : > { %12196 = vst [vmem:[%s22102_s12 + $0x2e8] sm:$0xff] %v15415_v61  ;;  %15144 = vmatmul.mubr.f32.gmra.mrb[20].mxu1 %v26728_v16  ;;  %v26768_v16 = vld [vmem:[#allocation428_spill] sm:$0xff] }
 0x782   : > { %12197 = vst [vmem:[%s22102_s12 + $0x2f0] sm:$0xff] %v15417_v42  ;;  %v6774_v23 = vpop.f32.mrb[64].mxu0  ;;  %15146 = vmatprep.mubr.f32.mxu1 %v26733_v35  ;;  %v2189_v59 = vadd.f32 %v26768_v16, %v22478_v5  ;;  %v2202_v42 = vadd.f32 %v26772_v53, %v22490_v12  ;;  %v22514_v16 = vpop.permute.xlu0 %1099 }
 0x783   : > { %v15419_v6 = vadd.f32 %v6774_v23, %v2178_v3  ;;  %v6776_v60 = vpop.f32.mrb[65].mxu0  ;;  %7144 = vmatmul.mubr.f32.gmra.mrb[170].mxu0 %v26767_v7 }
 0x784   : > { %v15421_v37 = vadd.f32 %v6776_v60, %v2180_v0  ;;  %7149 = vmatprep.mubr.f32.mxu0 %v25415_v41  ;;  %v26773_v0 = vld [vmem:[#allocation405_spill] sm:$0xff]  ;;  %v26775_v60 = vld [vmem:[#allocation443_spill] sm:$0xff] }
 0x785   : > { %12199 = vst [vmem:[%s22102_s12 + $0x300] sm:$0xff] %v15419_v6  ;;  %15147 = vmatmul.mubr.f32.gmra.mrb[22].mxu1 %v26737_v45  ;;  %v26771_v45 = vld [vmem:[#allocation434_spill] sm:$0xff] }
 0x786   : > { %12200 = vst [vmem:[%s22102_s12 + $0x308] sm:$0xff] %v15421_v37  ;;  %v6781_v35 = vpop.f32.mrb[66].mxu0  ;;  %15149 = vmatprep.mubr.f32.mxu1 %v26740_v19  ;;  %v2200_v61 = vadd.f32 %v26771_v45, %v22490_v12  ;;  %v2213_v37 = vadd.f32 %v26775_v60, %v22502_v18  ;;  %v22526_v45 = vpop.permute.xlu1 %1104 }
 0x787   : > { %v15423_v2 = vadd.f32 %v6781_v35, %v2189_v59  ;;  %v6783_v36 = vpop.f32.mrb[67].mxu0  ;;  %7151 = vmatmul.mubr.f32.gmra.mrb[172].mxu0 %v26770_v48 }
 0x788   : > { %v15425_v58 = vadd.f32 %v6783_v36, %v2191_v8  ;;  %7156 = vmatprep.mubr.f32.mxu0 %v25415_v41  ;;  %v26776_v8 = vld [vmem:[#allocation411_spill] sm:$0xff]  ;;  %v26778_v36 = vld [vmem:[#allocation449_spill] sm:$0xff] }
 0x789   : > { %12202 = vst [vmem:[%s22102_s12 + $0x318] sm:$0xff] %v15423_v2  ;;  %15150 = vmatmul.mubr.f32.gmra.mrb[24].mxu1 %v26743_v47  ;;  %v26774_v47 = vld [vmem:[#allocation439_spill] sm:$0xff] }
 0x78a   : > { %12203 = vst [vmem:[%s22102_s12 + $0x320] sm:$0xff] %v15425_v58  ;;  %v6788_v19 = vpop.f32.mrb[68].mxu0  ;;  %15152 = vmatprep.mubr.f32.mxu1 %v26746_v25  ;;  %v2211_v6 = vadd.f32 %v26774_v47, %v22502_v18  ;;  %v2224_v58 = vadd.f32 %v26778_v36, %v22514_v16  ;;  %v22538_v47 = vpop.permute.xlu0 %1109 }
 0x78b   : > { %v15427_v3 = vadd.f32 %v6788_v19, %v2200_v61  ;;  %v6790_v28 = vpop.f32.mrb[69].mxu0  ;;  %7158 = vmatmul.mubr.f32.gmra.mrb[174].mxu0 %v26773_v0 }
 0x78c   : > { %v15429_v23 = vadd.f32 %v6790_v28, %v2202_v42  ;;  %7163 = vmatprep.mubr.f32.mxu0 %v25415_v41  ;;  %v26779_v42 = vld [vmem:[#allocation420_spill] sm:$0xff]  ;;  %v26781_v28 = vld [vmem:[#allocation454_spill] sm:$0xff] }
 0x78d   : > { %12205 = vst [vmem:[%s22102_s12 + $0x330] sm:$0xff] %v15427_v3  ;;  %15153 = vmatmul.mubr.f32.gmra.mrb[26].mxu1 %v26749_v43  ;;  %v26777_v43 = vld [vmem:[#allocation445_spill] sm:$0xff] }
 0x78e   : > { %12206 = vst [vmem:[%s22102_s12 + $0x338] sm:$0xff] %v15429_v23  ;;  %v6795_v25 = vpop.f32.mrb[70].mxu0  ;;  %15155 = vmatprep.mubr.f32.mxu1 %v26752_v40  ;;  %v2222_v2 = vadd.f32 %v26777_v43, %v22514_v16  ;;  %v2235_v23 = vadd.f32 %v26781_v28, %v22526_v45  ;;  %v22550_v43 = vpop.permute.xlu1 %1114 }
 0x78f   : > { %v15431_v59 = vadd.f32 %v6795_v25, %v2211_v6  ;;  %v6797_v63 = vpop.f32.mrb[71].mxu0  ;;  %7165 = vmatmul.mubr.f32.gmra.mrb[176].mxu0 %v26776_v8 }
 0x790   : > { %v15433_v35 = vadd.f32 %v6797_v63, %v2213_v37  ;;  %7170 = vmatprep.mubr.f32.mxu0 %v25415_v41  ;;  %v26782_v37 = vld [vmem:[#allocation426_spill] sm:$0xff]  ;;  %v26784_v63 = vld [vmem:[#allocation459_spill] sm:$0xff] }
 0x791   : > { %12208 = vst [vmem:[%s22102_s12 + $0x348] sm:$0xff] %v15431_v59  ;;  %15156 = vmatmul.mubr.f32.gmra.mrb[28].mxu1 %v26755_v62  ;;  %v26780_v62 = vld [vmem:[#allocation451_spill] sm:$0xff] }
 0x792   : > { %12209 = vst [vmem:[%s22102_s12 + $0x350] sm:$0xff] %v15433_v35  ;;  %v6802_v40 = vpop.f32.mrb[72].mxu0  ;;  %15158 = vmatprep.mubr.f32.mxu1 %v26758_v24  ;;  %v2233_v3 = vadd.f32 %v26780_v62, %v22526_v45  ;;  %v2246_v35 = vadd.f32 %v26784_v63, %v22538_v47  ;;  %v22562_v62 = vpop.permute.xlu0 %1119 }
 0x793   : > { %v15435_v61 = vadd.f32 %v6802_v40, %v2222_v2  ;;  %v6804_v53 = vpop.f32.mrb[73].mxu0  ;;  %7172 = vmatmul.mubr.f32.gmra.mrb[178].mxu0 %v26779_v42 }
 0x794   : > { %v15437_v19 = vadd.f32 %v6804_v53, %v2224_v58  ;;  %7177 = vmatprep.mubr.f32.mxu0 %v25415_v41  ;;  %v26785_v58 = vld [vmem:[#allocation432_spill] sm:$0xff]  ;;  %v26787_v53 = vld [vmem:[#allocation466_spill] sm:$0xff] }
 0x795   : > { %12211 = vst [vmem:[%s22102_s12 + $0x360] sm:$0xff] %v15435_v61  ;;  %15159 = vmatmul.mubr.f32.gmra.mrb[30].mxu1 %v26761_v29  ;;  %v26783_v29 = vld [vmem:[#allocation458_spill] sm:$0xff] }
 0x796   : > { %12212 = vst [vmem:[%s22102_s12 + $0x368] sm:$0xff] %v15437_v19  ;;  %v6809_v24 = vpop.f32.mrb[74].mxu0  ;;  %15161 = vmatprep.mubr.f32.mxu1 %v26764_v54  ;;  %v2244_v59 = vadd.f32 %v26783_v29, %v22538_v47  ;;  %v2257_v19 = vadd.f32 %v26787_v53, %v22550_v43  ;;  %v22574_v29 = vpop.permute.xlu1 %1124 }
 0x797   : > { %v15439_v6 = vadd.f32 %v6809_v24, %v2233_v3  ;;  %v6811_v60 = vpop.f32.mrb[75].mxu0  ;;  %7179 = vmatmul.mubr.f32.gmra.mrb[180].mxu0 %v26782_v37 }
 0x798   : > { %v15441_v25 = vadd.f32 %v6811_v60, %v2235_v23  ;;  %7184 = vmatprep.mubr.f32.mxu0 %v25415_v41  ;;  %v26788_v23 = vld [vmem:[#allocation435_spill] sm:$0xff]  ;;  %v26790_v60 = vld [vmem:[#allocation472_spill] sm:$0xff] }
 0x799   : > { %12214 = vst [vmem:[%s22102_s12 + $0x378] sm:$0xff] %v15439_v6  ;;  %15162 = vmatmul.mubr.f32.gmra.mrb[32].mxu1 %v26767_v7  ;;  %v26786_v7 = vld [vmem:[#allocation463_spill] sm:$0xff] }
 0x79a   : > { %12215 = vst [vmem:[%s22102_s12 + $0x380] sm:$0xff] %v15441_v25  ;;  %v6816_v54 = vpop.f32.mrb[76].mxu0  ;;  %15164 = vmatprep.mubr.f32.mxu1 %v26770_v48  ;;  %v2255_v61 = vadd.f32 %v26786_v7, %v22550_v43  ;;  %v2268_v25 = vadd.f32 %v26790_v60, %v22562_v62  ;;  %v22586_v7 = vpop.permute.xlu0 %1129 }
 0x79b   : > { %v15443_v2 = vadd.f32 %v6816_v54, %v2244_v59  ;;  %v6818_v36 = vpop.f32.mrb[77].mxu0  ;;  %7186 = vmatmul.mubr.f32.gmra.mrb[182].mxu0 %v26785_v58 }
 0x79c   : > { %v15445_v40 = vadd.f32 %v6818_v36, %v2246_v35  ;;  %7191 = vmatprep.mubr.f32.mxu0 %v25415_v41  ;;  %v26791_v35 = vld [vmem:[#allocation441_spill] sm:$0xff]  ;;  %v26793_v36 = vld [vmem:[#allocation478_spill] sm:$0xff] }
 0x79d   : > { %12217 = vst [vmem:[%s22102_s12 + $0x390] sm:$0xff] %v15443_v2  ;;  %15165 = vmatmul.mubr.f32.gmra.mrb[34].mxu1 %v26773_v0  ;;  %v26789_v0 = vld [vmem:[#allocation469_spill] sm:$0xff] }
 0x79e   : > { %12218 = vst [vmem:[%s22102_s12 + $0x398] sm:$0xff] %v15445_v40  ;;  %v6823_v48 = vpop.f32.mrb[78].mxu0  ;;  %15167 = vmatprep.mubr.f32.mxu1 %v26776_v8  ;;  %v2266_v6 = vadd.f32 %v26789_v0, %v22562_v62  ;;  %v2279_v40 = vadd.f32 %v26793_v36, %v22574_v29  ;;  %v22598_v0 = vpop.permute.xlu1 %1134  ;;  %v26800_v36 = vld [vmem:[#allocation462_spill] sm:$0xff] }
 0x79f   : > { %v15447_v3 = vadd.f32 %v6823_v48, %v2255_v61  ;;  %v6825_v28 = vpop.f32.mrb[79].mxu0  ;;  %7193 = vmatmul.mubr.f32.gmra.mrb[184].mxu0 %v26788_v23 }
 0x7a0   : > { %v15449_v24 = vadd.f32 %v6825_v28, %v2257_v19  ;;  %7198 = vmatprep.mubr.f32.mxu0 %v25415_v41  ;;  %v26794_v19 = vld [vmem:[#allocation450_spill] sm:$0xff]  ;;  %v26796_v28 = vld [vmem:[#allocation483_spill] sm:$0xff] }
 0x7a1   : > { %12220 = vst [vmem:[%s22102_s12 + $0x3a8] sm:$0xff] %v15447_v3  ;;  %15168 = vmatmul.mubr.f32.gmra.mrb[36].mxu1 %v26779_v42  ;;  %v26792_v42 = vld [vmem:[#allocation475_spill] sm:$0xff] }
 0x7a2   : > { %12221 = vst [vmem:[%s22102_s12 + $0x3b0] sm:$0xff] %v15449_v24  ;;  %v6830_v8 = vpop.f32.mrb[80].mxu0  ;;  %15170 = vmatprep.mubr.f32.mxu1 %v26782_v37  ;;  %v2277_v2 = vadd.f32 %v26792_v42, %v22574_v29  ;;  %v2290_v24 = vadd.f32 %v26796_v28, %v22586_v7  ;;  %v22610_v42 = vpop.permute.xlu0 %1139 }
 0x7a3   : > { %v15451_v59 = vadd.f32 %v6830_v8, %v2266_v6  ;;  %v6832_v63 = vpop.f32.mrb[81].mxu0  ;;  %7200 = vmatmul.mubr.f32.gmra.mrb[186].mxu0 %v26791_v35  ;;  %v22622_v28 = vpop.permute.xlu1 %1144 }
 0x7a4   : > { %v15453_v54 = vadd.f32 %v6832_v63, %v2268_v25  ;;  %7205 = vmatprep.mubr.f32.mxu0 %v25415_v41  ;;  %v26797_v25 = vld [vmem:[#allocation456_spill] sm:$0xff] }
 0x7a5   : > { %12223 = vst [vmem:[%s22102_s12 + $0x3c0] sm:$0xff] %v15451_v59  ;;  %15171 = vmatmul.mubr.f32.gmra.mrb[38].mxu1 %v26785_v58  ;;  %v26795_v58 = vld [vmem:[#allocation481_spill] sm:$0xff]  ;;  %v26798_v59 = vld [vmem:[#allocation488_spill] sm:$0xff] }
 0x7a6   : > { %12224 = vst [vmem:[%s22102_s12 + $0x3c8] sm:$0xff] %v15453_v54  ;;  %v6837_v37 = vpop.f32.mrb[82].mxu0  ;;  %15173 = vmatprep.mubr.f32.mxu1 %v26788_v23  ;;  %v2288_v3 = vadd.f32 %v26795_v58, %v22586_v7  ;;  %v2299_v63 = vadd.f32 %v26798_v59, %v22598_v0  ;;  %v26803_v58 = vld [vmem:[#allocation495_spill] sm:$0xff] }
 0x7a7   : > { %v15455_v61 = vadd.f32 %v6837_v37, %v2277_v2  ;;  %v6839_v53 = vpop.f32.mrb[83].mxu0  ;;  %7207 = vmatmul.mubr.f32.gmra.mrb[188].mxu0 %v26794_v19 }
 0x7a8   : > { %v15457_v48 = vadd.f32 %v6839_v53, %v2279_v40  ;;  %7212 = vmatprep.mubr.f32.mxu0 %v25415_v41  ;;  %v26801_v53 = vld [vmem:[#allocation493_spill] sm:$0xff] }
 0x7a9   : > { %12226 = vst [vmem:[%s22102_s12 + $0x3d8] sm:$0xff] %v15455_v61  ;;  %15174 = vmatmul.mubr.f32.gmra.mrb[40].mxu1 %v26791_v35  ;;  %v26799_v35 = vld [vmem:[#allocation489_spill] sm:$0xff] }
 0x7aa   : > { %12227 = vst [vmem:[%s22102_s12 + $0x3e0] sm:$0xff] %v15457_v48  ;;  %v6844_v23 = vpop.f32.mrb[84].mxu0  ;;  %15176 = vmatprep.mubr.f32.mxu1 %v26794_v19  ;;  %v2301_v54 = vadd.f32 %v26799_v35, %v22598_v0  ;;  %v2310_v19 = vadd.f32 %v26801_v53, %v22610_v42  ;;  %v26802_v48 = vld [vmem:[#allocation464_spill] sm:$0xff] }
 0x7ab   : > { %v15459_v6 = vadd.f32 %v6844_v23, %v2288_v3  ;;  %v6846_v60 = vpop.f32.mrb[85].mxu0  ;;  %7214 = vmatmul.mubr.f32.gmra.mrb[190].mxu0 %v26797_v25  ;;  %v2312_v3 = vadd.f32 %v26803_v58, %v22610_v42  ;;  %v26804_v23 = vld [vmem:[#allocation474_spill] sm:$0xff]  ;;  %v26807_v35 = vld [vmem:[#allocation500_spill] sm:$0xff] }
 0x7ac   : > { %v15461_v8 = vadd.f32 %v6846_v60, %v2290_v24  ;;  %7219 = vmatprep.mubr.f32.mxu0 %v25415_v41  ;;  %v26810_v58 = vld [vmem:[#allocation492_spill] sm:$0xff] }
 0x7ad   : > { %12229 = vst [vmem:[%s22102_s12 + $0x3f0] sm:$0xff] %v15459_v6  ;;  %15177 = vmatmul.mubr.f32.gmra.mrb[42].mxu1 %v26797_v25 }
 0x7ae   : > { %12230 = vst [vmem:[%s22102_s12 + $0x3f8] sm:$0xff] %v15461_v8  ;;  %v6851_v2 = vpop.f32.mrb[86].mxu0  ;;  %15179 = vmatprep.mubr.f32.mxu1 %v26800_v36  ;;  %v26805_v8 = vld [vmem:[#allocation498_spill] sm:$0xff] }
 0x7af   : > { %v15463_v40 = vadd.f32 %v6851_v2, %v2299_v63  ;;  %v6853_v37 = vpop.f32.mrb[87].mxu0  ;;  %7221 = vmatmul.mubr.f32.gmra.mrb[192].mxu0 %v26800_v36  ;;  %v2321_v59 = vadd.f32 %v26805_v8, %v22622_v28  ;;  %v26806_v63 = vld [vmem:[#allocation480_spill] sm:$0xff]  ;;  %v22634_v2 = vpop.permute.xlu0 %1149 }
 0x7b0   : > { %v15465_v61 = vadd.f32 %v6853_v37, %v2301_v54  ;;  %7226 = vmatprep.mubr.f32.mxu0 %v25415_v41  ;;  %v2323_v54 = vadd.f32 %v26807_v35, %v22622_v28 }
 0x7b1   : > { %12232 = vst [vmem:[%s22102_s12 + $0x408] sm:$0xff] %v15463_v40  ;;  %15180 = vmatmul.mubr.f32.gmra.mrb[44].mxu1 %v26802_v48  ;;  %v26808_v40 = vld [vmem:[#allocation486_spill] sm:$0xff] }
 0x7b2   : > { %12233 = vst [vmem:[%s22102_s12 + $0x410] sm:$0xff] %v15465_v61  ;;  %v6858_v24 = vpop.f32.mrb[88].mxu0  ;;  %15182 = vmatprep.mubr.f32.mxu1 %v26804_v23 }
 0x7b3   : > { %v15467_v6 = vadd.f32 %v6858_v24, %v2310_v19  ;;  %v6860_v60 = vpop.f32.mrb[89].mxu0  ;;  %7228 = vmatmul.mubr.f32.gmra.mrb[194].mxu0 %v26802_v48  ;;  %v26809_v19 = vld [vmem:[#allocation502_spill] sm:$0xff] }
 0x7b4   : > { %v15469_v25 = vadd.f32 %v6860_v60, %v2312_v3  ;;  %7233 = vmatprep.mubr.f32.mxu0 %v25415_v41  ;;  %v2332_v48 = vadd.f32 %v26809_v19, %v22634_v2  ;;  %v26811_v3 = vld [vmem:[#allocation504_spill] sm:$0xff] }
 0x7b5   : > { %12235 = vst [vmem:[%s22102_s12 + $0x420] sm:$0xff] %v15467_v6  ;;  %15183 = vmatmul.mubr.f32.gmra.mrb[46].mxu1 %v26806_v63  ;;  %v2334_v24 = vadd.f32 %v26811_v3, %v22634_v2  ;;  %v22646_v6 = vpop.permute.xlu1 %1154 }
 0x7b6   : > { %12236 = vst [vmem:[%s22102_s12 + $0x428] sm:$0xff] %v15469_v25  ;;  %v6865_v36 = vpop.f32.mrb[90].mxu0  ;;  %15185 = vmatprep.mubr.f32.mxu1 %v26808_v40 }
 0x7b7   : > { %v15471_v37 = vadd.f32 %v6865_v36, %v2321_v59  ;;  %v6867_v61 = vpop.f32.mrb[91].mxu0  ;;  %7235 = vmatmul.mubr.f32.gmra.mrb[196].mxu0 %v26804_v23  ;;  %v26812_v59 = vld [vmem:[#allocation505_spill] sm:$0xff] }
 0x7b8   : > { %v15473_v53 = vadd.f32 %v6867_v61, %v2323_v54  ;;  %7240 = vmatprep.mubr.f32.mxu0 %v25415_v41  ;;  %v2343_v35 = vadd.f32 %v26812_v59, %v22646_v6  ;;  %v26813_v54 = vld [vmem:[#allocation506_spill] sm:$0xff] }
 0x7b9   : > { %12238 = vst [vmem:[%s22102_s12 + $0x438] sm:$0xff] %v15471_v37  ;;  %15186 = vmatmul.mubr.f32.gmra.mrb[48].mxu1 %v26810_v58  ;;  %v2345_v36 = vadd.f32 %v26813_v54, %v22646_v6  ;;  %v22656_v37 = vpop.permute.xlu0 %1159 }
 0x7ba   : > { %12239 = vst [vmem:[%s22102_s12 + $0x440] sm:$0xff] %v15473_v53  ;;  %v6872_v60 = vpop.f32.mrb[92].mxu0  ;;  %26814 = vst [vmem:[#allocation471_spill] sm:$0xff] %v22656_v37 }
 0x7bb   : > { %v15475_v25 = vadd.f32 %v6872_v60, %v2332_v48  ;;  %v6874_v23 = vpop.f32.mrb[93].mxu0  ;;  %7242 = vmatmul.mubr.f32.gmra.mrb[198].mxu0 %v26806_v63  ;;  %v26815_v48 = vld [vmem:[#allocation507_spill] sm:$0xff] }
 0x7bc   : > { %v15477_v8 = vadd.f32 %v6874_v23, %v2334_v24  ;;  %7247 = vmatprep.mubr.f32.mxu0 %v25415_v41  ;;  %v2354_v3 = vadd.f32 %v26815_v48, %v22656_v37  ;;  %v26816_v24 = vld [vmem:[#allocation508_spill] sm:$0xff] }
 0x7bd   : > { %12241 = vst [vmem:[%s22102_s12 + $0x450] sm:$0xff] %v15475_v25  ;;  %v2356_v60 = vadd.f32 %v26816_v24, %v22656_v37  ;;  %v22666_v25 = vpop.permute.xlu1 %1164  ;;  %v22676_v48 = vpop.permute.xlu0 %1169 }
 0x7be   : > { %12242 = vst [vmem:[%s22102_s12 + $0x458] sm:$0xff] %v15477_v8  ;;  %v6879_v61 = vpop.f32.mrb[94].mxu0 }
 0x7bf   : > { %v15479_v53 = vadd.f32 %v6879_v61, %v2343_v35  ;;  %v6881_v19 = vpop.f32.mrb[95].mxu0  ;;  %7249 = vmatmul.mubr.f32.gmra.mrb[200].mxu0 %v26808_v40  ;;  %v26817_v35 = vld [vmem:[#allocation510_spill] sm:$0xff] }
 0x7c0   : > { %v15481_v63 = vadd.f32 %v6881_v19, %v2345_v36  ;;  %7254 = vmatprep.mubr.f32.mxu0 %v25415_v41  ;;  %v2365_v54 = vadd.f32 %v26817_v35, %v22666_v25  ;;  %v26818_v36 = vld [vmem:[#allocation516_spill] sm:$0xff]  ;;  %v26819_v19 = vld [vmem:[#allocation511_spill] sm:$0xff] }
 0x7c1   : > { %12244 = vst [vmem:[%s22102_s12 + $0x468] sm:$0xff] %v15479_v53 }
 0x7c2   : > { %12245 = vst [vmem:[%s22102_s12 + $0x470] sm:$0xff] %v15481_v63  ;;  %v6886_v23 = vpop.f32.mrb[96].mxu0  ;;  %v2367_v63 = vadd.f32 %v26819_v19, %v22666_v25 }
 0x7c3   : > { %v15483_v8 = vadd.f32 %v6886_v23, %v2354_v3  ;;  %v6888_v59 = vpop.f32.mrb[97].mxu0  ;;  %7256 = vmatmul.mubr.f32.gmra.mrb[202].mxu0 %v26810_v58  ;;  %v26820_v58 = vld [vmem:[#allocation14_spill] sm:$0xff] }
 0x7c4   : > { %v15485_v40 = vadd.f32 %v6888_v59, %v2356_v60  ;;  %v15037_v41 = vpop.f32.mrb[204].mxu1 }
 0x7c5   : > { %12247 = vst [vmem:[%s22102_s12 + $0x480] sm:$0xff] %v15483_v8  ;;  %v15698_v61 = vadd.f32 %v15037_v41, %v26818_v36  ;;  %v11493_v53 = vpop.f32.mrb[205].mxu1  ;;  %v26821_v41 = vld [vmem:[#allocation513_spill] sm:$0xff] }
 0x7c6   : > { %12248 = vst [vmem:[%s22102_s12 + $0x488] sm:$0xff] %v15485_v40  ;;  %v6893_v3 = vpop.f32.mrb[98].mxu0  ;;  %v15699_v24 = vadd.f32 %v11493_v53, %v26820_v58  ;;  %v2376_v35 = vadd.f32 %v26821_v41, %v22676_v48  ;;  %v26822_v40 = vld [vmem:[#allocation514_spill] sm:$0xff]  ;;  %v22688_v53 = vpop.permute.xlu1 %1174 }
 0x7c7   : > { %v15487_v60 = vadd.f32 %v6893_v3, %v2365_v54  ;;  %12108 = vst [vmem:[%s22102_s12 + $0x28] sm:$0xff] %v15698_v61  ;;  %v6895_v23 = vpop.f32.mrb[99].mxu0  ;;  %v2378_v37 = vadd.f32 %v26822_v40, %v22676_v48  ;;  %v26823_v61 = vld [vmem:[#allocation515_spill] sm:$0xff] }
 0x7c8   : > { %v15489_v8 = vadd.f32 %v6895_v23, %v2367_v63  ;;  %12105 = vst [vmem:[%s22102_s12 + $0x10] sm:$0xff] %v15699_v24  ;;  %v15040_v59 = vpop.f32.mrb[206].mxu1 }
 0x7c9   : > { %12250 = vst [vmem:[%s22102_s12 + $0x498] sm:$0xff] %v15487_v60  ;;  %v15700_v36 = vadd.f32 %v15040_v59, %v26685_v11  ;;  %v11505_v19 = vpop.f32.mrb[207].mxu1  ;;  %v26824_v11 = vld [vmem:[#allocation28_spill] sm:$0xff] }
 0x7ca   : > { %12251 = vst [vmem:[%s22102_s12 + $0x4a0] sm:$0xff] %v15489_v8  ;;  %v6900_v54 = vpop.f32.mrb[100].mxu0  ;;  %v15701_v63 = vadd.f32 %v11505_v19, %v26823_v61  ;;  %v15494_v23 = vadd.f32 %v26824_v11, %v22688_v53  ;;  %v26825_v8 = vld [vmem:[#allocation33_spill] sm:$0xff]  ;;  %v22700_v19 = vpop.permute.xlu0 %1179 }
 0x7cb   : > { %v15491_v3 = vadd.f32 %v6900_v54, %v2376_v35  ;;  %12114 = vst [vmem:[%s22102_s12 + $0x58] sm:$0xff] %v15700_v36  ;;  %v6902_v58 = vpop.f32.mrb[101].mxu0  ;;  %v15496_v40 = vadd.f32 %v26825_v8, %v22688_v53 }
 0x7cc   : > { %v15493_v24 = vadd.f32 %v6902_v58, %v2378_v37  ;;  %12111 = vst [vmem:[%s22102_s12 + $0x40] sm:$0xff] %v15701_v63  ;;  %v15043_v60 = vpop.f32.mrb[208].mxu1 }
 0x7cd   : > { %12253 = vst [vmem:[%s22102_s12 + $0x4b0] sm:$0xff] %v15491_v3  ;;  %v15702_v59 = vadd.f32 %v15043_v60, %v22140_v14  ;;  %v11517_v41 = vpop.f32.mrb[209].mxu1  ;;  %v26826_v14 = vld [vmem:[#allocation35_spill] sm:$0xff] }
 0x7ce   : > { %12254 = vst [vmem:[%s22102_s12 + $0x4b8] sm:$0xff] %v15493_v24  ;;  %v6907_v35 = vpop.f32.mrb[102].mxu0  ;;  %v15703_v37 = vadd.f32 %v11517_v41, %v22128_v44  ;;  %v15498_v3 = vadd.f32 %v26826_v14, %v22700_v19  ;;  %v26827_v24 = vld [vmem:[#allocation42_spill] sm:$0xff]  ;;  %v22712_v44 = vpop.permute.xlu1 %1184 }
 0x7cf   : > { %v15495_v36 = vadd.f32 %v15494_v23, %v6907_v35  ;;  %12120 = vst [vmem:[%s22102_s12 + $0x88] sm:$0xff] %v15702_v59  ;;  %v6909_v54 = vpop.f32.mrb[103].mxu0  ;;  %v15500_v11 = vadd.f32 %v26827_v24, %v22700_v19 }
 0x7d0   : > { %v15497_v61 = vadd.f32 %v15496_v40, %v6909_v54  ;;  %12117 = vst [vmem:[%s22102_s12 + $0x70] sm:$0xff] %v15703_v37  ;;  %v15046_v63 = vpop.f32.mrb[210].mxu1 }
 0x7d1   : > { %12256 = vst [vmem:[%s22102_s12 + $0x4c8] sm:$0xff] %v15495_v36  ;;  %v15704_v58 = vadd.f32 %v15046_v63, %v22164_v56  ;;  %v11529_v60 = vpop.f32.mrb[211].mxu1  ;;  %v26828_v56 = vld [vmem:[#allocation46_spill] sm:$0xff] }
 0x7d2   : > { %12257 = vst [vmem:[%s22102_s12 + $0x4d0] sm:$0xff] %v15497_v61  ;;  %v6914_v23 = vpop.f32.mrb[104].mxu0  ;;  %v15705_v59 = vadd.f32 %v11529_v60, %v22152_v13  ;;  %v15502_v37 = vadd.f32 %v26828_v56, %v22712_v44  ;;  %v26829_v61 = vld [vmem:[#allocation17_spill] sm:$0xff]  ;;  %v22724_v13 = vpop.permute.xlu0 %1189 }
 0x7d3   : > { %v15499_v41 = vadd.f32 %v15498_v3, %v6914_v23  ;;  %12126 = vst [vmem:[%s22102_s12 + $0xb8] sm:$0xff] %v15704_v58  ;;  %v6916_v8 = vpop.f32.mrb[105].mxu0  ;;  %v15504_v63 = vadd.f32 %v26829_v61, %v22712_v44 }
 0x7d4   : > { %v15501_v40 = vadd.f32 %v15500_v11, %v6916_v8  ;;  %12123 = vst [vmem:[%s22102_s12 + $0xa0] sm:$0xff] %v15705_v59  ;;  %v15049_v35 = vpop.f32.mrb[212].mxu1  ;;  %v26831_v8 = vld [vmem:[#allocation50_spill] sm:$0xff] }
 0x7d5   : > { %12259 = vst [vmem:[%s22102_s12 + $0x4e0] sm:$0xff] %v15499_v41  ;;  %v15706_v36 = vadd.f32 %v15049_v35, %v22188_v52  ;;  %v11541_v54 = vpop.f32.mrb[213].mxu1  ;;  %v26830_v52 = vld [vmem:[#allocation18_spill] sm:$0xff] }
 0x7d6   : > { %12260 = vst [vmem:[%s22102_s12 + $0x4e8] sm:$0xff] %v15501_v40  ;;  %v6921_v14 = vpop.f32.mrb[106].mxu0  ;;  %v15707_v3 = vadd.f32 %v11541_v54, %v22176_v34  ;;  %v15506_v23 = vadd.f32 %v26830_v52, %v22724_v13  ;;  %v15508_v40 = vadd.f32 %v26831_v8, %v22724_v13  ;;  %v22736_v34 = vpop.permute.xlu1 %1194 }
 0x7d7   : > { %v15503_v58 = vadd.f32 %v15502_v37, %v6921_v14  ;;  %12132 = vst [vmem:[%s22102_s12 + $0xe8] sm:$0xff] %v15706_v36  ;;  %v6923_v60 = vpop.f32.mrb[107].mxu0 }
 0x7d8   : > { %v15505_v24 = vadd.f32 %v15504_v63, %v6923_v60  ;;  %12129 = vst [vmem:[%s22102_s12 + $0xd0] sm:$0xff] %v15707_v3  ;;  %v15052_v11 = vpop.f32.mrb[214].mxu1 }
 0x7d9   : > { %12262 = vst [vmem:[%s22102_s12 + $0x4f8] sm:$0xff] %v15503_v58  ;;  %v15708_v59 = vadd.f32 %v15052_v11, %v22212_v17  ;;  %v11553_v41 = vpop.f32.mrb[215].mxu1  ;;  %v26832_v17 = vld [vmem:[#allocation59_spill] sm:$0xff] }
 0x7da   : > { %12263 = vst [vmem:[%s22102_s12 + $0x500] sm:$0xff] %v15505_v24  ;;  %v6928_v35 = vpop.f32.mrb[108].mxu0  ;;  %v15709_v56 = vadd.f32 %v11553_v41, %v22200_v33  ;;  %v15510_v63 = vadd.f32 %v26832_v17, %v22736_v34  ;;  %v26833_v58 = vld [vmem:[#allocation63_spill] sm:$0xff]  ;;  %v22748_v33 = vpop.permute.xlu0 %1199 }
 0x7db   : > { %v15507_v37 = vadd.f32 %v15506_v23, %v6928_v35  ;;  %12138 = vst [vmem:[%s22102_s12 + $0x118] sm:$0xff] %v15708_v59  ;;  %v6930_v36 = vpop.f32.mrb[109].mxu0  ;;  %v15512_v60 = vadd.f32 %v26833_v58, %v22736_v34 }
 0x7dc   : > { %v15509_v54 = vadd.f32 %v15508_v40, %v6930_v36  ;;  %12135 = vst [vmem:[%s22102_s12 + $0x100] sm:$0xff] %v15709_v56  ;;  %v15055_v61 = vpop.f32.mrb[216].mxu1  ;;  %v26835_v56 = vld [vmem:[#allocation71_spill] sm:$0xff] }
 0x7dd   : > { %12265 = vst [vmem:[%s22102_s12 + $0x510] sm:$0xff] %v15507_v37  ;;  %v15710_v14 = vadd.f32 %v15055_v61, %v22236_v20  ;;  %v11565_v3 = vpop.f32.mrb[217].mxu1  ;;  %v26834_v20 = vld [vmem:[#allocation67_spill] sm:$0xff]  ;;  %v15516_v37 = vadd.f32 %v26835_v56, %v22748_v33 }
 0x7de   : > { %12266 = vst [vmem:[%s22102_s12 + $0x518] sm:$0xff] %v15509_v54  ;;  %v6935_v24 = vpop.f32.mrb[110].mxu0  ;;  %v15711_v11 = vadd.f32 %v11565_v3, %v22224_v46  ;;  %v15514_v8 = vadd.f32 %v26834_v20, %v22748_v33  ;;  %v22760_v46 = vpop.permute.xlu1 %1204 }
 0x7df   : > { %v15511_v52 = vadd.f32 %v15510_v63, %v6935_v24  ;;  %12144 = vst [vmem:[%s22102_s12 + $0x148] sm:$0xff] %v15710_v14  ;;  %v6937_v23 = vpop.f32.mrb[111].mxu0  ;;  %v26837_v24 = vld [vmem:[#allocation21_spill] sm:$0xff] }
 0x7e0   : > { %v15513_v59 = vadd.f32 %v15512_v60, %v6937_v23  ;;  %12141 = vst [vmem:[%s22102_s12 + $0x130] sm:$0xff] %v15711_v11  ;;  %v15058_v41 = vpop.f32.mrb[218].mxu1  ;;  %v15520_v11 = vadd.f32 %v26837_v24, %v22760_v46  ;;  %v26841_v24 = vld [vmem:[#allocation79_spill] sm:$0xff] }
 0x7e1   : > { %12268 = vst [vmem:[%s22102_s12 + $0x528] sm:$0xff] %v15511_v52  ;;  %v15712_v40 = vadd.f32 %v15058_v41, %v22260_v27  ;;  %v11577_v35 = vpop.f32.mrb[219].mxu1  ;;  %v26836_v27 = vld [vmem:[#allocation20_spill] sm:$0xff] }
 0x7e2   : > { %12269 = vst [vmem:[%s22102_s12 + $0x530] sm:$0xff] %v15513_v59  ;;  %v6942_v36 = vpop.f32.mrb[112].mxu0  ;;  %v15713_v54 = vadd.f32 %v11577_v35, %v22248_v22  ;;  %v15518_v3 = vadd.f32 %v26836_v27, %v22760_v46  ;;  %v22772_v22 = vpop.permute.xlu0 %1209 }
 0x7e3   : > { %v15515_v61 = vadd.f32 %v15514_v8, %v6942_v36  ;;  %12150 = vst [vmem:[%s22102_s12 + $0x178] sm:$0xff] %v15712_v40  ;;  %v6944_v17 = vpop.f32.mrb[113].mxu0 }
 0x7e4   : > { %v15517_v63 = vadd.f32 %v15516_v37, %v6944_v17  ;;  %12147 = vst [vmem:[%s22102_s12 + $0x160] sm:$0xff] %v15713_v54  ;;  %v15061_v14 = vpop.f32.mrb[220].mxu1  ;;  %v26839_v37 = vld [vmem:[#allocation25_spill] sm:$0xff] }
 0x7e5   : > { %12271 = vst [vmem:[%s22102_s12 + $0x540] sm:$0xff] %v15515_v61  ;;  %v15714_v58 = vadd.f32 %v15061_v14, %v22284_v21  ;;  %v11589_v60 = vpop.f32.mrb[221].mxu1  ;;  %v26838_v21 = vld [vmem:[#allocation24_spill] sm:$0xff]  ;;  %v15524_v36 = vadd.f32 %v26839_v37, %v22772_v22 }
 0x7e6   : > { %12272 = vst [vmem:[%s22102_s12 + $0x548] sm:$0xff] %v15517_v63  ;;  %v6949_v52 = vpop.f32.mrb[114].mxu0  ;;  %v15715_v23 = vadd.f32 %v11589_v60, %v22272_v9  ;;  %v15522_v40 = vadd.f32 %v26838_v21, %v22772_v22  ;;  %v22784_v9 = vpop.permute.xlu1 %1214 }
 0x7e7   : > { %v15519_v59 = vadd.f32 %v15518_v3, %v6949_v52  ;;  %12156 = vst [vmem:[%s22102_s12 + $0x1a8] sm:$0xff] %v15714_v58  ;;  %v6951_v41 = vpop.f32.mrb[115].mxu0 }
 0x7e8   : > { %v15521_v20 = vadd.f32 %v15520_v11, %v6951_v41  ;;  %12153 = vst [vmem:[%s22102_s12 + $0x190] sm:$0xff] %v15715_v23  ;;  %v15064_v8 = vpop.f32.mrb[222].mxu1  ;;  %v15528_v11 = vadd.f32 %v26841_v24, %v22784_v9 }
 0x7e9   : > { %12274 = vst [vmem:[%s22102_s12 + $0x558] sm:$0xff] %v15519_v59  ;;  %v15716_v35 = vadd.f32 %v15064_v8, %v22308_v57  ;;  %v11601_v56 = vpop.f32.mrb[223].mxu1  ;;  %v26840_v57 = vld [vmem:[#allocation74_spill] sm:$0xff] }
 0x7ea   : > { %12275 = vst [vmem:[%s22102_s12 + $0x560] sm:$0xff] %v15521_v20  ;;  %v6956_v54 = vpop.f32.mrb[116].mxu0  ;;  %v15717_v61 = vadd.f32 %v11601_v56, %v22296_v30  ;;  %v15526_v3 = vadd.f32 %v26840_v57, %v22784_v9  ;;  %v22796_v30 = vpop.permute.xlu0 %1219  ;;  %v26843_v56 = vld [vmem:[#allocation82_spill] sm:$0xff] }
 0x7eb   : > { %v15523_v17 = vadd.f32 %v15522_v40, %v6956_v54  ;;  %12162 = vst [vmem:[%s22102_s12 + $0x1d8] sm:$0xff] %v15716_v35  ;;  %v6958_v63 = vpop.f32.mrb[117].mxu0  ;;  %v15532_v37 = vadd.f32 %v26843_v56, %v22796_v30 }
 0x7ec   : > { %v15525_v14 = vadd.f32 %v15524_v36, %v6958_v63  ;;  %12159 = vst [vmem:[%s22102_s12 + $0x1c0] sm:$0xff] %v15717_v61  ;;  %v15067_v27 = vpop.f32.mrb[224].mxu1 }
 0x7ed   : > { %12277 = vst [vmem:[%s22102_s12 + $0x570] sm:$0xff] %v15523_v17  ;;  %v15718_v58 = vadd.f32 %v15067_v27, %v22332_v55  ;;  %v11613_v60 = vpop.f32.mrb[225].mxu1  ;;  %v26842_v55 = vld [vmem:[#allocation30_spill] sm:$0xff] }
 0x7ee   : > { %12278 = vst [vmem:[%s22102_s12 + $0x578] sm:$0xff] %v15525_v14  ;;  %v6963_v52 = vpop.f32.mrb[118].mxu0  ;;  %v15719_v23 = vadd.f32 %v11613_v60, %v22320_v50  ;;  %v15530_v21 = vadd.f32 %v26842_v55, %v22796_v30  ;;  %v22808_v50 = vpop.permute.xlu1 %1224 }
 0x7ef   : > { %v15527_v59 = vadd.f32 %v15526_v3, %v6963_v52  ;;  %12168 = vst [vmem:[%s22102_s12 + $0x208] sm:$0xff] %v15718_v58  ;;  %v6965_v41 = vpop.f32.mrb[119].mxu0  ;;  %v26845_v58 = vld [vmem:[#allocation31_spill] sm:$0xff] }
 0x7f0   : > { %v15529_v20 = vadd.f32 %v15528_v11, %v6965_v41  ;;  %12165 = vst [vmem:[%s22102_s12 + $0x1f0] sm:$0xff] %v15719_v23  ;;  %v15070_v8 = vpop.f32.mrb[226].mxu1  ;;  %v15536_v60 = vadd.f32 %v26845_v58, %v22808_v50 }
 0x7f1   : > { %12280 = vst [vmem:[%s22102_s12 + $0x588] sm:$0xff] %v15527_v59  ;;  %v15720_v40 = vadd.f32 %v15070_v8, %v22356_v32  ;;  %v11625_v35 = vpop.f32.mrb[227].mxu1  ;;  %v26844_v32 = vld [vmem:[#allocation86_spill] sm:$0xff] }
 0x7f2   : > { %12281 = vst [vmem:[%s22102_s12 + $0x590] sm:$0xff] %v15529_v20  ;;  %v6970_v36 = vpop.f32.mrb[120].mxu0  ;;  %v15721_v54 = vadd.f32 %v11625_v35, %v22344_v10  ;;  %v15534_v27 = vadd.f32 %v26844_v32, %v22808_v50  ;;  %v22820_v10 = vpop.permute.xlu0 %1229  ;;  %v26849_v32 = vld [vmem:[#allocation99_spill] sm:$0xff] }
 0x7f3   : > { %v15531_v61 = vadd.f32 %v15530_v21, %v6970_v36  ;;  %12174 = vst [vmem:[%s22102_s12 + $0x238] sm:$0xff] %v15720_v40  ;;  %v6972_v17 = vpop.f32.mrb[121].mxu0  ;;  %v26847_v21 = vld [vmem:[#allocation12_spill] sm:$0xff] }
 0x7f4   : > { %v15533_v63 = vadd.f32 %v15532_v37, %v6972_v17  ;;  %12171 = vst [vmem:[%s22102_s12 + $0x220] sm:$0xff] %v15721_v54  ;;  %v15073_v14 = vpop.f32.mrb[228].mxu1  ;;  %v15540_v40 = vadd.f32 %v26847_v21, %v22820_v10 }
 0x7f5   : > { %12283 = vst [vmem:[%s22102_s12 + $0x5a0] sm:$0xff] %v15531_v61  ;;  %v15722_v57 = vadd.f32 %v15073_v14, %v22380_v31  ;;  %v11637_v3 = vpop.f32.mrb[229].mxu1  ;;  %v26846_v31 = vld [vmem:[#allocation91_spill] sm:$0xff] }
 0x7f6   : > { %12284 = vst [vmem:[%s22102_s12 + $0x5a8] sm:$0xff] %v15533_v63  ;;  %v6977_v24 = vpop.f32.mrb[122].mxu0  ;;  %v15723_v11 = vadd.f32 %v11637_v3, %v22368_v1  ;;  %v15538_v20 = vadd.f32 %v26846_v31, %v22820_v10  ;;  %v22832_v1 = vpop.permute.xlu1 %1234 }
 0x7f7   : > { %v15535_v52 = vadd.f32 %v15534_v27, %v6977_v24  ;;  %12180 = vst [vmem:[%s22102_s12 + $0x268] sm:$0xff] %v15722_v57  ;;  %v6979_v23 = vpop.f32.mrb[123].mxu0  ;;  %v15544_v27 = vadd.f32 %v26849_v32, %v22832_v1 }
 0x7f8   : > { %v15537_v59 = vadd.f32 %v15536_v60, %v6979_v23  ;;  %12177 = vst [vmem:[%s22102_s12 + $0x250] sm:$0xff] %v15723_v11  ;;  %v15076_v41 = vpop.f32.mrb[230].mxu1 }
 0x7f9   : > { %12286 = vst [vmem:[%s22102_s12 + $0x5b8] sm:$0xff] %v15535_v52  ;;  %v15724_v8 = vadd.f32 %v15076_v41, %v22406_v39  ;;  %v11649_v55 = vpop.f32.mrb[231].mxu1  ;;  %v26848_v39 = vld [vmem:[#allocation94_spill] sm:$0xff] }
 0x7fa   : > { %12287 = vst [vmem:[%s22102_s12 + $0x5c0] sm:$0xff] %v15537_v59  ;;  %v6984_v35 = vpop.f32.mrb[124].mxu0  ;;  %v15725_v56 = vadd.f32 %v11649_v55, %v22394_v4  ;;  %v15542_v17 = vadd.f32 %v26848_v39, %v22832_v1  ;;  %v22844_v4 = vpop.permute.xlu0 %1239  ;;  %v26851_v41 = vld [vmem:[#allocation106_spill] sm:$0xff] }
 0x7fb   : > { %v15539_v37 = vadd.f32 %v15538_v20, %v6984_v35  ;;  %12186 = vst [vmem:[%s22102_s12 + $0x298] sm:$0xff] %v15724_v8  ;;  %v6986_v36 = vpop.f32.mrb[125].mxu0  ;;  %v15548_v31 = vadd.f32 %v26851_v41, %v22844_v4 }
 0x7fc   : > { %v15541_v54 = vadd.f32 %v15540_v40, %v6986_v36  ;;  %12183 = vst [vmem:[%s22102_s12 + $0x280] sm:$0xff] %v15725_v56  ;;  %v15079_v61 = vpop.f32.mrb[232].mxu1 }
 0x7fd   : > { %12289 = vst [vmem:[%s22102_s12 + $0x5d0] sm:$0xff] %v15539_v37  ;;  %v15726_v63 = vadd.f32 %v15079_v61, %v22430_v38  ;;  %v11661_v14 = vpop.f32.mrb[233].mxu1  ;;  %v26850_v38 = vld [vmem:[#allocation102_spill] sm:$0xff] }
 0x7fe   : > { %12290 = vst [vmem:[%s22102_s12 + $0x5d8] sm:$0xff] %v15541_v54  ;;  %v6991_v57 = vpop.f32.mrb[126].mxu0  ;;  %v15727_v3 = vadd.f32 %v11661_v14, %v22418_v51  ;;  %v15546_v52 = vadd.f32 %v26850_v38, %v22844_v4  ;;  %v22856_v51 = vpop.permute.xlu1 %1244  ;;  %v26853_v54 = vld [vmem:[#allocation114_spill] sm:$0xff] }
 0x7ff   : > { %v15543_v58 = vadd.f32 %v15542_v17, %v6991_v57  ;;  %12192 = vst [vmem:[%s22102_s12 + $0x2c8] sm:$0xff] %v15726_v63  ;;  %v6993_v60 = vpop.f32.mrb[127].mxu0  ;;  %v15552_v61 = vadd.f32 %v26853_v54, %v22856_v51 }
 0x800   : > { %v15545_v24 = vadd.f32 %v15544_v27, %v6993_v60  ;;  %12189 = vst [vmem:[%s22102_s12 + $0x2b0] sm:$0xff] %v15727_v3  ;;  %v15082_v11 = vpop.f32.mrb[234].mxu1  ;;  %v26855_v60 = vld [vmem:[#allocation122_spill] sm:$0xff] }
 0x801   : > { %12292 = vst [vmem:[%s22102_s12 + $0x5e8] sm:$0xff] %v15543_v58  ;;  %v15728_v23 = vadd.f32 %v15082_v11, %v22454_v15  ;;  %v11673_v59 = vpop.f32.mrb[235].mxu1  ;;  %v26852_v15 = vld [vmem:[#allocation110_spill] sm:$0xff] }
 0x802   : > { %12293 = vst [vmem:[%s22102_s12 + $0x5f0] sm:$0xff] %v15545_v24  ;;  %v6998_v20 = vpop.f32.mrb[128].mxu0  ;;  %v15729_v8 = vadd.f32 %v11673_v59, %v22442_v49  ;;  %v15550_v56 = vadd.f32 %v26852_v15, %v22856_v51  ;;  %v22868_v49 = vpop.permute.xlu0 %1249 }
 0x803   : > { %v15547_v55 = vadd.f32 %v15546_v52, %v6998_v20  ;;  %12198 = vst [vmem:[%s22102_s12 + $0x2f8] sm:$0xff] %v15728_v23  ;;  %v7000_v21 = vpop.f32.mrb[129].mxu0  ;;  %v15556_v24 = vadd.f32 %v26855_v60, %v22868_v49 }
 0x804   : > { %v15549_v40 = vadd.f32 %v15548_v31, %v7000_v21  ;;  %12195 = vst [vmem:[%s22102_s12 + $0x2e0] sm:$0xff] %v15729_v8  ;;  %v15085_v35 = vpop.f32.mrb[236].mxu1 }
 0x805   : > { %12295 = vst [vmem:[%s22102_s12 + $0x600] sm:$0xff] %v15547_v55  ;;  %v15730_v37 = vadd.f32 %v15085_v35, %v22478_v5  ;;  %v11685_v36 = vpop.f32.mrb[237].mxu1  ;;  %v26854_v5 = vld [vmem:[#allocation118_spill] sm:$0xff] }
 0x806   : > { %12296 = vst [vmem:[%s22102_s12 + $0x608] sm:$0xff] %v15549_v40  ;;  %v7005_v39 = vpop.f32.mrb[130].mxu0  ;;  %v15731_v17 = vadd.f32 %v11685_v36, %v22466_v26  ;;  %v15554_v57 = vadd.f32 %v26854_v5, %v22868_v49  ;;  %v22880_v26 = vpop.permute.xlu1 %1254  ;;  %v26857_v55 = vld [vmem:[#allocation130_spill] sm:$0xff] }
 0x807   : > { %v15551_v63 = vadd.f32 %v15550_v56, %v7005_v39  ;;  %12204 = vst [vmem:[%s22102_s12 + $0x328] sm:$0xff] %v15730_v37  ;;  %v7007_v14 = vpop.f32.mrb[131].mxu0  ;;  %v15560_v21 = vadd.f32 %v26857_v55, %v22880_v26 }
 0x808   : > { %v15553_v32 = vadd.f32 %v15552_v61, %v7007_v14  ;;  %12201 = vst [vmem:[%s22102_s12 + $0x310] sm:$0xff] %v15731_v17  ;;  %v15088_v27 = vpop.f32.mrb[238].mxu1  ;;  %v26859_v17 = vld [vmem:[#allocation139_spill] sm:$0xff] }
 0x809   : > { %12298 = vst [vmem:[%s22102_s12 + $0x618] sm:$0xff] %v15551_v63  ;;  %v15732_v3 = vadd.f32 %v15088_v27, %v22502_v18  ;;  %v11697_v58 = vpop.f32.mrb[239].mxu1  ;;  %v26856_v18 = vld [vmem:[#allocation126_spill] sm:$0xff] }
 0x80a   : > { %12299 = vst [vmem:[%s22102_s12 + $0x620] sm:$0xff] %v15553_v32  ;;  %v7012_v11 = vpop.f32.mrb[132].mxu0  ;;  %v15733_v38 = vadd.f32 %v11697_v58, %v22490_v12  ;;  %v15558_v31 = vadd.f32 %v26856_v18, %v22880_v26  ;;  %v22892_v12 = vpop.permute.xlu0 %1259 }
 0x80b   : > { %v15555_v52 = vadd.f32 %v15554_v57, %v7012_v11  ;;  %12210 = vst [vmem:[%s22102_s12 + $0x358] sm:$0xff] %v15732_v3  ;;  %v7014_v23 = vpop.f32.mrb[133].mxu0  ;;  %v15564_v63 = vadd.f32 %v26859_v17, %v22892_v12  ;;  %v26861_v11 = vld [vmem:[#allocation147_spill] sm:$0xff]  ;;  %v26865_v17 = vld [vmem:[#allocation162_spill] sm:$0xff] }
 0x80c   : > { %v15557_v59 = vadd.f32 %v15556_v24, %v7014_v23  ;;  %12207 = vst [vmem:[%s22102_s12 + $0x340] sm:$0xff] %v15733_v38  ;;  %v15091_v41 = vpop.f32.mrb[240].mxu1 }
 0x80d   : > { %12301 = vst [vmem:[%s22102_s12 + $0x630] sm:$0xff] %v15555_v52  ;;  %v15734_v20 = vadd.f32 %v15091_v41, %v22526_v45  ;;  %v11709_v8 = vpop.f32.mrb[241].mxu1  ;;  %v26858_v45 = vld [vmem:[#allocation134_spill] sm:$0xff] }
 0x80e   : > { %12302 = vst [vmem:[%s22102_s12 + $0x638] sm:$0xff] %v15557_v59  ;;  %v7019_v40 = vpop.f32.mrb[134].mxu0  ;;  %v15735_v35 = vadd.f32 %v11709_v8, %v22514_v16  ;;  %v15562_v54 = vadd.f32 %v26858_v45, %v22892_v12  ;;  %v22904_v16 = vpop.permute.xlu1 %1264 }
 0x80f   : > { %v15559_v15 = vadd.f32 %v15558_v31, %v7019_v40  ;;  %12216 = vst [vmem:[%s22102_s12 + $0x388] sm:$0xff] %v15734_v20  ;;  %v7021_v56 = vpop.f32.mrb[135].mxu0  ;;  %v15568_v38 = vadd.f32 %v26861_v11, %v22904_v16 }
 0x810   : > { %v15561_v37 = vadd.f32 %v15560_v21, %v7021_v56  ;;  %12213 = vst [vmem:[%s22102_s12 + $0x370] sm:$0xff] %v15735_v35  ;;  %v15094_v36 = vpop.f32.mrb[242].mxu1  ;;  %v26863_v21 = vld [vmem:[#allocation154_spill] sm:$0xff] }
 0x811   : > { %12304 = vst [vmem:[%s22102_s12 + $0x648] sm:$0xff] %v15559_v15  ;;  %v15736_v61 = vadd.f32 %v15094_v36, %v22550_v43  ;;  %v11721_v39 = vpop.f32.mrb[243].mxu1  ;;  %v26860_v43 = vld [vmem:[#allocation143_spill] sm:$0xff] }
 0x812   : > { %12305 = vst [vmem:[%s22102_s12 + $0x650] sm:$0xff] %v15561_v37  ;;  %v7026_v14 = vpop.f32.mrb[136].mxu0  ;;  %v15737_v32 = vadd.f32 %v11721_v39, %v22538_v47  ;;  %v15566_v58 = vadd.f32 %v26860_v43, %v22904_v16  ;;  %v22916_v47 = vpop.permute.xlu0 %1269 }
 0x813   : > { %v15563_v27 = vadd.f32 %v15562_v54, %v7026_v14  ;;  %12222 = vst [vmem:[%s22102_s12 + $0x3b8] sm:$0xff] %v15736_v61  ;;  %v7028_v5 = vpop.f32.mrb[137].mxu0  ;;  %v15572_v40 = vadd.f32 %v26863_v21, %v22916_v47 }
 0x814   : > { %v15565_v57 = vadd.f32 %v15564_v63, %v7028_v5  ;;  %12219 = vst [vmem:[%s22102_s12 + $0x3a0] sm:$0xff] %v15737_v32  ;;  %v15097_v3 = vpop.f32.mrb[244].mxu1 }
 0x815   : > { %12307 = vst [vmem:[%s22102_s12 + $0x660] sm:$0xff] %v15563_v27  ;;  %v15738_v60 = vadd.f32 %v15097_v3, %v22574_v29  ;;  %v11733_v24 = vpop.f32.mrb[245].mxu1  ;;  %v26862_v29 = vld [vmem:[#allocation150_spill] sm:$0xff] }
 0x816   : > { %12308 = vst [vmem:[%s22102_s12 + $0x668] sm:$0xff] %v15565_v57  ;;  %v7033_v52 = vpop.f32.mrb[138].mxu0  ;;  %v15739_v23 = vadd.f32 %v11733_v24, %v22562_v62  ;;  %v15570_v20 = vadd.f32 %v26862_v29, %v22916_v47  ;;  %v22928_v62 = vpop.permute.xlu1 %1274  ;;  %v26867_v24 = vld [vmem:[#allocation170_spill] sm:$0xff] }
 0x817   : > { %v15567_v59 = vadd.f32 %v15566_v58, %v7033_v52  ;;  %12228 = vst [vmem:[%s22102_s12 + $0x3e8] sm:$0xff] %v15738_v60  ;;  %v7035_v41 = vpop.f32.mrb[139].mxu0  ;;  %v15576_v63 = vadd.f32 %v26865_v17, %v22928_v62 }
 0x818   : > { %v15569_v18 = vadd.f32 %v15568_v38, %v7035_v41  ;;  %12225 = vst [vmem:[%s22102_s12 + $0x3d0] sm:$0xff] %v15739_v23  ;;  %v15100_v31 = vpop.f32.mrb[246].mxu1 }
 0x819   : > { %12310 = vst [vmem:[%s22102_s12 + $0x678] sm:$0xff] %v15567_v59  ;;  %v15740_v8 = vadd.f32 %v15100_v31, %v22598_v0  ;;  %v11745_v55 = vpop.f32.mrb[247].mxu1  ;;  %v26864_v0 = vld [vmem:[#allocation158_spill] sm:$0xff] }
 0x81a   : > { %12311 = vst [vmem:[%s22102_s12 + $0x680] sm:$0xff] %v15569_v18  ;;  %v7040_v35 = vpop.f32.mrb[140].mxu0  ;;  %v15741_v15 = vadd.f32 %v11745_v55, %v22586_v7  ;;  %v15574_v54 = vadd.f32 %v26864_v0, %v22928_v62  ;;  %v22940_v7 = vpop.permute.xlu0 %1279 }
 0x81b   : > { %v15571_v56 = vadd.f32 %v15570_v20, %v7040_v35  ;;  %12234 = vst [vmem:[%s22102_s12 + $0x418] sm:$0xff] %v15740_v8  ;;  %v7042_v37 = vpop.f32.mrb[141].mxu0  ;;  %v15580_v11 = vadd.f32 %v26867_v24, %v22940_v7  ;;  %v26869_v8 = vld [vmem:[#allocation178_spill] sm:$0xff] }
 0x81c   : > { %v15573_v36 = vadd.f32 %v15572_v40, %v7042_v37  ;;  %12231 = vst [vmem:[%s22102_s12 + $0x400] sm:$0xff] %v15741_v15  ;;  %v15103_v45 = vpop.f32.mrb[248].mxu1  ;;  %v26870_v40 = vld [vmem:[#allocation471_spill] sm:$0xff] }
 0x81d   : > { %12313 = vst [vmem:[%s22102_s12 + $0x690] sm:$0xff] %v15571_v56  ;;  %v15742_v61 = vadd.f32 %v15103_v45, %v22622_v28  ;;  %v11757_v39 = vpop.f32.mrb[249].mxu1  ;;  %v26866_v28 = vld [vmem:[#allocation166_spill] sm:$0xff] }
 0x81e   : > { %12314 = vst [vmem:[%s22102_s12 + $0x698] sm:$0xff] %v15573_v36  ;;  %v7047_v14 = vpop.f32.mrb[142].mxu0  ;;  %v15743_v32 = vadd.f32 %v11757_v39, %v22610_v42  ;;  %v15578_v43 = vadd.f32 %v26866_v28, %v22940_v7  ;;  %v22952_v42 = vpop.permute.xlu1 %1284 }
 0x81f   : > { %v15575_v27 = vadd.f32 %v15574_v54, %v7047_v14  ;;  %12240 = vst [vmem:[%s22102_s12 + $0x448] sm:$0xff] %v15742_v61  ;;  %v7049_v5 = vpop.f32.mrb[143].mxu0  ;;  %v15584_v55 = vadd.f32 %v26869_v8, %v22952_v42  ;;  %v26872_v61 = vld [vmem:[#allocation186_spill] sm:$0xff] }
 0x820   : > { %v15577_v57 = vadd.f32 %v15576_v63, %v7049_v5  ;;  %12237 = vst [vmem:[%s22102_s12 + $0x430] sm:$0xff] %v15743_v32  ;;  %v15106_v3 = vpop.f32.mrb[250].mxu1 }
 0x821   : > { %12316 = vst [vmem:[%s22102_s12 + $0x6a8] sm:$0xff] %v15575_v27  ;;  %v15744_v58 = vadd.f32 %v15106_v3, %v22646_v6  ;;  %v11769_v60 = vpop.f32.mrb[251].mxu1  ;;  %v26868_v6 = vld [vmem:[#allocation174_spill] sm:$0xff] }
 0x822   : > { %12317 = vst [vmem:[%s22102_s12 + $0x6b0] sm:$0xff] %v15577_v57  ;;  %v7054_v38 = vpop.f32.mrb[144].mxu0  ;;  %v15745_v52 = vadd.f32 %v11769_v60, %v22634_v2  ;;  %v15582_v31 = vadd.f32 %v26868_v6, %v22952_v42  ;;  %v22964_v2 = vpop.permute.xlu0 %1289 }
 0x823   : > { %v15579_v23 = vadd.f32 %v15578_v43, %v7054_v38  ;;  %12246 = vst [vmem:[%s22102_s12 + $0x478] sm:$0xff] %v15744_v58  ;;  %v7056_v59 = vpop.f32.mrb[145].mxu0  ;;  %v15588_v39 = vadd.f32 %v26872_v61, %v22964_v2  ;;  %v22976_v17 = vpop.permute.xlu1 %1294  ;;  %v26874_v58 = vld [vmem:[#allocation194_spill] sm:$0xff] }
 0x824   : > { %v15581_v41 = vadd.f32 %v15580_v11, %v7056_v59  ;;  %12243 = vst [vmem:[%s22102_s12 + $0x460] sm:$0xff] %v15745_v52  ;;  %v15109_v18 = vpop.f32.mrb[252].mxu1  ;;  %v15592_v60 = vadd.f32 %v26874_v58, %v22976_v17 }
 0x825   : > { %12319 = vst [vmem:[%s22102_s12 + $0x6c0] sm:$0xff] %v15579_v23  ;;  %v15746_v29 = vadd.f32 %v15109_v18, %v22666_v25  ;;  %v11781_v20 = vpop.f32.mrb[253].mxu1  ;;  %v26871_v25 = vld [vmem:[#allocation182_spill] sm:$0xff] }
 0x826   : > { %12320 = vst [vmem:[%s22102_s12 + $0x6c8] sm:$0xff] %v15581_v41  ;;  %v7061_v21 = vpop.f32.mrb[146].mxu0  ;;  %v15747_v35 = vadd.f32 %v11781_v20, %v26870_v40  ;;  %v15586_v45 = vadd.f32 %v26871_v25, %v22964_v2 }
 0x827   : > { %v15583_v15 = vadd.f32 %v15582_v31, %v7061_v21  ;;  %12252 = vst [vmem:[%s22102_s12 + $0x4a8] sm:$0xff] %v15746_v29  ;;  %v7063_v56 = vpop.f32.mrb[147].mxu0  ;;  %v26876_v31 = vld [vmem:[#allocation202_spill] sm:$0xff] }
 0x828   : > { %v15585_v37 = vadd.f32 %v15584_v55, %v7063_v56  ;;  %12249 = vst [vmem:[%s22102_s12 + $0x490] sm:$0xff] %v15747_v35  ;;  %v15112_v36 = vpop.f32.mrb[254].mxu1 }
 0x829   : > { %12322 = vst [vmem:[%s22102_s12 + $0x6d8] sm:$0xff] %v15583_v15  ;;  %v15748_v0 = vadd.f32 %v15112_v36, %v22688_v53  ;;  %v11793_v54 = vpop.f32.mrb[255].mxu1  ;;  %v26873_v53 = vld [vmem:[#allocation190_spill] sm:$0xff] }
 0x82a   : > { %12323 = vst [vmem:[%s22102_s12 + $0x6e0] sm:$0xff] %v15585_v37  ;;  %v7068_v63 = vpop.f32.mrb[148].mxu0  ;;  %v15749_v14 = vadd.f32 %v11793_v54, %v22676_v48  ;;  %v15590_v3 = vadd.f32 %v26873_v53, %v22976_v17  ;;  %v22988_v48 = vpop.permute.xlu0 %1299  ;;  %v26878_v36 = vld [vmem:[#allocation210_spill] sm:$0xff] }
 0x82b   : > { %v15587_v32 = vadd.f32 %v15586_v45, %v7068_v63  ;;  %12258 = vst [vmem:[%s22102_s12 + $0x4d8] sm:$0xff] %v15748_v0  ;;  %v7070_v27 = vpop.f32.mrb[149].mxu0  ;;  %v15596_v29 = vadd.f32 %v26876_v31, %v22988_v48 }
 0x82c   : > { %v15589_v5 = vadd.f32 %v15588_v39, %v7070_v27  ;;  %12255 = vst [vmem:[%s22102_s12 + $0x4c0] sm:$0xff] %v15749_v14  ;;  %v15115_v57 = vpop.f32.mrb[0].mxu1 }
 0x82d   : > { %12325 = vst [vmem:[%s22102_s12 + $0x6f0] sm:$0xff] %v15587_v32  ;;  %v15750_v28 = vadd.f32 %v15115_v57, %v22712_v44  ;;  %v11805_v43 = vpop.f32.mrb[1].mxu1  ;;  %v26875_v44 = vld [vmem:[#allocation198_spill] sm:$0xff] }
 0x82e   : > { %12326 = vst [vmem:[%s22102_s12 + $0x6f8] sm:$0xff] %v15589_v5  ;;  %v7075_v24 = vpop.f32.mrb[150].mxu0  ;;  %v15751_v11 = vadd.f32 %v11805_v43, %v22700_v19  ;;  %v15594_v41 = vadd.f32 %v26875_v44, %v22988_v48  ;;  %v23000_v19 = vpop.permute.xlu1 %1304  ;;  %v26880_v5 = vld [vmem:[#allocation218_spill] sm:$0xff] }
 0x82f   : > { %v15591_v38 = vadd.f32 %v15590_v3, %v7075_v24  ;;  %12264 = vst [vmem:[%s22102_s12 + $0x508] sm:$0xff] %v15750_v28  ;;  %v7077_v52 = vpop.f32.mrb[151].mxu0  ;;  %v15600_v25 = vadd.f32 %v26878_v36, %v23000_v19 }
 0x830   : > { %v15593_v23 = vadd.f32 %v15592_v60, %v7077_v52  ;;  %12261 = vst [vmem:[%s22102_s12 + $0x4f0] sm:$0xff] %v15751_v11  ;;  %v15118_v59 = vpop.f32.mrb[2].mxu1  ;;  %v26882_v52 = vld [vmem:[#allocation227_spill] sm:$0xff] }
 0x831   : > { %12328 = vst [vmem:[%s22102_s12 + $0x708] sm:$0xff] %v15591_v38  ;;  %v15752_v18 = vadd.f32 %v15118_v59, %v22736_v34  ;;  %v11817_v6 = vpop.f32.mrb[3].mxu1  ;;  %v26877_v34 = vld [vmem:[#allocation206_spill] sm:$0xff] }
 0x832   : > { %12329 = vst [vmem:[%s22102_s12 + $0x710] sm:$0xff] %v15593_v23  ;;  %v7082_v20 = vpop.f32.mrb[152].mxu0  ;;  %v15753_v8 = vadd.f32 %v11817_v6, %v22724_v13  ;;  %v15598_v15 = vadd.f32 %v26877_v34, %v23000_v19  ;;  %v23012_v13 = vpop.permute.xlu0 %1309 }
 0x833   : > { %v15595_v55 = vadd.f32 %v15594_v41, %v7082_v20  ;;  %12270 = vst [vmem:[%s22102_s12 + $0x538] sm:$0xff] %v15752_v18  ;;  %v7084_v21 = vpop.f32.mrb[153].mxu0  ;;  %v15604_v57 = vadd.f32 %v26880_v5, %v23012_v13 }
 0x834   : > { %v15597_v40 = vadd.f32 %v15596_v29, %v7084_v21  ;;  %12267 = vst [vmem:[%s22102_s12 + $0x520] sm:$0xff] %v15753_v8  ;;  %v15121_v35 = vpop.f32.mrb[4].mxu1 }
 0x835   : > { %12331 = vst [vmem:[%s22102_s12 + $0x720] sm:$0xff] %v15595_v55  ;;  %v15754_v56 = vadd.f32 %v15121_v35, %v22760_v46  ;;  %v11829_v37 = vpop.f32.mrb[5].mxu1  ;;  %v26879_v46 = vld [vmem:[#allocation214_spill] sm:$0xff] }
 0x836   : > { %12332 = vst [vmem:[%s22102_s12 + $0x728] sm:$0xff] %v15597_v40  ;;  %v7089_v45 = vpop.f32.mrb[154].mxu0  ;;  %v15755_v0 = vadd.f32 %v11829_v37, %v22748_v33  ;;  %v15602_v14 = vadd.f32 %v26879_v46, %v23012_v13  ;;  %v23024_v33 = vpop.permute.xlu1 %1314  ;;  %v26884_v55 = vld [vmem:[#allocation234_spill] sm:$0xff] }
 0x837   : > { %v15599_v54 = vadd.f32 %v15598_v15, %v7089_v45  ;;  %12276 = vst [vmem:[%s22102_s12 + $0x568] sm:$0xff] %v15754_v56  ;;  %v7091_v61 = vpop.f32.mrb[155].mxu0  ;;  %v15608_v23 = vadd.f32 %v26882_v52, %v23024_v33 }
 0x838   : > { %v15601_v39 = vadd.f32 %v15600_v25, %v7091_v61  ;;  %12273 = vst [vmem:[%s22102_s12 + $0x550] sm:$0xff] %v15755_v0  ;;  %v15124_v63 = vpop.f32.mrb[6].mxu1  ;;  %v26886_v0 = vld [vmem:[#allocation239_spill] sm:$0xff] }
 0x839   : > { %12334 = vst [vmem:[%s22102_s12 + $0x738] sm:$0xff] %v15599_v54  ;;  %v15756_v32 = vadd.f32 %v15124_v63, %v22784_v9  ;;  %v11841_v27 = vpop.f32.mrb[7].mxu1  ;;  %v26881_v9 = vld [vmem:[#allocation223_spill] sm:$0xff] }
 0x83a   : > { %12335 = vst [vmem:[%s22102_s12 + $0x740] sm:$0xff] %v15601_v39  ;;  %v7096_v53 = vpop.f32.mrb[156].mxu0  ;;  %v15757_v3 = vadd.f32 %v11841_v27, %v22772_v22  ;;  %v15606_v24 = vadd.f32 %v26881_v9, %v23024_v33  ;;  %v23036_v22 = vpop.permute.xlu0 %1319 }
 0x83b   : > { %v15603_v28 = vadd.f32 %v15602_v14, %v7096_v53  ;;  %12282 = vst [vmem:[%s22102_s12 + $0x598] sm:$0xff] %v15756_v32  ;;  %v7098_v43 = vpop.f32.mrb[157].mxu0  ;;  %v15612_v21 = vadd.f32 %v26884_v55, %v23036_v22  ;;  %v26888_v53 = vld [vmem:[#allocation251_spill] sm:$0xff]  ;;  %v26892_v55 = vld [vmem:[#allocation269_spill] sm:$0xff] }
 0x83c   : > { %v15605_v58 = vadd.f32 %v15604_v57, %v7098_v43  ;;  %12279 = vst [vmem:[%s22102_s12 + $0x580] sm:$0xff] %v15757_v3  ;;  %v15127_v60 = vpop.f32.mrb[8].mxu1 }
 0x83d   : > { %12337 = vst [vmem:[%s22102_s12 + $0x750] sm:$0xff] %v15603_v28  ;;  %v15758_v11 = vadd.f32 %v15127_v60, %v22808_v50  ;;  %v11853_v38 = vpop.f32.mrb[9].mxu1  ;;  %v26883_v50 = vld [vmem:[#allocation231_spill] sm:$0xff] }
 0x83e   : > { %12338 = vst [vmem:[%s22102_s12 + $0x758] sm:$0xff] %v15605_v58  ;;  %v7103_v59 = vpop.f32.mrb[158].mxu0  ;;  %v15759_v44 = vadd.f32 %v11853_v38, %v22796_v30  ;;  %v15610_v29 = vadd.f32 %v26883_v50, %v23036_v22  ;;  %v23048_v30 = vpop.permute.xlu1 %1324 }
 0x83f   : > { %v15607_v41 = vadd.f32 %v15606_v24, %v7103_v59  ;;  %12288 = vst [vmem:[%s22102_s12 + $0x5c8] sm:$0xff] %v15758_v11  ;;  %v7105_v18 = vpop.f32.mrb[159].mxu0  ;;  %v15616_v54 = vadd.f32 %v26886_v0, %v23048_v30 }
 0x840   : > { %v15609_v6 = vadd.f32 %v15608_v23, %v7105_v18  ;;  %12285 = vst [vmem:[%s22102_s12 + $0x5b0] sm:$0xff] %v15759_v44  ;;  %v15130_v31 = vpop.f32.mrb[10].mxu1  ;;  %v26890_v23 = vld [vmem:[#allocation257_spill] sm:$0xff] }
 0x841   : > { %12340 = vst [vmem:[%s22102_s12 + $0x768] sm:$0xff] %v15607_v41  ;;  %v15760_v20 = vadd.f32 %v15130_v31, %v22832_v1  ;;  %v11865_v8 = vpop.f32.mrb[11].mxu1  ;;  %v26885_v1 = vld [vmem:[#allocation236_spill] sm:$0xff] }
 0x842   : > { %12341 = vst [vmem:[%s22102_s12 + $0x770] sm:$0xff] %v15609_v6  ;;  %v7110_v40 = vpop.f32.mrb[160].mxu0  ;;  %v15761_v35 = vadd.f32 %v11865_v8, %v22820_v10  ;;  %v15614_v36 = vadd.f32 %v26885_v1, %v23048_v30  ;;  %v23060_v10 = vpop.permute.xlu0 %1329 }
 0x843   : > { %v15611_v34 = vadd.f32 %v15610_v29, %v7110_v40  ;;  %12294 = vst [vmem:[%s22102_s12 + $0x5f8] sm:$0xff] %v15760_v20  ;;  %v7112_v15 = vpop.f32.mrb[161].mxu0  ;;  %v15620_v3 = vadd.f32 %v26888_v53, %v23060_v10 }
 0x844   : > { %v15613_v56 = vadd.f32 %v15612_v21, %v7112_v15  ;;  %12291 = vst [vmem:[%s22102_s12 + $0x5e0] sm:$0xff] %v15761_v35  ;;  %v15133_v37 = vpop.f32.mrb[12].mxu1 }
 0x845   : > { %12343 = vst [vmem:[%s22102_s12 + $0x780] sm:$0xff] %v15611_v34  ;;  %v15762_v25 = vadd.f32 %v15133_v37, %v22856_v51  ;;  %v11877_v45 = vpop.f32.mrb[13].mxu1  ;;  %v26887_v51 = vld [vmem:[#allocation245_spill] sm:$0xff] }
 0x846   : > { %12344 = vst [vmem:[%s22102_s12 + $0x788] sm:$0xff] %v15613_v56  ;;  %v7117_v61 = vpop.f32.mrb[162].mxu0  ;;  %v15763_v39 = vadd.f32 %v11877_v45, %v22844_v4  ;;  %v15618_v27 = vadd.f32 %v26887_v51, %v23060_v10  ;;  %v23072_v4 = vpop.permute.xlu1 %1334  ;;  %v26894_v45 = vld [vmem:[#allocation279_spill] sm:$0xff] }
 0x847   : > { %v15615_v63 = vadd.f32 %v15614_v36, %v7117_v61  ;;  %12300 = vst [vmem:[%s22102_s12 + $0x628] sm:$0xff] %v15762_v25  ;;  %v7119_v46 = vpop.f32.mrb[163].mxu0  ;;  %v15624_v59 = vadd.f32 %v26890_v23, %v23072_v4 }
 0x848   : > { %v15617_v14 = vadd.f32 %v15616_v54, %v7119_v46  ;;  %12297 = vst [vmem:[%s22102_s12 + $0x610] sm:$0xff] %v15763_v39  ;;  %v15136_v32 = vpop.f32.mrb[14].mxu1 }
 0x849   : > { %12346 = vst [vmem:[%s22102_s12 + $0x798] sm:$0xff] %v15615_v63  ;;  %v15764_v5 = vadd.f32 %v15136_v32, %v22880_v26  ;;  %v11889_v57 = vpop.f32.mrb[15].mxu1  ;;  %v26889_v26 = vld [vmem:[#allocation255_spill] sm:$0xff] }
 0x84a   : > { %12347 = vst [vmem:[%s22102_s12 + $0x7a0] sm:$0xff] %v15617_v14  ;;  %v7124_v28 = vpop.f32.mrb[164].mxu0  ;;  %v15765_v43 = vadd.f32 %v11889_v57, %v22868_v49  ;;  %v15622_v11 = vadd.f32 %v26889_v26, %v23072_v4  ;;  %v23084_v49 = vpop.permute.xlu0 %1339 }
 0x84b   : > { %v15619_v58 = vadd.f32 %v15618_v27, %v7124_v28  ;;  %12306 = vst [vmem:[%s22102_s12 + $0x658] sm:$0xff] %v15764_v5  ;;  %v7126_v60 = vpop.f32.mrb[165].mxu0  ;;  %v15628_v21 = vadd.f32 %v26892_v55, %v23084_v49  ;;  %v26896_v5 = vld [vmem:[#allocation288_spill] sm:$0xff] }
 0x84c   : > { %v15621_v9 = vadd.f32 %v15620_v3, %v7126_v60  ;;  %12303 = vst [vmem:[%s22102_s12 + $0x640] sm:$0xff] %v15765_v43  ;;  %v15139_v24 = vpop.f32.mrb[16].mxu1 }
 0x84d   : > { %12349 = vst [vmem:[%s22102_s12 + $0x7b0] sm:$0xff] %v15619_v58  ;;  %v15766_v38 = vadd.f32 %v15139_v24, %v22904_v16  ;;  %v11901_v52 = vpop.f32.mrb[17].mxu1  ;;  %v26891_v16 = vld [vmem:[#allocation262_spill] sm:$0xff] }
 0x84e   : > { %12350 = vst [vmem:[%s22102_s12 + $0x7b8] sm:$0xff] %v15621_v9  ;;  %v7131_v44 = vpop.f32.mrb[166].mxu0  ;;  %v15767_v41 = vadd.f32 %v11901_v52, %v22892_v12  ;;  %v15626_v29 = vadd.f32 %v26891_v16, %v23084_v49  ;;  %v23096_v12 = vpop.permute.xlu1 %1344  ;;  %v26900_v16 = vld [vmem:[#allocation308_spill] sm:$0xff] }
 0x84f   : > { %v15623_v18 = vadd.f32 %v15622_v11, %v7131_v44  ;;  %12312 = vst [vmem:[%s22102_s12 + $0x688] sm:$0xff] %v15766_v38  ;;  %v7133_v6 = vpop.f32.mrb[167].mxu0  ;;  %v15632_v0 = vadd.f32 %v26894_v45, %v23096_v12  ;;  %v26898_v11 = vld [vmem:[#allocation301_spill] sm:$0xff] }
 0x850   : > { %v15625_v31 = vadd.f32 %v15624_v59, %v7133_v6  ;;  %12309 = vst [vmem:[%s22102_s12 + $0x670] sm:$0xff] %v15767_v41  ;;  %v15142_v50 = vpop.f32.mrb[18].mxu1 }
 0x851   : > { %12352 = vst [vmem:[%s22102_s12 + $0x7c8] sm:$0xff] %v15623_v18  ;;  %v15768_v20 = vadd.f32 %v15142_v50, %v22928_v62  ;;  %v11913_v8 = vpop.f32.mrb[19].mxu1  ;;  %v26893_v62 = vld [vmem:[#allocation275_spill] sm:$0xff] }
 0x852   : > { %12353 = vst [vmem:[%s22102_s12 + $0x7d0] sm:$0xff] %v15625_v31  ;;  %v7138_v40 = vpop.f32.mrb[168].mxu0  ;;  %v15769_v35 = vadd.f32 %v11913_v8, %v22916_v47  ;;  %v15630_v1 = vadd.f32 %v26893_v62, %v23096_v12  ;;  %v23108_v47 = vpop.permute.xlu0 %1349 }
 0x853   : > { %v15627_v34 = vadd.f32 %v15626_v29, %v7138_v40  ;;  %12318 = vst [vmem:[%s22102_s12 + $0x6b8] sm:$0xff] %v15768_v20  ;;  %v7140_v15 = vpop.f32.mrb[169].mxu0  ;;  %v15636_v57 = vadd.f32 %v26896_v5, %v23108_v47 }
 0x854   : > { %v15629_v56 = vadd.f32 %v15628_v21, %v7140_v15  ;;  %12315 = vst [vmem:[%s22102_s12 + $0x6a0] sm:$0xff] %v15769_v35  ;;  %v15145_v37 = vpop.f32.mrb[20].mxu1 }
 0x855   : > { %12355 = vst [vmem:[%s22102_s12 + $0x7e0] sm:$0xff] %v15627_v34  ;;  %v15770_v36 = vadd.f32 %v15145_v37, %v22952_v42  ;;  %v11925_v25 = vpop.f32.mrb[21].mxu1  ;;  %v26895_v42 = vld [vmem:[#allocation282_spill] sm:$0xff] }
 0x856   : > { %12356 = vst [vmem:[%s22102_s12 + $0x7e8] sm:$0xff] %v15629_v56  ;;  %v7145_v54 = vpop.f32.mrb[170].mxu0  ;;  %v15771_v61 = vadd.f32 %v11925_v25, %v22940_v7  ;;  %v15634_v32 = vadd.f32 %v26895_v42, %v23108_v47  ;;  %v23120_v7 = vpop.permute.xlu1 %1354  ;;  %v26902_v37 = vld [vmem:[#allocation322_spill] sm:$0xff] }
 0x857   : > { %v15631_v39 = vadd.f32 %v15630_v1, %v7145_v54  ;;  %12324 = vst [vmem:[%s22102_s12 + $0x6e8] sm:$0xff] %v15770_v36  ;;  %v7147_v63 = vpop.f32.mrb[171].mxu0  ;;  %v15640_v38 = vadd.f32 %v26898_v11, %v23120_v7 }
 0x858   : > { %v15633_v46 = vadd.f32 %v15632_v0, %v7147_v63  ;;  %12321 = vst [vmem:[%s22102_s12 + $0x6d0] sm:$0xff] %v15771_v61  ;;  %v15148_v14 = vpop.f32.mrb[22].mxu1 }
 0x859   : > { %12358 = vst [vmem:[%s22102_s12 + $0x7f8] sm:$0xff] %v15631_v39  ;;  %v15772_v51 = vadd.f32 %v15148_v14, %v22976_v17  ;;  %v11937_v27 = vpop.f32.mrb[23].mxu1  ;;  %v26897_v17 = vld [vmem:[#allocation295_spill] sm:$0xff] }
 0x85a   : > { %12359 = vst [vmem:[%s22102_s12 + $0x800] sm:$0xff] %v15633_v46  ;;  %v7152_v53 = vpop.f32.mrb[172].mxu0  ;;  %v15773_v3 = vadd.f32 %v11937_v27, %v22964_v2  ;;  %v15638_v9 = vadd.f32 %v26897_v17, %v23120_v7  ;;  %v23132_v2 = vpop.permute.xlu0 %1359  ;;  %v26904_v46 = vld [vmem:[#allocation333_spill] sm:$0xff] }
 0x85b   : > { %v15635_v28 = vadd.f32 %v15634_v32, %v7152_v53  ;;  %12330 = vst [vmem:[%s22102_s12 + $0x718] sm:$0xff] %v15772_v51  ;;  %v7154_v43 = vpop.f32.mrb[173].mxu0  ;;  %v15644_v29 = vadd.f32 %v26900_v16, %v23132_v2  ;;  %v26905_v53 = vld [vmem:[#allocation337_spill] sm:$0xff]  ;;  %v26909_v16 = vld [vmem:[#allocation363_spill] sm:$0xff] }
 0x85c   : > { %v15637_v58 = vadd.f32 %v15636_v57, %v7154_v43  ;;  %12327 = vst [vmem:[%s22102_s12 + $0x700] sm:$0xff] %v15773_v3  ;;  %v15151_v60 = vpop.f32.mrb[24].mxu1  ;;  %v26906_v43 = vld [vmem:[#allocation343_spill] sm:$0xff] }
 0x85d   : > { %12361 = vst [vmem:[%s22102_s12 + $0x810] sm:$0xff] %v15635_v28  ;;  %v15774_v24 = vadd.f32 %v15151_v60, %v23000_v19  ;;  %v11949_v26 = vpop.f32.mrb[25].mxu1  ;;  %v26899_v19 = vld [vmem:[#allocation305_spill] sm:$0xff] }
 0x85e   : > { %12362 = vst [vmem:[%s22102_s12 + $0x818] sm:$0xff] %v15637_v58  ;;  %v7159_v52 = vpop.f32.mrb[174].mxu0  ;;  %v15775_v23 = vadd.f32 %v11949_v26, %v22988_v48  ;;  %v15642_v6 = vadd.f32 %v26899_v19, %v23132_v2  ;;  %v23144_v48 = vpop.permute.xlu1 %1364 }
 0x85f   : > { %v15639_v59 = vadd.f32 %v15638_v9, %v7159_v52  ;;  %12336 = vst [vmem:[%s22102_s12 + $0x748] sm:$0xff] %v15774_v24  ;;  %v7161_v44 = vpop.f32.mrb[175].mxu0  ;;  %v15648_v62 = vadd.f32 %v26902_v37, %v23144_v48 }
 0x860   : > { %v15641_v41 = vadd.f32 %v15640_v38, %v7161_v44  ;;  %12333 = vst [vmem:[%s22102_s12 + $0x730] sm:$0xff] %v15775_v23  ;;  %v15154_v18 = vpop.f32.mrb[26].mxu1 }
 0x861   : > { %12364 = vst [vmem:[%s22102_s12 + $0x828] sm:$0xff] %v15639_v59  ;;  %v15776_v31 = vadd.f32 %v15154_v18, %v23024_v33  ;;  %v11961_v50 = vpop.f32.mrb[27].mxu1  ;;  %v26901_v33 = vld [vmem:[#allocation313_spill] sm:$0xff]  ;;  %v26908_v59 = vld [vmem:[#allocation358_spill] sm:$0xff] }
 0x862   : > { %12365 = vst [vmem:[%s22102_s12 + $0x830] sm:$0xff] %v15641_v41  ;;  %v7166_v20 = vpop.f32.mrb[176].mxu0  ;;  %v15777_v8 = vadd.f32 %v11961_v50, %v23012_v13  ;;  %v15646_v34 = vadd.f32 %v26901_v33, %v23144_v48  ;;  %v23156_v13 = vpop.permute.xlu0 %1369 }
 0x863   : > { %v15643_v55 = vadd.f32 %v15642_v6, %v7166_v20  ;;  %12342 = vst [vmem:[%s22102_s12 + $0x778] sm:$0xff] %v15776_v31  ;;  %v7168_v21 = vpop.f32.mrb[177].mxu0  ;;  %v15652_v14 = vadd.f32 %v26904_v46, %v23156_v13 }
 0x864   : > { %v15645_v40 = vadd.f32 %v15644_v29, %v7168_v21  ;;  %12339 = vst [vmem:[%s22102_s12 + $0x760] sm:$0xff] %v15777_v8  ;;  %v15157_v35 = vpop.f32.mrb[28].mxu1  ;;  %v26910_v8 = vld [vmem:[#allocation367_spill] sm:$0xff] }
 0x865   : > { %12367 = vst [vmem:[%s22102_s12 + $0x840] sm:$0xff] %v15643_v55  ;;  %v15778_v15 = vadd.f32 %v15157_v35, %v23048_v30  ;;  %v11973_v56 = vpop.f32.mrb[29].mxu1  ;;  %v26903_v30 = vld [vmem:[#allocation328_spill] sm:$0xff] }
 0x866   : > { %12368 = vst [vmem:[%s22102_s12 + $0x848] sm:$0xff] %v15645_v40  ;;  %v7173_v1 = vpop.f32.mrb[178].mxu0  ;;  %v15779_v36 = vadd.f32 %v11973_v56, %v23036_v22  ;;  %v15650_v61 = vadd.f32 %v26903_v30, %v23156_v13  ;;  %v1375_v22 = vpop.permute.xlu1 %1374  ;;  %v26911_v56 = vld [vmem:[#allocation373_spill] sm:$0xff] }
 0x867   : > { %v15647_v25 = vadd.f32 %v15646_v34, %v7173_v1  ;;  %12348 = vst [vmem:[%s22102_s12 + $0x7a8] sm:$0xff] %v15778_v15  ;;  %v7175_v45 = vpop.f32.mrb[179].mxu0  ;;  %v15656_v58 = vadd.f32 %v26906_v43, %v1375_v22  ;;  %v23176_v60 = vpop.permute.xlu0 %1379  ;;  %v26912_v1 = vld [vmem:[#allocation382_spill] sm:$0xff] }
 0x868   : > { %v15649_v0 = vadd.f32 %v15648_v62, %v7175_v45  ;;  %12345 = vst [vmem:[%s22102_s12 + $0x790] sm:$0xff] %v15779_v36  ;;  %v15160_v54 = vpop.f32.mrb[30].mxu1  ;;  %v15660_v44 = vadd.f32 %v26908_v59, %v23176_v60 }
 0x869   : > { %12370 = vst [vmem:[%s22102_s12 + $0x858] sm:$0xff] %v15647_v25  ;;  %v15780_v39 = vadd.f32 %v15160_v54, %v23072_v4  ;;  %v11985_v63 = vpop.f32.mrb[31].mxu1  ;;  %v15654_v4 = vadd.f32 %v26905_v53, %v1375_v22 }
 0x86a   : > { %12371 = vst [vmem:[%s22102_s12 + $0x860] sm:$0xff] %v15649_v0  ;;  %v7180_v42 = vpop.f32.mrb[180].mxu0  ;;  %v15781_v32 = vadd.f32 %v11985_v63, %v23060_v10 }
 0x86b   : > { %v15651_v51 = vadd.f32 %v15650_v61, %v7180_v42  ;;  %12354 = vst [vmem:[%s22102_s12 + $0x7d8] sm:$0xff] %v15780_v39  ;;  %v7182_v27 = vpop.f32.mrb[181].mxu0  ;;  %v1390_v21 = vpop.permute.xlu0 %1389  ;;  %v26913_v39 = vld [vmem:[#allocation388_spill] sm:$0xff] }
 0x86c   : > { %v15653_v5 = vadd.f32 %v15652_v14, %v7182_v27  ;;  %12351 = vst [vmem:[%s22102_s12 + $0x7c0] sm:$0xff] %v15781_v32  ;;  %v15163_v57 = vpop.f32.mrb[32].mxu1  ;;  %v15666_v37 = vadd.f32 %v26911_v56, %v1390_v21  ;;  %v15668_v36 = vadd.f32 %v26912_v1, %v1390_v21 }
 0x86d   : > { %12373 = vst [vmem:[%s22102_s12 + $0x870] sm:$0xff] %v15651_v51  ;;  %v15782_v3 = vadd.f32 %v15163_v57, %v23096_v12  ;;  %v11997_v28 = vpop.f32.mrb[33].mxu1  ;;  %v26907_v12 = vld [vmem:[#allocation352_spill] sm:$0xff] }
 0x86e   : > { %12374 = vst [vmem:[%s22102_s12 + $0x878] sm:$0xff] %v15653_v5  ;;  %v7187_v10 = vpop.f32.mrb[182].mxu0  ;;  %v15783_v17 = vadd.f32 %v11997_v28, %v23084_v49  ;;  %v15658_v38 = vadd.f32 %v26907_v12, %v23176_v60  ;;  %v1385_v49 = vpop.permute.xlu1 %1384 }
 0x86f   : > { %v15655_v9 = vadd.f32 %v15654_v4, %v7187_v10  ;;  %12360 = vst [vmem:[%s22102_s12 + $0x808] sm:$0xff] %v15782_v3  ;;  %v7189_v24 = vpop.f32.mrb[183].mxu0  ;;  %v15664_v55 = vadd.f32 %v26910_v8, %v1385_v49  ;;  %v1400_v32 = vpop.permute.xlu0 %1399  ;;  %v26915_v4 = vld [vmem:[#allocation397_spill] sm:$0xff] }
 0x870   : > { %v15657_v26 = vadd.f32 %v15656_v58, %v7189_v24  ;;  %12357 = vst [vmem:[%s22102_s12 + $0x7f0] sm:$0xff] %v15783_v17  ;;  %v15166_v11 = vpop.f32.mrb[34].mxu1  ;;  %v15674_v3 = vadd.f32 %v26915_v4, %v1400_v32  ;;  %v26916_v58 = vld [vmem:[#allocation403_spill] sm:$0xff] }
 0x871   : > { %12376 = vst [vmem:[%s22102_s12 + $0x888] sm:$0xff] %v15655_v9  ;;  %v15784_v52 = vadd.f32 %v15166_v11, %v23120_v7  ;;  %v12009_v23 = vpop.f32.mrb[35].mxu1  ;;  %v15662_v7 = vadd.f32 %v26909_v16, %v1385_v49  ;;  %v15676_v10 = vadd.f32 %v26916_v58, %v1400_v32 }
 0x872   : > { %12377 = vst [vmem:[%s22102_s12 + $0x890] sm:$0xff] %v15657_v26  ;;  %v7194_v41 = vpop.f32.mrb[184].mxu0  ;;  %v15785_v18 = vadd.f32 %v12009_v23, %v23108_v47  ;;  %v1395_v25 = vpop.permute.xlu1 %1394 }
 0x873   : > { %v15659_v19 = vadd.f32 %v15658_v38, %v7194_v41  ;;  %12366 = vst [vmem:[%s22102_s12 + $0x838] sm:$0xff] %v15784_v52  ;;  %v7196_v6 = vpop.f32.mrb[185].mxu0  ;;  %v15670_v63 = vadd.f32 %v26913_v39, %v1395_v25  ;;  %v26917_v38 = vld [vmem:[#allocation412_spill] sm:$0xff]  ;;  %v1410_v41 = vpop.permute.xlu0 %1409 }
 0x874   : > { %v15661_v31 = vadd.f32 %v15660_v44, %v7196_v6  ;;  %12363 = vst [vmem:[%s22102_s12 + $0x820] sm:$0xff] %v15785_v18  ;;  %v15169_v50 = vpop.f32.mrb[36].mxu1  ;;  %v26918_v44 = vld [vmem:[#allocation418_spill] sm:$0xff] }
 0x875   : > { %12379 = vst [vmem:[%s22102_s12 + $0x8a0] sm:$0xff] %v15659_v19  ;;  %v15786_v29 = vadd.f32 %v15169_v50, %v23144_v48  ;;  %v12021_v20 = vpop.f32.mrb[37].mxu1 }
 0x876   : > { %12380 = vst [vmem:[%s22102_s12 + $0x8a8] sm:$0xff] %v15661_v31  ;;  %v7201_v47 = vpop.f32.mrb[186].mxu0  ;;  %v15787_v40 = vadd.f32 %v12021_v20, %v23132_v2  ;;  %v1405_v17 = vpop.permute.xlu1 %1404 }
 0x877   : > { %v15663_v35 = vadd.f32 %v15662_v7, %v7201_v47  ;;  %12372 = vst [vmem:[%s22102_s12 + $0x868] sm:$0xff] %v15786_v29  ;;  %v7203_v33 = vpop.f32.mrb[187].mxu0  ;;  %v15678_v52 = vadd.f32 %v26917_v38, %v1405_v17  ;;  %v26919_v29 = vld [vmem:[#allocation423_spill] sm:$0xff]  ;;  %v1420_v1 = vpop.permute.xlu0 %1419 }
 0x878   : > { %v15665_v34 = vadd.f32 %v15664_v55, %v7203_v33  ;;  %12369 = vst [vmem:[%s22102_s12 + $0x850] sm:$0xff] %v15787_v40  ;;  %v15172_v15 = vpop.f32.mrb[38].mxu1  ;;  %v15682_v20 = vadd.f32 %v26919_v29, %v1410_v41 }
 0x879   : > { %12382 = vst [vmem:[%s22102_s12 + $0x8b8] sm:$0xff] %v15663_v35  ;;  %v15788_v48 = vadd.f32 %v15172_v15, %v1375_v22  ;;  %v12033_v62 = vpop.f32.mrb[39].mxu1  ;;  %v26914_v22 = vld [vmem:[#allocation393_spill] sm:$0xff] }
 0x87a   : > { %12383 = vst [vmem:[%s22102_s12 + $0x8c0] sm:$0xff] %v15665_v34  ;;  %v7208_v2 = vpop.f32.mrb[188].mxu0  ;;  %v15789_v45 = vadd.f32 %v12033_v62, %v23156_v13  ;;  %v15672_v42 = vadd.f32 %v26914_v22, %v1395_v25  ;;  %v1415_v50 = vpop.permute.xlu1 %1414 }
 0x87b   : > { %v15667_v0 = vadd.f32 %v15666_v37, %v7208_v2  ;;  %12378 = vst [vmem:[%s22102_s12 + $0x898] sm:$0xff] %v15788_v48  ;;  %v7210_v54 = vpop.f32.mrb[189].mxu0  ;;  %v26921_v48 = vld [vmem:[#allocation433_spill] sm:$0xff]  ;;  %v26922_v2 = vld [vmem:[#allocation442_spill] sm:$0xff] }
 0x87c   : > { %v15669_v30 = vadd.f32 %v15668_v36, %v7210_v54  ;;  %12375 = vst [vmem:[%s22102_s12 + $0x880] sm:$0xff] %v15789_v45  ;;  %v15175_v61 = vpop.f32.mrb[40].mxu1  ;;  %v15686_v62 = vadd.f32 %v26921_v48, %v1415_v50  ;;  %v15688_v45 = vadd.f32 %v26922_v2, %v1415_v50 }
 0x87d   : > { %12385 = vst [vmem:[%s22102_s12 + $0x8d0] sm:$0xff] %v15667_v0  ;;  %v15790_v46 = vadd.f32 %v15175_v61, %v1385_v49  ;;  %v12045_v14 = vpop.f32.mrb[41].mxu1  ;;  %v15680_v49 = vadd.f32 %v26918_v44, %v1405_v17 }
 0x87e   : > { %12386 = vst [vmem:[%s22102_s12 + $0x8d8] sm:$0xff] %v15669_v30  ;;  %v7215_v13 = vpop.f32.mrb[190].mxu0  ;;  %v15791_v51 = vadd.f32 %v12045_v14, %v23176_v60  ;;  %v1425_v15 = vpop.permute.xlu1 %1424  ;;  %v26924_v14 = vld [vmem:[#allocation453_spill] sm:$0xff] }
 0x87f   : > { %v15671_v27 = vadd.f32 %v15670_v63, %v7215_v13  ;;  %12384 = vst [vmem:[%s22102_s12 + $0x8c8] sm:$0xff] %v15790_v46  ;;  %v7217_v5 = vpop.f32.mrb[191].mxu0  ;;  %v26923_v63 = vld [vmem:[#allocation448_spill] sm:$0xff]  ;;  %v15692_v22 = vadd.f32 %v26924_v14, %v1420_v1 }
 0x880   : > { %v15673_v57 = vadd.f32 %v15672_v42, %v7217_v5  ;;  %12381 = vst [vmem:[%s22102_s12 + $0x8b0] sm:$0xff] %v15791_v51  ;;  %v15178_v53 = vpop.f32.mrb[42].mxu1  ;;  %v15690_v46 = vadd.f32 %v26923_v63, %v1420_v1 }
 0x881   : > { %12388 = vst [vmem:[%s22102_s12 + $0x8e8] sm:$0xff] %v15671_v27  ;;  %v15792_v28 = vadd.f32 %v15178_v53, %v1395_v25  ;;  %v12057_v43 = vpop.f32.mrb[43].mxu1  ;;  %v26925_v27 = vld [vmem:[#allocation457_spill] sm:$0xff] }
 0x882   : > { %12389 = vst [vmem:[%s22102_s12 + $0x8f0] sm:$0xff] %v15673_v57  ;;  %v7222_v60 = vpop.f32.mrb[192].mxu0  ;;  %v15793_v9 = vadd.f32 %v12057_v43, %v1390_v21  ;;  %v26920_v21 = vld [vmem:[#allocation427_spill] sm:$0xff]  ;;  %v15694_v5 = vadd.f32 %v26925_v27, %v1425_v15  ;;  %v26926_v57 = vld [vmem:[#allocation465_spill] sm:$0xff] }
 0x883   : > { %v15675_v24 = vadd.f32 %v15674_v3, %v7222_v60  ;;  %12390 = vst [vmem:[%s22102_s12 + $0x8f8] sm:$0xff] %v15792_v28  ;;  %v7224_v26 = vpop.f32.mrb[193].mxu0  ;;  %v15684_v47 = vadd.f32 %v26920_v21, %v1410_v41  ;;  %v15696_v53 = vadd.f32 %v26926_v57, %v1425_v15 }
 0x884   : > { %v15677_v11 = vadd.f32 %v15676_v10, %v7224_v26  ;;  %12387 = vst [vmem:[%s22102_s12 + $0x8e0] sm:$0xff] %v15793_v9  ;;  %v15181_v12 = vpop.f32.mrb[44].mxu1 }
 0x885   : > { %12391 = vst [vmem:[%s22102_s12 + $0x900] sm:$0xff] %v15675_v24  ;;  %v15794_v23 = vadd.f32 %v15181_v12, %v1405_v17  ;;  %v12069_v59 = vpop.f32.mrb[45].mxu1 }
 0x886   : > { %12392 = vst [vmem:[%s22102_s12 + $0x908] sm:$0xff] %v15677_v11  ;;  %v7229_v18 = vpop.f32.mrb[194].mxu0  ;;  %v15795_v19 = vadd.f32 %v12069_v59, %v1400_v32 }
 0x887   : > { %v15679_v6 = vadd.f32 %v15678_v52, %v7229_v18  ;;  %12396 = vst [vmem:[%s22102_s12 + $0x928] sm:$0xff] %v15794_v23  ;;  %v7231_v31 = vpop.f32.mrb[195].mxu0 }
 0x888   : > { %v15681_v16 = vadd.f32 %v15680_v49, %v7231_v31  ;;  %12393 = vst [vmem:[%s22102_s12 + $0x910] sm:$0xff] %v15795_v19  ;;  %v15184_v7 = vpop.f32.mrb[46].mxu1 }
 0x889   : > { %12394 = vst [vmem:[%s22102_s12 + $0x918] sm:$0xff] %v15679_v6  ;;  %v15796_v8 = vadd.f32 %v15184_v7, %v1415_v50  ;;  %v12081_v55 = vpop.f32.mrb[47].mxu1 }
 0x88a   : > { %12395 = vst [vmem:[%s22102_s12 + $0x920] sm:$0xff] %v15681_v16  ;;  %v7236_v40 = vpop.f32.mrb[196].mxu0  ;;  %v15797_v35 = vadd.f32 %v12081_v55, %v1410_v41 }
 0x88b   : > { %v15683_v33 = vadd.f32 %v15682_v20, %v7236_v40  ;;  %12402 = vst [vmem:[%s22102_s12 + $0x958] sm:$0xff] %v15796_v8  ;;  %v7238_v34 = vpop.f32.mrb[197].mxu0 }
 0x88c   : > { %v15685_v56 = vadd.f32 %v15684_v47, %v7238_v34  ;;  %12399 = vst [vmem:[%s22102_s12 + $0x940] sm:$0xff] %v15797_v35  ;;  %v15187_v37 = vpop.f32.mrb[48].mxu1 }
 0x88d   : > { %12397 = vst [vmem:[%s22102_s12 + $0x930] sm:$0xff] %v15683_v33  ;;  %v15798_v36 = vadd.f32 %v15187_v37, %v1425_v15  ;;  %v12093_v25 = vpop.f32.mrb[49].mxu1 }
 0x88e   : > { %12398 = vst [vmem:[%s22102_s12 + $0x938] sm:$0xff] %v15685_v56  ;;  %v7243_v0 = vpop.f32.mrb[198].mxu0  ;;  %v15799_v54 = vadd.f32 %v12093_v25, %v1420_v1 }
 0x88f   : > { %v15687_v30 = vadd.f32 %v15686_v62, %v7243_v0  ;;  %12408 = vst [vmem:[%s22102_s12 + $0x988] sm:$0xff] %v15798_v36  ;;  %v7245_v61 = vpop.f32.mrb[199].mxu0 }
 0x890   : > { %v15689_v39 = vadd.f32 %v15688_v45, %v7245_v61  ;;  %12405 = vst [vmem:[%s22102_s12 + $0x970] sm:$0xff] %v15799_v54 }
 0x891   : > { %12400 = vst [vmem:[%s22102_s12 + $0x948] sm:$0xff] %v15687_v30 }
 0x892   : > { %12401 = vst [vmem:[%s22102_s12 + $0x950] sm:$0xff] %v15689_v39  ;;  %v7250_v42 = vpop.f32.mrb[200].mxu0 }
 0x893   : > { %v15691_v32 = vadd.f32 %v15690_v46, %v7250_v42  ;;  %v7252_v13 = vpop.f32.mrb[201].mxu0 }
 0x894   : > { %v15693_v51 = vadd.f32 %v15692_v22, %v7252_v13  ;;  %12415 = sbr.rel (!%p17679_p6) target bundleno = 2563 (0xa03), region = 102 }
 0x895   : > { %12403 = vst [vmem:[%s22102_s12 + $0x960] sm:$0xff] %v15691_v32 }
 0x896   : > { %12404 = vst [vmem:[%s22102_s12 + $0x968] sm:$0xff] %v15693_v51  ;;  %v7257_v4 = vpop.f32.mrb[202].mxu0 }
 0x897   : > { %v15695_v3 = vadd.f32 %v15694_v5, %v7257_v4  ;;  %v7259_v28 = vpop.f32.mrb[203].mxu0 }
 0x898   : > { %v15697_v43 = vadd.f32 %v15696_v53, %v7259_v28 }
 0x899   : > { %12406 = vst [vmem:[%s22102_s12 + $0x978] sm:$0xff] %v15695_v3 }
 0x89a   : > { %12407 = vst [vmem:[%s22102_s12 + $0x980] sm:$0xff] %v15697_v43 }
 0x89b   : > { %s26956_s22 = smov (!%p12418_p11, %s12417_s22), 3 }
 0x89c   : > { %s12420_s26 = smul.u32 13056, %s26956_s22  ;;  %s23257_s29 = sshll.u32 %s26956_s22, 3 }
 0x89e   : > { %p13553_p12 = scmp.eq.s32.totalorder %s12420_s26, 0 }
 0x89f   : > { %p12430_p6 = scmp.lt.u32.totalorder (!%p13553_p12), %s23257_s29, 8 }
 0x8a0   : > { %12429 = sbr.rel (%p13553_p12) target bundleno = 2563 (0xa03), region = 106 }
 0x8a7   : > { %12433 = sbr.rel (%p12430_p6) target bundleno = 2458 (0x99a), region = 110  ;;  %s23261_s14 = sand.u32 (!%p12430_p6), 7, %s23257_s29  }
 0x8a8   : > { %p12651_p13 = scmp.eq.s32.totalorder (!%p12430_p6), %s23261_s14, 0  ;;  %p13554_p0 = scmp.ne.s32.totalorder (!%p12430_p6), %s23261_s14, 0 }
 0x8ae   : > { %12654 = sbr.rel (%p13554_p0) target bundleno = 2288 (0x8f0), region = 125  ;;  %s23266_s15 = sshrl.u32 (!%p13554_p0), %s23257_s29, 3 }
 0x8af   : > { %p13555_p1 = scmp.le.s32.totalorder (!%p13554_p0), %s23266_s15, 0 }
 0x8b5   : > { %13466 = sbr.rel (%p13555_p1) target bundleno = 2288 (0x8f0), region = 251  ;;  %s26927_s23 = smov (!%p13555_p1), %s23255_s8 }
 0x8b6   : > { %s26928_s9 = smov (!%p13555_p1), %s22102_s12  ;;  %s23275_s28 = smov (!%p13555_p1), 0  }
 0x8b7   : > { %s23277_s0 = smov (!%p13555_p1), 0  }
 0x8bc LB: >> { %v12667_v58 = vld [vmem:[%s17579_s9] sm:$0xff]  ;;  %v12669_v10 = vld [vmem:[%s17579_s9 + $0x18] sm:$0xff]  ;;  %v12671_v17 = vld [vmem:[%s17579_s9 + $0x30] sm:$0xff]  ;;  %s12871_s24 = sadd.s32 1, %s17583_s28  ;;  %s12661_s0 = sadd.s32 1, %s17587_s0   ;;  %s17587_s0 = sphi %s23277_s0, %s12661_s0   ;;  %s17583_s28 = sphi %s23275_s28, %s26931_s28   ;;  %s17579_s9 = sphi %s26928_s9, %s26930_s9   ;;  %s17575_s23 = sphi %s26927_s23, %s26929_s23  }
 0x8bd   : >> { %12668 = vst [vmem:[%s17575_s23] sm:$0xff] %v12667_v58  ;;  %12670 = vst [vmem:[%s17575_s23 + $0x28] sm:$0xff] %v12669_v10  ;;  %v12673_v60 = vld [vmem:[%s17579_s9 + $0x48] sm:$0xff]  ;;  %v12675_v9 = vld [vmem:[%s17579_s9 + $0x60] sm:$0xff]  ;;  %p12872_p2 = scmp.ge.s32.totalorder %s12871_s24, %s23266_s15  ;;  %p12660_p3 = scmp.ge.s32.totalorder %s12661_s0, %s23266_s15 }
 0x8be   : >> { %12672 = vst [vmem:[%s17575_s23 + $0x50] sm:$0xff] %v12671_v17  ;;  %v12677_v24 = vld [vmem:[%s17579_s9 + $0x78] sm:$0xff]  ;;  %12674 = vst [vmem:[%s17575_s23 + $0x78] sm:$0xff] %v12673_v60  ;;  %v12679_v26 = vld [vmem:[%s17579_s9 + $0x90] sm:$0xff] }
 0x8bf   : >> { %12676 = vst [vmem:[%s17575_s23 + $0xa0] sm:$0xff] %v12675_v9  ;;  %12678 = vst [vmem:[%s17575_s23 + $0xc8] sm:$0xff] %v12677_v24  ;;  %v12681_v11 = vld [vmem:[%s17579_s9 + $0xa8] sm:$0xff]  ;;  %v12683_v12 = vld [vmem:[%s17579_s9 + $0xc0] sm:$0xff]  ;;  %s26958_s24 = smov (%p12872_p2, %s12871_s24), 0 }
 0x8c0   : >> { %12680 = vst [vmem:[%s17575_s23 + $0xf0] sm:$0xff] %v12679_v26  ;;  %12682 = vst [vmem:[%s17575_s23 + $0x118] sm:$0xff] %v12681_v11  ;;  %v12685_v38 = vld [vmem:[%s17579_s9 + $0xd8] sm:$0xff]  ;;  %v12687_v52 = vld [vmem:[%s17579_s9 + $0xf0] sm:$0xff]  ;;  %s13556_s4 = sshll.u32 %s26958_s24, 3  ;;  %s26931_s28 = smov %s26958_s24 }
 0x8c1   : >> { %12684 = vst [vmem:[%s17575_s23 + $0x140] sm:$0xff] %v12683_v12  ;;  %v12689_v23 = vld [vmem:[%s17579_s9 + $0x108] sm:$0xff]  ;;  %12686 = vst [vmem:[%s17575_s23 + $0x168] sm:$0xff] %v12685_v38  ;;  %v12691_v59 = vld [vmem:[%s17579_s9 + $0x120] sm:$0xff]  ;;  %s23333_s30 = scalar_lea.vmem %s22102_s12, %s13556_s4 [#allocation3]   ;;  %s23336_s10 = scalar_lea.vmem %s23255_s8, %s13556_s4  }
 0x8c2   : >> { %12688 = vst [vmem:[%s17575_s23 + $0x190] sm:$0xff] %v12687_v52  ;;  %12690 = vst [vmem:[%s17575_s23 + $0x1b8] sm:$0xff] %v12689_v23  ;;  %v12693_v44 = vld [vmem:[%s17579_s9 + $0x138] sm:$0xff]  ;;  %v12695_v49 = vld [vmem:[%s17579_s9 + $0x150] sm:$0xff] }
 0x8c3   : >> { %12692 = vst [vmem:[%s17575_s23 + $0x1e0] sm:$0xff] %v12691_v59  ;;  %12694 = vst [vmem:[%s17575_s23 + $0x208] sm:$0xff] %v12693_v44  ;;  %v12697_v41 = vld [vmem:[%s17579_s9 + $0x168] sm:$0xff]  ;;  %v12699_v18 = vld [vmem:[%s17579_s9 + $0x180] sm:$0xff] }
 0x8c4   : >> { %12696 = vst [vmem:[%s17575_s23 + $0x230] sm:$0xff] %v12695_v49  ;;  %v12701_v19 = vld [vmem:[%s17579_s9 + $0x198] sm:$0xff]  ;;  %12698 = vst [vmem:[%s17575_s23 + $0x258] sm:$0xff] %v12697_v41  ;;  %v12703_v6 = vld [vmem:[%s17579_s9 + $0x1b0] sm:$0xff] }
 0x8c5   : >> { %12700 = vst [vmem:[%s17575_s23 + $0x280] sm:$0xff] %v12699_v18  ;;  %12702 = vst [vmem:[%s17575_s23 + $0x2a8] sm:$0xff] %v12701_v19  ;;  %v12705_v31 = vld [vmem:[%s17579_s9 + $0x1c8] sm:$0xff]  ;;  %v12707_v50 = vld [vmem:[%s17579_s9 + $0x1e0] sm:$0xff] }
 0x8c6   : >> { %12704 = vst [vmem:[%s17575_s23 + $0x2d0] sm:$0xff] %v12703_v6  ;;  %12706 = vst [vmem:[%s17575_s23 + $0x2f8] sm:$0xff] %v12705_v31  ;;  %v12709_v16 = vld [vmem:[%s17579_s9 + $0x1f8] sm:$0xff]  ;;  %v12711_v7 = vld [vmem:[%s17579_s9 + $0x210] sm:$0xff] }
 0x8c7   : >> { %12708 = vst [vmem:[%s17575_s23 + $0x320] sm:$0xff] %v12707_v50  ;;  %v12713_v29 = vld [vmem:[%s17579_s9 + $0x228] sm:$0xff]  ;;  %12710 = vst [vmem:[%s17575_s23 + $0x348] sm:$0xff] %v12709_v16  ;;  %v12715_v20 = vld [vmem:[%s17579_s9 + $0x240] sm:$0xff] }
 0x8c8   : >> { %12712 = vst [vmem:[%s17575_s23 + $0x370] sm:$0xff] %v12711_v7  ;;  %12714 = vst [vmem:[%s17575_s23 + $0x398] sm:$0xff] %v12713_v29  ;;  %v12717_v8 = vld [vmem:[%s17579_s9 + $0x258] sm:$0xff]  ;;  %v12719_v55 = vld [vmem:[%s17579_s9 + $0x270] sm:$0xff] }
 0x8c9   : >> { %12716 = vst [vmem:[%s17575_s23 + $0x3c0] sm:$0xff] %v12715_v20  ;;  %12718 = vst [vmem:[%s17575_s23 + $0x3e8] sm:$0xff] %v12717_v8  ;;  %v12721_v21 = vld [vmem:[%s17579_s9 + $0x288] sm:$0xff]  ;;  %v12723_v47 = vld [vmem:[%s17579_s9 + $0x2a0] sm:$0xff] }
 0x8ca   : >> { %12720 = vst [vmem:[%s17575_s23 + $0x410] sm:$0xff] %v12719_v55  ;;  %v12725_v40 = vld [vmem:[%s17579_s9 + $0x2b8] sm:$0xff]  ;;  %12722 = vst [vmem:[%s17575_s23 + $0x438] sm:$0xff] %v12721_v21  ;;  %v12727_v35 = vld [vmem:[%s17579_s9 + $0x2d0] sm:$0xff] }
 0x8cb   : >> { %12724 = vst [vmem:[%s17575_s23 + $0x460] sm:$0xff] %v12723_v47  ;;  %12726 = vst [vmem:[%s17575_s23 + $0x488] sm:$0xff] %v12725_v40  ;;  %v12729_v33 = vld [vmem:[%s17579_s9 + $0x2e8] sm:$0xff]  ;;  %v12731_v34 = vld [vmem:[%s17579_s9 + $0x300] sm:$0xff] }
 0x8cc   : >> { %12728 = vst [vmem:[%s17575_s23 + $0x4b0] sm:$0xff] %v12727_v35  ;;  %12730 = vst [vmem:[%s17575_s23 + $0x4d8] sm:$0xff] %v12729_v33  ;;  %v12733_v15 = vld [vmem:[%s17579_s9 + $0x318] sm:$0xff]  ;;  %v12735_v56 = vld [vmem:[%s17579_s9 + $0x330] sm:$0xff] }
 0x8cd   : >> { %12732 = vst [vmem:[%s17575_s23 + $0x500] sm:$0xff] %v12731_v34  ;;  %v12737_v37 = vld [vmem:[%s17579_s9 + $0x348] sm:$0xff]  ;;  %12734 = vst [vmem:[%s17575_s23 + $0x528] sm:$0xff] %v12733_v15  ;;  %v12739_v48 = vld [vmem:[%s17579_s9 + $0x360] sm:$0xff] }
 0x8ce   : >> { %12736 = vst [vmem:[%s17575_s23 + $0x550] sm:$0xff] %v12735_v56  ;;  %12738 = vst [vmem:[%s17575_s23 + $0x578] sm:$0xff] %v12737_v37  ;;  %v12741_v62 = vld [vmem:[%s17579_s9 + $0x378] sm:$0xff]  ;;  %v12743_v1 = vld [vmem:[%s17579_s9 + $0x390] sm:$0xff] }
 0x8cf   : >> { %12740 = vst [vmem:[%s17575_s23 + $0x5a0] sm:$0xff] %v12739_v48  ;;  %12742 = vst [vmem:[%s17575_s23 + $0x5c8] sm:$0xff] %v12741_v62  ;;  %v12745_v36 = vld [vmem:[%s17579_s9 + $0x3a8] sm:$0xff]  ;;  %v12747_v25 = vld [vmem:[%s17579_s9 + $0x3c0] sm:$0xff] }
 0x8d0   : >> { %12744 = vst [vmem:[%s17575_s23 + $0x5f0] sm:$0xff] %v12743_v1  ;;  %v12749_v2 = vld [vmem:[%s17579_s9 + $0x3d8] sm:$0xff]  ;;  %12746 = vst [vmem:[%s17575_s23 + $0x618] sm:$0xff] %v12745_v36  ;;  %v12751_v45 = vld [vmem:[%s17579_s9 + $0x3f0] sm:$0xff] }
 0x8d1   : >> { %12748 = vst [vmem:[%s17575_s23 + $0x640] sm:$0xff] %v12747_v25  ;;  %12750 = vst [vmem:[%s17575_s23 + $0x668] sm:$0xff] %v12749_v2  ;;  %v12753_v0 = vld [vmem:[%s17579_s9 + $0x408] sm:$0xff]  ;;  %v12755_v54 = vld [vmem:[%s17579_s9 + $0x420] sm:$0xff] }
 0x8d2   : >> { %12752 = vst [vmem:[%s17575_s23 + $0x690] sm:$0xff] %v12751_v45  ;;  %12754 = vst [vmem:[%s17575_s23 + $0x6b8] sm:$0xff] %v12753_v0  ;;  %v12757_v30 = vld [vmem:[%s17579_s9 + $0x438] sm:$0xff]  ;;  %v12759_v61 = vld [vmem:[%s17579_s9 + $0x450] sm:$0xff] }
 0x8d3   : >> { %12756 = vst [vmem:[%s17575_s23 + $0x6e0] sm:$0xff] %v12755_v54  ;;  %v12761_v39 = vld [vmem:[%s17579_s9 + $0x468] sm:$0xff]  ;;  %12758 = vst [vmem:[%s17575_s23 + $0x708] sm:$0xff] %v12757_v30  ;;  %v12763_v63 = vld [vmem:[%s17579_s9 + $0x480] sm:$0xff] }
 0x8d4   : >> { %12760 = vst [vmem:[%s17575_s23 + $0x730] sm:$0xff] %v12759_v61  ;;  %12762 = vst [vmem:[%s17575_s23 + $0x758] sm:$0xff] %v12761_v39  ;;  %v12765_v46 = vld [vmem:[%s17579_s9 + $0x498] sm:$0xff]  ;;  %v12767_v14 = vld [vmem:[%s17579_s9 + $0x4b0] sm:$0xff] }
 0x8d5   : >> { %12764 = vst [vmem:[%s17575_s23 + $0x780] sm:$0xff] %v12763_v63  ;;  %12766 = vst [vmem:[%s17575_s23 + $0x7a8] sm:$0xff] %v12765_v46  ;;  %v12769_v22 = vld [vmem:[%s17579_s9 + $0x4c8] sm:$0xff]  ;;  %v12771_v42 = vld [vmem:[%s17579_s9 + $0x4e0] sm:$0xff] }
 0x8d6   : >> { %12768 = vst [vmem:[%s17575_s23 + $0x7d0] sm:$0xff] %v12767_v14  ;;  %v12773_v32 = vld [vmem:[%s17579_s9 + $0x4f8] sm:$0xff]  ;;  %12770 = vst [vmem:[%s17575_s23 + $0x7f8] sm:$0xff] %v12769_v22  ;;  %v12775_v13 = vld [vmem:[%s17579_s9 + $0x510] sm:$0xff] }
 0x8d7   : >> { %12772 = vst [vmem:[%s17575_s23 + $0x820] sm:$0xff] %v12771_v42  ;;  %12774 = vst [vmem:[%s17575_s23 + $0x848] sm:$0xff] %v12773_v32  ;;  %v12777_v51 = vld [vmem:[%s17579_s9 + $0x528] sm:$0xff]  ;;  %v12779_v27 = vld [vmem:[%s17579_s9 + $0x540] sm:$0xff] }
 0x8d8   : >> { %12776 = vst [vmem:[%s17575_s23 + $0x870] sm:$0xff] %v12775_v13  ;;  %12778 = vst [vmem:[%s17575_s23 + $0x898] sm:$0xff] %v12777_v51  ;;  %v12781_v5 = vld [vmem:[%s17579_s9 + $0x558] sm:$0xff]  ;;  %v12783_v57 = vld [vmem:[%s17579_s9 + $0x570] sm:$0xff] }
 0x8d9   : >> { %12780 = vst [vmem:[%s17575_s23 + $0x8c0] sm:$0xff] %v12779_v27  ;;  %v12785_v53 = vld [vmem:[%s17579_s9 + $0x588] sm:$0xff]  ;;  %12782 = vst [vmem:[%s17575_s23 + $0x8e8] sm:$0xff] %v12781_v5  ;;  %v12787_v4 = vld [vmem:[%s17579_s9 + $0x5a0] sm:$0xff] }
 0x8da   : >> { %12784 = vst [vmem:[%s17575_s23 + $0x910] sm:$0xff] %v12783_v57  ;;  %12786 = vst [vmem:[%s17575_s23 + $0x938] sm:$0xff] %v12785_v53  ;;  %v12789_v3 = vld [vmem:[%s17579_s9 + $0x5b8] sm:$0xff]  ;;  %v12791_v28 = vld [vmem:[%s17579_s9 + $0x5d0] sm:$0xff] }
 0x8db   : >> { %12788 = vst [vmem:[%s17575_s23 + $0x960] sm:$0xff] %v12787_v4  ;;  %12790 = vst [vmem:[%s17575_s23 + $0x988] sm:$0xff] %v12789_v3  ;;  %v12793_v43 = vld [vmem:[%s17579_s9 + $0x5e8] sm:$0xff]  ;;  %v12795_v58 = vld [vmem:[%s17579_s9 + $0x600] sm:$0xff] }
 0x8dc   : >> { %12792 = vst [vmem:[%s17575_s23 + $0x9b0] sm:$0xff] %v12791_v28  ;;  %v12797_v10 = vld [vmem:[%s17579_s9 + $0x618] sm:$0xff]  ;;  %12794 = vst [vmem:[%s17575_s23 + $0x9d8] sm:$0xff] %v12793_v43  ;;  %v12799_v17 = vld [vmem:[%s17579_s9 + $0x630] sm:$0xff] }
 0x8dd   : >> { %12796 = vst [vmem:[%s17575_s23 + $0xa00] sm:$0xff] %v12795_v58  ;;  %12798 = vst [vmem:[%s17575_s23 + $0xa28] sm:$0xff] %v12797_v10  ;;  %v12801_v60 = vld [vmem:[%s17579_s9 + $0x648] sm:$0xff]  ;;  %v12803_v9 = vld [vmem:[%s17579_s9 + $0x660] sm:$0xff] }
 0x8de   : >> { %12800 = vst [vmem:[%s17575_s23 + $0xa50] sm:$0xff] %v12799_v17  ;;  %12802 = vst [vmem:[%s17575_s23 + $0xa78] sm:$0xff] %v12801_v60  ;;  %v12805_v24 = vld [vmem:[%s17579_s9 + $0x678] sm:$0xff]  ;;  %v12807_v26 = vld [vmem:[%s17579_s9 + $0x690] sm:$0xff] }
 0x8df   : >> { %12804 = vst [vmem:[%s17575_s23 + $0xaa0] sm:$0xff] %v12803_v9  ;;  %v12809_v11 = vld [vmem:[%s17579_s9 + $0x6a8] sm:$0xff]  ;;  %12806 = vst [vmem:[%s17575_s23 + $0xac8] sm:$0xff] %v12805_v24  ;;  %v12811_v12 = vld [vmem:[%s17579_s9 + $0x6c0] sm:$0xff] }
 0x8e0   : >> { %12808 = vst [vmem:[%s17575_s23 + $0xaf0] sm:$0xff] %v12807_v26  ;;  %12810 = vst [vmem:[%s17575_s23 + $0xb18] sm:$0xff] %v12809_v11  ;;  %v12813_v38 = vld [vmem:[%s17579_s9 + $0x6d8] sm:$0xff]  ;;  %v12815_v52 = vld [vmem:[%s17579_s9 + $0x6f0] sm:$0xff] }
 0x8e1   : >> { %12812 = vst [vmem:[%s17575_s23 + $0xb40] sm:$0xff] %v12811_v12  ;;  %12814 = vst [vmem:[%s17575_s23 + $0xb68] sm:$0xff] %v12813_v38  ;;  %v12817_v23 = vld [vmem:[%s17579_s9 + $0x708] sm:$0xff]  ;;  %v12819_v59 = vld [vmem:[%s17579_s9 + $0x720] sm:$0xff] }
 0x8e2   : >> { %12816 = vst [vmem:[%s17575_s23 + $0xb90] sm:$0xff] %v12815_v52  ;;  %v12821_v44 = vld [vmem:[%s17579_s9 + $0x738] sm:$0xff]  ;;  %12818 = vst [vmem:[%s17575_s23 + $0xbb8] sm:$0xff] %v12817_v23  ;;  %v12823_v49 = vld [vmem:[%s17579_s9 + $0x750] sm:$0xff] }
 0x8e3   : >> { %12820 = vst [vmem:[%s17575_s23 + $0xbe0] sm:$0xff] %v12819_v59  ;;  %12822 = vst [vmem:[%s17575_s23 + $0xc08] sm:$0xff] %v12821_v44  ;;  %v12825_v41 = vld [vmem:[%s17579_s9 + $0x768] sm:$0xff]  ;;  %v12827_v18 = vld [vmem:[%s17579_s9 + $0x780] sm:$0xff] }
 0x8e4   : >> { %12824 = vst [vmem:[%s17575_s23 + $0xc30] sm:$0xff] %v12823_v49  ;;  %12826 = vst [vmem:[%s17575_s23 + $0xc58] sm:$0xff] %v12825_v41  ;;  %v12829_v19 = vld [vmem:[%s17579_s9 + $0x798] sm:$0xff]  ;;  %v12831_v6 = vld [vmem:[%s17579_s9 + $0x7b0] sm:$0xff] }
 0x8e5   : >> { %12828 = vst [vmem:[%s17575_s23 + $0xc80] sm:$0xff] %v12827_v18  ;;  %v12833_v31 = vld [vmem:[%s17579_s9 + $0x7c8] sm:$0xff]  ;;  %12830 = vst [vmem:[%s17575_s23 + $0xca8] sm:$0xff] %v12829_v19  ;;  %v12835_v50 = vld [vmem:[%s17579_s9 + $0x7e0] sm:$0xff] }
 0x8e6   : >> { %12832 = vst [vmem:[%s17575_s23 + $0xcd0] sm:$0xff] %v12831_v6  ;;  %12834 = vst [vmem:[%s17575_s23 + $0xcf8] sm:$0xff] %v12833_v31  ;;  %v12837_v16 = vld [vmem:[%s17579_s9 + $0x7f8] sm:$0xff]  ;;  %v12839_v7 = vld [vmem:[%s17579_s9 + $0x810] sm:$0xff] }
 0x8e7   : >> { %12836 = vst [vmem:[%s17575_s23 + $0xd20] sm:$0xff] %v12835_v50  ;;  %12838 = vst [vmem:[%s17575_s23 + $0xd48] sm:$0xff] %v12837_v16  ;;  %v12841_v29 = vld [vmem:[%s17579_s9 + $0x828] sm:$0xff]  ;;  %v12843_v20 = vld [vmem:[%s17579_s9 + $0x840] sm:$0xff] }
 0x8e8   : >> { %12840 = vst [vmem:[%s17575_s23 + $0xd70] sm:$0xff] %v12839_v7  ;;  %v12845_v8 = vld [vmem:[%s17579_s9 + $0x858] sm:$0xff]  ;;  %12842 = vst [vmem:[%s17575_s23 + $0xd98] sm:$0xff] %v12841_v29  ;;  %v12847_v55 = vld [vmem:[%s17579_s9 + $0x870] sm:$0xff] }
 0x8e9   : >> { %12844 = vst [vmem:[%s17575_s23 + $0xdc0] sm:$0xff] %v12843_v20  ;;  %12846 = vst [vmem:[%s17575_s23 + $0xde8] sm:$0xff] %v12845_v8  ;;  %v12849_v21 = vld [vmem:[%s17579_s9 + $0x888] sm:$0xff]  ;;  %v12851_v47 = vld [vmem:[%s17579_s9 + $0x8a0] sm:$0xff]  ;;  %12663 = sbr.rel (!%p12660_p3) target bundleno = 2236 (0x8bc), region = 257 }
 0x8ea   : >> { %12848 = vst [vmem:[%s17575_s23 + $0xe10] sm:$0xff] %v12847_v55  ;;  %12850 = vst [vmem:[%s17575_s23 + $0xe38] sm:$0xff] %v12849_v21  ;;  %v12853_v40 = vld [vmem:[%s17579_s9 + $0x8b8] sm:$0xff]  ;;  %v12855_v35 = vld [vmem:[%s17579_s9 + $0x8d0] sm:$0xff] }
 0x8eb   : >> { %12852 = vst [vmem:[%s17575_s23 + $0xe60] sm:$0xff] %v12851_v47  ;;  %v12857_v33 = vld [vmem:[%s17579_s9 + $0x8e8] sm:$0xff]  ;;  %12854 = vst [vmem:[%s17575_s23 + $0xe88] sm:$0xff] %v12853_v40  ;;  %v12859_v34 = vld [vmem:[%s17579_s9 + $0x900] sm:$0xff] }
 0x8ec   : >> { %12856 = vst [vmem:[%s17575_s23 + $0xeb0] sm:$0xff] %v12855_v35  ;;  %12858 = vst [vmem:[%s17575_s23 + $0xed8] sm:$0xff] %v12857_v33  ;;  %v12861_v15 = vld [vmem:[%s17579_s9 + $0x918] sm:$0xff]  ;;  %v12863_v56 = vld [vmem:[%s17579_s9 + $0x930] sm:$0xff] }
 0x8ed   : >> { %12860 = vst [vmem:[%s17575_s23 + $0xf00] sm:$0xff] %v12859_v34  ;;  %12862 = vst [vmem:[%s17575_s23 + $0xf28] sm:$0xff] %v12861_v15  ;;  %v12865_v37 = vld [vmem:[%s17579_s9 + $0x948] sm:$0xff]  ;;  %v12867_v48 = vld [vmem:[%s17579_s9 + $0x960] sm:$0xff] }
 0x8ee   : >> { %12864 = vst [vmem:[%s17575_s23 + $0xf50] sm:$0xff] %v12863_v56  ;;  %v12869_v62 = vld [vmem:[%s17579_s9 + $0x978] sm:$0xff]  ;;  %12866 = vst [vmem:[%s17575_s23 + $0xf78] sm:$0xff] %v12865_v37  ;;  %s26930_s9 = smov %s23333_s30 }
 0x8ef   : >> { %12868 = vst [vmem:[%s17575_s23 + $0xfa0] sm:$0xff] %v12867_v48  ;;  %12870 = vst [vmem:[%s17575_s23 + $0xfc8] sm:$0xff] %v12869_v62  ;;  %s26929_s23 = smov %s23336_s10 }
 0x8f0 PF: > { %12880 = sbr.rel (%p12651_p13) target bundleno = 2458 (0x99a), region = 136  ;;  %s12882_s21 = ssub.s32 (!%p12651_p13), %s23257_s29, %s23261_s14 }
 0x8f1   : > { %s23521_s11 = sshrl.u32 (!%p12651_p13), %s23257_s29, 3  ;;  %s23524_s22 = scalar_lea.vmem (!%p12651_p13), %s22102_s12, %s12882_s21 [#allocation3] }
 0x8f2   : > { %s23527_s25 = scalar_lea.vmem (!%p12651_p13), %s23255_s8, %s12882_s21  ;;  %p13558_p4 = scmp.le.s32.totalorder (!%p12651_p13), %s23521_s11, 0 }
 0x8f7   : > { %13480 = sbr.rel (%p13558_p4) target bundleno = 2354 (0x932), region = 262  ;;  %s26932_s5 = smov (!%p13558_p4), %s23255_s8 }
 0x8f8   : > { %s26933_s6 = smov (!%p13558_p4), %s22102_s12  ;;  %s23536_s7 = smov (!%p13558_p4), 0  }
 0x8f9   : > { %s23538_s26 = smov (!%p13558_p4), 0  }
 0x8fe LB: >> { %v12898_v1 = vld [vmem:[%s17595_s6] sm:$0xff]  ;;  %v12900_v36 = vld [vmem:[%s17595_s6 + $0x18] sm:$0xff]  ;;  %v12902_v25 = vld [vmem:[%s17595_s6 + $0x30] sm:$0xff]  ;;  %s13102_s15 = sadd.s32 1, %s17599_s7  ;;  %s12892_s26 = sadd.s32 1, %s17603_s26   ;;  %s17603_s26 = sphi %s23538_s26, %s12892_s26   ;;  %s17599_s7 = sphi %s23536_s7, %s26936_s7   ;;  %s17595_s6 = sphi %s26933_s6, %s26935_s6   ;;  %s17591_s5 = sphi %s26932_s5, %s26934_s5  }
 0x8ff   : >> { %12899 = vst [vmem:[%s17591_s5] sm:$0xff] %v12898_v1  ;;  %12901 = vst [vmem:[%s17591_s5 + $0x28] sm:$0xff] %v12900_v36  ;;  %v12904_v2 = vld [vmem:[%s17595_s6 + $0x48] sm:$0xff]  ;;  %v12906_v45 = vld [vmem:[%s17595_s6 + $0x60] sm:$0xff]  ;;  %p13103_p5 = scmp.ge.s32.totalorder %s13102_s15, %s23521_s11  ;;  %p12891_p7 = scmp.ge.s32.totalorder %s12892_s26, %s23521_s11 }
 0x900   : >> { %12903 = vst [vmem:[%s17591_s5 + $0x50] sm:$0xff] %v12902_v25  ;;  %v12908_v0 = vld [vmem:[%s17595_s6 + $0x78] sm:$0xff]  ;;  %12905 = vst [vmem:[%s17591_s5 + $0x78] sm:$0xff] %v12904_v2  ;;  %v12910_v54 = vld [vmem:[%s17595_s6 + $0x90] sm:$0xff] }
 0x901   : >> { %12907 = vst [vmem:[%s17591_s5 + $0xa0] sm:$0xff] %v12906_v45  ;;  %12909 = vst [vmem:[%s17591_s5 + $0xc8] sm:$0xff] %v12908_v0  ;;  %v12912_v30 = vld [vmem:[%s17595_s6 + $0xa8] sm:$0xff]  ;;  %v12914_v61 = vld [vmem:[%s17595_s6 + $0xc0] sm:$0xff]  ;;  %s26960_s15 = smov (%p13103_p5, %s13102_s15), 0 }
 0x902   : >> { %12911 = vst [vmem:[%s17591_s5 + $0xf0] sm:$0xff] %v12910_v54  ;;  %12913 = vst [vmem:[%s17591_s5 + $0x118] sm:$0xff] %v12912_v30  ;;  %v12916_v39 = vld [vmem:[%s17595_s6 + $0xd8] sm:$0xff]  ;;  %v12918_v63 = vld [vmem:[%s17595_s6 + $0xf0] sm:$0xff]  ;;  %s13559_s23 = sshll.u32 %s26960_s15, 3  ;;  %s26936_s7 = smov %s26960_s15 }
 0x903   : >> { %12915 = vst [vmem:[%s17591_s5 + $0x140] sm:$0xff] %v12914_v61  ;;  %v12920_v46 = vld [vmem:[%s17595_s6 + $0x108] sm:$0xff]  ;;  %12917 = vst [vmem:[%s17591_s5 + $0x168] sm:$0xff] %v12916_v39  ;;  %v12922_v14 = vld [vmem:[%s17595_s6 + $0x120] sm:$0xff]  ;;  %s23594_s9 = scalar_lea.vmem %s22102_s12, %s13559_s23 [#allocation3]   ;;  %s23597_s28 = scalar_lea.vmem %s23255_s8, %s13559_s23  }
 0x904   : >> { %12919 = vst [vmem:[%s17591_s5 + $0x190] sm:$0xff] %v12918_v63  ;;  %12921 = vst [vmem:[%s17591_s5 + $0x1b8] sm:$0xff] %v12920_v46  ;;  %v12924_v22 = vld [vmem:[%s17595_s6 + $0x138] sm:$0xff]  ;;  %v12926_v42 = vld [vmem:[%s17595_s6 + $0x150] sm:$0xff] }
 0x905   : >> { %12923 = vst [vmem:[%s17591_s5 + $0x1e0] sm:$0xff] %v12922_v14  ;;  %12925 = vst [vmem:[%s17591_s5 + $0x208] sm:$0xff] %v12924_v22  ;;  %v12928_v32 = vld [vmem:[%s17595_s6 + $0x168] sm:$0xff]  ;;  %v12930_v13 = vld [vmem:[%s17595_s6 + $0x180] sm:$0xff] }
 0x906   : >> { %12927 = vst [vmem:[%s17591_s5 + $0x230] sm:$0xff] %v12926_v42  ;;  %v12932_v51 = vld [vmem:[%s17595_s6 + $0x198] sm:$0xff]  ;;  %12929 = vst [vmem:[%s17591_s5 + $0x258] sm:$0xff] %v12928_v32  ;;  %v12934_v27 = vld [vmem:[%s17595_s6 + $0x1b0] sm:$0xff] }
 0x907   : >> { %12931 = vst [vmem:[%s17591_s5 + $0x280] sm:$0xff] %v12930_v13  ;;  %12933 = vst [vmem:[%s17591_s5 + $0x2a8] sm:$0xff] %v12932_v51  ;;  %v12936_v5 = vld [vmem:[%s17595_s6 + $0x1c8] sm:$0xff]  ;;  %v12938_v57 = vld [vmem:[%s17595_s6 + $0x1e0] sm:$0xff] }
 0x908   : >> { %12935 = vst [vmem:[%s17591_s5 + $0x2d0] sm:$0xff] %v12934_v27  ;;  %12937 = vst [vmem:[%s17591_s5 + $0x2f8] sm:$0xff] %v12936_v5  ;;  %v12940_v53 = vld [vmem:[%s17595_s6 + $0x1f8] sm:$0xff]  ;;  %v12942_v4 = vld [vmem:[%s17595_s6 + $0x210] sm:$0xff] }
 0x909   : >> { %12939 = vst [vmem:[%s17591_s5 + $0x320] sm:$0xff] %v12938_v57  ;;  %v12944_v3 = vld [vmem:[%s17595_s6 + $0x228] sm:$0xff]  ;;  %12941 = vst [vmem:[%s17591_s5 + $0x348] sm:$0xff] %v12940_v53  ;;  %v12946_v28 = vld [vmem:[%s17595_s6 + $0x240] sm:$0xff] }
 0x90a   : >> { %12943 = vst [vmem:[%s17591_s5 + $0x370] sm:$0xff] %v12942_v4  ;;  %12945 = vst [vmem:[%s17591_s5 + $0x398] sm:$0xff] %v12944_v3  ;;  %v12948_v43 = vld [vmem:[%s17595_s6 + $0x258] sm:$0xff]  ;;  %v12950_v58 = vld [vmem:[%s17595_s6 + $0x270] sm:$0xff] }
 0x90b   : >> { %12947 = vst [vmem:[%s17591_s5 + $0x3c0] sm:$0xff] %v12946_v28  ;;  %12949 = vst [vmem:[%s17591_s5 + $0x3e8] sm:$0xff] %v12948_v43  ;;  %v12952_v10 = vld [vmem:[%s17595_s6 + $0x288] sm:$0xff]  ;;  %v12954_v17 = vld [vmem:[%s17595_s6 + $0x2a0] sm:$0xff] }
 0x90c   : >> { %12951 = vst [vmem:[%s17591_s5 + $0x410] sm:$0xff] %v12950_v58  ;;  %v12956_v60 = vld [vmem:[%s17595_s6 + $0x2b8] sm:$0xff]  ;;  %12953 = vst [vmem:[%s17591_s5 + $0x438] sm:$0xff] %v12952_v10  ;;  %v12958_v9 = vld [vmem:[%s17595_s6 + $0x2d0] sm:$0xff] }
 0x90d   : >> { %12955 = vst [vmem:[%s17591_s5 + $0x460] sm:$0xff] %v12954_v17  ;;  %12957 = vst [vmem:[%s17591_s5 + $0x488] sm:$0xff] %v12956_v60  ;;  %v12960_v24 = vld [vmem:[%s17595_s6 + $0x2e8] sm:$0xff]  ;;  %v12962_v26 = vld [vmem:[%s17595_s6 + $0x300] sm:$0xff] }
 0x90e   : >> { %12959 = vst [vmem:[%s17591_s5 + $0x4b0] sm:$0xff] %v12958_v9  ;;  %12961 = vst [vmem:[%s17591_s5 + $0x4d8] sm:$0xff] %v12960_v24  ;;  %v12964_v11 = vld [vmem:[%s17595_s6 + $0x318] sm:$0xff]  ;;  %v12966_v12 = vld [vmem:[%s17595_s6 + $0x330] sm:$0xff] }
 0x90f   : >> { %12963 = vst [vmem:[%s17591_s5 + $0x500] sm:$0xff] %v12962_v26  ;;  %v12968_v38 = vld [vmem:[%s17595_s6 + $0x348] sm:$0xff]  ;;  %12965 = vst [vmem:[%s17591_s5 + $0x528] sm:$0xff] %v12964_v11  ;;  %v12970_v52 = vld [vmem:[%s17595_s6 + $0x360] sm:$0xff] }
 0x910   : >> { %12967 = vst [vmem:[%s17591_s5 + $0x550] sm:$0xff] %v12966_v12  ;;  %12969 = vst [vmem:[%s17591_s5 + $0x578] sm:$0xff] %v12968_v38  ;;  %v12972_v23 = vld [vmem:[%s17595_s6 + $0x378] sm:$0xff]  ;;  %v12974_v59 = vld [vmem:[%s17595_s6 + $0x390] sm:$0xff] }
 0x911   : >> { %12971 = vst [vmem:[%s17591_s5 + $0x5a0] sm:$0xff] %v12970_v52  ;;  %12973 = vst [vmem:[%s17591_s5 + $0x5c8] sm:$0xff] %v12972_v23  ;;  %v12976_v44 = vld [vmem:[%s17595_s6 + $0x3a8] sm:$0xff]  ;;  %v12978_v49 = vld [vmem:[%s17595_s6 + $0x3c0] sm:$0xff] }
 0x912   : >> { %12975 = vst [vmem:[%s17591_s5 + $0x5f0] sm:$0xff] %v12974_v59  ;;  %v12980_v41 = vld [vmem:[%s17595_s6 + $0x3d8] sm:$0xff]  ;;  %12977 = vst [vmem:[%s17591_s5 + $0x618] sm:$0xff] %v12976_v44  ;;  %v12982_v18 = vld [vmem:[%s17595_s6 + $0x3f0] sm:$0xff] }
 0x913   : >> { %12979 = vst [vmem:[%s17591_s5 + $0x640] sm:$0xff] %v12978_v49  ;;  %12981 = vst [vmem:[%s17591_s5 + $0x668] sm:$0xff] %v12980_v41  ;;  %v12984_v19 = vld [vmem:[%s17595_s6 + $0x408] sm:$0xff]  ;;  %v12986_v6 = vld [vmem:[%s17595_s6 + $0x420] sm:$0xff] }
 0x914   : >> { %12983 = vst [vmem:[%s17591_s5 + $0x690] sm:$0xff] %v12982_v18  ;;  %12985 = vst [vmem:[%s17591_s5 + $0x6b8] sm:$0xff] %v12984_v19  ;;  %v12988_v31 = vld [vmem:[%s17595_s6 + $0x438] sm:$0xff]  ;;  %v12990_v50 = vld [vmem:[%s17595_s6 + $0x450] sm:$0xff] }
 0x915   : >> { %12987 = vst [vmem:[%s17591_s5 + $0x6e0] sm:$0xff] %v12986_v6  ;;  %v12992_v16 = vld [vmem:[%s17595_s6 + $0x468] sm:$0xff]  ;;  %12989 = vst [vmem:[%s17591_s5 + $0x708] sm:$0xff] %v12988_v31  ;;  %v12994_v7 = vld [vmem:[%s17595_s6 + $0x480] sm:$0xff] }
 0x916   : >> { %12991 = vst [vmem:[%s17591_s5 + $0x730] sm:$0xff] %v12990_v50  ;;  %12993 = vst [vmem:[%s17591_s5 + $0x758] sm:$0xff] %v12992_v16  ;;  %v12996_v29 = vld [vmem:[%s17595_s6 + $0x498] sm:$0xff]  ;;  %v12998_v20 = vld [vmem:[%s17595_s6 + $0x4b0] sm:$0xff] }
 0x917   : >> { %12995 = vst [vmem:[%s17591_s5 + $0x780] sm:$0xff] %v12994_v7  ;;  %12997 = vst [vmem:[%s17591_s5 + $0x7a8] sm:$0xff] %v12996_v29  ;;  %v13000_v8 = vld [vmem:[%s17595_s6 + $0x4c8] sm:$0xff]  ;;  %v13002_v55 = vld [vmem:[%s17595_s6 + $0x4e0] sm:$0xff] }
 0x918   : >> { %12999 = vst [vmem:[%s17591_s5 + $0x7d0] sm:$0xff] %v12998_v20  ;;  %v13004_v21 = vld [vmem:[%s17595_s6 + $0x4f8] sm:$0xff]  ;;  %13001 = vst [vmem:[%s17591_s5 + $0x7f8] sm:$0xff] %v13000_v8  ;;  %v13006_v47 = vld [vmem:[%s17595_s6 + $0x510] sm:$0xff] }
 0x919   : >> { %13003 = vst [vmem:[%s17591_s5 + $0x820] sm:$0xff] %v13002_v55  ;;  %13005 = vst [vmem:[%s17591_s5 + $0x848] sm:$0xff] %v13004_v21  ;;  %v13008_v40 = vld [vmem:[%s17595_s6 + $0x528] sm:$0xff]  ;;  %v13010_v35 = vld [vmem:[%s17595_s6 + $0x540] sm:$0xff] }
 0x91a   : >> { %13007 = vst [vmem:[%s17591_s5 + $0x870] sm:$0xff] %v13006_v47  ;;  %13009 = vst [vmem:[%s17591_s5 + $0x898] sm:$0xff] %v13008_v40  ;;  %v13012_v33 = vld [vmem:[%s17595_s6 + $0x558] sm:$0xff]  ;;  %v13014_v34 = vld [vmem:[%s17595_s6 + $0x570] sm:$0xff] }
 0x91b   : >> { %13011 = vst [vmem:[%s17591_s5 + $0x8c0] sm:$0xff] %v13010_v35  ;;  %v13016_v15 = vld [vmem:[%s17595_s6 + $0x588] sm:$0xff]  ;;  %13013 = vst [vmem:[%s17591_s5 + $0x8e8] sm:$0xff] %v13012_v33  ;;  %v13018_v56 = vld [vmem:[%s17595_s6 + $0x5a0] sm:$0xff] }
 0x91c   : >> { %13015 = vst [vmem:[%s17591_s5 + $0x910] sm:$0xff] %v13014_v34  ;;  %13017 = vst [vmem:[%s17591_s5 + $0x938] sm:$0xff] %v13016_v15  ;;  %v13020_v37 = vld [vmem:[%s17595_s6 + $0x5b8] sm:$0xff]  ;;  %v13022_v48 = vld [vmem:[%s17595_s6 + $0x5d0] sm:$0xff] }
 0x91d   : >> { %13019 = vst [vmem:[%s17591_s5 + $0x960] sm:$0xff] %v13018_v56  ;;  %13021 = vst [vmem:[%s17591_s5 + $0x988] sm:$0xff] %v13020_v37  ;;  %v13024_v62 = vld [vmem:[%s17595_s6 + $0x5e8] sm:$0xff]  ;;  %v13026_v1 = vld [vmem:[%s17595_s6 + $0x600] sm:$0xff] }
 0x91e   : >> { %13023 = vst [vmem:[%s17591_s5 + $0x9b0] sm:$0xff] %v13022_v48  ;;  %v13028_v36 = vld [vmem:[%s17595_s6 + $0x618] sm:$0xff]  ;;  %13025 = vst [vmem:[%s17591_s5 + $0x9d8] sm:$0xff] %v13024_v62  ;;  %v13030_v25 = vld [vmem:[%s17595_s6 + $0x630] sm:$0xff] }
 0x91f   : >> { %13027 = vst [vmem:[%s17591_s5 + $0xa00] sm:$0xff] %v13026_v1  ;;  %13029 = vst [vmem:[%s17591_s5 + $0xa28] sm:$0xff] %v13028_v36  ;;  %v13032_v2 = vld [vmem:[%s17595_s6 + $0x648] sm:$0xff]  ;;  %v13034_v45 = vld [vmem:[%s17595_s6 + $0x660] sm:$0xff] }
 0x920   : >> { %13031 = vst [vmem:[%s17591_s5 + $0xa50] sm:$0xff] %v13030_v25  ;;  %13033 = vst [vmem:[%s17591_s5 + $0xa78] sm:$0xff] %v13032_v2  ;;  %v13036_v0 = vld [vmem:[%s17595_s6 + $0x678] sm:$0xff]  ;;  %v13038_v54 = vld [vmem:[%s17595_s6 + $0x690] sm:$0xff] }
 0x921   : >> { %13035 = vst [vmem:[%s17591_s5 + $0xaa0] sm:$0xff] %v13034_v45  ;;  %v13040_v30 = vld [vmem:[%s17595_s6 + $0x6a8] sm:$0xff]  ;;  %13037 = vst [vmem:[%s17591_s5 + $0xac8] sm:$0xff] %v13036_v0  ;;  %v13042_v61 = vld [vmem:[%s17595_s6 + $0x6c0] sm:$0xff] }
 0x922   : >> { %13039 = vst [vmem:[%s17591_s5 + $0xaf0] sm:$0xff] %v13038_v54  ;;  %13041 = vst [vmem:[%s17591_s5 + $0xb18] sm:$0xff] %v13040_v30  ;;  %v13044_v39 = vld [vmem:[%s17595_s6 + $0x6d8] sm:$0xff]  ;;  %v13046_v63 = vld [vmem:[%s17595_s6 + $0x6f0] sm:$0xff] }
 0x923   : >> { %13043 = vst [vmem:[%s17591_s5 + $0xb40] sm:$0xff] %v13042_v61  ;;  %13045 = vst [vmem:[%s17591_s5 + $0xb68] sm:$0xff] %v13044_v39  ;;  %v13048_v46 = vld [vmem:[%s17595_s6 + $0x708] sm:$0xff]  ;;  %v13050_v14 = vld [vmem:[%s17595_s6 + $0x720] sm:$0xff] }
 0x924   : >> { %13047 = vst [vmem:[%s17591_s5 + $0xb90] sm:$0xff] %v13046_v63  ;;  %v13052_v22 = vld [vmem:[%s17595_s6 + $0x738] sm:$0xff]  ;;  %13049 = vst [vmem:[%s17591_s5 + $0xbb8] sm:$0xff] %v13048_v46  ;;  %v13054_v42 = vld [vmem:[%s17595_s6 + $0x750] sm:$0xff] }
 0x925   : >> { %13051 = vst [vmem:[%s17591_s5 + $0xbe0] sm:$0xff] %v13050_v14  ;;  %13053 = vst [vmem:[%s17591_s5 + $0xc08] sm:$0xff] %v13052_v22  ;;  %v13056_v32 = vld [vmem:[%s17595_s6 + $0x768] sm:$0xff]  ;;  %v13058_v13 = vld [vmem:[%s17595_s6 + $0x780] sm:$0xff] }
 0x926   : >> { %13055 = vst [vmem:[%s17591_s5 + $0xc30] sm:$0xff] %v13054_v42  ;;  %13057 = vst [vmem:[%s17591_s5 + $0xc58] sm:$0xff] %v13056_v32  ;;  %v13060_v51 = vld [vmem:[%s17595_s6 + $0x798] sm:$0xff]  ;;  %v13062_v27 = vld [vmem:[%s17595_s6 + $0x7b0] sm:$0xff] }
 0x927   : >> { %13059 = vst [vmem:[%s17591_s5 + $0xc80] sm:$0xff] %v13058_v13  ;;  %v13064_v5 = vld [vmem:[%s17595_s6 + $0x7c8] sm:$0xff]  ;;  %13061 = vst [vmem:[%s17591_s5 + $0xca8] sm:$0xff] %v13060_v51  ;;  %v13066_v57 = vld [vmem:[%s17595_s6 + $0x7e0] sm:$0xff] }
 0x928   : >> { %13063 = vst [vmem:[%s17591_s5 + $0xcd0] sm:$0xff] %v13062_v27  ;;  %13065 = vst [vmem:[%s17591_s5 + $0xcf8] sm:$0xff] %v13064_v5  ;;  %v13068_v53 = vld [vmem:[%s17595_s6 + $0x7f8] sm:$0xff]  ;;  %v13070_v4 = vld [vmem:[%s17595_s6 + $0x810] sm:$0xff] }
 0x929   : >> { %13067 = vst [vmem:[%s17591_s5 + $0xd20] sm:$0xff] %v13066_v57  ;;  %13069 = vst [vmem:[%s17591_s5 + $0xd48] sm:$0xff] %v13068_v53  ;;  %v13072_v3 = vld [vmem:[%s17595_s6 + $0x828] sm:$0xff]  ;;  %v13074_v28 = vld [vmem:[%s17595_s6 + $0x840] sm:$0xff] }
 0x92a   : >> { %13071 = vst [vmem:[%s17591_s5 + $0xd70] sm:$0xff] %v13070_v4  ;;  %v13076_v43 = vld [vmem:[%s17595_s6 + $0x858] sm:$0xff]  ;;  %13073 = vst [vmem:[%s17591_s5 + $0xd98] sm:$0xff] %v13072_v3  ;;  %v13078_v58 = vld [vmem:[%s17595_s6 + $0x870] sm:$0xff] }
 0x92b   : >> { %13075 = vst [vmem:[%s17591_s5 + $0xdc0] sm:$0xff] %v13074_v28  ;;  %13077 = vst [vmem:[%s17591_s5 + $0xde8] sm:$0xff] %v13076_v43  ;;  %v13080_v10 = vld [vmem:[%s17595_s6 + $0x888] sm:$0xff]  ;;  %v13082_v17 = vld [vmem:[%s17595_s6 + $0x8a0] sm:$0xff]  ;;  %12894 = sbr.rel (!%p12891_p7) target bundleno = 2302 (0x8fe), region = 268 }
 0x92c   : >> { %13079 = vst [vmem:[%s17591_s5 + $0xe10] sm:$0xff] %v13078_v58  ;;  %13081 = vst [vmem:[%s17591_s5 + $0xe38] sm:$0xff] %v13080_v10  ;;  %v13084_v60 = vld [vmem:[%s17595_s6 + $0x8b8] sm:$0xff]  ;;  %v13086_v9 = vld [vmem:[%s17595_s6 + $0x8d0] sm:$0xff] }
 0x92d   : >> { %13083 = vst [vmem:[%s17591_s5 + $0xe60] sm:$0xff] %v13082_v17  ;;  %v13088_v24 = vld [vmem:[%s17595_s6 + $0x8e8] sm:$0xff]  ;;  %13085 = vst [vmem:[%s17591_s5 + $0xe88] sm:$0xff] %v13084_v60  ;;  %v13090_v26 = vld [vmem:[%s17595_s6 + $0x900] sm:$0xff] }
 0x92e   : >> { %13087 = vst [vmem:[%s17591_s5 + $0xeb0] sm:$0xff] %v13086_v9  ;;  %13089 = vst [vmem:[%s17591_s5 + $0xed8] sm:$0xff] %v13088_v24  ;;  %v13092_v11 = vld [vmem:[%s17595_s6 + $0x918] sm:$0xff]  ;;  %v13094_v12 = vld [vmem:[%s17595_s6 + $0x930] sm:$0xff] }
 0x92f   : >> { %13091 = vst [vmem:[%s17591_s5 + $0xf00] sm:$0xff] %v13090_v26  ;;  %13093 = vst [vmem:[%s17591_s5 + $0xf28] sm:$0xff] %v13092_v11  ;;  %v13096_v38 = vld [vmem:[%s17595_s6 + $0x948] sm:$0xff]  ;;  %v13098_v52 = vld [vmem:[%s17595_s6 + $0x960] sm:$0xff] }
 0x930   : >> { %13095 = vst [vmem:[%s17591_s5 + $0xf50] sm:$0xff] %v13094_v12  ;;  %v13100_v23 = vld [vmem:[%s17595_s6 + $0x978] sm:$0xff]  ;;  %13097 = vst [vmem:[%s17591_s5 + $0xf78] sm:$0xff] %v13096_v38  ;;  %s26935_s6 = smov %s23594_s9 }
 0x931   : >> { %13099 = vst [vmem:[%s17591_s5 + $0xfa0] sm:$0xff] %v13098_v52  ;;  %13101 = vst [vmem:[%s17591_s5 + $0xfc8] sm:$0xff] %v13100_v23  ;;  %s26934_s5 = smov %s23597_s28 }
 0x932 PF: > { %s17609_s0 = smov 0  }
 0x933   : > { %s23778_s24 = sshllo.u32 %s17609_s0, %s23261_s14 }
 0x934   : > { %v13118_v59 = vld [vmem:[%s23524_s22] sm:%s23778_s24]  ;;  %v13120_v44 = vld [vmem:[%s23524_s22 + $0x18] sm:%s23778_s24] }
 0x935   : > { %13119 = vst [vmem:[%s23527_s25] sm:%s23778_s24] %v13118_v59  ;;  %13121 = vst [vmem:[%s23527_s25 + $0x28] sm:%s23778_s24] %v13120_v44 }
 0x936   : > { %v13122_v49 = vld [vmem:[%s23524_s22 + $0x30] sm:%s23778_s24]  ;;  %v13124_v41 = vld [vmem:[%s23524_s22 + $0x48] sm:%s23778_s24] }
 0x937   : > { %13123 = vst [vmem:[%s23527_s25 + $0x50] sm:%s23778_s24] %v13122_v49  ;;  %13125 = vst [vmem:[%s23527_s25 + $0x78] sm:%s23778_s24] %v13124_v41 }
 0x938   : > { %v13126_v18 = vld [vmem:[%s23524_s22 + $0x60] sm:%s23778_s24]  ;;  %v13128_v19 = vld [vmem:[%s23524_s22 + $0x78] sm:%s23778_s24] }
 0x939   : > { %13127 = vst [vmem:[%s23527_s25 + $0xa0] sm:%s23778_s24] %v13126_v18  ;;  %13129 = vst [vmem:[%s23527_s25 + $0xc8] sm:%s23778_s24] %v13128_v19 }
 0x93a   : > { %v13130_v6 = vld [vmem:[%s23524_s22 + $0x90] sm:%s23778_s24]  ;;  %v13132_v31 = vld [vmem:[%s23524_s22 + $0xa8] sm:%s23778_s24] }
 0x93b   : > { %13131 = vst [vmem:[%s23527_s25 + $0xf0] sm:%s23778_s24] %v13130_v6  ;;  %13133 = vst [vmem:[%s23527_s25 + $0x118] sm:%s23778_s24] %v13132_v31 }
 0x93c   : > { %v13134_v50 = vld [vmem:[%s23524_s22 + $0xc0] sm:%s23778_s24]  ;;  %v13136_v16 = vld [vmem:[%s23524_s22 + $0xd8] sm:%s23778_s24] }
 0x93d   : > { %13135 = vst [vmem:[%s23527_s25 + $0x140] sm:%s23778_s24] %v13134_v50  ;;  %13137 = vst [vmem:[%s23527_s25 + $0x168] sm:%s23778_s24] %v13136_v16 }
 0x93e   : > { %v13138_v7 = vld [vmem:[%s23524_s22 + $0xf0] sm:%s23778_s24]  ;;  %v13140_v29 = vld [vmem:[%s23524_s22 + $0x108] sm:%s23778_s24] }
 0x93f   : > { %13139 = vst [vmem:[%s23527_s25 + $0x190] sm:%s23778_s24] %v13138_v7  ;;  %13141 = vst [vmem:[%s23527_s25 + $0x1b8] sm:%s23778_s24] %v13140_v29 }
 0x940   : > { %v13142_v20 = vld [vmem:[%s23524_s22 + $0x120] sm:%s23778_s24]  ;;  %v13144_v8 = vld [vmem:[%s23524_s22 + $0x138] sm:%s23778_s24] }
 0x941   : > { %13143 = vst [vmem:[%s23527_s25 + $0x1e0] sm:%s23778_s24] %v13142_v20  ;;  %13145 = vst [vmem:[%s23527_s25 + $0x208] sm:%s23778_s24] %v13144_v8 }
 0x942   : > { %v13146_v55 = vld [vmem:[%s23524_s22 + $0x150] sm:%s23778_s24]  ;;  %v13148_v21 = vld [vmem:[%s23524_s22 + $0x168] sm:%s23778_s24] }
 0x943   : > { %13147 = vst [vmem:[%s23527_s25 + $0x230] sm:%s23778_s24] %v13146_v55  ;;  %13149 = vst [vmem:[%s23527_s25 + $0x258] sm:%s23778_s24] %v13148_v21 }
 0x944   : > { %v13150_v47 = vld [vmem:[%s23524_s22 + $0x180] sm:%s23778_s24]  ;;  %v13152_v40 = vld [vmem:[%s23524_s22 + $0x198] sm:%s23778_s24] }
 0x945   : > { %13151 = vst [vmem:[%s23527_s25 + $0x280] sm:%s23778_s24] %v13150_v47  ;;  %13153 = vst [vmem:[%s23527_s25 + $0x2a8] sm:%s23778_s24] %v13152_v40 }
 0x946   : > { %v13154_v35 = vld [vmem:[%s23524_s22 + $0x1b0] sm:%s23778_s24]  ;;  %v13156_v33 = vld [vmem:[%s23524_s22 + $0x1c8] sm:%s23778_s24] }
 0x947   : > { %13155 = vst [vmem:[%s23527_s25 + $0x2d0] sm:%s23778_s24] %v13154_v35  ;;  %13157 = vst [vmem:[%s23527_s25 + $0x2f8] sm:%s23778_s24] %v13156_v33 }
 0x948   : > { %v13158_v34 = vld [vmem:[%s23524_s22 + $0x1e0] sm:%s23778_s24]  ;;  %v13160_v15 = vld [vmem:[%s23524_s22 + $0x1f8] sm:%s23778_s24] }
 0x949   : > { %13159 = vst [vmem:[%s23527_s25 + $0x320] sm:%s23778_s24] %v13158_v34  ;;  %13161 = vst [vmem:[%s23527_s25 + $0x348] sm:%s23778_s24] %v13160_v15 }
 0x94a   : > { %v13162_v56 = vld [vmem:[%s23524_s22 + $0x210] sm:%s23778_s24]  ;;  %v13164_v37 = vld [vmem:[%s23524_s22 + $0x228] sm:%s23778_s24] }
 0x94b   : > { %13163 = vst [vmem:[%s23527_s25 + $0x370] sm:%s23778_s24] %v13162_v56  ;;  %13165 = vst [vmem:[%s23527_s25 + $0x398] sm:%s23778_s24] %v13164_v37 }
 0x94c   : > { %v13166_v48 = vld [vmem:[%s23524_s22 + $0x240] sm:%s23778_s24]  ;;  %v13168_v62 = vld [vmem:[%s23524_s22 + $0x258] sm:%s23778_s24] }
 0x94d   : > { %13167 = vst [vmem:[%s23527_s25 + $0x3c0] sm:%s23778_s24] %v13166_v48  ;;  %13169 = vst [vmem:[%s23527_s25 + $0x3e8] sm:%s23778_s24] %v13168_v62 }
 0x94e   : > { %v13170_v1 = vld [vmem:[%s23524_s22 + $0x270] sm:%s23778_s24]  ;;  %v13172_v36 = vld [vmem:[%s23524_s22 + $0x288] sm:%s23778_s24] }
 0x94f   : > { %13171 = vst [vmem:[%s23527_s25 + $0x410] sm:%s23778_s24] %v13170_v1  ;;  %13173 = vst [vmem:[%s23527_s25 + $0x438] sm:%s23778_s24] %v13172_v36 }
 0x950   : > { %v13174_v25 = vld [vmem:[%s23524_s22 + $0x2a0] sm:%s23778_s24]  ;;  %v13176_v2 = vld [vmem:[%s23524_s22 + $0x2b8] sm:%s23778_s24] }
 0x951   : > { %13175 = vst [vmem:[%s23527_s25 + $0x460] sm:%s23778_s24] %v13174_v25  ;;  %13177 = vst [vmem:[%s23527_s25 + $0x488] sm:%s23778_s24] %v13176_v2 }
 0x952   : > { %v13178_v45 = vld [vmem:[%s23524_s22 + $0x2d0] sm:%s23778_s24]  ;;  %v13180_v0 = vld [vmem:[%s23524_s22 + $0x2e8] sm:%s23778_s24] }
 0x953   : > { %13179 = vst [vmem:[%s23527_s25 + $0x4b0] sm:%s23778_s24] %v13178_v45  ;;  %13181 = vst [vmem:[%s23527_s25 + $0x4d8] sm:%s23778_s24] %v13180_v0 }
 0x954   : > { %v13182_v54 = vld [vmem:[%s23524_s22 + $0x300] sm:%s23778_s24]  ;;  %v13184_v30 = vld [vmem:[%s23524_s22 + $0x318] sm:%s23778_s24] }
 0x955   : > { %13183 = vst [vmem:[%s23527_s25 + $0x500] sm:%s23778_s24] %v13182_v54  ;;  %13185 = vst [vmem:[%s23527_s25 + $0x528] sm:%s23778_s24] %v13184_v30 }
 0x956   : > { %v13186_v61 = vld [vmem:[%s23524_s22 + $0x330] sm:%s23778_s24]  ;;  %v13188_v39 = vld [vmem:[%s23524_s22 + $0x348] sm:%s23778_s24] }
 0x957   : > { %13187 = vst [vmem:[%s23527_s25 + $0x550] sm:%s23778_s24] %v13186_v61  ;;  %13189 = vst [vmem:[%s23527_s25 + $0x578] sm:%s23778_s24] %v13188_v39 }
 0x958   : > { %v13190_v63 = vld [vmem:[%s23524_s22 + $0x360] sm:%s23778_s24]  ;;  %v13192_v46 = vld [vmem:[%s23524_s22 + $0x378] sm:%s23778_s24] }
 0x959   : > { %13191 = vst [vmem:[%s23527_s25 + $0x5a0] sm:%s23778_s24] %v13190_v63  ;;  %13193 = vst [vmem:[%s23527_s25 + $0x5c8] sm:%s23778_s24] %v13192_v46 }
 0x95a   : > { %v13194_v14 = vld [vmem:[%s23524_s22 + $0x390] sm:%s23778_s24]  ;;  %v13196_v22 = vld [vmem:[%s23524_s22 + $0x3a8] sm:%s23778_s24] }
 0x95b   : > { %13195 = vst [vmem:[%s23527_s25 + $0x5f0] sm:%s23778_s24] %v13194_v14  ;;  %13197 = vst [vmem:[%s23527_s25 + $0x618] sm:%s23778_s24] %v13196_v22 }
 0x95c   : > { %v13198_v42 = vld [vmem:[%s23524_s22 + $0x3c0] sm:%s23778_s24]  ;;  %v13200_v32 = vld [vmem:[%s23524_s22 + $0x3d8] sm:%s23778_s24] }
 0x95d   : > { %13199 = vst [vmem:[%s23527_s25 + $0x640] sm:%s23778_s24] %v13198_v42  ;;  %13201 = vst [vmem:[%s23527_s25 + $0x668] sm:%s23778_s24] %v13200_v32 }
 0x95e   : > { %v13202_v13 = vld [vmem:[%s23524_s22 + $0x3f0] sm:%s23778_s24]  ;;  %v13204_v51 = vld [vmem:[%s23524_s22 + $0x408] sm:%s23778_s24] }
 0x95f   : > { %13203 = vst [vmem:[%s23527_s25 + $0x690] sm:%s23778_s24] %v13202_v13  ;;  %13205 = vst [vmem:[%s23527_s25 + $0x6b8] sm:%s23778_s24] %v13204_v51 }
 0x960   : > { %v13206_v27 = vld [vmem:[%s23524_s22 + $0x420] sm:%s23778_s24]  ;;  %v13208_v5 = vld [vmem:[%s23524_s22 + $0x438] sm:%s23778_s24] }
 0x961   : > { %13207 = vst [vmem:[%s23527_s25 + $0x6e0] sm:%s23778_s24] %v13206_v27  ;;  %13209 = vst [vmem:[%s23527_s25 + $0x708] sm:%s23778_s24] %v13208_v5 }
 0x962   : > { %v13210_v57 = vld [vmem:[%s23524_s22 + $0x450] sm:%s23778_s24]  ;;  %v13212_v53 = vld [vmem:[%s23524_s22 + $0x468] sm:%s23778_s24] }
 0x963   : > { %13211 = vst [vmem:[%s23527_s25 + $0x730] sm:%s23778_s24] %v13210_v57  ;;  %13213 = vst [vmem:[%s23527_s25 + $0x758] sm:%s23778_s24] %v13212_v53 }
 0x964   : > { %v13214_v4 = vld [vmem:[%s23524_s22 + $0x480] sm:%s23778_s24]  ;;  %v13216_v3 = vld [vmem:[%s23524_s22 + $0x498] sm:%s23778_s24] }
 0x965   : > { %13215 = vst [vmem:[%s23527_s25 + $0x780] sm:%s23778_s24] %v13214_v4  ;;  %13217 = vst [vmem:[%s23527_s25 + $0x7a8] sm:%s23778_s24] %v13216_v3 }
 0x966   : > { %v13218_v28 = vld [vmem:[%s23524_s22 + $0x4b0] sm:%s23778_s24]  ;;  %v13220_v43 = vld [vmem:[%s23524_s22 + $0x4c8] sm:%s23778_s24] }
 0x967   : > { %13219 = vst [vmem:[%s23527_s25 + $0x7d0] sm:%s23778_s24] %v13218_v28  ;;  %13221 = vst [vmem:[%s23527_s25 + $0x7f8] sm:%s23778_s24] %v13220_v43 }
 0x968   : > { %v13222_v58 = vld [vmem:[%s23524_s22 + $0x4e0] sm:%s23778_s24]  ;;  %v13224_v10 = vld [vmem:[%s23524_s22 + $0x4f8] sm:%s23778_s24] }
 0x969   : > { %13223 = vst [vmem:[%s23527_s25 + $0x820] sm:%s23778_s24] %v13222_v58  ;;  %13225 = vst [vmem:[%s23527_s25 + $0x848] sm:%s23778_s24] %v13224_v10 }
 0x96a   : > { %v13226_v17 = vld [vmem:[%s23524_s22 + $0x510] sm:%s23778_s24]  ;;  %v13228_v60 = vld [vmem:[%s23524_s22 + $0x528] sm:%s23778_s24] }
 0x96b   : > { %13227 = vst [vmem:[%s23527_s25 + $0x870] sm:%s23778_s24] %v13226_v17  ;;  %13229 = vst [vmem:[%s23527_s25 + $0x898] sm:%s23778_s24] %v13228_v60 }
 0x96c   : > { %v13230_v9 = vld [vmem:[%s23524_s22 + $0x540] sm:%s23778_s24]  ;;  %v13232_v24 = vld [vmem:[%s23524_s22 + $0x558] sm:%s23778_s24] }
 0x96d   : > { %13231 = vst [vmem:[%s23527_s25 + $0x8c0] sm:%s23778_s24] %v13230_v9  ;;  %13233 = vst [vmem:[%s23527_s25 + $0x8e8] sm:%s23778_s24] %v13232_v24 }
 0x96e   : > { %v13234_v26 = vld [vmem:[%s23524_s22 + $0x570] sm:%s23778_s24]  ;;  %v13236_v11 = vld [vmem:[%s23524_s22 + $0x588] sm:%s23778_s24] }
 0x96f   : > { %13235 = vst [vmem:[%s23527_s25 + $0x910] sm:%s23778_s24] %v13234_v26  ;;  %13237 = vst [vmem:[%s23527_s25 + $0x938] sm:%s23778_s24] %v13236_v11 }
 0x970   : > { %v13238_v12 = vld [vmem:[%s23524_s22 + $0x5a0] sm:%s23778_s24]  ;;  %v13240_v38 = vld [vmem:[%s23524_s22 + $0x5b8] sm:%s23778_s24] }
 0x971   : > { %13239 = vst [vmem:[%s23527_s25 + $0x960] sm:%s23778_s24] %v13238_v12  ;;  %13241 = vst [vmem:[%s23527_s25 + $0x988] sm:%s23778_s24] %v13240_v38 }
 0x972   : > { %v13242_v52 = vld [vmem:[%s23524_s22 + $0x5d0] sm:%s23778_s24]  ;;  %v13244_v23 = vld [vmem:[%s23524_s22 + $0x5e8] sm:%s23778_s24] }
 0x973   : > { %13243 = vst [vmem:[%s23527_s25 + $0x9b0] sm:%s23778_s24] %v13242_v52  ;;  %13245 = vst [vmem:[%s23527_s25 + $0x9d8] sm:%s23778_s24] %v13244_v23 }
 0x974   : > { %v13246_v59 = vld [vmem:[%s23524_s22 + $0x600] sm:%s23778_s24]  ;;  %v13248_v44 = vld [vmem:[%s23524_s22 + $0x618] sm:%s23778_s24] }
 0x975   : > { %13247 = vst [vmem:[%s23527_s25 + $0xa00] sm:%s23778_s24] %v13246_v59  ;;  %13249 = vst [vmem:[%s23527_s25 + $0xa28] sm:%s23778_s24] %v13248_v44 }
 0x976   : > { %v13250_v49 = vld [vmem:[%s23524_s22 + $0x630] sm:%s23778_s24]  ;;  %v13252_v41 = vld [vmem:[%s23524_s22 + $0x648] sm:%s23778_s24] }
 0x977   : > { %13251 = vst [vmem:[%s23527_s25 + $0xa50] sm:%s23778_s24] %v13250_v49  ;;  %13253 = vst [vmem:[%s23527_s25 + $0xa78] sm:%s23778_s24] %v13252_v41 }
 0x978   : > { %v13254_v18 = vld [vmem:[%s23524_s22 + $0x660] sm:%s23778_s24]  ;;  %v13256_v19 = vld [vmem:[%s23524_s22 + $0x678] sm:%s23778_s24] }
 0x979   : > { %13255 = vst [vmem:[%s23527_s25 + $0xaa0] sm:%s23778_s24] %v13254_v18  ;;  %13257 = vst [vmem:[%s23527_s25 + $0xac8] sm:%s23778_s24] %v13256_v19 }
 0x97a   : > { %v13258_v6 = vld [vmem:[%s23524_s22 + $0x690] sm:%s23778_s24]  ;;  %v13260_v31 = vld [vmem:[%s23524_s22 + $0x6a8] sm:%s23778_s24] }
 0x97b   : > { %13259 = vst [vmem:[%s23527_s25 + $0xaf0] sm:%s23778_s24] %v13258_v6  ;;  %13261 = vst [vmem:[%s23527_s25 + $0xb18] sm:%s23778_s24] %v13260_v31 }
 0x97c   : > { %v13262_v50 = vld [vmem:[%s23524_s22 + $0x6c0] sm:%s23778_s24]  ;;  %v13264_v16 = vld [vmem:[%s23524_s22 + $0x6d8] sm:%s23778_s24] }
 0x97d   : > { %13263 = vst [vmem:[%s23527_s25 + $0xb40] sm:%s23778_s24] %v13262_v50  ;;  %13265 = vst [vmem:[%s23527_s25 + $0xb68] sm:%s23778_s24] %v13264_v16 }
 0x97e   : > { %v13266_v7 = vld [vmem:[%s23524_s22 + $0x6f0] sm:%s23778_s24]  ;;  %v13268_v29 = vld [vmem:[%s23524_s22 + $0x708] sm:%s23778_s24] }
 0x97f   : > { %13267 = vst [vmem:[%s23527_s25 + $0xb90] sm:%s23778_s24] %v13266_v7  ;;  %13269 = vst [vmem:[%s23527_s25 + $0xbb8] sm:%s23778_s24] %v13268_v29 }
 0x980   : > { %v13270_v20 = vld [vmem:[%s23524_s22 + $0x720] sm:%s23778_s24]  ;;  %v13272_v8 = vld [vmem:[%s23524_s22 + $0x738] sm:%s23778_s24] }
 0x981   : > { %13271 = vst [vmem:[%s23527_s25 + $0xbe0] sm:%s23778_s24] %v13270_v20  ;;  %13273 = vst [vmem:[%s23527_s25 + $0xc08] sm:%s23778_s24] %v13272_v8 }
 0x982   : > { %v13274_v55 = vld [vmem:[%s23524_s22 + $0x750] sm:%s23778_s24]  ;;  %v13276_v21 = vld [vmem:[%s23524_s22 + $0x768] sm:%s23778_s24] }
 0x983   : > { %13275 = vst [vmem:[%s23527_s25 + $0xc30] sm:%s23778_s24] %v13274_v55  ;;  %13277 = vst [vmem:[%s23527_s25 + $0xc58] sm:%s23778_s24] %v13276_v21 }
 0x984   : > { %v13278_v47 = vld [vmem:[%s23524_s22 + $0x780] sm:%s23778_s24]  ;;  %v13280_v40 = vld [vmem:[%s23524_s22 + $0x798] sm:%s23778_s24] }
 0x985   : > { %13279 = vst [vmem:[%s23527_s25 + $0xc80] sm:%s23778_s24] %v13278_v47  ;;  %13281 = vst [vmem:[%s23527_s25 + $0xca8] sm:%s23778_s24] %v13280_v40 }
 0x986   : > { %v13282_v35 = vld [vmem:[%s23524_s22 + $0x7b0] sm:%s23778_s24]  ;;  %v13284_v33 = vld [vmem:[%s23524_s22 + $0x7c8] sm:%s23778_s24] }
 0x987   : > { %13283 = vst [vmem:[%s23527_s25 + $0xcd0] sm:%s23778_s24] %v13282_v35  ;;  %13285 = vst [vmem:[%s23527_s25 + $0xcf8] sm:%s23778_s24] %v13284_v33 }
 0x988   : > { %v13286_v34 = vld [vmem:[%s23524_s22 + $0x7e0] sm:%s23778_s24]  ;;  %v13288_v15 = vld [vmem:[%s23524_s22 + $0x7f8] sm:%s23778_s24] }
 0x989   : > { %13287 = vst [vmem:[%s23527_s25 + $0xd20] sm:%s23778_s24] %v13286_v34  ;;  %13289 = vst [vmem:[%s23527_s25 + $0xd48] sm:%s23778_s24] %v13288_v15 }
 0x98a   : > { %v13290_v56 = vld [vmem:[%s23524_s22 + $0x810] sm:%s23778_s24]  ;;  %v13292_v37 = vld [vmem:[%s23524_s22 + $0x828] sm:%s23778_s24] }
 0x98b   : > { %13291 = vst [vmem:[%s23527_s25 + $0xd70] sm:%s23778_s24] %v13290_v56  ;;  %13293 = vst [vmem:[%s23527_s25 + $0xd98] sm:%s23778_s24] %v13292_v37 }
 0x98c   : > { %v13294_v48 = vld [vmem:[%s23524_s22 + $0x840] sm:%s23778_s24]  ;;  %v13296_v62 = vld [vmem:[%s23524_s22 + $0x858] sm:%s23778_s24] }
 0x98d   : > { %13295 = vst [vmem:[%s23527_s25 + $0xdc0] sm:%s23778_s24] %v13294_v48  ;;  %13297 = vst [vmem:[%s23527_s25 + $0xde8] sm:%s23778_s24] %v13296_v62 }
 0x98e   : > { %v13298_v1 = vld [vmem:[%s23524_s22 + $0x870] sm:%s23778_s24]  ;;  %v13300_v36 = vld [vmem:[%s23524_s22 + $0x888] sm:%s23778_s24] }
 0x98f   : > { %13299 = vst [vmem:[%s23527_s25 + $0xe10] sm:%s23778_s24] %v13298_v1  ;;  %13301 = vst [vmem:[%s23527_s25 + $0xe38] sm:%s23778_s24] %v13300_v36 }
 0x990   : > { %v13302_v25 = vld [vmem:[%s23524_s22 + $0x8a0] sm:%s23778_s24]  ;;  %v13304_v2 = vld [vmem:[%s23524_s22 + $0x8b8] sm:%s23778_s24] }
 0x991   : > { %13303 = vst [vmem:[%s23527_s25 + $0xe60] sm:%s23778_s24] %v13302_v25  ;;  %13305 = vst [vmem:[%s23527_s25 + $0xe88] sm:%s23778_s24] %v13304_v2 }
 0x992   : > { %v13306_v45 = vld [vmem:[%s23524_s22 + $0x8d0] sm:%s23778_s24]  ;;  %v13308_v0 = vld [vmem:[%s23524_s22 + $0x8e8] sm:%s23778_s24] }
 0x993   : > { %13307 = vst [vmem:[%s23527_s25 + $0xeb0] sm:%s23778_s24] %v13306_v45  ;;  %13309 = vst [vmem:[%s23527_s25 + $0xed8] sm:%s23778_s24] %v13308_v0 }
 0x994   : > { %v13310_v54 = vld [vmem:[%s23524_s22 + $0x900] sm:%s23778_s24]  ;;  %v13312_v30 = vld [vmem:[%s23524_s22 + $0x918] sm:%s23778_s24] }
 0x995   : > { %13311 = vst [vmem:[%s23527_s25 + $0xf00] sm:%s23778_s24] %v13310_v54  ;;  %13313 = vst [vmem:[%s23527_s25 + $0xf28] sm:%s23778_s24] %v13312_v30 }
 0x996   : > { %v13314_v61 = vld [vmem:[%s23524_s22 + $0x930] sm:%s23778_s24]  ;;  %v13316_v39 = vld [vmem:[%s23524_s22 + $0x948] sm:%s23778_s24] }
 0x997   : > { %13315 = vst [vmem:[%s23527_s25 + $0xf50] sm:%s23778_s24] %v13314_v61  ;;  %13317 = vst [vmem:[%s23527_s25 + $0xf78] sm:%s23778_s24] %v13316_v39 }
 0x998   : > { %v13318_v63 = vld [vmem:[%s23524_s22 + $0x960] sm:%s23778_s24]  ;;  %v13320_v46 = vld [vmem:[%s23524_s22 + $0x978] sm:%s23778_s24] }
 0x999   : > { %13319 = vst [vmem:[%s23527_s25 + $0xfa0] sm:%s23778_s24] %v13318_v63  ;;  %13321 = vst [vmem:[%s23527_s25 + $0xfc8] sm:%s23778_s24] %v13320_v46 }
 0x99a PF: > { %p13561_p8 = scmp.ge.u32.totalorder %s23257_s29, 8 }
 0x99b   : > { %s17610_s14 = smov (!%p13561_p8), 0  }
 0x99c   : > { %12436 = sbr.rel (%p13561_p8) target bundleno = 2563 (0xa03), region = 114  ;;  %s24190_s4 = sshllo.u32 (!%p13561_p8), %s17610_s14, %s23257_s29 }
 0x99d   : > { %v12446_v14 = vld [vmem:[%s22102_s12] sm:%s24190_s4] (!%p13561_p8)  ;;  %v12448_v22 = vld [vmem:[%s22102_s12 + $0x18] sm:%s24190_s4] (!%p13561_p8) }
 0x99e   : > { %12447 = vst [vmem:[%s23255_s8] sm:%s24190_s4] (!%p13561_p8), %v12446_v14  ;;  %12449 = vst [vmem:[%s23255_s8 + $0x28] sm:%s24190_s4] (!%p13561_p8), %v12448_v22 }
 0x99f   : > { %v12450_v42 = vld [vmem:[%s22102_s12 + $0x30] sm:%s24190_s4] (!%p13561_p8)  ;;  %v12452_v32 = vld [vmem:[%s22102_s12 + $0x48] sm:%s24190_s4] (!%p13561_p8) }
 0x9a0   : > { %12451 = vst [vmem:[%s23255_s8 + $0x50] sm:%s24190_s4] (!%p13561_p8), %v12450_v42  ;;  %12453 = vst [vmem:[%s23255_s8 + $0x78] sm:%s24190_s4] (!%p13561_p8), %v12452_v32 }
 0x9a1   : > { %v12454_v13 = vld [vmem:[%s22102_s12 + $0x60] sm:%s24190_s4] (!%p13561_p8)  ;;  %v12456_v51 = vld [vmem:[%s22102_s12 + $0x78] sm:%s24190_s4] (!%p13561_p8) }
 0x9a2   : > { %12455 = vst [vmem:[%s23255_s8 + $0xa0] sm:%s24190_s4] (!%p13561_p8), %v12454_v13  ;;  %12457 = vst [vmem:[%s23255_s8 + $0xc8] sm:%s24190_s4] (!%p13561_p8), %v12456_v51 }
 0x9a3   : > { %v12458_v27 = vld [vmem:[%s22102_s12 + $0x90] sm:%s24190_s4]  ;;  %v12460_v5 = vld [vmem:[%s22102_s12 + $0xa8] sm:%s24190_s4] }
 0x9a4   : > { %12459 = vst [vmem:[%s23255_s8 + $0xf0] sm:%s24190_s4] %v12458_v27  ;;  %12461 = vst [vmem:[%s23255_s8 + $0x118] sm:%s24190_s4] %v12460_v5 }
 0x9a5   : > { %v12462_v57 = vld [vmem:[%s22102_s12 + $0xc0] sm:%s24190_s4]  ;;  %v12464_v53 = vld [vmem:[%s22102_s12 + $0xd8] sm:%s24190_s4] }
 0x9a6   : > { %12463 = vst [vmem:[%s23255_s8 + $0x140] sm:%s24190_s4] %v12462_v57  ;;  %12465 = vst [vmem:[%s23255_s8 + $0x168] sm:%s24190_s4] %v12464_v53 }
 0x9a7   : > { %v12466_v4 = vld [vmem:[%s22102_s12 + $0xf0] sm:%s24190_s4]  ;;  %v12468_v3 = vld [vmem:[%s22102_s12 + $0x108] sm:%s24190_s4] }
 0x9a8   : > { %12467 = vst [vmem:[%s23255_s8 + $0x190] sm:%s24190_s4] %v12466_v4  ;;  %12469 = vst [vmem:[%s23255_s8 + $0x1b8] sm:%s24190_s4] %v12468_v3 }
 0x9a9   : > { %v12470_v28 = vld [vmem:[%s22102_s12 + $0x120] sm:%s24190_s4]  ;;  %v12472_v43 = vld [vmem:[%s22102_s12 + $0x138] sm:%s24190_s4] }
 0x9aa   : > { %12471 = vst [vmem:[%s23255_s8 + $0x1e0] sm:%s24190_s4] %v12470_v28  ;;  %12473 = vst [vmem:[%s23255_s8 + $0x208] sm:%s24190_s4] %v12472_v43 }
 0x9ab   : > { %v12474_v58 = vld [vmem:[%s22102_s12 + $0x150] sm:%s24190_s4]  ;;  %v12476_v10 = vld [vmem:[%s22102_s12 + $0x168] sm:%s24190_s4] }
 0x9ac   : > { %12475 = vst [vmem:[%s23255_s8 + $0x230] sm:%s24190_s4] %v12474_v58  ;;  %12477 = vst [vmem:[%s23255_s8 + $0x258] sm:%s24190_s4] %v12476_v10 }
 0x9ad   : > { %v12478_v17 = vld [vmem:[%s22102_s12 + $0x180] sm:%s24190_s4]  ;;  %v12480_v60 = vld [vmem:[%s22102_s12 + $0x198] sm:%s24190_s4] }
 0x9ae   : > { %12479 = vst [vmem:[%s23255_s8 + $0x280] sm:%s24190_s4] %v12478_v17  ;;  %12481 = vst [vmem:[%s23255_s8 + $0x2a8] sm:%s24190_s4] %v12480_v60 }
 0x9af   : > { %v12482_v9 = vld [vmem:[%s22102_s12 + $0x1b0] sm:%s24190_s4]  ;;  %v12484_v24 = vld [vmem:[%s22102_s12 + $0x1c8] sm:%s24190_s4] }
 0x9b0   : > { %12483 = vst [vmem:[%s23255_s8 + $0x2d0] sm:%s24190_s4] %v12482_v9  ;;  %12485 = vst [vmem:[%s23255_s8 + $0x2f8] sm:%s24190_s4] %v12484_v24 }
 0x9b1   : > { %v12486_v26 = vld [vmem:[%s22102_s12 + $0x1e0] sm:%s24190_s4]  ;;  %v12488_v11 = vld [vmem:[%s22102_s12 + $0x1f8] sm:%s24190_s4] }
 0x9b2   : > { %12487 = vst [vmem:[%s23255_s8 + $0x320] sm:%s24190_s4] %v12486_v26  ;;  %12489 = vst [vmem:[%s23255_s8 + $0x348] sm:%s24190_s4] %v12488_v11 }
 0x9b3   : > { %v12490_v12 = vld [vmem:[%s22102_s12 + $0x210] sm:%s24190_s4]  ;;  %v12492_v38 = vld [vmem:[%s22102_s12 + $0x228] sm:%s24190_s4] }
 0x9b4   : > { %12491 = vst [vmem:[%s23255_s8 + $0x370] sm:%s24190_s4] %v12490_v12  ;;  %12493 = vst [vmem:[%s23255_s8 + $0x398] sm:%s24190_s4] %v12492_v38 }
 0x9b5   : > { %v12494_v52 = vld [vmem:[%s22102_s12 + $0x240] sm:%s24190_s4]  ;;  %v12496_v23 = vld [vmem:[%s22102_s12 + $0x258] sm:%s24190_s4] }
 0x9b6   : > { %12495 = vst [vmem:[%s23255_s8 + $0x3c0] sm:%s24190_s4] %v12494_v52  ;;  %12497 = vst [vmem:[%s23255_s8 + $0x3e8] sm:%s24190_s4] %v12496_v23 }
 0x9b7   : > { %v12498_v59 = vld [vmem:[%s22102_s12 + $0x270] sm:%s24190_s4]  ;;  %v12500_v44 = vld [vmem:[%s22102_s12 + $0x288] sm:%s24190_s4] }
 0x9b8   : > { %12499 = vst [vmem:[%s23255_s8 + $0x410] sm:%s24190_s4] %v12498_v59  ;;  %12501 = vst [vmem:[%s23255_s8 + $0x438] sm:%s24190_s4] %v12500_v44 }
 0x9b9   : > { %v12502_v49 = vld [vmem:[%s22102_s12 + $0x2a0] sm:%s24190_s4]  ;;  %v12504_v41 = vld [vmem:[%s22102_s12 + $0x2b8] sm:%s24190_s4] }
 0x9ba   : > { %12503 = vst [vmem:[%s23255_s8 + $0x460] sm:%s24190_s4] %v12502_v49  ;;  %12505 = vst [vmem:[%s23255_s8 + $0x488] sm:%s24190_s4] %v12504_v41 }
 0x9bb   : > { %v12506_v18 = vld [vmem:[%s22102_s12 + $0x2d0] sm:%s24190_s4]  ;;  %v12508_v19 = vld [vmem:[%s22102_s12 + $0x2e8] sm:%s24190_s4] }
 0x9bc   : > { %12507 = vst [vmem:[%s23255_s8 + $0x4b0] sm:%s24190_s4] %v12506_v18  ;;  %12509 = vst [vmem:[%s23255_s8 + $0x4d8] sm:%s24190_s4] %v12508_v19 }
 0x9bd   : > { %v12510_v6 = vld [vmem:[%s22102_s12 + $0x300] sm:%s24190_s4]  ;;  %v12512_v31 = vld [vmem:[%s22102_s12 + $0x318] sm:%s24190_s4] }
 0x9be   : > { %12511 = vst [vmem:[%s23255_s8 + $0x500] sm:%s24190_s4] %v12510_v6  ;;  %12513 = vst [vmem:[%s23255_s8 + $0x528] sm:%s24190_s4] %v12512_v31 }
 0x9bf   : > { %v12514_v50 = vld [vmem:[%s22102_s12 + $0x330] sm:%s24190_s4]  ;;  %v12516_v16 = vld [vmem:[%s22102_s12 + $0x348] sm:%s24190_s4] }
 0x9c0   : > { %12515 = vst [vmem:[%s23255_s8 + $0x550] sm:%s24190_s4] %v12514_v50  ;;  %12517 = vst [vmem:[%s23255_s8 + $0x578] sm:%s24190_s4] %v12516_v16 }
 0x9c1   : > { %v12518_v7 = vld [vmem:[%s22102_s12 + $0x360] sm:%s24190_s4]  ;;  %v12520_v29 = vld [vmem:[%s22102_s12 + $0x378] sm:%s24190_s4] }
 0x9c2   : > { %12519 = vst [vmem:[%s23255_s8 + $0x5a0] sm:%s24190_s4] %v12518_v7  ;;  %12521 = vst [vmem:[%s23255_s8 + $0x5c8] sm:%s24190_s4] %v12520_v29 }
 0x9c3   : > { %v12522_v20 = vld [vmem:[%s22102_s12 + $0x390] sm:%s24190_s4]  ;;  %v12524_v8 = vld [vmem:[%s22102_s12 + $0x3a8] sm:%s24190_s4] }
 0x9c4   : > { %12523 = vst [vmem:[%s23255_s8 + $0x5f0] sm:%s24190_s4] %v12522_v20  ;;  %12525 = vst [vmem:[%s23255_s8 + $0x618] sm:%s24190_s4] %v12524_v8 }
 0x9c5   : > { %v12526_v55 = vld [vmem:[%s22102_s12 + $0x3c0] sm:%s24190_s4]  ;;  %v12528_v21 = vld [vmem:[%s22102_s12 + $0x3d8] sm:%s24190_s4] }
 0x9c6   : > { %12527 = vst [vmem:[%s23255_s8 + $0x640] sm:%s24190_s4] %v12526_v55  ;;  %12529 = vst [vmem:[%s23255_s8 + $0x668] sm:%s24190_s4] %v12528_v21 }
 0x9c7   : > { %v12530_v47 = vld [vmem:[%s22102_s12 + $0x3f0] sm:%s24190_s4]  ;;  %v12532_v40 = vld [vmem:[%s22102_s12 + $0x408] sm:%s24190_s4] }
 0x9c8   : > { %12531 = vst [vmem:[%s23255_s8 + $0x690] sm:%s24190_s4] %v12530_v47  ;;  %12533 = vst [vmem:[%s23255_s8 + $0x6b8] sm:%s24190_s4] %v12532_v40 }
 0x9c9   : > { %v12534_v35 = vld [vmem:[%s22102_s12 + $0x420] sm:%s24190_s4]  ;;  %v12536_v33 = vld [vmem:[%s22102_s12 + $0x438] sm:%s24190_s4] }
 0x9ca   : > { %12535 = vst [vmem:[%s23255_s8 + $0x6e0] sm:%s24190_s4] %v12534_v35  ;;  %12537 = vst [vmem:[%s23255_s8 + $0x708] sm:%s24190_s4] %v12536_v33 }
 0x9cb   : > { %v12538_v34 = vld [vmem:[%s22102_s12 + $0x450] sm:%s24190_s4]  ;;  %v12540_v15 = vld [vmem:[%s22102_s12 + $0x468] sm:%s24190_s4] }
 0x9cc   : > { %12539 = vst [vmem:[%s23255_s8 + $0x730] sm:%s24190_s4] %v12538_v34  ;;  %12541 = vst [vmem:[%s23255_s8 + $0x758] sm:%s24190_s4] %v12540_v15 }
 0x9cd   : > { %v12542_v56 = vld [vmem:[%s22102_s12 + $0x480] sm:%s24190_s4]  ;;  %v12544_v37 = vld [vmem:[%s22102_s12 + $0x498] sm:%s24190_s4] }
 0x9ce   : > { %12543 = vst [vmem:[%s23255_s8 + $0x780] sm:%s24190_s4] %v12542_v56  ;;  %12545 = vst [vmem:[%s23255_s8 + $0x7a8] sm:%s24190_s4] %v12544_v37 }
 0x9cf   : > { %v12546_v48 = vld [vmem:[%s22102_s12 + $0x4b0] sm:%s24190_s4]  ;;  %v12548_v62 = vld [vmem:[%s22102_s12 + $0x4c8] sm:%s24190_s4] }
 0x9d0   : > { %12547 = vst [vmem:[%s23255_s8 + $0x7d0] sm:%s24190_s4] %v12546_v48  ;;  %12549 = vst [vmem:[%s23255_s8 + $0x7f8] sm:%s24190_s4] %v12548_v62 }
 0x9d1   : > { %v12550_v1 = vld [vmem:[%s22102_s12 + $0x4e0] sm:%s24190_s4]  ;;  %v12552_v36 = vld [vmem:[%s22102_s12 + $0x4f8] sm:%s24190_s4] }
 0x9d2   : > { %12551 = vst [vmem:[%s23255_s8 + $0x820] sm:%s24190_s4] %v12550_v1  ;;  %12553 = vst [vmem:[%s23255_s8 + $0x848] sm:%s24190_s4] %v12552_v36 }
 0x9d3   : > { %v12554_v25 = vld [vmem:[%s22102_s12 + $0x510] sm:%s24190_s4]  ;;  %v12556_v2 = vld [vmem:[%s22102_s12 + $0x528] sm:%s24190_s4] }
 0x9d4   : > { %12555 = vst [vmem:[%s23255_s8 + $0x870] sm:%s24190_s4] %v12554_v25  ;;  %12557 = vst [vmem:[%s23255_s8 + $0x898] sm:%s24190_s4] %v12556_v2 }
 0x9d5   : > { %v12558_v45 = vld [vmem:[%s22102_s12 + $0x540] sm:%s24190_s4]  ;;  %v12560_v0 = vld [vmem:[%s22102_s12 + $0x558] sm:%s24190_s4] }
 0x9d6   : > { %12559 = vst [vmem:[%s23255_s8 + $0x8c0] sm:%s24190_s4] %v12558_v45  ;;  %12561 = vst [vmem:[%s23255_s8 + $0x8e8] sm:%s24190_s4] %v12560_v0 }
 0x9d7   : > { %v12562_v54 = vld [vmem:[%s22102_s12 + $0x570] sm:%s24190_s4]  ;;  %v12564_v30 = vld [vmem:[%s22102_s12 + $0x588] sm:%s24190_s4] }
 0x9d8   : > { %12563 = vst [vmem:[%s23255_s8 + $0x910] sm:%s24190_s4] %v12562_v54  ;;  %12565 = vst [vmem:[%s23255_s8 + $0x938] sm:%s24190_s4] %v12564_v30 }
 0x9d9   : > { %v12566_v61 = vld [vmem:[%s22102_s12 + $0x5a0] sm:%s24190_s4]  ;;  %v12568_v39 = vld [vmem:[%s22102_s12 + $0x5b8] sm:%s24190_s4] }
 0x9da   : > { %12567 = vst [vmem:[%s23255_s8 + $0x960] sm:%s24190_s4] %v12566_v61  ;;  %12569 = vst [vmem:[%s23255_s8 + $0x988] sm:%s24190_s4] %v12568_v39 }
 0x9db   : > { %v12570_v63 = vld [vmem:[%s22102_s12 + $0x5d0] sm:%s24190_s4]  ;;  %v12572_v46 = vld [vmem:[%s22102_s12 + $0x5e8] sm:%s24190_s4] }
 0x9dc   : > { %12571 = vst [vmem:[%s23255_s8 + $0x9b0] sm:%s24190_s4] %v12570_v63  ;;  %12573 = vst [vmem:[%s23255_s8 + $0x9d8] sm:%s24190_s4] %v12572_v46 }
 0x9dd   : > { %v12574_v14 = vld [vmem:[%s22102_s12 + $0x600] sm:%s24190_s4]  ;;  %v12576_v22 = vld [vmem:[%s22102_s12 + $0x618] sm:%s24190_s4] }
 0x9de   : > { %12575 = vst [vmem:[%s23255_s8 + $0xa00] sm:%s24190_s4] %v12574_v14  ;;  %12577 = vst [vmem:[%s23255_s8 + $0xa28] sm:%s24190_s4] %v12576_v22 }
 0x9df   : > { %v12578_v42 = vld [vmem:[%s22102_s12 + $0x630] sm:%s24190_s4]  ;;  %v12580_v32 = vld [vmem:[%s22102_s12 + $0x648] sm:%s24190_s4] }
 0x9e0   : > { %12579 = vst [vmem:[%s23255_s8 + $0xa50] sm:%s24190_s4] %v12578_v42  ;;  %12581 = vst [vmem:[%s23255_s8 + $0xa78] sm:%s24190_s4] %v12580_v32 }
 0x9e1   : > { %v12582_v13 = vld [vmem:[%s22102_s12 + $0x660] sm:%s24190_s4]  ;;  %v12584_v51 = vld [vmem:[%s22102_s12 + $0x678] sm:%s24190_s4] }
 0x9e2   : > { %12583 = vst [vmem:[%s23255_s8 + $0xaa0] sm:%s24190_s4] %v12582_v13  ;;  %12585 = vst [vmem:[%s23255_s8 + $0xac8] sm:%s24190_s4] %v12584_v51 }
 0x9e3   : > { %v12586_v27 = vld [vmem:[%s22102_s12 + $0x690] sm:%s24190_s4]  ;;  %v12588_v5 = vld [vmem:[%s22102_s12 + $0x6a8] sm:%s24190_s4] }
 0x9e4   : > { %12587 = vst [vmem:[%s23255_s8 + $0xaf0] sm:%s24190_s4] %v12586_v27  ;;  %12589 = vst [vmem:[%s23255_s8 + $0xb18] sm:%s24190_s4] %v12588_v5 }
 0x9e5   : > { %v12590_v57 = vld [vmem:[%s22102_s12 + $0x6c0] sm:%s24190_s4]  ;;  %v12592_v53 = vld [vmem:[%s22102_s12 + $0x6d8] sm:%s24190_s4] }
 0x9e6   : > { %12591 = vst [vmem:[%s23255_s8 + $0xb40] sm:%s24190_s4] %v12590_v57  ;;  %12593 = vst [vmem:[%s23255_s8 + $0xb68] sm:%s24190_s4] %v12592_v53 }
 0x9e7   : > { %v12594_v4 = vld [vmem:[%s22102_s12 + $0x6f0] sm:%s24190_s4]  ;;  %v12596_v3 = vld [vmem:[%s22102_s12 + $0x708] sm:%s24190_s4] }
 0x9e8   : > { %12595 = vst [vmem:[%s23255_s8 + $0xb90] sm:%s24190_s4] %v12594_v4  ;;  %12597 = vst [vmem:[%s23255_s8 + $0xbb8] sm:%s24190_s4] %v12596_v3 }
 0x9e9   : > { %v12598_v28 = vld [vmem:[%s22102_s12 + $0x720] sm:%s24190_s4]  ;;  %v12600_v43 = vld [vmem:[%s22102_s12 + $0x738] sm:%s24190_s4] }
 0x9ea   : > { %12599 = vst [vmem:[%s23255_s8 + $0xbe0] sm:%s24190_s4] %v12598_v28  ;;  %12601 = vst [vmem:[%s23255_s8 + $0xc08] sm:%s24190_s4] %v12600_v43 }
 0x9eb   : > { %v12602_v58 = vld [vmem:[%s22102_s12 + $0x750] sm:%s24190_s4]  ;;  %v12604_v10 = vld [vmem:[%s22102_s12 + $0x768] sm:%s24190_s4] }
 0x9ec   : > { %12603 = vst [vmem:[%s23255_s8 + $0xc30] sm:%s24190_s4] %v12602_v58  ;;  %12605 = vst [vmem:[%s23255_s8 + $0xc58] sm:%s24190_s4] %v12604_v10 }
 0x9ed   : > { %v12606_v17 = vld [vmem:[%s22102_s12 + $0x780] sm:%s24190_s4]  ;;  %v12608_v60 = vld [vmem:[%s22102_s12 + $0x798] sm:%s24190_s4] }
 0x9ee   : > { %12607 = vst [vmem:[%s23255_s8 + $0xc80] sm:%s24190_s4] %v12606_v17  ;;  %12609 = vst [vmem:[%s23255_s8 + $0xca8] sm:%s24190_s4] %v12608_v60 }
 0x9ef   : > { %v12610_v9 = vld [vmem:[%s22102_s12 + $0x7b0] sm:%s24190_s4]  ;;  %v12612_v24 = vld [vmem:[%s22102_s12 + $0x7c8] sm:%s24190_s4] }
 0x9f0   : > { %12611 = vst [vmem:[%s23255_s8 + $0xcd0] sm:%s24190_s4] %v12610_v9  ;;  %12613 = vst [vmem:[%s23255_s8 + $0xcf8] sm:%s24190_s4] %v12612_v24 }
 0x9f1   : > { %v12614_v26 = vld [vmem:[%s22102_s12 + $0x7e0] sm:%s24190_s4]  ;;  %v12616_v11 = vld [vmem:[%s22102_s12 + $0x7f8] sm:%s24190_s4] }
 0x9f2   : > { %12615 = vst [vmem:[%s23255_s8 + $0xd20] sm:%s24190_s4] %v12614_v26  ;;  %12617 = vst [vmem:[%s23255_s8 + $0xd48] sm:%s24190_s4] %v12616_v11 }
 0x9f3   : > { %v12618_v12 = vld [vmem:[%s22102_s12 + $0x810] sm:%s24190_s4]  ;;  %v12620_v38 = vld [vmem:[%s22102_s12 + $0x828] sm:%s24190_s4] }
 0x9f4   : > { %12619 = vst [vmem:[%s23255_s8 + $0xd70] sm:%s24190_s4] %v12618_v12  ;;  %12621 = vst [vmem:[%s23255_s8 + $0xd98] sm:%s24190_s4] %v12620_v38 }
 0x9f5   : > { %v12622_v52 = vld [vmem:[%s22102_s12 + $0x840] sm:%s24190_s4]  ;;  %v12624_v23 = vld [vmem:[%s22102_s12 + $0x858] sm:%s24190_s4] }
 0x9f6   : > { %12623 = vst [vmem:[%s23255_s8 + $0xdc0] sm:%s24190_s4] %v12622_v52  ;;  %12625 = vst [vmem:[%s23255_s8 + $0xde8] sm:%s24190_s4] %v12624_v23 }
 0x9f7   : > { %v12626_v59 = vld [vmem:[%s22102_s12 + $0x870] sm:%s24190_s4]  ;;  %v12628_v44 = vld [vmem:[%s22102_s12 + $0x888] sm:%s24190_s4] }
 0x9f8   : > { %12627 = vst [vmem:[%s23255_s8 + $0xe10] sm:%s24190_s4] %v12626_v59  ;;  %12629 = vst [vmem:[%s23255_s8 + $0xe38] sm:%s24190_s4] %v12628_v44 }
 0x9f9   : > { %v12630_v49 = vld [vmem:[%s22102_s12 + $0x8a0] sm:%s24190_s4]  ;;  %v12632_v41 = vld [vmem:[%s22102_s12 + $0x8b8] sm:%s24190_s4] }
 0x9fa   : > { %12631 = vst [vmem:[%s23255_s8 + $0xe60] sm:%s24190_s4] %v12630_v49  ;;  %12633 = vst [vmem:[%s23255_s8 + $0xe88] sm:%s24190_s4] %v12632_v41 }
 0x9fb   : > { %v12634_v18 = vld [vmem:[%s22102_s12 + $0x8d0] sm:%s24190_s4]  ;;  %v12636_v19 = vld [vmem:[%s22102_s12 + $0x8e8] sm:%s24190_s4] }
 0x9fc   : > { %12635 = vst [vmem:[%s23255_s8 + $0xeb0] sm:%s24190_s4] %v12634_v18  ;;  %12637 = vst [vmem:[%s23255_s8 + $0xed8] sm:%s24190_s4] %v12636_v19 }
 0x9fd   : > { %v12638_v6 = vld [vmem:[%s22102_s12 + $0x900] sm:%s24190_s4]  ;;  %v12640_v31 = vld [vmem:[%s22102_s12 + $0x918] sm:%s24190_s4] }
 0x9fe   : > { %12639 = vst [vmem:[%s23255_s8 + $0xf00] sm:%s24190_s4] %v12638_v6  ;;  %12641 = vst [vmem:[%s23255_s8 + $0xf28] sm:%s24190_s4] %v12640_v31 }
 0x9ff   : > { %v12642_v50 = vld [vmem:[%s22102_s12 + $0x930] sm:%s24190_s4]  ;;  %v12644_v16 = vld [vmem:[%s22102_s12 + $0x948] sm:%s24190_s4] }
 0xa00   : > { %12643 = vst [vmem:[%s23255_s8 + $0xf50] sm:%s24190_s4] %v12642_v50  ;;  %12645 = vst [vmem:[%s23255_s8 + $0xf78] sm:%s24190_s4] %v12644_v16 }
 0xa01   : > { %v12646_v7 = vld [vmem:[%s22102_s12 + $0x960] sm:%s24190_s4]  ;;  %v12648_v29 = vld [vmem:[%s22102_s12 + $0x978] sm:%s24190_s4] }
 0xa02   : > { %12647 = vst [vmem:[%s23255_s8 + $0xfa0] sm:%s24190_s4] %v12646_v7  ;;  %12649 = vst [vmem:[%s23255_s8 + $0xfc8] sm:%s24190_s4] %v12648_v29 }
 0xa03 PF: > { %s13_s18 = sadd.s32 1, %s17539_s18   ;;  %s26937_s12 = smov %s17519_s13 }
 0xa04   : > { %p10_p9 = scmp.ge.s32.totalorder %s13_s18, 6   ;;  %s26938_s13 = smov %s17687_s27 }
 0xa05   : > { %s26939_s14 = smov %s17531_s16  ;;  %s26940_s15 = smov %s17535_s17 }
 0xa06   : > { %s26941_s16 = smov %s26944_s19  ;;  %s26942_s17 = smov %s26948_s20 }
 0xa07   :  { %12 = sbr.rel (!%p10_p9) target bundleno = 6 (0x6), region = 279 }

</bundles_post_ra>
